<compile_context>
chip_gen: v6e
topology: v6e:2x2x1
jax: 0.10.0
libtpu: 0.0.40
codegen_flags: <defaults>
</compile_context>

<pallas_src>
import math

import jax
import jax.numpy as jnp
from jax.experimental import pallas as pl
from jax.experimental.pallas import tpu as pltpu

# ----------------------------- configuration --------------------------------
VOCAB2IDX = {"<start>": 0, "<stop>": 1, "C": 2, "N": 3, "O": 4, "=": 5}
START_IDX = VOCAB2IDX["<start>"]
STOP_IDX = VOCAB2IDX["<stop>"]
VOCAB_SIZE = len(VOCAB2IDX)

MODEL_DIM = 32                 # D
BOTTLENECK = 2                 # b
ENC_DIM = 2 * MODEL_DIM        # encoder embedding dim = 2*D
ENC_NHEAD = 8
DEC_NHEAD = 8
ENC_FF = 64
DEC_FF = 64
ENC_LAYERS = 2
DEC_LAYERS = 2
MIN_POSTERIOR_STD = 1e-4
LN_EPS = 1e-5
NEG_INF = -1e9

LOGIT_LANES = 64                            # logits in lanes [0:64] (valid [:VOCAB_SIZE])
OUT_LANES = LOGIT_LANES + 2 * MODEL_DIM     # | logits(64) | mu(32) | logvar(32) | = 128
ACT_LANES = ENC_DIM + 2 * MODEL_DIM         # | enc_in(64) | dec_in(32) | eps(32) | = 128
assert OUT_LANES == 128 and ACT_LANES == 128


# ------------------------ weight-slab layout (static) ------------------------
_ENC_W_LAYOUT = (("wqkv", ENC_DIM, 3 * ENC_DIM), ("wo", ENC_DIM, ENC_DIM),
                 ("ff1", ENC_DIM, ENC_FF), ("ff2", ENC_FF, ENC_DIM))
_DEC_W_LAYOUT = (("sa_wqkv", MODEL_DIM, 3 * MODEL_DIM), ("sa_wo", MODEL_DIM, MODEL_DIM),
                 ("ca_wq", MODEL_DIM, MODEL_DIM), ("ca_wkv", MODEL_DIM, 2 * MODEL_DIM),
                 ("ca_wo", MODEL_DIM, MODEL_DIM), ("ff1", MODEL_DIM, DEC_FF),
                 ("ff2", DEC_FF, MODEL_DIM))
_ENC_V_LAYOUT = (("bqkv", 1, 3 * ENC_DIM), ("bo", 1, ENC_DIM), ("ff1_b", 1, ENC_FF),
                 ("ff2_b", 1, ENC_DIM), ("ln1_g", 1, ENC_DIM), ("ln1_b", 1, ENC_DIM),
                 ("ln2_g", 1, ENC_DIM), ("ln2_b", 1, ENC_DIM))
_DEC_V_LAYOUT = (("sa_bqkv", 1, 3 * MODEL_DIM), ("sa_bo", 1, MODEL_DIM),
                 ("ca_bq", 1, MODEL_DIM), ("ca_bkv", 1, 2 * MODEL_DIM),
                 ("ca_bo", 1, MODEL_DIM), ("ff1_b", 1, DEC_FF), ("ff2_b", 1, MODEL_DIM),
                 ("ln1_g", 1, MODEL_DIM), ("ln1_b", 1, MODEL_DIM),
                 ("ln2_g", 1, MODEL_DIM), ("ln2_b", 1, MODEL_DIM),
                 ("ln3_g", 1, MODEL_DIM), ("ln3_b", 1, MODEL_DIM))


def _round_up(x, m):
    return ((x + m - 1) // m) * m


def _layout_offsets(layout, num_layers, start=0):
    off, r = {}, start
    for l in range(num_layers):
        for name, rows, _ in layout:
            off[(l, name)] = r
            r += rows
    return off, r


_ENC_W_OFF, _used = _layout_offsets(_ENC_W_LAYOUT, ENC_LAYERS)
ENC_W_ROWS, ENC_W_LANES = _round_up(_used, 8), 3 * ENC_DIM
_DEC_W_OFF, _used = _layout_offsets(_DEC_W_LAYOUT, DEC_LAYERS)
UNEMB_ROW = _used
DEC_W_ROWS, DEC_W_LANES = _round_up(UNEMB_ROW + MODEL_DIM, 8), 128
_ENC_V_OFF, _used = _layout_offsets(_ENC_V_LAYOUT, ENC_LAYERS)
_DEC_V_OFF, _used = _layout_offsets(_DEC_V_LAYOUT, DEC_LAYERS, start=_used)
VEC_ROWS, VEC_LANES = _round_up(_used, 8), 3 * ENC_DIM

_ENC_W_SHAPE = {n: (r, c) for n, r, c in _ENC_W_LAYOUT}
_DEC_W_SHAPE = {n: (r, c) for n, r, c in _DEC_W_LAYOUT}
_ENC_V_COLS = {n: c for n, _, c in _ENC_V_LAYOUT}
_DEC_V_COLS = {n: c for n, _, c in _DEC_V_LAYOUT}


# ------------------------- in-kernel helper math -----------------------------
def _layernorm(x, gamma, beta):
    mean = jnp.mean(x, axis=-1, keepdims=True)
    xc = x - mean
    var = jnp.mean(xc * xc, axis=-1, keepdims=True)
    return xc * jax.lax.rsqrt(var + LN_EPS) * gamma + beta


def _softmax_rows(s):
    s = s - jnp.max(s, axis=-1, keepdims=True)
    p = jnp.exp(s)
    return p * pl.reciprocal(jnp.sum(p, axis=-1, keepdims=True), approx=True)


def _softplus(x):
    return jnp.maximum(x, 0.0) + jnp.log(1.0 + jnp.exp(-jnp.abs(x)))


def _mha(q, k, v, bias, wo, nhead):
    """Multi-head attention with the output projection folded into the
    per-head accumulation (no per-head concatenate).  The 1/sqrt(dh) scale is
    already folded into the packed Q projection weights/biases.  `bias` is an
    additive (Mq, Mk) mask (block-diagonal over the folded batch)."""
    dh = q.shape[-1] // nhead
    out = None
    for h in range(nhead):
        lo = h * dh
        s = jax.lax.dot_general(q[:, lo:lo + dh], k[:, lo:lo + dh],
                                (((1,), (1,)), ((), ())),
                                preferred_element_type=jnp.float32)
        p = _softmax_rows(s + bias)
        oh = jnp.dot(p, v[:, lo:lo + dh], preferred_element_type=jnp.float32)
        c = jnp.dot(oh, wo[lo:lo + dh, :], preferred_element_type=jnp.float32)
        out = c if out is None else out + c
    return out


# ------------------------------ fused kernel ---------------------------------
def _vae_fwd_kernel(act_ref, bias_ref, enc_w_ref, dec_w_ref, vec_ref, out_ref):
    E, D = ENC_DIM, MODEL_DIM
    M = out_ref.shape[0]                       # Bb * S rows (batch folded)

    def ew(l, name):
        r0, (rows, cols) = _ENC_W_OFF[(l, name)], _ENC_W_SHAPE[name]
        return enc_w_ref[r0:r0 + rows, 0:cols]

    def dw(l, name):
        r0, (rows, cols) = _DEC_W_OFF[(l, name)], _DEC_W_SHAPE[name]
        return dec_w_ref[r0:r0 + rows, 0:cols]

    def ev(l, name):
        r0 = _ENC_V_OFF[(l, name)]
        return vec_ref[r0:r0 + 1, 0:_ENC_V_COLS[name]]

    def dv(l, name):
        r0 = _DEC_V_OFF[(l, name)]
        return vec_ref[r0:r0 + 1, 0:_DEC_V_COLS[name]]

    x = act_ref[:, 0:E]                        # (M, E)  encoder input
    y = act_ref[:, E:E + D]                    # (M, D)  decoder input
    eps = act_ref[:, E + D:E + 2 * D]          # (M, D)  posterior noise (0 past bottleneck)

    enc_bias = bias_ref[0:M, :]                # key padding   (block-diag over folded batch)
    dec_bias = bias_ref[M:2 * M, :]            # causal        (block-diag)
    ca_bias = bias_ref[2 * M:3 * M, :]         # latent keys   (block-diag, pos < bottleneck)

    # -------------------------------- encoder -------------------------------
    for l in range(ENC_LAYERS):
        qkv = (jnp.dot(x, ew(l, "wqkv"), preferred_element_type=jnp.float32)
               + ev(l, "bqkv"))
        attn = _mha(qkv[:, 0:E], qkv[:, E:2 * E], qkv[:, 2 * E:3 * E],
                    enc_bias, ew(l, "wo"), ENC_NHEAD) + ev(l, "bo")
        x = _layernorm(x + attn, ev(l, "ln1_g"), ev(l, "ln1_b"))
        h = jnp.maximum(jnp.dot(x, ew(l, "ff1"), preferred_element_type=jnp.float32)
                        + ev(l, "ff1_b"), 0.0)
        h = jnp.dot(h, ew(l, "ff2"), preferred_element_type=jnp.float32) + ev(l, "ff2_b")
        x = _layernorm(x + h, ev(l, "ln2_g"), ev(l, "ln2_b"))

    # -------------------- posterior (mu, sigma, sampled z) ------------------
    # Computed for every row; rows >= BOTTLENECK per batch are never used: the
    # cross-attention bias masks them and the JAX wrapper slices only the
    # first BOTTLENECK rows of mu / logvar.
    mu_all = x[:, 0:D]
    sigma_all = MIN_POSTERIOR_STD + _softplus(x[:, D:2 * D])
    z = mu_all + eps * sigma_all               # (M, D) latent memory, row-aligned with x
    logvar_all = 2.0 * jnp.log(sigma_all)

    # -------------------------------- decoder -------------------------------
    for l in range(DEC_LAYERS):
        qkv = (jnp.dot(y, dw(l, "sa_wqkv"), preferred_element_type=jnp.float32)
               + dv(l, "sa_bqkv"))
        sa = _mha(qkv[:, 0:D], qkv[:, D:2 * D], qkv[:, 2 * D:3 * D],
                  dec_bias, dw(l, "sa_wo"), DEC_NHEAD) + dv(l, "sa_bo")
        y = _layernorm(y + sa, dv(l, "ln1_g"), dv(l, "ln1_b"))

        q = jnp.dot(y, dw(l, "ca_wq"), preferred_element_type=jnp.float32) + dv(l, "ca_bq")
        kv = jnp.dot(z, dw(l, "ca_wkv"), preferred_element_type=jnp.float32) + dv(l, "ca_bkv")
        ca = _mha(q, kv[:, 0:D], kv[:, D:2 * D],
                  ca_bias, dw(l, "ca_wo"), DEC_NHEAD) + dv(l, "ca_bo")
        y = _layernorm(y + ca, dv(l, "ln2_g"), dv(l, "ln2_b"))

        h = jnp.maximum(jnp.dot(y, dw(l, "ff1"), preferred_element_type=jnp.float32)
                        + dv(l, "ff1_b"), 0.0)
        h = jnp.dot(h, dw(l, "ff2"), preferred_element_type=jnp.float32) + dv(l, "ff2_b")
        y = _layernorm(y + h, dv(l, "ln3_g"), dv(l, "ln3_b"))

    # ---------------- single lane-dense (M, 128) output slab ----------------
    unemb = dec_w_ref[UNEMB_ROW:UNEMB_ROW + D, 0:LOGIT_LANES]   # zero-padded past vocab
    out_ref[:, 0:LOGIT_LANES] = jnp.dot(y, unemb, preferred_element_type=jnp.float32)
    out_ref[:, LOGIT_LANES:LOGIT_LANES + D] = mu_all
    out_ref[:, LOGIT_LANES + D:OUT_LANES] = logvar_all


# ------------------------------ JAX-side glue --------------------------------
def sinusoidal_pe(S, E):
    pos = jnp.arange(S, dtype=jnp.float32)[:, None]
    div = jnp.exp(jnp.arange(0, E, 2, dtype=jnp.float32) * (-math.log(10000.0) / E))
    pe = jnp.zeros((S, E), jnp.float32)
    pe = pe.at[:, 0::2].set(jnp.sin(pos * div))
    pe = pe.at[:, 1::2].set(jnp.cos(pos * div))
    return pe


def generate_pad_mask(tokens):
    """Mask all but the first <stop> token per row (True = ignore)."""
    mask = tokens == STOP_IDX
    idxs = jnp.argmax(mask, axis=-1)
    mask = mask.at[jnp.arange(tokens.shape[0]), idxs].set(False)
    return mask


def _num_grid_steps(B):
    """One grid step per TensorCore (v7x: 2 TCs/chip, v5e/v6e: 1 TC/chip)."""
    try:
        kind = jax.devices()[0].device_kind.lower()
    except Exception:
        kind = ""
    n_tc = 2 if "v7" in kind else 1
    return n_tc if (B % n_tc == 0) else 1


def _build_bias(pad_mask, G, Bb, S):
    """Additive attention-bias slab of shape (G*3M, M), M = Bb*S.
    Rows [0:M)=encoder key-padding, [M:2M)=decoder causal, [2M:3M)=cross-attn."""
    M = Bb * S
    batch_id = jnp.repeat(jnp.arange(Bb, dtype=jnp.int32), S)
    pos = jnp.tile(jnp.arange(S, dtype=jnp.int32), Bb)
    same = batch_id[:, None] == batch_id[None, :]
    causal = pos[:, None] >= pos[None, :]
    key_pad = pad_mask.reshape(G, M)
    enc_ok = same[None] & jnp.logical_not(key_pad)[:, None, :]
    dec_ok = jnp.broadcast_to(same & causal, (G, M, M))
    ca_ok = jnp.broadcast_to(same & (pos[None, :] < BOTTLENECK), (G, M, M))
    ok = jnp.concatenate([enc_ok, dec_ok, ca_ok], axis=1)
    return jnp.where(ok, 0.0, NEG_INF).astype(jnp.float32).reshape(G * 3 * M, M)


@jax.jit
def forward(packed, tokens, posterior_eps):
    """Returns (logits (B,S,V), mu (B,b,D), logvar (B,b,D))."""
    tokens = tokens.astype(jnp.int32)
    B, S = tokens.shape
    D, E, V = MODEL_DIM, ENC_DIM, VOCAB_SIZE
    assert S >= BOTTLENECK

    G = _num_grid_steps(B)
    Bb = B // G
    M = Bb * S

    # per-batch activations packed into one lane-dense (B*S, 128) slab
    enc_in = packed["enc_emb"][tokens] + sinusoidal_pe(S, E)[None]          # (B,S,E)
    dec_embed = packed["dec_emb"][tokens[:, :-1]]                           # (B,S-1,D)
    # TODO(synk): torch.full(..., fill_value=start_idx) fills the first decoder
    # position with the raw index VALUE (not the <start> embedding); matched here.
    start_fill = jnp.full((B, 1, D), float(START_IDX), jnp.float32)
    dec_in = jnp.concatenate([start_fill, dec_embed], axis=1) + sinusoidal_pe(S, D)[None]
    eps_full = jnp.zeros((B, S, D), jnp.float32).at[:, :BOTTLENECK, :].set(posterior_eps)
    act = jnp.concatenate([enc_in, dec_in, eps_full], axis=-1).reshape(B * S, ACT_LANES)

    bias = _build_bias(generate_pad_mask(tokens), G, Bb, S)

    in_specs = [
        pl.BlockSpec((M, ACT_LANES), lambda g: (g, 0)),               # activations
        pl.BlockSpec((3 * M, M), lambda g: (g, 0)),                   # attention biases
        pl.BlockSpec((ENC_W_ROWS, ENC_W_LANES), lambda g: (0, 0)),    # encoder weights
        pl.BlockSpec((DEC_W_ROWS, DEC_W_LANES), lambda g: (0, 0)),    # decoder weights
        pl.BlockSpec((VEC_ROWS, VEC_LANES), lambda g: (0, 0)),        # biases / LN vectors
    ]
    out_spec = pl.BlockSpec((M, OUT_LANES), lambda g: (g, 0))

    out = pl.pallas_call(
        _vae_fwd_kernel,
        grid=(G,),
        in_specs=in_specs,
        out_specs=out_spec,
        out_shape=jax.ShapeDtypeStruct((B * S, OUT_LANES), jnp.float32),
        compiler_params=pltpu.CompilerParams(
            dimension_semantics=("parallel",)),
    )(act, bias, packed["enc_w"], packed["dec_w"], packed["vec"])

    out = out.reshape(B, S, OUT_LANES)
    logits = out[:, :, :V]
    mu = out[:, :BOTTLENECK, LOGIT_LANES:LOGIT_LANES + D]
    logvar = out[:, :BOTTLENECK, LOGIT_LANES + D:OUT_LANES]
    return logits, mu, logvar


# --------------------------- parameter construction --------------------------
def _dense(key, shape, scale=0.02):
    return scale * jax.random.normal(key, shape, dtype=jnp.float32)


def _ln_init(L, N):
    # (L, 2, N): row 0 = gamma (ones), row 1 = beta (zeros)
    return jnp.stack([jnp.ones((L, N), jnp.float32),
                      jnp.zeros((L, N), jnp.float32)], axis=1)


def init_params(key):
    keys = jax.random.split(key, 16)
    E, D, V = ENC_DIM, MODEL_DIM, VOCAB_SIZE
    Le, Ld = ENC_LAYERS, DEC_LAYERS
    enc = {
        "wqkv": _dense(keys[3], (Le, E, 3 * E)),      # fused Q|K|V projection
        "bqkv": jnp.zeros((Le, 1, 3 * E), jnp.float32),
        "wo": _dense(keys[4], (Le, E, E)),
        "bo": jnp.zeros((Le, 1, E), jnp.float32),
        "ln1": _ln_init(Le, E),
        "ln2": _ln_init(Le, E),
        "ff1_w": _dense(keys[5], (Le, E, ENC_FF)),
        "ff1_b": jnp.zeros((Le, 1, ENC_FF), jnp.float32),
        "ff2_w": _dense(keys[6], (Le, ENC_FF, E)),
        "ff2_b": jnp.zeros((Le, 1, E), jnp.float32),
    }
    dec = {
        "sa_wqkv": _dense(keys[7], (Ld, D, 3 * D)),   # fused Q|K|V (self-attn)
        "sa_bqkv": jnp.zeros((Ld, 1, 3 * D), jnp.float32),
        "sa_wo": _dense(keys[8], (Ld, D, D)),
        "sa_bo": jnp.zeros((Ld, 1, D), jnp.float32),
        "ca_wq": _dense(keys[9], (Ld, D, D)),
        "ca_bq": jnp.zeros((Ld, 1, D), jnp.float32),
        "ca_wkv": _dense(keys[10], (Ld, D, 2 * D)),   # fused K|V (cross-attn)
        "ca_bkv": jnp.zeros((Ld, 1, 2 * D), jnp.float32),
        "ca_wo": _dense(keys[11], (Ld, D, D)),
        "ca_bo": jnp.zeros((Ld, 1, D), jnp.float32),
        "ln1": _ln_init(Ld, D),
        "ln2": _ln_init(Ld, D),
        "ln3": _ln_init(Ld, D),
        "ff1_w": _dense(keys[12], (Ld, D, DEC_FF)),
        "ff1_b": jnp.zeros((Ld, 1, DEC_FF), jnp.float32),
        "ff2_w": _dense(keys[13], (Ld, DEC_FF, D)),
        "ff2_b": jnp.zeros((Ld, 1, D), jnp.float32),
    }
    return {
        "enc_emb": _dense(keys[0], (V, E), scale=1.0),
        "dec_emb": _dense(keys[1], (V, D), scale=1.0),
        "unembed": _dense(keys[2], (D, V), scale=1.0),
        "enc": enc,
        "dec": dec,
    }


def pack_params(params):
    """Pack all layer weights into 3 lane-dense f32 slabs (done once, host side).
    The 1/sqrt(head_dim) attention scale is folded into the packed Q weights."""
    E, D = ENC_DIM, MODEL_DIM
    enc, dec = params["enc"], params["dec"]
    enc_scale = 1.0 / math.sqrt(E // ENC_NHEAD)
    dec_scale = 1.0 / math.sqrt(D // DEC_NHEAD)

    def put(slab, row, arr):
        r, c = arr.shape
        return slab.at[row:row + r, 0:c].set(arr.astype(jnp.float32))

    enc_w = jnp.zeros((ENC_W_ROWS, ENC_W_LANES), jnp.float32)
    dec_w = jnp.zeros((DEC_W_ROWS, DEC_W_LANES), jnp.float32)
    vec = jnp.zeros((VEC_ROWS, VEC_LANES), jnp.float32)

    for l in range(ENC_LAYERS):
        wqkv = enc["wqkv"][l].at[:, :E].multiply(enc_scale)
        bqkv = enc["bqkv"][l].at[:, :E].multiply(enc_scale)
        enc_w = put(enc_w, _ENC_W_OFF[(l, "wqkv")], wqkv)
        enc_w = put(enc_w, _ENC_W_OFF[(l, "wo")], enc["wo"][l])
        enc_w = put(enc_w, _ENC_W_OFF[(l, "ff1")], enc["ff1_w"][l])
        enc_w = put(enc_w, _ENC_W_OFF[(l, "ff2")], enc["ff2_w"][l])
        vec = put(vec, _ENC_V_OFF[(l, "bqkv")], bqkv)
        vec = put(vec, _ENC_V_OFF[(l, "bo")], enc["bo"][l])
        vec = put(vec, _ENC_V_OFF[(l, "ff1_b")], enc["ff1_b"][l])
        vec = put(vec, _ENC_V_OFF[(l, "ff2_b")], enc["ff2_b"][l])
        vec = put(vec, _ENC_V_OFF[(l, "ln1_g")], enc["ln1"][l, 0:1])
        vec = put(vec, _ENC_V_OFF[(l, "ln1_b")], enc["ln1"][l, 1:2])
        vec = put(vec, _ENC_V_OFF[(l, "ln2_g")], enc["ln2"][l, 0:1])
        vec = put(vec, _ENC_V_OFF[(l, "ln2_b")], enc["ln2"][l, 1:2])

    for l in range(DEC_LAYERS):
        sa_wqkv = dec["sa_wqkv"][l].at[:, :D].multiply(dec_scale)
        sa_bqkv = dec["sa_bqkv"][l].at[:, :D].multiply(dec_scale)
        dec_w = put(dec_w, _DEC_W_OFF[(l, "sa_wqkv")], sa_wqkv)
        dec_w = put(dec_w, _DEC_W_OFF[(l, "sa_wo")], dec["sa_wo"][l])
        dec_w = put(dec_w, _DEC_W_OFF[(l, "ca_wq")], dec["ca_wq"][l] * dec_scale)
        dec_w = put(dec_w, _DEC_W_OFF[(l, "ca_wkv")], dec["ca_wkv"][l])
        dec_w = put(dec_w, _DEC_W_OFF[(l, "ca_wo")], dec["ca_wo"][l])
        dec_w = put(dec_w, _DEC_W_OFF[(l, "ff1")], dec["ff1_w"][l])
        dec_w = put(dec_w, _DEC_W_OFF[(l, "ff2")], dec["ff2_w"][l])
        vec = put(vec, _DEC_V_OFF[(l, "sa_bqkv")], sa_bqkv)
        vec = put(vec, _DEC_V_OFF[(l, "sa_bo")], dec["sa_bo"][l])
        vec = put(vec, _DEC_V_OFF[(l, "ca_bq")], dec["ca_bq"][l] * dec_scale)
        vec = put(vec, _DEC_V_OFF[(l, "ca_bkv")], dec["ca_bkv"][l])
        vec = put(vec, _DEC_V_OFF[(l, "ca_bo")], dec["ca_bo"][l])
        vec = put(vec, _DEC_V_OFF[(l, "ff1_b")], dec["ff1_b"][l])
        vec = put(vec, _DEC_V_OFF[(l, "ff2_b")], dec["ff2_b"][l])
        vec = put(vec, _DEC_V_OFF[(l, "ln1_g")], dec["ln1"][l, 0:1])
        vec = put(vec, _DEC_V_OFF[(l, "ln1_b")], dec["ln1"][l, 1:2])
        vec = put(vec, _DEC_V_OFF[(l, "ln2_g")], dec["ln2"][l, 0:1])
        vec = put(vec, _DEC_V_OFF[(l, "ln2_b")], dec["ln2"][l, 1:2])
        vec = put(vec, _DEC_V_OFF[(l, "ln3_g")], dec["ln3"][l, 0:1])
        vec = put(vec, _DEC_V_OFF[(l, "ln3_b")], dec["ln3"][l, 1:2])

    dec_w = put(dec_w, UNEMB_ROW, params["unembed"])     # lanes [VOCAB:64] stay zero

    return {"enc_w": enc_w, "dec_w": dec_w, "vec": vec,
            "enc_emb": params["enc_emb"], "dec_emb": params["dec_emb"]}


# ---------------------------------- main --------------------------------------
if __name__ == "__main__":
    key = jax.random.PRNGKey(0)
    k_tok, k_param, k_noise = jax.random.split(key, 3)

    B, S = 2, 8
    tokens = jax.random.randint(k_tok, (B, S), 2, VOCAB_SIZE, dtype=jnp.int32)
    tokens = tokens.at[:, -1].set(STOP_IDX)      # every row ends with <stop>
    tokens = tokens.at[0, 4].set(STOP_IDX)       # extra stop to exercise pad mask

    params = init_params(k_param)
    packed = pack_params(params)
    posterior_eps = jax.random.normal(k_noise, (B, BOTTLENECK, MODEL_DIM),
                                      dtype=jnp.float32)

    logits, mu, logvar = forward(packed, tokens, posterior_eps)
    jax.block_until_ready((logits, mu, logvar))

    assert logits.shape == (B, S, VOCAB_SIZE)
    assert mu.shape == (B, BOTTLENECK, MODEL_DIM)
    assert logvar.shape == (B, BOTTLENECK, MODEL_DIM)
    assert bool(jnp.all(jnp.isfinite(logits)))
    assert bool(jnp.all(jnp.isfinite(mu)))
    assert bool(jnp.all(jnp.isfinite(logvar)))
    print("KERNEL_OK")
</pallas_src>

<mosaic_0001>
module attributes {stable_mosaic.version = 11 : i64} {
  func.func @_vae_fwd_kernel(%arg0: i32, %arg1: memref<16x128xf32, #tpu.memory_space<vmem>>, %arg2: memref<48x16xf32, #tpu.memory_space<vmem>>, %arg3: memref<512x192xf32, #tpu.memory_space<vmem>>, %arg4: memref<544x128xf32, #tpu.memory_space<vmem>>, %arg5: memref<48x192xf32, #tpu.memory_space<vmem>>, %arg6: memref<16x128xf32, #tpu.memory_space<vmem>>) attributes {dimension_semantics = [#tpu.dimension_semantics<parallel>], iteration_bounds = array<i64: 1>, scalar_prefetch = 0 : i64, scratch_operands = 0 : i64, tpu.core_type = #tpu.core_type<tc>, window_params = [{transform_indices = @transform_0, window_bounds = array<i64: 16, 128>}, {transform_indices = @transform_1, window_bounds = array<i64: 48, 16>}, {pipeline_mode = #tpu.pipeline_mode<synchronous>, transform_indices = @transform_2, window_bounds = array<i64: 512, 192>}, {pipeline_mode = #tpu.pipeline_mode<synchronous>, transform_indices = @transform_3, window_bounds = array<i64: 544, 128>}, {pipeline_mode = #tpu.pipeline_mode<synchronous>, transform_indices = @transform_4, window_bounds = array<i64: 48, 192>}, {transform_indices = @transform_5, window_bounds = array<i64: 16, 128>}]} {
    %c0 = arith.constant 0 : index
    %c0_0 = arith.constant 0 : index
    %0 = vector.load %arg1[%c0, %c0_0] : memref<16x128xf32, #tpu.memory_space<vmem>>, vector<16x64xf32>
    %c0_1 = arith.constant 0 : index
    %c64 = arith.constant 64 : index
    %1 = vector.load %arg1[%c0_1, %c64] : memref<16x128xf32, #tpu.memory_space<vmem>>, vector<16x32xf32>
    %c0_2 = arith.constant 0 : index
    %c96 = arith.constant 96 : index
    %2 = vector.load %arg1[%c0_2, %c96] : memref<16x128xf32, #tpu.memory_space<vmem>>, vector<16x32xf32>
    %c0_3 = arith.constant 0 : index
    %c0_4 = arith.constant 0 : index
    %3 = vector.load %arg2[%c0_3, %c0_4] : memref<48x16xf32, #tpu.memory_space<vmem>>, vector<16x16xf32>
    %c16 = arith.constant 16 : index
    %c0_5 = arith.constant 0 : index
    %4 = vector.load %arg2[%c16, %c0_5] : memref<48x16xf32, #tpu.memory_space<vmem>>, vector<16x16xf32>
    %c32 = arith.constant 32 : index
    %c0_6 = arith.constant 0 : index
    %5 = vector.load %arg2[%c32, %c0_6] : memref<48x16xf32, #tpu.memory_space<vmem>>, vector<16x16xf32>
    %c0_7 = arith.constant 0 : index
    %c0_8 = arith.constant 0 : index
    %6 = vector.load %arg3[%c0_7, %c0_8] : memref<512x192xf32, #tpu.memory_space<vmem>>, vector<64x192xf32>
    %cst = arith.constant dense<0.000000e+00> : vector<16x192xf32>
    %7 = tpu.matmul %0, %6, %cst {dimension_numbers = #tpu.dot_dimension_numbers<[1], [0], [0], [1], [0, 0, 1, 1], [], []>} : vector<16x64xf32>, vector<64x192xf32>, vector<16x192xf32> -> vector<16x192xf32>
    %c0_9 = arith.constant 0 : index
    %c0_10 = arith.constant 0 : index
    %8 = vector.load %arg5[%c0_9, %c0_10] : memref<48x192xf32, #tpu.memory_space<vmem>>, vector<1x192xf32>
    %9 = vector.broadcast %8 : vector<1x192xf32> to vector<16x192xf32>
    %10 = arith.addf %7, %9 : vector<16x192xf32>
    %11 = vector.extract_strided_slice %10 {offsets = [0, 0], sizes = [16, 64], strides = [1, 1]} : vector<16x192xf32> to vector<16x64xf32>
    %12 = vector.extract_strided_slice %10 {offsets = [0, 64], sizes = [16, 64], strides = [1, 1]} : vector<16x192xf32> to vector<16x64xf32>
    %13 = vector.extract_strided_slice %10 {offsets = [0, 128], sizes = [16, 64], strides = [1, 1]} : vector<16x192xf32> to vector<16x64xf32>
    %c64_11 = arith.constant 64 : index
    %c0_12 = arith.constant 0 : index
    %14 = vector.load %arg3[%c64_11, %c0_12] : memref<512x192xf32, #tpu.memory_space<vmem>>, vector<64x64xf32>
    %15 = vector.extract_strided_slice %11 {offsets = [0, 0], sizes = [16, 8], strides = [1, 1]} : vector<16x64xf32> to vector<16x8xf32>
    %16 = vector.extract_strided_slice %12 {offsets = [0, 0], sizes = [16, 8], strides = [1, 1]} : vector<16x64xf32> to vector<16x8xf32>
    %cst_13 = arith.constant dense<0.000000e+00> : vector<16x16xf32>
    %17 = tpu.matmul %15, %16, %cst_13 {dimension_numbers = #tpu.dot_dimension_numbers<[1], [1], [0], [0], [0, 0, 1, 0], [], []>} : vector<16x8xf32>, vector<16x8xf32>, vector<16x16xf32> -> vector<16x16xf32>
    %18 = arith.addf %17, %3 : vector<16x16xf32>
    %cst_14 = arith.constant dense<0xFF800000> : vector<16xf32>
    %19 = vector.multi_reduction <maximumf>, %18, %cst_14 [1] : vector<16x16xf32> to vector<16xf32>
    %20 = vector.shape_cast %19 : vector<16xf32> to vector<16x1xf32>
    %21 = vector.broadcast %20 : vector<16x1xf32> to vector<16x16xf32>
    %22 = arith.subf %18, %21 : vector<16x16xf32>
    %23 = math.exp %22 : vector<16x16xf32>
    %cst_15 = arith.constant dense<0.000000e+00> : vector<16xf32>
    %24 = vector.multi_reduction <add>, %23, %cst_15 [1] : vector<16x16xf32> to vector<16xf32>
    %25 = vector.shape_cast %24 : vector<16xf32> to vector<16x1xf32>
    %26 = tpu.reciprocal %25 {approx = true} : vector<16x1xf32> -> vector<16x1xf32>
    %27 = vector.broadcast %26 : vector<16x1xf32> to vector<16x16xf32>
    %28 = arith.mulf %23, %27 : vector<16x16xf32>
    %29 = vector.extract_strided_slice %13 {offsets = [0, 0], sizes = [16, 8], strides = [1, 1]} : vector<16x64xf32> to vector<16x8xf32>
    %cst_16 = arith.constant dense<0.000000e+00> : vector<16x8xf32>
    %30 = tpu.matmul %28, %29, %cst_16 {dimension_numbers = #tpu.dot_dimension_numbers<[1], [0], [0], [1], [0, 0, 1, 1], [], []>} : vector<16x16xf32>, vector<16x8xf32>, vector<16x8xf32> -> vector<16x8xf32>
    %31 = vector.extract_strided_slice %14 {offsets = [0, 0], sizes = [8, 64], strides = [1, 1]} : vector<64x64xf32> to vector<8x64xf32>
    %cst_17 = arith.constant dense<0.000000e+00> : vector<16x64xf32>
    %32 = tpu.matmul %30, %31, %cst_17 {dimension_numbers = #tpu.dot_dimension_numbers<[1], [0], [0], [1], [0, 0, 1, 1], [], []>} : vector<16x8xf32>, vector<8x64xf32>, vector<16x64xf32> -> vector<16x64xf32>
    %33 = vector.extract_strided_slice %11 {offsets = [0, 8], sizes = [16, 8], strides = [1, 1]} : vector<16x64xf32> to vector<16x8xf32>
    %34 = vector.extract_strided_slice %12 {offsets = [0, 8], sizes = [16, 8], strides = [1, 1]} : vector<16x64xf32> to vector<16x8xf32>
    %cst_18 = arith.constant dense<0.000000e+00> : vector<16x16xf32>
    %35 = tpu.matmul %33, %34, %cst_18 {dimension_numbers = #tpu.dot_dimension_numbers<[1], [1], [0], [0], [0, 0, 1, 0], [], []>} : vector<16x8xf32>, vector<16x8xf32>, vector<16x16xf32> -> vector<16x16xf32>
    %36 = arith.addf %35, %3 : vector<16x16xf32>
    %cst_19 = arith.constant dense<0xFF800000> : vector<16xf32>
    %37 = vector.multi_reduction <maximumf>, %36, %cst_19 [1] : vector<16x16xf32> to vector<16xf32>
    %38 = vector.shape_cast %37 : vector<16xf32> to vector<16x1xf32>
    %39 = vector.broadcast %38 : vector<16x1xf32> to vector<16x16xf32>
    %40 = arith.subf %36, %39 : vector<16x16xf32>
    %41 = math.exp %40 : vector<16x16xf32>
    %cst_20 = arith.constant dense<0.000000e+00> : vector<16xf32>
    %42 = vector.multi_reduction <add>, %41, %cst_20 [1] : vector<16x16xf32> to vector<16xf32>
    %43 = vector.shape_cast %42 : vector<16xf32> to vector<16x1xf32>
    %44 = tpu.reciprocal %43 {approx = true} : vector<16x1xf32> -> vector<16x1xf32>
    %45 = vector.broadcast %44 : vector<16x1xf32> to vector<16x16xf32>
    %46 = arith.mulf %41, %45 : vector<16x16xf32>
    %47 = vector.extract_strided_slice %13 {offsets = [0, 8], sizes = [16, 8], strides = [1, 1]} : vector<16x64xf32> to vector<16x8xf32>
    %cst_21 = arith.constant dense<0.000000e+00> : vector<16x8xf32>
    %48 = tpu.matmul %46, %47, %cst_21 {dimension_numbers = #tpu.dot_dimension_numbers<[1], [0], [0], [1], [0, 0, 1, 1], [], []>} : vector<16x16xf32>, vector<16x8xf32>, vector<16x8xf32> -> vector<16x8xf32>
    %49 = vector.extract_strided_slice %14 {offsets = [8, 0], sizes = [8, 64], strides = [1, 1]} : vector<64x64xf32> to vector<8x64xf32>
    %cst_22 = arith.constant dense<0.000000e+00> : vector<16x64xf32>
    %50 = tpu.matmul %48, %49, %cst_22 {dimension_numbers = #tpu.dot_dimension_numbers<[1], [0], [0], [1], [0, 0, 1, 1], [], []>} : vector<16x8xf32>, vector<8x64xf32>, vector<16x64xf32> -> vector<16x64xf32>
    %51 = arith.addf %32, %50 : vector<16x64xf32>
    %52 = vector.extract_strided_slice %11 {offsets = [0, 16], sizes = [16, 8], strides = [1, 1]} : vector<16x64xf32> to vector<16x8xf32>
    %53 = vector.extract_strided_slice %12 {offsets = [0, 16], sizes = [16, 8], strides = [1, 1]} : vector<16x64xf32> to vector<16x8xf32>
    %cst_23 = arith.constant dense<0.000000e+00> : vector<16x16xf32>
    %54 = tpu.matmul %52, %53, %cst_23 {dimension_numbers = #tpu.dot_dimension_numbers<[1], [1], [0], [0], [0, 0, 1, 0], [], []>} : vector<16x8xf32>, vector<16x8xf32>, vector<16x16xf32> -> vector<16x16xf32>
    %55 = arith.addf %54, %3 : vector<16x16xf32>
    %cst_24 = arith.constant dense<0xFF800000> : vector<16xf32>
    %56 = vector.multi_reduction <maximumf>, %55, %cst_24 [1] : vector<16x16xf32> to vector<16xf32>
    %57 = vector.shape_cast %56 : vector<16xf32> to vector<16x1xf32>
    %58 = vector.broadcast %57 : vector<16x1xf32> to vector<16x16xf32>
    %59 = arith.subf %55, %58 : vector<16x16xf32>
    %60 = math.exp %59 : vector<16x16xf32>
    %cst_25 = arith.constant dense<0.000000e+00> : vector<16xf32>
    %61 = vector.multi_reduction <add>, %60, %cst_25 [1] : vector<16x16xf32> to vector<16xf32>
    %62 = vector.shape_cast %61 : vector<16xf32> to vector<16x1xf32>
    %63 = tpu.reciprocal %62 {approx = true} : vector<16x1xf32> -> vector<16x1xf32>
    %64 = vector.broadcast %63 : vector<16x1xf32> to vector<16x16xf32>
    %65 = arith.mulf %60, %64 : vector<16x16xf32>
    %66 = vector.extract_strided_slice %13 {offsets = [0, 16], sizes = [16, 8], strides = [1, 1]} : vector<16x64xf32> to vector<16x8xf32>
    %cst_26 = arith.constant dense<0.000000e+00> : vector<16x8xf32>
    %67 = tpu.matmul %65, %66, %cst_26 {dimension_numbers = #tpu.dot_dimension_numbers<[1], [0], [0], [1], [0, 0, 1, 1], [], []>} : vector<16x16xf32>, vector<16x8xf32>, vector<16x8xf32> -> vector<16x8xf32>
    %68 = vector.extract_strided_slice %14 {offsets = [16, 0], sizes = [8, 64], strides = [1, 1]} : vector<64x64xf32> to vector<8x64xf32>
    %cst_27 = arith.constant dense<0.000000e+00> : vector<16x64xf32>
    %69 = tpu.matmul %67, %68, %cst_27 {dimension_numbers = #tpu.dot_dimension_numbers<[1], [0], [0], [1], [0, 0, 1, 1], [], []>} : vector<16x8xf32>, vector<8x64xf32>, vector<16x64xf32> -> vector<16x64xf32>
    %70 = arith.addf %51, %69 : vector<16x64xf32>
    %71 = vector.extract_strided_slice %11 {offsets = [0, 24], sizes = [16, 8], strides = [1, 1]} : vector<16x64xf32> to vector<16x8xf32>
    %72 = vector.extract_strided_slice %12 {offsets = [0, 24], sizes = [16, 8], strides = [1, 1]} : vector<16x64xf32> to vector<16x8xf32>
    %cst_28 = arith.constant dense<0.000000e+00> : vector<16x16xf32>
    %73 = tpu.matmul %71, %72, %cst_28 {dimension_numbers = #tpu.dot_dimension_numbers<[1], [1], [0], [0], [0, 0, 1, 0], [], []>} : vector<16x8xf32>, vector<16x8xf32>, vector<16x16xf32> -> vector<16x16xf32>
    %74 = arith.addf %73, %3 : vector<16x16xf32>
    %cst_29 = arith.constant dense<0xFF800000> : vector<16xf32>
    %75 = vector.multi_reduction <maximumf>, %74, %cst_29 [1] : vector<16x16xf32> to vector<16xf32>
    %76 = vector.shape_cast %75 : vector<16xf32> to vector<16x1xf32>
    %77 = vector.broadcast %76 : vector<16x1xf32> to vector<16x16xf32>
    %78 = arith.subf %74, %77 : vector<16x16xf32>
    %79 = math.exp %78 : vector<16x16xf32>
    %cst_30 = arith.constant dense<0.000000e+00> : vector<16xf32>
    %80 = vector.multi_reduction <add>, %79, %cst_30 [1] : vector<16x16xf32> to vector<16xf32>
    %81 = vector.shape_cast %80 : vector<16xf32> to vector<16x1xf32>
    %82 = tpu.reciprocal %81 {approx = true} : vector<16x1xf32> -> vector<16x1xf32>
    %83 = vector.broadcast %82 : vector<16x1xf32> to vector<16x16xf32>
    %84 = arith.mulf %79, %83 : vector<16x16xf32>
    %85 = vector.extract_strided_slice %13 {offsets = [0, 24], sizes = [16, 8], strides = [1, 1]} : vector<16x64xf32> to vector<16x8xf32>
    %cst_31 = arith.constant dense<0.000000e+00> : vector<16x8xf32>
    %86 = tpu.matmul %84, %85, %cst_31 {dimension_numbers = #tpu.dot_dimension_numbers<[1], [0], [0], [1], [0, 0, 1, 1], [], []>} : vector<16x16xf32>, vector<16x8xf32>, vector<16x8xf32> -> vector<16x8xf32>
    %87 = vector.extract_strided_slice %14 {offsets = [24, 0], sizes = [8, 64], strides = [1, 1]} : vector<64x64xf32> to vector<8x64xf32>
    %cst_32 = arith.constant dense<0.000000e+00> : vector<16x64xf32>
    %88 = tpu.matmul %86, %87, %cst_32 {dimension_numbers = #tpu.dot_dimension_numbers<[1], [0], [0], [1], [0, 0, 1, 1], [], []>} : vector<16x8xf32>, vector<8x64xf32>, vector<16x64xf32> -> vector<16x64xf32>
    %89 = arith.addf %70, %88 : vector<16x64xf32>
    %90 = vector.extract_strided_slice %11 {offsets = [0, 32], sizes = [16, 8], strides = [1, 1]} : vector<16x64xf32> to vector<16x8xf32>
    %91 = vector.extract_strided_slice %12 {offsets = [0, 32], sizes = [16, 8], strides = [1, 1]} : vector<16x64xf32> to vector<16x8xf32>
    %cst_33 = arith.constant dense<0.000000e+00> : vector<16x16xf32>
    %92 = tpu.matmul %90, %91, %cst_33 {dimension_numbers = #tpu.dot_dimension_numbers<[1], [1], [0], [0], [0, 0, 1, 0], [], []>} : vector<16x8xf32>, vector<16x8xf32>, vector<16x16xf32> -> vector<16x16xf32>
    %93 = arith.addf %92, %3 : vector<16x16xf32>
    %cst_34 = arith.constant dense<0xFF800000> : vector<16xf32>
    %94 = vector.multi_reduction <maximumf>, %93, %cst_34 [1] : vector<16x16xf32> to vector<16xf32>
    %95 = vector.shape_cast %94 : vector<16xf32> to vector<16x1xf32>
    %96 = vector.broadcast %95 : vector<16x1xf32> to vector<16x16xf32>
    %97 = arith.subf %93, %96 : vector<16x16xf32>
    %98 = math.exp %97 : vector<16x16xf32>
    %cst_35 = arith.constant dense<0.000000e+00> : vector<16xf32>
    %99 = vector.multi_reduction <add>, %98, %cst_35 [1] : vector<16x16xf32> to vector<16xf32>
    %100 = vector.shape_cast %99 : vector<16xf32> to vector<16x1xf32>
    %101 = tpu.reciprocal %100 {approx = true} : vector<16x1xf32> -> vector<16x1xf32>
    %102 = vector.broadcast %101 : vector<16x1xf32> to vector<16x16xf32>
    %103 = arith.mulf %98, %102 : vector<16x16xf32>
    %104 = vector.extract_strided_slice %13 {offsets = [0, 32], sizes = [16, 8], strides = [1, 1]} : vector<16x64xf32> to vector<16x8xf32>
    %cst_36 = arith.constant dense<0.000000e+00> : vector<16x8xf32>
    %105 = tpu.matmul %103, %104, %cst_36 {dimension_numbers = #tpu.dot_dimension_numbers<[1], [0], [0], [1], [0, 0, 1, 1], [], []>} : vector<16x16xf32>, vector<16x8xf32>, vector<16x8xf32> -> vector<16x8xf32>
    %106 = vector.extract_strided_slice %14 {offsets = [32, 0], sizes = [8, 64], strides = [1, 1]} : vector<64x64xf32> to vector<8x64xf32>
    %cst_37 = arith.constant dense<0.000000e+00> : vector<16x64xf32>
    %107 = tpu.matmul %105, %106, %cst_37 {dimension_numbers = #tpu.dot_dimension_numbers<[1], [0], [0], [1], [0, 0, 1, 1], [], []>} : vector<16x8xf32>, vector<8x64xf32>, vector<16x64xf32> -> vector<16x64xf32>
    %108 = arith.addf %89, %107 : vector<16x64xf32>
    %109 = vector.extract_strided_slice %11 {offsets = [0, 40], sizes = [16, 8], strides = [1, 1]} : vector<16x64xf32> to vector<16x8xf32>
    %110 = vector.extract_strided_slice %12 {offsets = [0, 40], sizes = [16, 8], strides = [1, 1]} : vector<16x64xf32> to vector<16x8xf32>
    %cst_38 = arith.constant dense<0.000000e+00> : vector<16x16xf32>
    %111 = tpu.matmul %109, %110, %cst_38 {dimension_numbers = #tpu.dot_dimension_numbers<[1], [1], [0], [0], [0, 0, 1, 0], [], []>} : vector<16x8xf32>, vector<16x8xf32>, vector<16x16xf32> -> vector<16x16xf32>
    %112 = arith.addf %111, %3 : vector<16x16xf32>
    %cst_39 = arith.constant dense<0xFF800000> : vector<16xf32>
    %113 = vector.multi_reduction <maximumf>, %112, %cst_39 [1] : vector<16x16xf32> to vector<16xf32>
    %114 = vector.shape_cast %113 : vector<16xf32> to vector<16x1xf32>
    %115 = vector.broadcast %114 : vector<16x1xf32> to vector<16x16xf32>
    %116 = arith.subf %112, %115 : vector<16x16xf32>
    %117 = math.exp %116 : vector<16x16xf32>
    %cst_40 = arith.constant dense<0.000000e+00> : vector<16xf32>
    %118 = vector.multi_reduction <add>, %117, %cst_40 [1] : vector<16x16xf32> to vector<16xf32>
    %119 = vector.shape_cast %118 : vector<16xf32> to vector<16x1xf32>
    %120 = tpu.reciprocal %119 {approx = true} : vector<16x1xf32> -> vector<16x1xf32>
    %121 = vector.broadcast %120 : vector<16x1xf32> to vector<16x16xf32>
    %122 = arith.mulf %117, %121 : vector<16x16xf32>
    %123 = vector.extract_strided_slice %13 {offsets = [0, 40], sizes = [16, 8], strides = [1, 1]} : vector<16x64xf32> to vector<16x8xf32>
    %cst_41 = arith.constant dense<0.000000e+00> : vector<16x8xf32>
    %124 = tpu.matmul %122, %123, %cst_41 {dimension_numbers = #tpu.dot_dimension_numbers<[1], [0], [0], [1], [0, 0, 1, 1], [], []>} : vector<16x16xf32>, vector<16x8xf32>, vector<16x8xf32> -> vector<16x8xf32>
    %125 = vector.extract_strided_slice %14 {offsets = [40, 0], sizes = [8, 64], strides = [1, 1]} : vector<64x64xf32> to vector<8x64xf32>
    %cst_42 = arith.constant dense<0.000000e+00> : vector<16x64xf32>
    %126 = tpu.matmul %124, %125, %cst_42 {dimension_numbers = #tpu.dot_dimension_numbers<[1], [0], [0], [1], [0, 0, 1, 1], [], []>} : vector<16x8xf32>, vector<8x64xf32>, vector<16x64xf32> -> vector<16x64xf32>
    %127 = arith.addf %108, %126 : vector<16x64xf32>
    %128 = vector.extract_strided_slice %11 {offsets = [0, 48], sizes = [16, 8], strides = [1, 1]} : vector<16x64xf32> to vector<16x8xf32>
    %129 = vector.extract_strided_slice %12 {offsets = [0, 48], sizes = [16, 8], strides = [1, 1]} : vector<16x64xf32> to vector<16x8xf32>
    %cst_43 = arith.constant dense<0.000000e+00> : vector<16x16xf32>
    %130 = tpu.matmul %128, %129, %cst_43 {dimension_numbers = #tpu.dot_dimension_numbers<[1], [1], [0], [0], [0, 0, 1, 0], [], []>} : vector<16x8xf32>, vector<16x8xf32>, vector<16x16xf32> -> vector<16x16xf32>
    %131 = arith.addf %130, %3 : vector<16x16xf32>
    %cst_44 = arith.constant dense<0xFF800000> : vector<16xf32>
    %132 = vector.multi_reduction <maximumf>, %131, %cst_44 [1] : vector<16x16xf32> to vector<16xf32>
    %133 = vector.shape_cast %132 : vector<16xf32> to vector<16x1xf32>
    %134 = vector.broadcast %133 : vector<16x1xf32> to vector<16x16xf32>
    %135 = arith.subf %131, %134 : vector<16x16xf32>
    %136 = math.exp %135 : vector<16x16xf32>
    %cst_45 = arith.constant dense<0.000000e+00> : vector<16xf32>
    %137 = vector.multi_reduction <add>, %136, %cst_45 [1] : vector<16x16xf32> to vector<16xf32>
    %138 = vector.shape_cast %137 : vector<16xf32> to vector<16x1xf32>
    %139 = tpu.reciprocal %138 {approx = true} : vector<16x1xf32> -> vector<16x1xf32>
    %140 = vector.broadcast %139 : vector<16x1xf32> to vector<16x16xf32>
    %141 = arith.mulf %136, %140 : vector<16x16xf32>
    %142 = vector.extract_strided_slice %13 {offsets = [0, 48], sizes = [16, 8], strides = [1, 1]} : vector<16x64xf32> to vector<16x8xf32>
    %cst_46 = arith.constant dense<0.000000e+00> : vector<16x8xf32>
    %143 = tpu.matmul %141, %142, %cst_46 {dimension_numbers = #tpu.dot_dimension_numbers<[1], [0], [0], [1], [0, 0, 1, 1], [], []>} : vector<16x16xf32>, vector<16x8xf32>, vector<16x8xf32> -> vector<16x8xf32>
    %144 = vector.extract_strided_slice %14 {offsets = [48, 0], sizes = [8, 64], strides = [1, 1]} : vector<64x64xf32> to vector<8x64xf32>
    %cst_47 = arith.constant dense<0.000000e+00> : vector<16x64xf32>
    %145 = tpu.matmul %143, %144, %cst_47 {dimension_numbers = #tpu.dot_dimension_numbers<[1], [0], [0], [1], [0, 0, 1, 1], [], []>} : vector<16x8xf32>, vector<8x64xf32>, vector<16x64xf32> -> vector<16x64xf32>
    %146 = arith.addf %127, %145 : vector<16x64xf32>
    %147 = vector.extract_strided_slice %11 {offsets = [0, 56], sizes = [16, 8], strides = [1, 1]} : vector<16x64xf32> to vector<16x8xf32>
    %148 = vector.extract_strided_slice %12 {offsets = [0, 56], sizes = [16, 8], strides = [1, 1]} : vector<16x64xf32> to vector<16x8xf32>
    %cst_48 = arith.constant dense<0.000000e+00> : vector<16x16xf32>
    %149 = tpu.matmul %147, %148, %cst_48 {dimension_numbers = #tpu.dot_dimension_numbers<[1], [1], [0], [0], [0, 0, 1, 0], [], []>} : vector<16x8xf32>, vector<16x8xf32>, vector<16x16xf32> -> vector<16x16xf32>
    %150 = arith.addf %149, %3 : vector<16x16xf32>
    %cst_49 = arith.constant dense<0xFF800000> : vector<16xf32>
    %151 = vector.multi_reduction <maximumf>, %150, %cst_49 [1] : vector<16x16xf32> to vector<16xf32>
    %152 = vector.shape_cast %151 : vector<16xf32> to vector<16x1xf32>
    %153 = vector.broadcast %152 : vector<16x1xf32> to vector<16x16xf32>
    %154 = arith.subf %150, %153 : vector<16x16xf32>
    %155 = math.exp %154 : vector<16x16xf32>
    %cst_50 = arith.constant dense<0.000000e+00> : vector<16xf32>
    %156 = vector.multi_reduction <add>, %155, %cst_50 [1] : vector<16x16xf32> to vector<16xf32>
    %157 = vector.shape_cast %156 : vector<16xf32> to vector<16x1xf32>
    %158 = tpu.reciprocal %157 {approx = true} : vector<16x1xf32> -> vector<16x1xf32>
    %159 = vector.broadcast %158 : vector<16x1xf32> to vector<16x16xf32>
    %160 = arith.mulf %155, %159 : vector<16x16xf32>
    %161 = vector.extract_strided_slice %13 {offsets = [0, 56], sizes = [16, 8], strides = [1, 1]} : vector<16x64xf32> to vector<16x8xf32>
    %cst_51 = arith.constant dense<0.000000e+00> : vector<16x8xf32>
    %162 = tpu.matmul %160, %161, %cst_51 {dimension_numbers = #tpu.dot_dimension_numbers<[1], [0], [0], [1], [0, 0, 1, 1], [], []>} : vector<16x16xf32>, vector<16x8xf32>, vector<16x8xf32> -> vector<16x8xf32>
    %163 = vector.extract_strided_slice %14 {offsets = [56, 0], sizes = [8, 64], strides = [1, 1]} : vector<64x64xf32> to vector<8x64xf32>
    %cst_52 = arith.constant dense<0.000000e+00> : vector<16x64xf32>
    %164 = tpu.matmul %162, %163, %cst_52 {dimension_numbers = #tpu.dot_dimension_numbers<[1], [0], [0], [1], [0, 0, 1, 1], [], []>} : vector<16x8xf32>, vector<8x64xf32>, vector<16x64xf32> -> vector<16x64xf32>
    %165 = arith.addf %146, %164 : vector<16x64xf32>
    %c1 = arith.constant 1 : index
    %c0_53 = arith.constant 0 : index
    %166 = vector.load %arg5[%c1, %c0_53] : memref<48x192xf32, #tpu.memory_space<vmem>>, vector<1x64xf32>
    %167 = vector.broadcast %166 : vector<1x64xf32> to vector<16x64xf32>
    %168 = arith.addf %165, %167 : vector<16x64xf32>
    %169 = arith.addf %0, %168 : vector<16x64xf32>
    %c4 = arith.constant 4 : index
    %c0_54 = arith.constant 0 : index
    %170 = vector.load %arg5[%c4, %c0_54] : memref<48x192xf32, #tpu.memory_space<vmem>>, vector<1x64xf32>
    %c5 = arith.constant 5 : index
    %c0_55 = arith.constant 0 : index
    %171 = vector.load %arg5[%c5, %c0_55] : memref<48x192xf32, #tpu.memory_space<vmem>>, vector<1x64xf32>
    %cst_56 = arith.constant dense<0.000000e+00> : vector<16xf32>
    %172 = vector.multi_reduction <add>, %169, %cst_56 [1] : vector<16x64xf32> to vector<16xf32>
    %173 = vector.shape_cast %172 : vector<16xf32> to vector<16x1xf32>
    %cst_57 = arith.constant 6.400000e+01 : f32
    %174 = vector.broadcast %cst_57 : f32 to vector<16x1xf32>
    %175 = arith.divf %173, %174 : vector<16x1xf32>
    %176 = vector.broadcast %175 : vector<16x1xf32> to vector<16x64xf32>
    %177 = arith.subf %169, %176 : vector<16x64xf32>
    %178 = arith.mulf %177, %177 : vector<16x64xf32>
    %cst_58 = arith.constant dense<0.000000e+00> : vector<16xf32>
    %179 = vector.multi_reduction <add>, %178, %cst_58 [1] : vector<16x64xf32> to vector<16xf32>
    %180 = vector.shape_cast %179 : vector<16xf32> to vector<16x1xf32>
    %cst_59 = arith.constant 6.400000e+01 : f32
    %181 = vector.broadcast %cst_59 : f32 to vector<16x1xf32>
    %182 = arith.divf %180, %181 : vector<16x1xf32>
    %cst_60 = arith.constant 9.99999974E-6 : f32
    %183 = vector.broadcast %cst_60 : f32 to vector<16x1xf32>
    %184 = arith.addf %182, %183 : vector<16x1xf32>
    %185 = math.rsqrt %184 : vector<16x1xf32>
    %186 = vector.broadcast %185 : vector<16x1xf32> to vector<16x64xf32>
    %187 = arith.mulf %177, %186 : vector<16x64xf32>
    %188 = vector.broadcast %170 : vector<1x64xf32> to vector<16x64xf32>
    %189 = arith.mulf %187, %188 : vector<16x64xf32>
    %190 = vector.broadcast %171 : vector<1x64xf32> to vector<16x64xf32>
    %191 = arith.addf %189, %190 : vector<16x64xf32>
    %c128 = arith.constant 128 : index
    %c0_61 = arith.constant 0 : index
    %192 = vector.load %arg3[%c128, %c0_61] : memref<512x192xf32, #tpu.memory_space<vmem>>, vector<64x64xf32>
    %cst_62 = arith.constant dense<0.000000e+00> : vector<16x64xf32>
    %193 = tpu.matmul %191, %192, %cst_62 {dimension_numbers = #tpu.dot_dimension_numbers<[1], [0], [0], [1], [0, 0, 1, 1], [], []>} : vector<16x64xf32>, vector<64x64xf32>, vector<16x64xf32> -> vector<16x64xf32>
    %c2 = arith.constant 2 : index
    %c0_63 = arith.constant 0 : index
    %194 = vector.load %arg5[%c2, %c0_63] : memref<48x192xf32, #tpu.memory_space<vmem>>, vector<1x64xf32>
    %195 = vector.broadcast %194 : vector<1x64xf32> to vector<16x64xf32>
    %196 = arith.addf %193, %195 : vector<16x64xf32>
    %cst_64 = arith.constant 0.000000e+00 : f32
    %197 = vector.broadcast %cst_64 : f32 to vector<16x64xf32>
    %198 = arith.maximumf %196, %197 : vector<16x64xf32>
    %c192 = arith.constant 192 : index
    %c0_65 = arith.constant 0 : index
    %199 = vector.load %arg3[%c192, %c0_65] : memref<512x192xf32, #tpu.memory_space<vmem>>, vector<64x64xf32>
    %cst_66 = arith.constant dense<0.000000e+00> : vector<16x64xf32>
    %200 = tpu.matmul %198, %199, %cst_66 {dimension_numbers = #tpu.dot_dimension_numbers<[1], [0], [0], [1], [0, 0, 1, 1], [], []>} : vector<16x64xf32>, vector<64x64xf32>, vector<16x64xf32> -> vector<16x64xf32>
    %c3 = arith.constant 3 : index
    %c0_67 = arith.constant 0 : index
    %201 = vector.load %arg5[%c3, %c0_67] : memref<48x192xf32, #tpu.memory_space<vmem>>, vector<1x64xf32>
    %202 = vector.broadcast %201 : vector<1x64xf32> to vector<16x64xf32>
    %203 = arith.addf %200, %202 : vector<16x64xf32>
    %204 = arith.addf %191, %203 : vector<16x64xf32>
    %c6 = arith.constant 6 : index
    %c0_68 = arith.constant 0 : index
    %205 = vector.load %arg5[%c6, %c0_68] : memref<48x192xf32, #tpu.memory_space<vmem>>, vector<1x64xf32>
    %c7 = arith.constant 7 : index
    %c0_69 = arith.constant 0 : index
    %206 = vector.load %arg5[%c7, %c0_69] : memref<48x192xf32, #tpu.memory_space<vmem>>, vector<1x64xf32>
    %cst_70 = arith.constant dense<0.000000e+00> : vector<16xf32>
    %207 = vector.multi_reduction <add>, %204, %cst_70 [1] : vector<16x64xf32> to vector<16xf32>
    %208 = vector.shape_cast %207 : vector<16xf32> to vector<16x1xf32>
    %cst_71 = arith.constant 6.400000e+01 : f32
    %209 = vector.broadcast %cst_71 : f32 to vector<16x1xf32>
    %210 = arith.divf %208, %209 : vector<16x1xf32>
    %211 = vector.broadcast %210 : vector<16x1xf32> to vector<16x64xf32>
    %212 = arith.subf %204, %211 : vector<16x64xf32>
    %213 = arith.mulf %212, %212 : vector<16x64xf32>
    %cst_72 = arith.constant dense<0.000000e+00> : vector<16xf32>
    %214 = vector.multi_reduction <add>, %213, %cst_72 [1] : vector<16x64xf32> to vector<16xf32>
    %215 = vector.shape_cast %214 : vector<16xf32> to vector<16x1xf32>
    %cst_73 = arith.constant 6.400000e+01 : f32
    %216 = vector.broadcast %cst_73 : f32 to vector<16x1xf32>
    %217 = arith.divf %215, %216 : vector<16x1xf32>
    %cst_74 = arith.constant 9.99999974E-6 : f32
    %218 = vector.broadcast %cst_74 : f32 to vector<16x1xf32>
    %219 = arith.addf %217, %218 : vector<16x1xf32>
    %220 = math.rsqrt %219 : vector<16x1xf32>
    %221 = vector.broadcast %220 : vector<16x1xf32> to vector<16x64xf32>
    %222 = arith.mulf %212, %221 : vector<16x64xf32>
    %223 = vector.broadcast %205 : vector<1x64xf32> to vector<16x64xf32>
    %224 = arith.mulf %222, %223 : vector<16x64xf32>
    %225 = vector.broadcast %206 : vector<1x64xf32> to vector<16x64xf32>
    %226 = arith.addf %224, %225 : vector<16x64xf32>
    %c256 = arith.constant 256 : index
    %c0_75 = arith.constant 0 : index
    %227 = vector.load %arg3[%c256, %c0_75] : memref<512x192xf32, #tpu.memory_space<vmem>>, vector<64x192xf32>
    %cst_76 = arith.constant dense<0.000000e+00> : vector<16x192xf32>
    %228 = tpu.matmul %226, %227, %cst_76 {dimension_numbers = #tpu.dot_dimension_numbers<[1], [0], [0], [1], [0, 0, 1, 1], [], []>} : vector<16x64xf32>, vector<64x192xf32>, vector<16x192xf32> -> vector<16x192xf32>
    %c8 = arith.constant 8 : index
    %c0_77 = arith.constant 0 : index
    %229 = vector.load %arg5[%c8, %c0_77] : memref<48x192xf32, #tpu.memory_space<vmem>>, vector<1x192xf32>
    %230 = vector.broadcast %229 : vector<1x192xf32> to vector<16x192xf32>
    %231 = arith.addf %228, %230 : vector<16x192xf32>
    %232 = vector.extract_strided_slice %231 {offsets = [0, 0], sizes = [16, 64], strides = [1, 1]} : vector<16x192xf32> to vector<16x64xf32>
    %233 = vector.extract_strided_slice %231 {offsets = [0, 64], sizes = [16, 64], strides = [1, 1]} : vector<16x192xf32> to vector<16x64xf32>
    %234 = vector.extract_strided_slice %231 {offsets = [0, 128], sizes = [16, 64], strides = [1, 1]} : vector<16x192xf32> to vector<16x64xf32>
    %c320 = arith.constant 320 : index
    %c0_78 = arith.constant 0 : index
    %235 = vector.load %arg3[%c320, %c0_78] : memref<512x192xf32, #tpu.memory_space<vmem>>, vector<64x64xf32>
    %236 = vector.extract_strided_slice %232 {offsets = [0, 0], sizes = [16, 8], strides = [1, 1]} : vector<16x64xf32> to vector<16x8xf32>
    %237 = vector.extract_strided_slice %233 {offsets = [0, 0], sizes = [16, 8], strides = [1, 1]} : vector<16x64xf32> to vector<16x8xf32>
    %cst_79 = arith.constant dense<0.000000e+00> : vector<16x16xf32>
    %238 = tpu.matmul %236, %237, %cst_79 {dimension_numbers = #tpu.dot_dimension_numbers<[1], [1], [0], [0], [0, 0, 1, 0], [], []>} : vector<16x8xf32>, vector<16x8xf32>, vector<16x16xf32> -> vector<16x16xf32>
    %239 = arith.addf %238, %3 : vector<16x16xf32>
    %cst_80 = arith.constant dense<0xFF800000> : vector<16xf32>
    %240 = vector.multi_reduction <maximumf>, %239, %cst_80 [1] : vector<16x16xf32> to vector<16xf32>
    %241 = vector.shape_cast %240 : vector<16xf32> to vector<16x1xf32>
    %242 = vector.broadcast %241 : vector<16x1xf32> to vector<16x16xf32>
    %243 = arith.subf %239, %242 : vector<16x16xf32>
    %244 = math.exp %243 : vector<16x16xf32>
    %cst_81 = arith.constant dense<0.000000e+00> : vector<16xf32>
    %245 = vector.multi_reduction <add>, %244, %cst_81 [1] : vector<16x16xf32> to vector<16xf32>
    %246 = vector.shape_cast %245 : vector<16xf32> to vector<16x1xf32>
    %247 = tpu.reciprocal %246 {approx = true} : vector<16x1xf32> -> vector<16x1xf32>
    %248 = vector.broadcast %247 : vector<16x1xf32> to vector<16x16xf32>
    %249 = arith.mulf %244, %248 : vector<16x16xf32>
    %250 = vector.extract_strided_slice %234 {offsets = [0, 0], sizes = [16, 8], strides = [1, 1]} : vector<16x64xf32> to vector<16x8xf32>
    %cst_82 = arith.constant dense<0.000000e+00> : vector<16x8xf32>
    %251 = tpu.matmul %249, %250, %cst_82 {dimension_numbers = #tpu.dot_dimension_numbers<[1], [0], [0], [1], [0, 0, 1, 1], [], []>} : vector<16x16xf32>, vector<16x8xf32>, vector<16x8xf32> -> vector<16x8xf32>
    %252 = vector.extract_strided_slice %235 {offsets = [0, 0], sizes = [8, 64], strides = [1, 1]} : vector<64x64xf32> to vector<8x64xf32>
    %cst_83 = arith.constant dense<0.000000e+00> : vector<16x64xf32>
    %253 = tpu.matmul %251, %252, %cst_83 {dimension_numbers = #tpu.dot_dimension_numbers<[1], [0], [0], [1], [0, 0, 1, 1], [], []>} : vector<16x8xf32>, vector<8x64xf32>, vector<16x64xf32> -> vector<16x64xf32>
    %254 = vector.extract_strided_slice %232 {offsets = [0, 8], sizes = [16, 8], strides = [1, 1]} : vector<16x64xf32> to vector<16x8xf32>
    %255 = vector.extract_strided_slice %233 {offsets = [0, 8], sizes = [16, 8], strides = [1, 1]} : vector<16x64xf32> to vector<16x8xf32>
    %cst_84 = arith.constant dense<0.000000e+00> : vector<16x16xf32>
    %256 = tpu.matmul %254, %255, %cst_84 {dimension_numbers = #tpu.dot_dimension_numbers<[1], [1], [0], [0], [0, 0, 1, 0], [], []>} : vector<16x8xf32>, vector<16x8xf32>, vector<16x16xf32> -> vector<16x16xf32>
    %257 = arith.addf %256, %3 : vector<16x16xf32>
    %cst_85 = arith.constant dense<0xFF800000> : vector<16xf32>
    %258 = vector.multi_reduction <maximumf>, %257, %cst_85 [1] : vector<16x16xf32> to vector<16xf32>
    %259 = vector.shape_cast %258 : vector<16xf32> to vector<16x1xf32>
    %260 = vector.broadcast %259 : vector<16x1xf32> to vector<16x16xf32>
    %261 = arith.subf %257, %260 : vector<16x16xf32>
    %262 = math.exp %261 : vector<16x16xf32>
    %cst_86 = arith.constant dense<0.000000e+00> : vector<16xf32>
    %263 = vector.multi_reduction <add>, %262, %cst_86 [1] : vector<16x16xf32> to vector<16xf32>
    %264 = vector.shape_cast %263 : vector<16xf32> to vector<16x1xf32>
    %265 = tpu.reciprocal %264 {approx = true} : vector<16x1xf32> -> vector<16x1xf32>
    %266 = vector.broadcast %265 : vector<16x1xf32> to vector<16x16xf32>
    %267 = arith.mulf %262, %266 : vector<16x16xf32>
    %268 = vector.extract_strided_slice %234 {offsets = [0, 8], sizes = [16, 8], strides = [1, 1]} : vector<16x64xf32> to vector<16x8xf32>
    %cst_87 = arith.constant dense<0.000000e+00> : vector<16x8xf32>
    %269 = tpu.matmul %267, %268, %cst_87 {dimension_numbers = #tpu.dot_dimension_numbers<[1], [0], [0], [1], [0, 0, 1, 1], [], []>} : vector<16x16xf32>, vector<16x8xf32>, vector<16x8xf32> -> vector<16x8xf32>
    %270 = vector.extract_strided_slice %235 {offsets = [8, 0], sizes = [8, 64], strides = [1, 1]} : vector<64x64xf32> to vector<8x64xf32>
    %cst_88 = arith.constant dense<0.000000e+00> : vector<16x64xf32>
    %271 = tpu.matmul %269, %270, %cst_88 {dimension_numbers = #tpu.dot_dimension_numbers<[1], [0], [0], [1], [0, 0, 1, 1], [], []>} : vector<16x8xf32>, vector<8x64xf32>, vector<16x64xf32> -> vector<16x64xf32>
    %272 = arith.addf %253, %271 : vector<16x64xf32>
    %273 = vector.extract_strided_slice %232 {offsets = [0, 16], sizes = [16, 8], strides = [1, 1]} : vector<16x64xf32> to vector<16x8xf32>
    %274 = vector.extract_strided_slice %233 {offsets = [0, 16], sizes = [16, 8], strides = [1, 1]} : vector<16x64xf32> to vector<16x8xf32>
    %cst_89 = arith.constant dense<0.000000e+00> : vector<16x16xf32>
    %275 = tpu.matmul %273, %274, %cst_89 {dimension_numbers = #tpu.dot_dimension_numbers<[1], [1], [0], [0], [0, 0, 1, 0], [], []>} : vector<16x8xf32>, vector<16x8xf32>, vector<16x16xf32> -> vector<16x16xf32>
    %276 = arith.addf %275, %3 : vector<16x16xf32>
    %cst_90 = arith.constant dense<0xFF800000> : vector<16xf32>
    %277 = vector.multi_reduction <maximumf>, %276, %cst_90 [1] : vector<16x16xf32> to vector<16xf32>
    %278 = vector.shape_cast %277 : vector<16xf32> to vector<16x1xf32>
    %279 = vector.broadcast %278 : vector<16x1xf32> to vector<16x16xf32>
    %280 = arith.subf %276, %279 : vector<16x16xf32>
    %281 = math.exp %280 : vector<16x16xf32>
    %cst_91 = arith.constant dense<0.000000e+00> : vector<16xf32>
    %282 = vector.multi_reduction <add>, %281, %cst_91 [1] : vector<16x16xf32> to vector<16xf32>
    %283 = vector.shape_cast %282 : vector<16xf32> to vector<16x1xf32>
    %284 = tpu.reciprocal %283 {approx = true} : vector<16x1xf32> -> vector<16x1xf32>
    %285 = vector.broadcast %284 : vector<16x1xf32> to vector<16x16xf32>
    %286 = arith.mulf %281, %285 : vector<16x16xf32>
    %287 = vector.extract_strided_slice %234 {offsets = [0, 16], sizes = [16, 8], strides = [1, 1]} : vector<16x64xf32> to vector<16x8xf32>
    %cst_92 = arith.constant dense<0.000000e+00> : vector<16x8xf32>
    %288 = tpu.matmul %286, %287, %cst_92 {dimension_numbers = #tpu.dot_dimension_numbers<[1], [0], [0], [1], [0, 0, 1, 1], [], []>} : vector<16x16xf32>, vector<16x8xf32>, vector<16x8xf32> -> vector<16x8xf32>
    %289 = vector.extract_strided_slice %235 {offsets = [16, 0], sizes = [8, 64], strides = [1, 1]} : vector<64x64xf32> to vector<8x64xf32>
    %cst_93 = arith.constant dense<0.000000e+00> : vector<16x64xf32>
    %290 = tpu.matmul %288, %289, %cst_93 {dimension_numbers = #tpu.dot_dimension_numbers<[1], [0], [0], [1], [0, 0, 1, 1], [], []>} : vector<16x8xf32>, vector<8x64xf32>, vector<16x64xf32> -> vector<16x64xf32>
    %291 = arith.addf %272, %290 : vector<16x64xf32>
    %292 = vector.extract_strided_slice %232 {offsets = [0, 24], sizes = [16, 8], strides = [1, 1]} : vector<16x64xf32> to vector<16x8xf32>
    %293 = vector.extract_strided_slice %233 {offsets = [0, 24], sizes = [16, 8], strides = [1, 1]} : vector<16x64xf32> to vector<16x8xf32>
    %cst_94 = arith.constant dense<0.000000e+00> : vector<16x16xf32>
    %294 = tpu.matmul %292, %293, %cst_94 {dimension_numbers = #tpu.dot_dimension_numbers<[1], [1], [0], [0], [0, 0, 1, 0], [], []>} : vector<16x8xf32>, vector<16x8xf32>, vector<16x16xf32> -> vector<16x16xf32>
    %295 = arith.addf %294, %3 : vector<16x16xf32>
    %cst_95 = arith.constant dense<0xFF800000> : vector<16xf32>
    %296 = vector.multi_reduction <maximumf>, %295, %cst_95 [1] : vector<16x16xf32> to vector<16xf32>
    %297 = vector.shape_cast %296 : vector<16xf32> to vector<16x1xf32>
    %298 = vector.broadcast %297 : vector<16x1xf32> to vector<16x16xf32>
    %299 = arith.subf %295, %298 : vector<16x16xf32>
    %300 = math.exp %299 : vector<16x16xf32>
    %cst_96 = arith.constant dense<0.000000e+00> : vector<16xf32>
    %301 = vector.multi_reduction <add>, %300, %cst_96 [1] : vector<16x16xf32> to vector<16xf32>
    %302 = vector.shape_cast %301 : vector<16xf32> to vector<16x1xf32>
    %303 = tpu.reciprocal %302 {approx = true} : vector<16x1xf32> -> vector<16x1xf32>
    %304 = vector.broadcast %303 : vector<16x1xf32> to vector<16x16xf32>
    %305 = arith.mulf %300, %304 : vector<16x16xf32>
    %306 = vector.extract_strided_slice %234 {offsets = [0, 24], sizes = [16, 8], strides = [1, 1]} : vector<16x64xf32> to vector<16x8xf32>
    %cst_97 = arith.constant dense<0.000000e+00> : vector<16x8xf32>
    %307 = tpu.matmul %305, %306, %cst_97 {dimension_numbers = #tpu.dot_dimension_numbers<[1], [0], [0], [1], [0, 0, 1, 1], [], []>} : vector<16x16xf32>, vector<16x8xf32>, vector<16x8xf32> -> vector<16x8xf32>
    %308 = vector.extract_strided_slice %235 {offsets = [24, 0], sizes = [8, 64], strides = [1, 1]} : vector<64x64xf32> to vector<8x64xf32>
    %cst_98 = arith.constant dense<0.000000e+00> : vector<16x64xf32>
    %309 = tpu.matmul %307, %308, %cst_98 {dimension_numbers = #tpu.dot_dimension_numbers<[1], [0], [0], [1], [0, 0, 1, 1], [], []>} : vector<16x8xf32>, vector<8x64xf32>, vector<16x64xf32> -> vector<16x64xf32>
    %310 = arith.addf %291, %309 : vector<16x64xf32>
    %311 = vector.extract_strided_slice %232 {offsets = [0, 32], sizes = [16, 8], strides = [1, 1]} : vector<16x64xf32> to vector<16x8xf32>
    %312 = vector.extract_strided_slice %233 {offsets = [0, 32], sizes = [16, 8], strides = [1, 1]} : vector<16x64xf32> to vector<16x8xf32>
    %cst_99 = arith.constant dense<0.000000e+00> : vector<16x16xf32>
    %313 = tpu.matmul %311, %312, %cst_99 {dimension_numbers = #tpu.dot_dimension_numbers<[1], [1], [0], [0], [0, 0, 1, 0], [], []>} : vector<16x8xf32>, vector<16x8xf32>, vector<16x16xf32> -> vector<16x16xf32>
    %314 = arith.addf %313, %3 : vector<16x16xf32>
    %cst_100 = arith.constant dense<0xFF800000> : vector<16xf32>
    %315 = vector.multi_reduction <maximumf>, %314, %cst_100 [1] : vector<16x16xf32> to vector<16xf32>
    %316 = vector.shape_cast %315 : vector<16xf32> to vector<16x1xf32>
    %317 = vector.broadcast %316 : vector<16x1xf32> to vector<16x16xf32>
    %318 = arith.subf %314, %317 : vector<16x16xf32>
    %319 = math.exp %318 : vector<16x16xf32>
    %cst_101 = arith.constant dense<0.000000e+00> : vector<16xf32>
    %320 = vector.multi_reduction <add>, %319, %cst_101 [1] : vector<16x16xf32> to vector<16xf32>
    %321 = vector.shape_cast %320 : vector<16xf32> to vector<16x1xf32>
    %322 = tpu.reciprocal %321 {approx = true} : vector<16x1xf32> -> vector<16x1xf32>
    %323 = vector.broadcast %322 : vector<16x1xf32> to vector<16x16xf32>
    %324 = arith.mulf %319, %323 : vector<16x16xf32>
    %325 = vector.extract_strided_slice %234 {offsets = [0, 32], sizes = [16, 8], strides = [1, 1]} : vector<16x64xf32> to vector<16x8xf32>
    %cst_102 = arith.constant dense<0.000000e+00> : vector<16x8xf32>
    %326 = tpu.matmul %324, %325, %cst_102 {dimension_numbers = #tpu.dot_dimension_numbers<[1], [0], [0], [1], [0, 0, 1, 1], [], []>} : vector<16x16xf32>, vector<16x8xf32>, vector<16x8xf32> -> vector<16x8xf32>
    %327 = vector.extract_strided_slice %235 {offsets = [32, 0], sizes = [8, 64], strides = [1, 1]} : vector<64x64xf32> to vector<8x64xf32>
    %cst_103 = arith.constant dense<0.000000e+00> : vector<16x64xf32>
    %328 = tpu.matmul %326, %327, %cst_103 {dimension_numbers = #tpu.dot_dimension_numbers<[1], [0], [0], [1], [0, 0, 1, 1], [], []>} : vector<16x8xf32>, vector<8x64xf32>, vector<16x64xf32> -> vector<16x64xf32>
    %329 = arith.addf %310, %328 : vector<16x64xf32>
    %330 = vector.extract_strided_slice %232 {offsets = [0, 40], sizes = [16, 8], strides = [1, 1]} : vector<16x64xf32> to vector<16x8xf32>
    %331 = vector.extract_strided_slice %233 {offsets = [0, 40], sizes = [16, 8], strides = [1, 1]} : vector<16x64xf32> to vector<16x8xf32>
    %cst_104 = arith.constant dense<0.000000e+00> : vector<16x16xf32>
    %332 = tpu.matmul %330, %331, %cst_104 {dimension_numbers = #tpu.dot_dimension_numbers<[1], [1], [0], [0], [0, 0, 1, 0], [], []>} : vector<16x8xf32>, vector<16x8xf32>, vector<16x16xf32> -> vector<16x16xf32>
    %333 = arith.addf %332, %3 : vector<16x16xf32>
    %cst_105 = arith.constant dense<0xFF800000> : vector<16xf32>
    %334 = vector.multi_reduction <maximumf>, %333, %cst_105 [1] : vector<16x16xf32> to vector<16xf32>
    %335 = vector.shape_cast %334 : vector<16xf32> to vector<16x1xf32>
    %336 = vector.broadcast %335 : vector<16x1xf32> to vector<16x16xf32>
    %337 = arith.subf %333, %336 : vector<16x16xf32>
    %338 = math.exp %337 : vector<16x16xf32>
    %cst_106 = arith.constant dense<0.000000e+00> : vector<16xf32>
    %339 = vector.multi_reduction <add>, %338, %cst_106 [1] : vector<16x16xf32> to vector<16xf32>
    %340 = vector.shape_cast %339 : vector<16xf32> to vector<16x1xf32>
    %341 = tpu.reciprocal %340 {approx = true} : vector<16x1xf32> -> vector<16x1xf32>
    %342 = vector.broadcast %341 : vector<16x1xf32> to vector<16x16xf32>
    %343 = arith.mulf %338, %342 : vector<16x16xf32>
    %344 = vector.extract_strided_slice %234 {offsets = [0, 40], sizes = [16, 8], strides = [1, 1]} : vector<16x64xf32> to vector<16x8xf32>
    %cst_107 = arith.constant dense<0.000000e+00> : vector<16x8xf32>
    %345 = tpu.matmul %343, %344, %cst_107 {dimension_numbers = #tpu.dot_dimension_numbers<[1], [0], [0], [1], [0, 0, 1, 1], [], []>} : vector<16x16xf32>, vector<16x8xf32>, vector<16x8xf32> -> vector<16x8xf32>
    %346 = vector.extract_strided_slice %235 {offsets = [40, 0], sizes = [8, 64], strides = [1, 1]} : vector<64x64xf32> to vector<8x64xf32>
    %cst_108 = arith.constant dense<0.000000e+00> : vector<16x64xf32>
    %347 = tpu.matmul %345, %346, %cst_108 {dimension_numbers = #tpu.dot_dimension_numbers<[1], [0], [0], [1], [0, 0, 1, 1], [], []>} : vector<16x8xf32>, vector<8x64xf32>, vector<16x64xf32> -> vector<16x64xf32>
    %348 = arith.addf %329, %347 : vector<16x64xf32>
    %349 = vector.extract_strided_slice %232 {offsets = [0, 48], sizes = [16, 8], strides = [1, 1]} : vector<16x64xf32> to vector<16x8xf32>
    %350 = vector.extract_strided_slice %233 {offsets = [0, 48], sizes = [16, 8], strides = [1, 1]} : vector<16x64xf32> to vector<16x8xf32>
    %cst_109 = arith.constant dense<0.000000e+00> : vector<16x16xf32>
    %351 = tpu.matmul %349, %350, %cst_109 {dimension_numbers = #tpu.dot_dimension_numbers<[1], [1], [0], [0], [0, 0, 1, 0], [], []>} : vector<16x8xf32>, vector<16x8xf32>, vector<16x16xf32> -> vector<16x16xf32>
    %352 = arith.addf %351, %3 : vector<16x16xf32>
    %cst_110 = arith.constant dense<0xFF800000> : vector<16xf32>
    %353 = vector.multi_reduction <maximumf>, %352, %cst_110 [1] : vector<16x16xf32> to vector<16xf32>
    %354 = vector.shape_cast %353 : vector<16xf32> to vector<16x1xf32>
    %355 = vector.broadcast %354 : vector<16x1xf32> to vector<16x16xf32>
    %356 = arith.subf %352, %355 : vector<16x16xf32>
    %357 = math.exp %356 : vector<16x16xf32>
    %cst_111 = arith.constant dense<0.000000e+00> : vector<16xf32>
    %358 = vector.multi_reduction <add>, %357, %cst_111 [1] : vector<16x16xf32> to vector<16xf32>
    %359 = vector.shape_cast %358 : vector<16xf32> to vector<16x1xf32>
    %360 = tpu.reciprocal %359 {approx = true} : vector<16x1xf32> -> vector<16x1xf32>
    %361 = vector.broadcast %360 : vector<16x1xf32> to vector<16x16xf32>
    %362 = arith.mulf %357, %361 : vector<16x16xf32>
    %363 = vector.extract_strided_slice %234 {offsets = [0, 48], sizes = [16, 8], strides = [1, 1]} : vector<16x64xf32> to vector<16x8xf32>
    %cst_112 = arith.constant dense<0.000000e+00> : vector<16x8xf32>
    %364 = tpu.matmul %362, %363, %cst_112 {dimension_numbers = #tpu.dot_dimension_numbers<[1], [0], [0], [1], [0, 0, 1, 1], [], []>} : vector<16x16xf32>, vector<16x8xf32>, vector<16x8xf32> -> vector<16x8xf32>
    %365 = vector.extract_strided_slice %235 {offsets = [48, 0], sizes = [8, 64], strides = [1, 1]} : vector<64x64xf32> to vector<8x64xf32>
    %cst_113 = arith.constant dense<0.000000e+00> : vector<16x64xf32>
    %366 = tpu.matmul %364, %365, %cst_113 {dimension_numbers = #tpu.dot_dimension_numbers<[1], [0], [0], [1], [0, 0, 1, 1], [], []>} : vector<16x8xf32>, vector<8x64xf32>, vector<16x64xf32> -> vector<16x64xf32>
    %367 = arith.addf %348, %366 : vector<16x64xf32>
    %368 = vector.extract_strided_slice %232 {offsets = [0, 56], sizes = [16, 8], strides = [1, 1]} : vector<16x64xf32> to vector<16x8xf32>
    %369 = vector.extract_strided_slice %233 {offsets = [0, 56], sizes = [16, 8], strides = [1, 1]} : vector<16x64xf32> to vector<16x8xf32>
    %cst_114 = arith.constant dense<0.000000e+00> : vector<16x16xf32>
    %370 = tpu.matmul %368, %369, %cst_114 {dimension_numbers = #tpu.dot_dimension_numbers<[1], [1], [0], [0], [0, 0, 1, 0], [], []>} : vector<16x8xf32>, vector<16x8xf32>, vector<16x16xf32> -> vector<16x16xf32>
    %371 = arith.addf %370, %3 : vector<16x16xf32>
    %cst_115 = arith.constant dense<0xFF800000> : vector<16xf32>
    %372 = vector.multi_reduction <maximumf>, %371, %cst_115 [1] : vector<16x16xf32> to vector<16xf32>
    %373 = vector.shape_cast %372 : vector<16xf32> to vector<16x1xf32>
    %374 = vector.broadcast %373 : vector<16x1xf32> to vector<16x16xf32>
    %375 = arith.subf %371, %374 : vector<16x16xf32>
    %376 = math.exp %375 : vector<16x16xf32>
    %cst_116 = arith.constant dense<0.000000e+00> : vector<16xf32>
    %377 = vector.multi_reduction <add>, %376, %cst_116 [1] : vector<16x16xf32> to vector<16xf32>
    %378 = vector.shape_cast %377 : vector<16xf32> to vector<16x1xf32>
    %379 = tpu.reciprocal %378 {approx = true} : vector<16x1xf32> -> vector<16x1xf32>
    %380 = vector.broadcast %379 : vector<16x1xf32> to vector<16x16xf32>
    %381 = arith.mulf %376, %380 : vector<16x16xf32>
    %382 = vector.extract_strided_slice %234 {offsets = [0, 56], sizes = [16, 8], strides = [1, 1]} : vector<16x64xf32> to vector<16x8xf32>
    %cst_117 = arith.constant dense<0.000000e+00> : vector<16x8xf32>
    %383 = tpu.matmul %381, %382, %cst_117 {dimension_numbers = #tpu.dot_dimension_numbers<[1], [0], [0], [1], [0, 0, 1, 1], [], []>} : vector<16x16xf32>, vector<16x8xf32>, vector<16x8xf32> -> vector<16x8xf32>
    %384 = vector.extract_strided_slice %235 {offsets = [56, 0], sizes = [8, 64], strides = [1, 1]} : vector<64x64xf32> to vector<8x64xf32>
    %cst_118 = arith.constant dense<0.000000e+00> : vector<16x64xf32>
    %385 = tpu.matmul %383, %384, %cst_118 {dimension_numbers = #tpu.dot_dimension_numbers<[1], [0], [0], [1], [0, 0, 1, 1], [], []>} : vector<16x8xf32>, vector<8x64xf32>, vector<16x64xf32> -> vector<16x64xf32>
    %386 = arith.addf %367, %385 : vector<16x64xf32>
    %c9 = arith.constant 9 : index
    %c0_119 = arith.constant 0 : index
    %387 = vector.load %arg5[%c9, %c0_119] : memref<48x192xf32, #tpu.memory_space<vmem>>, vector<1x64xf32>
    %388 = vector.broadcast %387 : vector<1x64xf32> to vector<16x64xf32>
    %389 = arith.addf %386, %388 : vector<16x64xf32>
    %390 = arith.addf %226, %389 : vector<16x64xf32>
    %c12 = arith.constant 12 : index
    %c0_120 = arith.constant 0 : index
    %391 = vector.load %arg5[%c12, %c0_120] : memref<48x192xf32, #tpu.memory_space<vmem>>, vector<1x64xf32>
    %c13 = arith.constant 13 : index
    %c0_121 = arith.constant 0 : index
    %392 = vector.load %arg5[%c13, %c0_121] : memref<48x192xf32, #tpu.memory_space<vmem>>, vector<1x64xf32>
    %cst_122 = arith.constant dense<0.000000e+00> : vector<16xf32>
    %393 = vector.multi_reduction <add>, %390, %cst_122 [1] : vector<16x64xf32> to vector<16xf32>
    %394 = vector.shape_cast %393 : vector<16xf32> to vector<16x1xf32>
    %cst_123 = arith.constant 6.400000e+01 : f32
    %395 = vector.broadcast %cst_123 : f32 to vector<16x1xf32>
    %396 = arith.divf %394, %395 : vector<16x1xf32>
    %397 = vector.broadcast %396 : vector<16x1xf32> to vector<16x64xf32>
    %398 = arith.subf %390, %397 : vector<16x64xf32>
    %399 = arith.mulf %398, %398 : vector<16x64xf32>
    %cst_124 = arith.constant dense<0.000000e+00> : vector<16xf32>
    %400 = vector.multi_reduction <add>, %399, %cst_124 [1] : vector<16x64xf32> to vector<16xf32>
    %401 = vector.shape_cast %400 : vector<16xf32> to vector<16x1xf32>
    %cst_125 = arith.constant 6.400000e+01 : f32
    %402 = vector.broadcast %cst_125 : f32 to vector<16x1xf32>
    %403 = arith.divf %401, %402 : vector<16x1xf32>
    %cst_126 = arith.constant 9.99999974E-6 : f32
    %404 = vector.broadcast %cst_126 : f32 to vector<16x1xf32>
    %405 = arith.addf %403, %404 : vector<16x1xf32>
    %406 = math.rsqrt %405 : vector<16x1xf32>
    %407 = vector.broadcast %406 : vector<16x1xf32> to vector<16x64xf32>
    %408 = arith.mulf %398, %407 : vector<16x64xf32>
    %409 = vector.broadcast %391 : vector<1x64xf32> to vector<16x64xf32>
    %410 = arith.mulf %408, %409 : vector<16x64xf32>
    %411 = vector.broadcast %392 : vector<1x64xf32> to vector<16x64xf32>
    %412 = arith.addf %410, %411 : vector<16x64xf32>
    %c384 = arith.constant 384 : index
    %c0_127 = arith.constant 0 : index
    %413 = vector.load %arg3[%c384, %c0_127] : memref<512x192xf32, #tpu.memory_space<vmem>>, vector<64x64xf32>
    %cst_128 = arith.constant dense<0.000000e+00> : vector<16x64xf32>
    %414 = tpu.matmul %412, %413, %cst_128 {dimension_numbers = #tpu.dot_dimension_numbers<[1], [0], [0], [1], [0, 0, 1, 1], [], []>} : vector<16x64xf32>, vector<64x64xf32>, vector<16x64xf32> -> vector<16x64xf32>
    %c10 = arith.constant 10 : index
    %c0_129 = arith.constant 0 : index
    %415 = vector.load %arg5[%c10, %c0_129] : memref<48x192xf32, #tpu.memory_space<vmem>>, vector<1x64xf32>
    %416 = vector.broadcast %415 : vector<1x64xf32> to vector<16x64xf32>
    %417 = arith.addf %414, %416 : vector<16x64xf32>
    %cst_130 = arith.constant 0.000000e+00 : f32
    %418 = vector.broadcast %cst_130 : f32 to vector<16x64xf32>
    %419 = arith.maximumf %417, %418 : vector<16x64xf32>
    %c448 = arith.constant 448 : index
    %c0_131 = arith.constant 0 : index
    %420 = vector.load %arg3[%c448, %c0_131] : memref<512x192xf32, #tpu.memory_space<vmem>>, vector<64x64xf32>
    %cst_132 = arith.constant dense<0.000000e+00> : vector<16x64xf32>
    %421 = tpu.matmul %419, %420, %cst_132 {dimension_numbers = #tpu.dot_dimension_numbers<[1], [0], [0], [1], [0, 0, 1, 1], [], []>} : vector<16x64xf32>, vector<64x64xf32>, vector<16x64xf32> -> vector<16x64xf32>
    %c11 = arith.constant 11 : index
    %c0_133 = arith.constant 0 : index
    %422 = vector.load %arg5[%c11, %c0_133] : memref<48x192xf32, #tpu.memory_space<vmem>>, vector<1x64xf32>
    %423 = vector.broadcast %422 : vector<1x64xf32> to vector<16x64xf32>
    %424 = arith.addf %421, %423 : vector<16x64xf32>
    %425 = arith.addf %412, %424 : vector<16x64xf32>
    %c14 = arith.constant 14 : index
    %c0_134 = arith.constant 0 : index
    %426 = vector.load %arg5[%c14, %c0_134] : memref<48x192xf32, #tpu.memory_space<vmem>>, vector<1x64xf32>
    %c15 = arith.constant 15 : index
    %c0_135 = arith.constant 0 : index
    %427 = vector.load %arg5[%c15, %c0_135] : memref<48x192xf32, #tpu.memory_space<vmem>>, vector<1x64xf32>
    %cst_136 = arith.constant dense<0.000000e+00> : vector<16xf32>
    %428 = vector.multi_reduction <add>, %425, %cst_136 [1] : vector<16x64xf32> to vector<16xf32>
    %429 = vector.shape_cast %428 : vector<16xf32> to vector<16x1xf32>
    %cst_137 = arith.constant 6.400000e+01 : f32
    %430 = vector.broadcast %cst_137 : f32 to vector<16x1xf32>
    %431 = arith.divf %429, %430 : vector<16x1xf32>
    %432 = vector.broadcast %431 : vector<16x1xf32> to vector<16x64xf32>
    %433 = arith.subf %425, %432 : vector<16x64xf32>
    %434 = arith.mulf %433, %433 : vector<16x64xf32>
    %cst_138 = arith.constant dense<0.000000e+00> : vector<16xf32>
    %435 = vector.multi_reduction <add>, %434, %cst_138 [1] : vector<16x64xf32> to vector<16xf32>
    %436 = vector.shape_cast %435 : vector<16xf32> to vector<16x1xf32>
    %cst_139 = arith.constant 6.400000e+01 : f32
    %437 = vector.broadcast %cst_139 : f32 to vector<16x1xf32>
    %438 = arith.divf %436, %437 : vector<16x1xf32>
    %cst_140 = arith.constant 9.99999974E-6 : f32
    %439 = vector.broadcast %cst_140 : f32 to vector<16x1xf32>
    %440 = arith.addf %438, %439 : vector<16x1xf32>
    %441 = math.rsqrt %440 : vector<16x1xf32>
    %442 = vector.broadcast %441 : vector<16x1xf32> to vector<16x64xf32>
    %443 = arith.mulf %433, %442 : vector<16x64xf32>
    %444 = vector.broadcast %426 : vector<1x64xf32> to vector<16x64xf32>
    %445 = arith.mulf %443, %444 : vector<16x64xf32>
    %446 = vector.broadcast %427 : vector<1x64xf32> to vector<16x64xf32>
    %447 = arith.addf %445, %446 : vector<16x64xf32>
    %448 = vector.extract_strided_slice %447 {offsets = [0, 0], sizes = [16, 32], strides = [1, 1]} : vector<16x64xf32> to vector<16x32xf32>
    %449 = vector.extract_strided_slice %447 {offsets = [0, 32], sizes = [16, 32], strides = [1, 1]} : vector<16x64xf32> to vector<16x32xf32>
    %cst_141 = arith.constant 0.000000e+00 : f32
    %450 = vector.broadcast %cst_141 : f32 to vector<16x32xf32>
    %451 = arith.maximumf %449, %450 : vector<16x32xf32>
    %452 = math.absf %449 : vector<16x32xf32>
    %cst_142 = arith.constant 0.000000e+00 : f32
    %453 = vector.broadcast %cst_142 : f32 to vector<16x32xf32>
    %454 = arith.subf %453, %452 : vector<16x32xf32>
    %455 = math.exp %454 : vector<16x32xf32>
    %cst_143 = arith.constant 1.000000e+00 : f32
    %456 = vector.broadcast %cst_143 : f32 to vector<16x32xf32>
    %457 = arith.addf %456, %455 : vector<16x32xf32>
    %458 = math.log %457 : vector<16x32xf32>
    %459 = arith.addf %451, %458 : vector<16x32xf32>
    %cst_144 = arith.constant 9.99999974E-5 : f32
    %460 = vector.broadcast %cst_144 : f32 to vector<16x32xf32>
    %461 = arith.addf %460, %459 : vector<16x32xf32>
    %462 = arith.mulf %2, %461 : vector<16x32xf32>
    %463 = arith.addf %448, %462 : vector<16x32xf32>
    %464 = math.log %461 : vector<16x32xf32>
    %cst_145 = arith.constant 2.000000e+00 : f32
    %465 = vector.broadcast %cst_145 : f32 to vector<16x32xf32>
    %466 = arith.mulf %465, %464 : vector<16x32xf32>
    %c0_146 = arith.constant 0 : index
    %c0_147 = arith.constant 0 : index
    %467 = vector.load %arg4[%c0_146, %c0_147] : memref<544x128xf32, #tpu.memory_space<vmem>>, vector<32x96xf32>
    %cst_148 = arith.constant dense<0.000000e+00> : vector<16x96xf32>
    %468 = tpu.matmul %1, %467, %cst_148 {dimension_numbers = #tpu.dot_dimension_numbers<[1], [0], [0], [1], [0, 0, 1, 1], [], []>} : vector<16x32xf32>, vector<32x96xf32>, vector<16x96xf32> -> vector<16x96xf32>
    %c16_149 = arith.constant 16 : index
    %c0_150 = arith.constant 0 : index
    %469 = vector.load %arg5[%c16_149, %c0_150] : memref<48x192xf32, #tpu.memory_space<vmem>>, vector<1x96xf32>
    %470 = vector.broadcast %469 : vector<1x96xf32> to vector<16x96xf32>
    %471 = arith.addf %468, %470 : vector<16x96xf32>
    %472 = vector.extract_strided_slice %471 {offsets = [0, 0], sizes = [16, 32], strides = [1, 1]} : vector<16x96xf32> to vector<16x32xf32>
    %473 = vector.extract_strided_slice %471 {offsets = [0, 32], sizes = [16, 32], strides = [1, 1]} : vector<16x96xf32> to vector<16x32xf32>
    %474 = vector.extract_strided_slice %471 {offsets = [0, 64], sizes = [16, 32], strides = [1, 1]} : vector<16x96xf32> to vector<16x32xf32>
    %c32_151 = arith.constant 32 : index
    %c0_152 = arith.constant 0 : index
    %475 = vector.load %arg4[%c32_151, %c0_152] : memref<544x128xf32, #tpu.memory_space<vmem>>, vector<32x32xf32>
    %476 = vector.extract_strided_slice %472 {offsets = [0, 0], sizes = [16, 4], strides = [1, 1]} : vector<16x32xf32> to vector<16x4xf32>
    %477 = vector.extract_strided_slice %473 {offsets = [0, 0], sizes = [16, 4], strides = [1, 1]} : vector<16x32xf32> to vector<16x4xf32>
    %cst_153 = arith.constant dense<0.000000e+00> : vector<16x16xf32>
    %478 = tpu.matmul %476, %477, %cst_153 {dimension_numbers = #tpu.dot_dimension_numbers<[1], [1], [0], [0], [0, 0, 1, 0], [], []>} : vector<16x4xf32>, vector<16x4xf32>, vector<16x16xf32> -> vector<16x16xf32>
    %479 = arith.addf %478, %4 : vector<16x16xf32>
    %cst_154 = arith.constant dense<0xFF800000> : vector<16xf32>
    %480 = vector.multi_reduction <maximumf>, %479, %cst_154 [1] : vector<16x16xf32> to vector<16xf32>
    %481 = vector.shape_cast %480 : vector<16xf32> to vector<16x1xf32>
    %482 = vector.broadcast %481 : vector<16x1xf32> to vector<16x16xf32>
    %483 = arith.subf %479, %482 : vector<16x16xf32>
    %484 = math.exp %483 : vector<16x16xf32>
    %cst_155 = arith.constant dense<0.000000e+00> : vector<16xf32>
    %485 = vector.multi_reduction <add>, %484, %cst_155 [1] : vector<16x16xf32> to vector<16xf32>
    %486 = vector.shape_cast %485 : vector<16xf32> to vector<16x1xf32>
    %487 = tpu.reciprocal %486 {approx = true} : vector<16x1xf32> -> vector<16x1xf32>
    %488 = vector.broadcast %487 : vector<16x1xf32> to vector<16x16xf32>
    %489 = arith.mulf %484, %488 : vector<16x16xf32>
    %490 = vector.extract_strided_slice %474 {offsets = [0, 0], sizes = [16, 4], strides = [1, 1]} : vector<16x32xf32> to vector<16x4xf32>
    %cst_156 = arith.constant dense<0.000000e+00> : vector<16x4xf32>
    %491 = tpu.matmul %489, %490, %cst_156 {dimension_numbers = #tpu.dot_dimension_numbers<[1], [0], [0], [1], [0, 0, 1, 1], [], []>} : vector<16x16xf32>, vector<16x4xf32>, vector<16x4xf32> -> vector<16x4xf32>
    %492 = vector.extract_strided_slice %475 {offsets = [0, 0], sizes = [4, 32], strides = [1, 1]} : vector<32x32xf32> to vector<4x32xf32>
    %cst_157 = arith.constant dense<0.000000e+00> : vector<16x32xf32>
    %493 = tpu.matmul %491, %492, %cst_157 {dimension_numbers = #tpu.dot_dimension_numbers<[1], [0], [0], [1], [0, 0, 1, 1], [], []>} : vector<16x4xf32>, vector<4x32xf32>, vector<16x32xf32> -> vector<16x32xf32>
    %494 = vector.extract_strided_slice %472 {offsets = [0, 4], sizes = [16, 4], strides = [1, 1]} : vector<16x32xf32> to vector<16x4xf32>
    %495 = vector.extract_strided_slice %473 {offsets = [0, 4], sizes = [16, 4], strides = [1, 1]} : vector<16x32xf32> to vector<16x4xf32>
    %cst_158 = arith.constant dense<0.000000e+00> : vector<16x16xf32>
    %496 = tpu.matmul %494, %495, %cst_158 {dimension_numbers = #tpu.dot_dimension_numbers<[1], [1], [0], [0], [0, 0, 1, 0], [], []>} : vector<16x4xf32>, vector<16x4xf32>, vector<16x16xf32> -> vector<16x16xf32>
    %497 = arith.addf %496, %4 : vector<16x16xf32>
    %cst_159 = arith.constant dense<0xFF800000> : vector<16xf32>
    %498 = vector.multi_reduction <maximumf>, %497, %cst_159 [1] : vector<16x16xf32> to vector<16xf32>
    %499 = vector.shape_cast %498 : vector<16xf32> to vector<16x1xf32>
    %500 = vector.broadcast %499 : vector<16x1xf32> to vector<16x16xf32>
    %501 = arith.subf %497, %500 : vector<16x16xf32>
    %502 = math.exp %501 : vector<16x16xf32>
    %cst_160 = arith.constant dense<0.000000e+00> : vector<16xf32>
    %503 = vector.multi_reduction <add>, %502, %cst_160 [1] : vector<16x16xf32> to vector<16xf32>
    %504 = vector.shape_cast %503 : vector<16xf32> to vector<16x1xf32>
    %505 = tpu.reciprocal %504 {approx = true} : vector<16x1xf32> -> vector<16x1xf32>
    %506 = vector.broadcast %505 : vector<16x1xf32> to vector<16x16xf32>
    %507 = arith.mulf %502, %506 : vector<16x16xf32>
    %508 = vector.extract_strided_slice %474 {offsets = [0, 4], sizes = [16, 4], strides = [1, 1]} : vector<16x32xf32> to vector<16x4xf32>
    %cst_161 = arith.constant dense<0.000000e+00> : vector<16x4xf32>
    %509 = tpu.matmul %507, %508, %cst_161 {dimension_numbers = #tpu.dot_dimension_numbers<[1], [0], [0], [1], [0, 0, 1, 1], [], []>} : vector<16x16xf32>, vector<16x4xf32>, vector<16x4xf32> -> vector<16x4xf32>
    %510 = vector.extract_strided_slice %475 {offsets = [4, 0], sizes = [4, 32], strides = [1, 1]} : vector<32x32xf32> to vector<4x32xf32>
    %cst_162 = arith.constant dense<0.000000e+00> : vector<16x32xf32>
    %511 = tpu.matmul %509, %510, %cst_162 {dimension_numbers = #tpu.dot_dimension_numbers<[1], [0], [0], [1], [0, 0, 1, 1], [], []>} : vector<16x4xf32>, vector<4x32xf32>, vector<16x32xf32> -> vector<16x32xf32>
    %512 = arith.addf %493, %511 : vector<16x32xf32>
    %513 = vector.extract_strided_slice %472 {offsets = [0, 8], sizes = [16, 4], strides = [1, 1]} : vector<16x32xf32> to vector<16x4xf32>
    %514 = vector.extract_strided_slice %473 {offsets = [0, 8], sizes = [16, 4], strides = [1, 1]} : vector<16x32xf32> to vector<16x4xf32>
    %cst_163 = arith.constant dense<0.000000e+00> : vector<16x16xf32>
    %515 = tpu.matmul %513, %514, %cst_163 {dimension_numbers = #tpu.dot_dimension_numbers<[1], [1], [0], [0], [0, 0, 1, 0], [], []>} : vector<16x4xf32>, vector<16x4xf32>, vector<16x16xf32> -> vector<16x16xf32>
    %516 = arith.addf %515, %4 : vector<16x16xf32>
    %cst_164 = arith.constant dense<0xFF800000> : vector<16xf32>
    %517 = vector.multi_reduction <maximumf>, %516, %cst_164 [1] : vector<16x16xf32> to vector<16xf32>
    %518 = vector.shape_cast %517 : vector<16xf32> to vector<16x1xf32>
    %519 = vector.broadcast %518 : vector<16x1xf32> to vector<16x16xf32>
    %520 = arith.subf %516, %519 : vector<16x16xf32>
    %521 = math.exp %520 : vector<16x16xf32>
    %cst_165 = arith.constant dense<0.000000e+00> : vector<16xf32>
    %522 = vector.multi_reduction <add>, %521, %cst_165 [1] : vector<16x16xf32> to vector<16xf32>
    %523 = vector.shape_cast %522 : vector<16xf32> to vector<16x1xf32>
    %524 = tpu.reciprocal %523 {approx = true} : vector<16x1xf32> -> vector<16x1xf32>
    %525 = vector.broadcast %524 : vector<16x1xf32> to vector<16x16xf32>
    %526 = arith.mulf %521, %525 : vector<16x16xf32>
    %527 = vector.extract_strided_slice %474 {offsets = [0, 8], sizes = [16, 4], strides = [1, 1]} : vector<16x32xf32> to vector<16x4xf32>
    %cst_166 = arith.constant dense<0.000000e+00> : vector<16x4xf32>
    %528 = tpu.matmul %526, %527, %cst_166 {dimension_numbers = #tpu.dot_dimension_numbers<[1], [0], [0], [1], [0, 0, 1, 1], [], []>} : vector<16x16xf32>, vector<16x4xf32>, vector<16x4xf32> -> vector<16x4xf32>
    %529 = vector.extract_strided_slice %475 {offsets = [8, 0], sizes = [4, 32], strides = [1, 1]} : vector<32x32xf32> to vector<4x32xf32>
    %cst_167 = arith.constant dense<0.000000e+00> : vector<16x32xf32>
    %530 = tpu.matmul %528, %529, %cst_167 {dimension_numbers = #tpu.dot_dimension_numbers<[1], [0], [0], [1], [0, 0, 1, 1], [], []>} : vector<16x4xf32>, vector<4x32xf32>, vector<16x32xf32> -> vector<16x32xf32>
    %531 = arith.addf %512, %530 : vector<16x32xf32>
    %532 = vector.extract_strided_slice %472 {offsets = [0, 12], sizes = [16, 4], strides = [1, 1]} : vector<16x32xf32> to vector<16x4xf32>
    %533 = vector.extract_strided_slice %473 {offsets = [0, 12], sizes = [16, 4], strides = [1, 1]} : vector<16x32xf32> to vector<16x4xf32>
    %cst_168 = arith.constant dense<0.000000e+00> : vector<16x16xf32>
    %534 = tpu.matmul %532, %533, %cst_168 {dimension_numbers = #tpu.dot_dimension_numbers<[1], [1], [0], [0], [0, 0, 1, 0], [], []>} : vector<16x4xf32>, vector<16x4xf32>, vector<16x16xf32> -> vector<16x16xf32>
    %535 = arith.addf %534, %4 : vector<16x16xf32>
    %cst_169 = arith.constant dense<0xFF800000> : vector<16xf32>
    %536 = vector.multi_reduction <maximumf>, %535, %cst_169 [1] : vector<16x16xf32> to vector<16xf32>
    %537 = vector.shape_cast %536 : vector<16xf32> to vector<16x1xf32>
    %538 = vector.broadcast %537 : vector<16x1xf32> to vector<16x16xf32>
    %539 = arith.subf %535, %538 : vector<16x16xf32>
    %540 = math.exp %539 : vector<16x16xf32>
    %cst_170 = arith.constant dense<0.000000e+00> : vector<16xf32>
    %541 = vector.multi_reduction <add>, %540, %cst_170 [1] : vector<16x16xf32> to vector<16xf32>
    %542 = vector.shape_cast %541 : vector<16xf32> to vector<16x1xf32>
    %543 = tpu.reciprocal %542 {approx = true} : vector<16x1xf32> -> vector<16x1xf32>
    %544 = vector.broadcast %543 : vector<16x1xf32> to vector<16x16xf32>
    %545 = arith.mulf %540, %544 : vector<16x16xf32>
    %546 = vector.extract_strided_slice %474 {offsets = [0, 12], sizes = [16, 4], strides = [1, 1]} : vector<16x32xf32> to vector<16x4xf32>
    %cst_171 = arith.constant dense<0.000000e+00> : vector<16x4xf32>
    %547 = tpu.matmul %545, %546, %cst_171 {dimension_numbers = #tpu.dot_dimension_numbers<[1], [0], [0], [1], [0, 0, 1, 1], [], []>} : vector<16x16xf32>, vector<16x4xf32>, vector<16x4xf32> -> vector<16x4xf32>
    %548 = vector.extract_strided_slice %475 {offsets = [12, 0], sizes = [4, 32], strides = [1, 1]} : vector<32x32xf32> to vector<4x32xf32>
    %cst_172 = arith.constant dense<0.000000e+00> : vector<16x32xf32>
    %549 = tpu.matmul %547, %548, %cst_172 {dimension_numbers = #tpu.dot_dimension_numbers<[1], [0], [0], [1], [0, 0, 1, 1], [], []>} : vector<16x4xf32>, vector<4x32xf32>, vector<16x32xf32> -> vector<16x32xf32>
    %550 = arith.addf %531, %549 : vector<16x32xf32>
    %551 = vector.extract_strided_slice %472 {offsets = [0, 16], sizes = [16, 4], strides = [1, 1]} : vector<16x32xf32> to vector<16x4xf32>
    %552 = vector.extract_strided_slice %473 {offsets = [0, 16], sizes = [16, 4], strides = [1, 1]} : vector<16x32xf32> to vector<16x4xf32>
    %cst_173 = arith.constant dense<0.000000e+00> : vector<16x16xf32>
    %553 = tpu.matmul %551, %552, %cst_173 {dimension_numbers = #tpu.dot_dimension_numbers<[1], [1], [0], [0], [0, 0, 1, 0], [], []>} : vector<16x4xf32>, vector<16x4xf32>, vector<16x16xf32> -> vector<16x16xf32>
    %554 = arith.addf %553, %4 : vector<16x16xf32>
    %cst_174 = arith.constant dense<0xFF800000> : vector<16xf32>
    %555 = vector.multi_reduction <maximumf>, %554, %cst_174 [1] : vector<16x16xf32> to vector<16xf32>
    %556 = vector.shape_cast %555 : vector<16xf32> to vector<16x1xf32>
    %557 = vector.broadcast %556 : vector<16x1xf32> to vector<16x16xf32>
    %558 = arith.subf %554, %557 : vector<16x16xf32>
    %559 = math.exp %558 : vector<16x16xf32>
    %cst_175 = arith.constant dense<0.000000e+00> : vector<16xf32>
    %560 = vector.multi_reduction <add>, %559, %cst_175 [1] : vector<16x16xf32> to vector<16xf32>
    %561 = vector.shape_cast %560 : vector<16xf32> to vector<16x1xf32>
    %562 = tpu.reciprocal %561 {approx = true} : vector<16x1xf32> -> vector<16x1xf32>
    %563 = vector.broadcast %562 : vector<16x1xf32> to vector<16x16xf32>
    %564 = arith.mulf %559, %563 : vector<16x16xf32>
    %565 = vector.extract_strided_slice %474 {offsets = [0, 16], sizes = [16, 4], strides = [1, 1]} : vector<16x32xf32> to vector<16x4xf32>
    %cst_176 = arith.constant dense<0.000000e+00> : vector<16x4xf32>
    %566 = tpu.matmul %564, %565, %cst_176 {dimension_numbers = #tpu.dot_dimension_numbers<[1], [0], [0], [1], [0, 0, 1, 1], [], []>} : vector<16x16xf32>, vector<16x4xf32>, vector<16x4xf32> -> vector<16x4xf32>
    %567 = vector.extract_strided_slice %475 {offsets = [16, 0], sizes = [4, 32], strides = [1, 1]} : vector<32x32xf32> to vector<4x32xf32>
    %cst_177 = arith.constant dense<0.000000e+00> : vector<16x32xf32>
    %568 = tpu.matmul %566, %567, %cst_177 {dimension_numbers = #tpu.dot_dimension_numbers<[1], [0], [0], [1], [0, 0, 1, 1], [], []>} : vector<16x4xf32>, vector<4x32xf32>, vector<16x32xf32> -> vector<16x32xf32>
    %569 = arith.addf %550, %568 : vector<16x32xf32>
    %570 = vector.extract_strided_slice %472 {offsets = [0, 20], sizes = [16, 4], strides = [1, 1]} : vector<16x32xf32> to vector<16x4xf32>
    %571 = vector.extract_strided_slice %473 {offsets = [0, 20], sizes = [16, 4], strides = [1, 1]} : vector<16x32xf32> to vector<16x4xf32>
    %cst_178 = arith.constant dense<0.000000e+00> : vector<16x16xf32>
    %572 = tpu.matmul %570, %571, %cst_178 {dimension_numbers = #tpu.dot_dimension_numbers<[1], [1], [0], [0], [0, 0, 1, 0], [], []>} : vector<16x4xf32>, vector<16x4xf32>, vector<16x16xf32> -> vector<16x16xf32>
    %573 = arith.addf %572, %4 : vector<16x16xf32>
    %cst_179 = arith.constant dense<0xFF800000> : vector<16xf32>
    %574 = vector.multi_reduction <maximumf>, %573, %cst_179 [1] : vector<16x16xf32> to vector<16xf32>
    %575 = vector.shape_cast %574 : vector<16xf32> to vector<16x1xf32>
    %576 = vector.broadcast %575 : vector<16x1xf32> to vector<16x16xf32>
    %577 = arith.subf %573, %576 : vector<16x16xf32>
    %578 = math.exp %577 : vector<16x16xf32>
    %cst_180 = arith.constant dense<0.000000e+00> : vector<16xf32>
    %579 = vector.multi_reduction <add>, %578, %cst_180 [1] : vector<16x16xf32> to vector<16xf32>
    %580 = vector.shape_cast %579 : vector<16xf32> to vector<16x1xf32>
    %581 = tpu.reciprocal %580 {approx = true} : vector<16x1xf32> -> vector<16x1xf32>
    %582 = vector.broadcast %581 : vector<16x1xf32> to vector<16x16xf32>
    %583 = arith.mulf %578, %582 : vector<16x16xf32>
    %584 = vector.extract_strided_slice %474 {offsets = [0, 20], sizes = [16, 4], strides = [1, 1]} : vector<16x32xf32> to vector<16x4xf32>
    %cst_181 = arith.constant dense<0.000000e+00> : vector<16x4xf32>
    %585 = tpu.matmul %583, %584, %cst_181 {dimension_numbers = #tpu.dot_dimension_numbers<[1], [0], [0], [1], [0, 0, 1, 1], [], []>} : vector<16x16xf32>, vector<16x4xf32>, vector<16x4xf32> -> vector<16x4xf32>
    %586 = vector.extract_strided_slice %475 {offsets = [20, 0], sizes = [4, 32], strides = [1, 1]} : vector<32x32xf32> to vector<4x32xf32>
    %cst_182 = arith.constant dense<0.000000e+00> : vector<16x32xf32>
    %587 = tpu.matmul %585, %586, %cst_182 {dimension_numbers = #tpu.dot_dimension_numbers<[1], [0], [0], [1], [0, 0, 1, 1], [], []>} : vector<16x4xf32>, vector<4x32xf32>, vector<16x32xf32> -> vector<16x32xf32>
    %588 = arith.addf %569, %587 : vector<16x32xf32>
    %589 = vector.extract_strided_slice %472 {offsets = [0, 24], sizes = [16, 4], strides = [1, 1]} : vector<16x32xf32> to vector<16x4xf32>
    %590 = vector.extract_strided_slice %473 {offsets = [0, 24], sizes = [16, 4], strides = [1, 1]} : vector<16x32xf32> to vector<16x4xf32>
    %cst_183 = arith.constant dense<0.000000e+00> : vector<16x16xf32>
    %591 = tpu.matmul %589, %590, %cst_183 {dimension_numbers = #tpu.dot_dimension_numbers<[1], [1], [0], [0], [0, 0, 1, 0], [], []>} : vector<16x4xf32>, vector<16x4xf32>, vector<16x16xf32> -> vector<16x16xf32>
    %592 = arith.addf %591, %4 : vector<16x16xf32>
    %cst_184 = arith.constant dense<0xFF800000> : vector<16xf32>
    %593 = vector.multi_reduction <maximumf>, %592, %cst_184 [1] : vector<16x16xf32> to vector<16xf32>
    %594 = vector.shape_cast %593 : vector<16xf32> to vector<16x1xf32>
    %595 = vector.broadcast %594 : vector<16x1xf32> to vector<16x16xf32>
    %596 = arith.subf %592, %595 : vector<16x16xf32>
    %597 = math.exp %596 : vector<16x16xf32>
    %cst_185 = arith.constant dense<0.000000e+00> : vector<16xf32>
    %598 = vector.multi_reduction <add>, %597, %cst_185 [1] : vector<16x16xf32> to vector<16xf32>
    %599 = vector.shape_cast %598 : vector<16xf32> to vector<16x1xf32>
    %600 = tpu.reciprocal %599 {approx = true} : vector<16x1xf32> -> vector<16x1xf32>
    %601 = vector.broadcast %600 : vector<16x1xf32> to vector<16x16xf32>
    %602 = arith.mulf %597, %601 : vector<16x16xf32>
    %603 = vector.extract_strided_slice %474 {offsets = [0, 24], sizes = [16, 4], strides = [1, 1]} : vector<16x32xf32> to vector<16x4xf32>
    %cst_186 = arith.constant dense<0.000000e+00> : vector<16x4xf32>
    %604 = tpu.matmul %602, %603, %cst_186 {dimension_numbers = #tpu.dot_dimension_numbers<[1], [0], [0], [1], [0, 0, 1, 1], [], []>} : vector<16x16xf32>, vector<16x4xf32>, vector<16x4xf32> -> vector<16x4xf32>
    %605 = vector.extract_strided_slice %475 {offsets = [24, 0], sizes = [4, 32], strides = [1, 1]} : vector<32x32xf32> to vector<4x32xf32>
    %cst_187 = arith.constant dense<0.000000e+00> : vector<16x32xf32>
    %606 = tpu.matmul %604, %605, %cst_187 {dimension_numbers = #tpu.dot_dimension_numbers<[1], [0], [0], [1], [0, 0, 1, 1], [], []>} : vector<16x4xf32>, vector<4x32xf32>, vector<16x32xf32> -> vector<16x32xf32>
    %607 = arith.addf %588, %606 : vector<16x32xf32>
    %608 = vector.extract_strided_slice %472 {offsets = [0, 28], sizes = [16, 4], strides = [1, 1]} : vector<16x32xf32> to vector<16x4xf32>
    %609 = vector.extract_strided_slice %473 {offsets = [0, 28], sizes = [16, 4], strides = [1, 1]} : vector<16x32xf32> to vector<16x4xf32>
    %cst_188 = arith.constant dense<0.000000e+00> : vector<16x16xf32>
    %610 = tpu.matmul %608, %609, %cst_188 {dimension_numbers = #tpu.dot_dimension_numbers<[1], [1], [0], [0], [0, 0, 1, 0], [], []>} : vector<16x4xf32>, vector<16x4xf32>, vector<16x16xf32> -> vector<16x16xf32>
    %611 = arith.addf %610, %4 : vector<16x16xf32>
    %cst_189 = arith.constant dense<0xFF800000> : vector<16xf32>
    %612 = vector.multi_reduction <maximumf>, %611, %cst_189 [1] : vector<16x16xf32> to vector<16xf32>
    %613 = vector.shape_cast %612 : vector<16xf32> to vector<16x1xf32>
    %614 = vector.broadcast %613 : vector<16x1xf32> to vector<16x16xf32>
    %615 = arith.subf %611, %614 : vector<16x16xf32>
    %616 = math.exp %615 : vector<16x16xf32>
    %cst_190 = arith.constant dense<0.000000e+00> : vector<16xf32>
    %617 = vector.multi_reduction <add>, %616, %cst_190 [1] : vector<16x16xf32> to vector<16xf32>
    %618 = vector.shape_cast %617 : vector<16xf32> to vector<16x1xf32>
    %619 = tpu.reciprocal %618 {approx = true} : vector<16x1xf32> -> vector<16x1xf32>
    %620 = vector.broadcast %619 : vector<16x1xf32> to vector<16x16xf32>
    %621 = arith.mulf %616, %620 : vector<16x16xf32>
    %622 = vector.extract_strided_slice %474 {offsets = [0, 28], sizes = [16, 4], strides = [1, 1]} : vector<16x32xf32> to vector<16x4xf32>
    %cst_191 = arith.constant dense<0.000000e+00> : vector<16x4xf32>
    %623 = tpu.matmul %621, %622, %cst_191 {dimension_numbers = #tpu.dot_dimension_numbers<[1], [0], [0], [1], [0, 0, 1, 1], [], []>} : vector<16x16xf32>, vector<16x4xf32>, vector<16x4xf32> -> vector<16x4xf32>
    %624 = vector.extract_strided_slice %475 {offsets = [28, 0], sizes = [4, 32], strides = [1, 1]} : vector<32x32xf32> to vector<4x32xf32>
    %cst_192 = arith.constant dense<0.000000e+00> : vector<16x32xf32>
    %625 = tpu.matmul %623, %624, %cst_192 {dimension_numbers = #tpu.dot_dimension_numbers<[1], [0], [0], [1], [0, 0, 1, 1], [], []>} : vector<16x4xf32>, vector<4x32xf32>, vector<16x32xf32> -> vector<16x32xf32>
    %626 = arith.addf %607, %625 : vector<16x32xf32>
    %c17 = arith.constant 17 : index
    %c0_193 = arith.constant 0 : index
    %627 = vector.load %arg5[%c17, %c0_193] : memref<48x192xf32, #tpu.memory_space<vmem>>, vector<1x32xf32>
    %628 = vector.broadcast %627 : vector<1x32xf32> to vector<16x32xf32>
    %629 = arith.addf %626, %628 : vector<16x32xf32>
    %630 = arith.addf %1, %629 : vector<16x32xf32>
    %c23 = arith.constant 23 : index
    %c0_194 = arith.constant 0 : index
    %631 = vector.load %arg5[%c23, %c0_194] : memref<48x192xf32, #tpu.memory_space<vmem>>, vector<1x32xf32>
    %c24 = arith.constant 24 : index
    %c0_195 = arith.constant 0 : index
    %632 = vector.load %arg5[%c24, %c0_195] : memref<48x192xf32, #tpu.memory_space<vmem>>, vector<1x32xf32>
    %cst_196 = arith.constant dense<0.000000e+00> : vector<16xf32>
    %633 = vector.multi_reduction <add>, %630, %cst_196 [1] : vector<16x32xf32> to vector<16xf32>
    %634 = vector.shape_cast %633 : vector<16xf32> to vector<16x1xf32>
    %cst_197 = arith.constant 3.200000e+01 : f32
    %635 = vector.broadcast %cst_197 : f32 to vector<16x1xf32>
    %636 = arith.divf %634, %635 : vector<16x1xf32>
    %637 = vector.broadcast %636 : vector<16x1xf32> to vector<16x32xf32>
    %638 = arith.subf %630, %637 : vector<16x32xf32>
    %639 = arith.mulf %638, %638 : vector<16x32xf32>
    %cst_198 = arith.constant dense<0.000000e+00> : vector<16xf32>
    %640 = vector.multi_reduction <add>, %639, %cst_198 [1] : vector<16x32xf32> to vector<16xf32>
    %641 = vector.shape_cast %640 : vector<16xf32> to vector<16x1xf32>
    %cst_199 = arith.constant 3.200000e+01 : f32
    %642 = vector.broadcast %cst_199 : f32 to vector<16x1xf32>
    %643 = arith.divf %641, %642 : vector<16x1xf32>
    %cst_200 = arith.constant 9.99999974E-6 : f32
    %644 = vector.broadcast %cst_200 : f32 to vector<16x1xf32>
    %645 = arith.addf %643, %644 : vector<16x1xf32>
    %646 = math.rsqrt %645 : vector<16x1xf32>
    %647 = vector.broadcast %646 : vector<16x1xf32> to vector<16x32xf32>
    %648 = arith.mulf %638, %647 : vector<16x32xf32>
    %649 = vector.broadcast %631 : vector<1x32xf32> to vector<16x32xf32>
    %650 = arith.mulf %648, %649 : vector<16x32xf32>
    %651 = vector.broadcast %632 : vector<1x32xf32> to vector<16x32xf32>
    %652 = arith.addf %650, %651 : vector<16x32xf32>
    %c64_201 = arith.constant 64 : index
    %c0_202 = arith.constant 0 : index
    %653 = vector.load %arg4[%c64_201, %c0_202] : memref<544x128xf32, #tpu.memory_space<vmem>>, vector<32x32xf32>
    %cst_203 = arith.constant dense<0.000000e+00> : vector<16x32xf32>
    %654 = tpu.matmul %652, %653, %cst_203 {dimension_numbers = #tpu.dot_dimension_numbers<[1], [0], [0], [1], [0, 0, 1, 1], [], []>} : vector<16x32xf32>, vector<32x32xf32>, vector<16x32xf32> -> vector<16x32xf32>
    %c18 = arith.constant 18 : index
    %c0_204 = arith.constant 0 : index
    %655 = vector.load %arg5[%c18, %c0_204] : memref<48x192xf32, #tpu.memory_space<vmem>>, vector<1x32xf32>
    %656 = vector.broadcast %655 : vector<1x32xf32> to vector<16x32xf32>
    %657 = arith.addf %654, %656 : vector<16x32xf32>
    %c96_205 = arith.constant 96 : index
    %c0_206 = arith.constant 0 : index
    %658 = vector.load %arg4[%c96_205, %c0_206] : memref<544x128xf32, #tpu.memory_space<vmem>>, vector<32x64xf32>
    %cst_207 = arith.constant dense<0.000000e+00> : vector<16x64xf32>
    %659 = tpu.matmul %463, %658, %cst_207 {dimension_numbers = #tpu.dot_dimension_numbers<[1], [0], [0], [1], [0, 0, 1, 1], [], []>} : vector<16x32xf32>, vector<32x64xf32>, vector<16x64xf32> -> vector<16x64xf32>
    %c19 = arith.constant 19 : index
    %c0_208 = arith.constant 0 : index
    %660 = vector.load %arg5[%c19, %c0_208] : memref<48x192xf32, #tpu.memory_space<vmem>>, vector<1x64xf32>
    %661 = vector.broadcast %660 : vector<1x64xf32> to vector<16x64xf32>
    %662 = arith.addf %659, %661 : vector<16x64xf32>
    %663 = vector.extract_strided_slice %662 {offsets = [0, 0], sizes = [16, 32], strides = [1, 1]} : vector<16x64xf32> to vector<16x32xf32>
    %664 = vector.extract_strided_slice %662 {offsets = [0, 32], sizes = [16, 32], strides = [1, 1]} : vector<16x64xf32> to vector<16x32xf32>
    %c128_209 = arith.constant 128 : index
    %c0_210 = arith.constant 0 : index
    %665 = vector.load %arg4[%c128_209, %c0_210] : memref<544x128xf32, #tpu.memory_space<vmem>>, vector<32x32xf32>
    %666 = vector.extract_strided_slice %657 {offsets = [0, 0], sizes = [16, 4], strides = [1, 1]} : vector<16x32xf32> to vector<16x4xf32>
    %667 = vector.extract_strided_slice %663 {offsets = [0, 0], sizes = [16, 4], strides = [1, 1]} : vector<16x32xf32> to vector<16x4xf32>
    %cst_211 = arith.constant dense<0.000000e+00> : vector<16x16xf32>
    %668 = tpu.matmul %666, %667, %cst_211 {dimension_numbers = #tpu.dot_dimension_numbers<[1], [1], [0], [0], [0, 0, 1, 0], [], []>} : vector<16x4xf32>, vector<16x4xf32>, vector<16x16xf32> -> vector<16x16xf32>
    %669 = arith.addf %668, %5 : vector<16x16xf32>
    %cst_212 = arith.constant dense<0xFF800000> : vector<16xf32>
    %670 = vector.multi_reduction <maximumf>, %669, %cst_212 [1] : vector<16x16xf32> to vector<16xf32>
    %671 = vector.shape_cast %670 : vector<16xf32> to vector<16x1xf32>
    %672 = vector.broadcast %671 : vector<16x1xf32> to vector<16x16xf32>
    %673 = arith.subf %669, %672 : vector<16x16xf32>
    %674 = math.exp %673 : vector<16x16xf32>
    %cst_213 = arith.constant dense<0.000000e+00> : vector<16xf32>
    %675 = vector.multi_reduction <add>, %674, %cst_213 [1] : vector<16x16xf32> to vector<16xf32>
    %676 = vector.shape_cast %675 : vector<16xf32> to vector<16x1xf32>
    %677 = tpu.reciprocal %676 {approx = true} : vector<16x1xf32> -> vector<16x1xf32>
    %678 = vector.broadcast %677 : vector<16x1xf32> to vector<16x16xf32>
    %679 = arith.mulf %674, %678 : vector<16x16xf32>
    %680 = vector.extract_strided_slice %664 {offsets = [0, 0], sizes = [16, 4], strides = [1, 1]} : vector<16x32xf32> to vector<16x4xf32>
    %cst_214 = arith.constant dense<0.000000e+00> : vector<16x4xf32>
    %681 = tpu.matmul %679, %680, %cst_214 {dimension_numbers = #tpu.dot_dimension_numbers<[1], [0], [0], [1], [0, 0, 1, 1], [], []>} : vector<16x16xf32>, vector<16x4xf32>, vector<16x4xf32> -> vector<16x4xf32>
    %682 = vector.extract_strided_slice %665 {offsets = [0, 0], sizes = [4, 32], strides = [1, 1]} : vector<32x32xf32> to vector<4x32xf32>
    %cst_215 = arith.constant dense<0.000000e+00> : vector<16x32xf32>
    %683 = tpu.matmul %681, %682, %cst_215 {dimension_numbers = #tpu.dot_dimension_numbers<[1], [0], [0], [1], [0, 0, 1, 1], [], []>} : vector<16x4xf32>, vector<4x32xf32>, vector<16x32xf32> -> vector<16x32xf32>
    %684 = vector.extract_strided_slice %657 {offsets = [0, 4], sizes = [16, 4], strides = [1, 1]} : vector<16x32xf32> to vector<16x4xf32>
    %685 = vector.extract_strided_slice %663 {offsets = [0, 4], sizes = [16, 4], strides = [1, 1]} : vector<16x32xf32> to vector<16x4xf32>
    %cst_216 = arith.constant dense<0.000000e+00> : vector<16x16xf32>
    %686 = tpu.matmul %684, %685, %cst_216 {dimension_numbers = #tpu.dot_dimension_numbers<[1], [1], [0], [0], [0, 0, 1, 0], [], []>} : vector<16x4xf32>, vector<16x4xf32>, vector<16x16xf32> -> vector<16x16xf32>
    %687 = arith.addf %686, %5 : vector<16x16xf32>
    %cst_217 = arith.constant dense<0xFF800000> : vector<16xf32>
    %688 = vector.multi_reduction <maximumf>, %687, %cst_217 [1] : vector<16x16xf32> to vector<16xf32>
    %689 = vector.shape_cast %688 : vector<16xf32> to vector<16x1xf32>
    %690 = vector.broadcast %689 : vector<16x1xf32> to vector<16x16xf32>
    %691 = arith.subf %687, %690 : vector<16x16xf32>
    %692 = math.exp %691 : vector<16x16xf32>
    %cst_218 = arith.constant dense<0.000000e+00> : vector<16xf32>
    %693 = vector.multi_reduction <add>, %692, %cst_218 [1] : vector<16x16xf32> to vector<16xf32>
    %694 = vector.shape_cast %693 : vector<16xf32> to vector<16x1xf32>
    %695 = tpu.reciprocal %694 {approx = true} : vector<16x1xf32> -> vector<16x1xf32>
    %696 = vector.broadcast %695 : vector<16x1xf32> to vector<16x16xf32>
    %697 = arith.mulf %692, %696 : vector<16x16xf32>
    %698 = vector.extract_strided_slice %664 {offsets = [0, 4], sizes = [16, 4], strides = [1, 1]} : vector<16x32xf32> to vector<16x4xf32>
    %cst_219 = arith.constant dense<0.000000e+00> : vector<16x4xf32>
    %699 = tpu.matmul %697, %698, %cst_219 {dimension_numbers = #tpu.dot_dimension_numbers<[1], [0], [0], [1], [0, 0, 1, 1], [], []>} : vector<16x16xf32>, vector<16x4xf32>, vector<16x4xf32> -> vector<16x4xf32>
    %700 = vector.extract_strided_slice %665 {offsets = [4, 0], sizes = [4, 32], strides = [1, 1]} : vector<32x32xf32> to vector<4x32xf32>
    %cst_220 = arith.constant dense<0.000000e+00> : vector<16x32xf32>
    %701 = tpu.matmul %699, %700, %cst_220 {dimension_numbers = #tpu.dot_dimension_numbers<[1], [0], [0], [1], [0, 0, 1, 1], [], []>} : vector<16x4xf32>, vector<4x32xf32>, vector<16x32xf32> -> vector<16x32xf32>
    %702 = arith.addf %683, %701 : vector<16x32xf32>
    %703 = vector.extract_strided_slice %657 {offsets = [0, 8], sizes = [16, 4], strides = [1, 1]} : vector<16x32xf32> to vector<16x4xf32>
    %704 = vector.extract_strided_slice %663 {offsets = [0, 8], sizes = [16, 4], strides = [1, 1]} : vector<16x32xf32> to vector<16x4xf32>
    %cst_221 = arith.constant dense<0.000000e+00> : vector<16x16xf32>
    %705 = tpu.matmul %703, %704, %cst_221 {dimension_numbers = #tpu.dot_dimension_numbers<[1], [1], [0], [0], [0, 0, 1, 0], [], []>} : vector<16x4xf32>, vector<16x4xf32>, vector<16x16xf32> -> vector<16x16xf32>
    %706 = arith.addf %705, %5 : vector<16x16xf32>
    %cst_222 = arith.constant dense<0xFF800000> : vector<16xf32>
    %707 = vector.multi_reduction <maximumf>, %706, %cst_222 [1] : vector<16x16xf32> to vector<16xf32>
    %708 = vector.shape_cast %707 : vector<16xf32> to vector<16x1xf32>
    %709 = vector.broadcast %708 : vector<16x1xf32> to vector<16x16xf32>
    %710 = arith.subf %706, %709 : vector<16x16xf32>
    %711 = math.exp %710 : vector<16x16xf32>
    %cst_223 = arith.constant dense<0.000000e+00> : vector<16xf32>
    %712 = vector.multi_reduction <add>, %711, %cst_223 [1] : vector<16x16xf32> to vector<16xf32>
    %713 = vector.shape_cast %712 : vector<16xf32> to vector<16x1xf32>
    %714 = tpu.reciprocal %713 {approx = true} : vector<16x1xf32> -> vector<16x1xf32>
    %715 = vector.broadcast %714 : vector<16x1xf32> to vector<16x16xf32>
    %716 = arith.mulf %711, %715 : vector<16x16xf32>
    %717 = vector.extract_strided_slice %664 {offsets = [0, 8], sizes = [16, 4], strides = [1, 1]} : vector<16x32xf32> to vector<16x4xf32>
    %cst_224 = arith.constant dense<0.000000e+00> : vector<16x4xf32>
    %718 = tpu.matmul %716, %717, %cst_224 {dimension_numbers = #tpu.dot_dimension_numbers<[1], [0], [0], [1], [0, 0, 1, 1], [], []>} : vector<16x16xf32>, vector<16x4xf32>, vector<16x4xf32> -> vector<16x4xf32>
    %719 = vector.extract_strided_slice %665 {offsets = [8, 0], sizes = [4, 32], strides = [1, 1]} : vector<32x32xf32> to vector<4x32xf32>
    %cst_225 = arith.constant dense<0.000000e+00> : vector<16x32xf32>
    %720 = tpu.matmul %718, %719, %cst_225 {dimension_numbers = #tpu.dot_dimension_numbers<[1], [0], [0], [1], [0, 0, 1, 1], [], []>} : vector<16x4xf32>, vector<4x32xf32>, vector<16x32xf32> -> vector<16x32xf32>
    %721 = arith.addf %702, %720 : vector<16x32xf32>
    %722 = vector.extract_strided_slice %657 {offsets = [0, 12], sizes = [16, 4], strides = [1, 1]} : vector<16x32xf32> to vector<16x4xf32>
    %723 = vector.extract_strided_slice %663 {offsets = [0, 12], sizes = [16, 4], strides = [1, 1]} : vector<16x32xf32> to vector<16x4xf32>
    %cst_226 = arith.constant dense<0.000000e+00> : vector<16x16xf32>
    %724 = tpu.matmul %722, %723, %cst_226 {dimension_numbers = #tpu.dot_dimension_numbers<[1], [1], [0], [0], [0, 0, 1, 0], [], []>} : vector<16x4xf32>, vector<16x4xf32>, vector<16x16xf32> -> vector<16x16xf32>
    %725 = arith.addf %724, %5 : vector<16x16xf32>
    %cst_227 = arith.constant dense<0xFF800000> : vector<16xf32>
    %726 = vector.multi_reduction <maximumf>, %725, %cst_227 [1] : vector<16x16xf32> to vector<16xf32>
    %727 = vector.shape_cast %726 : vector<16xf32> to vector<16x1xf32>
    %728 = vector.broadcast %727 : vector<16x1xf32> to vector<16x16xf32>
    %729 = arith.subf %725, %728 : vector<16x16xf32>
    %730 = math.exp %729 : vector<16x16xf32>
    %cst_228 = arith.constant dense<0.000000e+00> : vector<16xf32>
    %731 = vector.multi_reduction <add>, %730, %cst_228 [1] : vector<16x16xf32> to vector<16xf32>
    %732 = vector.shape_cast %731 : vector<16xf32> to vector<16x1xf32>
    %733 = tpu.reciprocal %732 {approx = true} : vector<16x1xf32> -> vector<16x1xf32>
    %734 = vector.broadcast %733 : vector<16x1xf32> to vector<16x16xf32>
    %735 = arith.mulf %730, %734 : vector<16x16xf32>
    %736 = vector.extract_strided_slice %664 {offsets = [0, 12], sizes = [16, 4], strides = [1, 1]} : vector<16x32xf32> to vector<16x4xf32>
    %cst_229 = arith.constant dense<0.000000e+00> : vector<16x4xf32>
    %737 = tpu.matmul %735, %736, %cst_229 {dimension_numbers = #tpu.dot_dimension_numbers<[1], [0], [0], [1], [0, 0, 1, 1], [], []>} : vector<16x16xf32>, vector<16x4xf32>, vector<16x4xf32> -> vector<16x4xf32>
    %738 = vector.extract_strided_slice %665 {offsets = [12, 0], sizes = [4, 32], strides = [1, 1]} : vector<32x32xf32> to vector<4x32xf32>
    %cst_230 = arith.constant dense<0.000000e+00> : vector<16x32xf32>
    %739 = tpu.matmul %737, %738, %cst_230 {dimension_numbers = #tpu.dot_dimension_numbers<[1], [0], [0], [1], [0, 0, 1, 1], [], []>} : vector<16x4xf32>, vector<4x32xf32>, vector<16x32xf32> -> vector<16x32xf32>
    %740 = arith.addf %721, %739 : vector<16x32xf32>
    %741 = vector.extract_strided_slice %657 {offsets = [0, 16], sizes = [16, 4], strides = [1, 1]} : vector<16x32xf32> to vector<16x4xf32>
    %742 = vector.extract_strided_slice %663 {offsets = [0, 16], sizes = [16, 4], strides = [1, 1]} : vector<16x32xf32> to vector<16x4xf32>
    %cst_231 = arith.constant dense<0.000000e+00> : vector<16x16xf32>
    %743 = tpu.matmul %741, %742, %cst_231 {dimension_numbers = #tpu.dot_dimension_numbers<[1], [1], [0], [0], [0, 0, 1, 0], [], []>} : vector<16x4xf32>, vector<16x4xf32>, vector<16x16xf32> -> vector<16x16xf32>
    %744 = arith.addf %743, %5 : vector<16x16xf32>
    %cst_232 = arith.constant dense<0xFF800000> : vector<16xf32>
    %745 = vector.multi_reduction <maximumf>, %744, %cst_232 [1] : vector<16x16xf32> to vector<16xf32>
    %746 = vector.shape_cast %745 : vector<16xf32> to vector<16x1xf32>
    %747 = vector.broadcast %746 : vector<16x1xf32> to vector<16x16xf32>
    %748 = arith.subf %744, %747 : vector<16x16xf32>
    %749 = math.exp %748 : vector<16x16xf32>
    %cst_233 = arith.constant dense<0.000000e+00> : vector<16xf32>
    %750 = vector.multi_reduction <add>, %749, %cst_233 [1] : vector<16x16xf32> to vector<16xf32>
    %751 = vector.shape_cast %750 : vector<16xf32> to vector<16x1xf32>
    %752 = tpu.reciprocal %751 {approx = true} : vector<16x1xf32> -> vector<16x1xf32>
    %753 = vector.broadcast %752 : vector<16x1xf32> to vector<16x16xf32>
    %754 = arith.mulf %749, %753 : vector<16x16xf32>
    %755 = vector.extract_strided_slice %664 {offsets = [0, 16], sizes = [16, 4], strides = [1, 1]} : vector<16x32xf32> to vector<16x4xf32>
    %cst_234 = arith.constant dense<0.000000e+00> : vector<16x4xf32>
    %756 = tpu.matmul %754, %755, %cst_234 {dimension_numbers = #tpu.dot_dimension_numbers<[1], [0], [0], [1], [0, 0, 1, 1], [], []>} : vector<16x16xf32>, vector<16x4xf32>, vector<16x4xf32> -> vector<16x4xf32>
    %757 = vector.extract_strided_slice %665 {offsets = [16, 0], sizes = [4, 32], strides = [1, 1]} : vector<32x32xf32> to vector<4x32xf32>
    %cst_235 = arith.constant dense<0.000000e+00> : vector<16x32xf32>
    %758 = tpu.matmul %756, %757, %cst_235 {dimension_numbers = #tpu.dot_dimension_numbers<[1], [0], [0], [1], [0, 0, 1, 1], [], []>} : vector<16x4xf32>, vector<4x32xf32>, vector<16x32xf32> -> vector<16x32xf32>
    %759 = arith.addf %740, %758 : vector<16x32xf32>
    %760 = vector.extract_strided_slice %657 {offsets = [0, 20], sizes = [16, 4], strides = [1, 1]} : vector<16x32xf32> to vector<16x4xf32>
    %761 = vector.extract_strided_slice %663 {offsets = [0, 20], sizes = [16, 4], strides = [1, 1]} : vector<16x32xf32> to vector<16x4xf32>
    %cst_236 = arith.constant dense<0.000000e+00> : vector<16x16xf32>
    %762 = tpu.matmul %760, %761, %cst_236 {dimension_numbers = #tpu.dot_dimension_numbers<[1], [1], [0], [0], [0, 0, 1, 0], [], []>} : vector<16x4xf32>, vector<16x4xf32>, vector<16x16xf32> -> vector<16x16xf32>
    %763 = arith.addf %762, %5 : vector<16x16xf32>
    %cst_237 = arith.constant dense<0xFF800000> : vector<16xf32>
    %764 = vector.multi_reduction <maximumf>, %763, %cst_237 [1] : vector<16x16xf32> to vector<16xf32>
    %765 = vector.shape_cast %764 : vector<16xf32> to vector<16x1xf32>
    %766 = vector.broadcast %765 : vector<16x1xf32> to vector<16x16xf32>
    %767 = arith.subf %763, %766 : vector<16x16xf32>
    %768 = math.exp %767 : vector<16x16xf32>
    %cst_238 = arith.constant dense<0.000000e+00> : vector<16xf32>
    %769 = vector.multi_reduction <add>, %768, %cst_238 [1] : vector<16x16xf32> to vector<16xf32>
    %770 = vector.shape_cast %769 : vector<16xf32> to vector<16x1xf32>
    %771 = tpu.reciprocal %770 {approx = true} : vector<16x1xf32> -> vector<16x1xf32>
    %772 = vector.broadcast %771 : vector<16x1xf32> to vector<16x16xf32>
    %773 = arith.mulf %768, %772 : vector<16x16xf32>
    %774 = vector.extract_strided_slice %664 {offsets = [0, 20], sizes = [16, 4], strides = [1, 1]} : vector<16x32xf32> to vector<16x4xf32>
    %cst_239 = arith.constant dense<0.000000e+00> : vector<16x4xf32>
    %775 = tpu.matmul %773, %774, %cst_239 {dimension_numbers = #tpu.dot_dimension_numbers<[1], [0], [0], [1], [0, 0, 1, 1], [], []>} : vector<16x16xf32>, vector<16x4xf32>, vector<16x4xf32> -> vector<16x4xf32>
    %776 = vector.extract_strided_slice %665 {offsets = [20, 0], sizes = [4, 32], strides = [1, 1]} : vector<32x32xf32> to vector<4x32xf32>
    %cst_240 = arith.constant dense<0.000000e+00> : vector<16x32xf32>
    %777 = tpu.matmul %775, %776, %cst_240 {dimension_numbers = #tpu.dot_dimension_numbers<[1], [0], [0], [1], [0, 0, 1, 1], [], []>} : vector<16x4xf32>, vector<4x32xf32>, vector<16x32xf32> -> vector<16x32xf32>
    %778 = arith.addf %759, %777 : vector<16x32xf32>
    %779 = vector.extract_strided_slice %657 {offsets = [0, 24], sizes = [16, 4], strides = [1, 1]} : vector<16x32xf32> to vector<16x4xf32>
    %780 = vector.extract_strided_slice %663 {offsets = [0, 24], sizes = [16, 4], strides = [1, 1]} : vector<16x32xf32> to vector<16x4xf32>
    %cst_241 = arith.constant dense<0.000000e+00> : vector<16x16xf32>
    %781 = tpu.matmul %779, %780, %cst_241 {dimension_numbers = #tpu.dot_dimension_numbers<[1], [1], [0], [0], [0, 0, 1, 0], [], []>} : vector<16x4xf32>, vector<16x4xf32>, vector<16x16xf32> -> vector<16x16xf32>
    %782 = arith.addf %781, %5 : vector<16x16xf32>
    %cst_242 = arith.constant dense<0xFF800000> : vector<16xf32>
    %783 = vector.multi_reduction <maximumf>, %782, %cst_242 [1] : vector<16x16xf32> to vector<16xf32>
    %784 = vector.shape_cast %783 : vector<16xf32> to vector<16x1xf32>
    %785 = vector.broadcast %784 : vector<16x1xf32> to vector<16x16xf32>
    %786 = arith.subf %782, %785 : vector<16x16xf32>
    %787 = math.exp %786 : vector<16x16xf32>
    %cst_243 = arith.constant dense<0.000000e+00> : vector<16xf32>
    %788 = vector.multi_reduction <add>, %787, %cst_243 [1] : vector<16x16xf32> to vector<16xf32>
    %789 = vector.shape_cast %788 : vector<16xf32> to vector<16x1xf32>
    %790 = tpu.reciprocal %789 {approx = true} : vector<16x1xf32> -> vector<16x1xf32>
    %791 = vector.broadcast %790 : vector<16x1xf32> to vector<16x16xf32>
    %792 = arith.mulf %787, %791 : vector<16x16xf32>
    %793 = vector.extract_strided_slice %664 {offsets = [0, 24], sizes = [16, 4], strides = [1, 1]} : vector<16x32xf32> to vector<16x4xf32>
    %cst_244 = arith.constant dense<0.000000e+00> : vector<16x4xf32>
    %794 = tpu.matmul %792, %793, %cst_244 {dimension_numbers = #tpu.dot_dimension_numbers<[1], [0], [0], [1], [0, 0, 1, 1], [], []>} : vector<16x16xf32>, vector<16x4xf32>, vector<16x4xf32> -> vector<16x4xf32>
    %795 = vector.extract_strided_slice %665 {offsets = [24, 0], sizes = [4, 32], strides = [1, 1]} : vector<32x32xf32> to vector<4x32xf32>
    %cst_245 = arith.constant dense<0.000000e+00> : vector<16x32xf32>
    %796 = tpu.matmul %794, %795, %cst_245 {dimension_numbers = #tpu.dot_dimension_numbers<[1], [0], [0], [1], [0, 0, 1, 1], [], []>} : vector<16x4xf32>, vector<4x32xf32>, vector<16x32xf32> -> vector<16x32xf32>
    %797 = arith.addf %778, %796 : vector<16x32xf32>
    %798 = vector.extract_strided_slice %657 {offsets = [0, 28], sizes = [16, 4], strides = [1, 1]} : vector<16x32xf32> to vector<16x4xf32>
    %799 = vector.extract_strided_slice %663 {offsets = [0, 28], sizes = [16, 4], strides = [1, 1]} : vector<16x32xf32> to vector<16x4xf32>
    %cst_246 = arith.constant dense<0.000000e+00> : vector<16x16xf32>
    %800 = tpu.matmul %798, %799, %cst_246 {dimension_numbers = #tpu.dot_dimension_numbers<[1], [1], [0], [0], [0, 0, 1, 0], [], []>} : vector<16x4xf32>, vector<16x4xf32>, vector<16x16xf32> -> vector<16x16xf32>
    %801 = arith.addf %800, %5 : vector<16x16xf32>
    %cst_247 = arith.constant dense<0xFF800000> : vector<16xf32>
    %802 = vector.multi_reduction <maximumf>, %801, %cst_247 [1] : vector<16x16xf32> to vector<16xf32>
    %803 = vector.shape_cast %802 : vector<16xf32> to vector<16x1xf32>
    %804 = vector.broadcast %803 : vector<16x1xf32> to vector<16x16xf32>
    %805 = arith.subf %801, %804 : vector<16x16xf32>
    %806 = math.exp %805 : vector<16x16xf32>
    %cst_248 = arith.constant dense<0.000000e+00> : vector<16xf32>
    %807 = vector.multi_reduction <add>, %806, %cst_248 [1] : vector<16x16xf32> to vector<16xf32>
    %808 = vector.shape_cast %807 : vector<16xf32> to vector<16x1xf32>
    %809 = tpu.reciprocal %808 {approx = true} : vector<16x1xf32> -> vector<16x1xf32>
    %810 = vector.broadcast %809 : vector<16x1xf32> to vector<16x16xf32>
    %811 = arith.mulf %806, %810 : vector<16x16xf32>
    %812 = vector.extract_strided_slice %664 {offsets = [0, 28], sizes = [16, 4], strides = [1, 1]} : vector<16x32xf32> to vector<16x4xf32>
    %cst_249 = arith.constant dense<0.000000e+00> : vector<16x4xf32>
    %813 = tpu.matmul %811, %812, %cst_249 {dimension_numbers = #tpu.dot_dimension_numbers<[1], [0], [0], [1], [0, 0, 1, 1], [], []>} : vector<16x16xf32>, vector<16x4xf32>, vector<16x4xf32> -> vector<16x4xf32>
    %814 = vector.extract_strided_slice %665 {offsets = [28, 0], sizes = [4, 32], strides = [1, 1]} : vector<32x32xf32> to vector<4x32xf32>
    %cst_250 = arith.constant dense<0.000000e+00> : vector<16x32xf32>
    %815 = tpu.matmul %813, %814, %cst_250 {dimension_numbers = #tpu.dot_dimension_numbers<[1], [0], [0], [1], [0, 0, 1, 1], [], []>} : vector<16x4xf32>, vector<4x32xf32>, vector<16x32xf32> -> vector<16x32xf32>
    %816 = arith.addf %797, %815 : vector<16x32xf32>
    %c20 = arith.constant 20 : index
    %c0_251 = arith.constant 0 : index
    %817 = vector.load %arg5[%c20, %c0_251] : memref<48x192xf32, #tpu.memory_space<vmem>>, vector<1x32xf32>
    %818 = vector.broadcast %817 : vector<1x32xf32> to vector<16x32xf32>
    %819 = arith.addf %816, %818 : vector<16x32xf32>
    %820 = arith.addf %652, %819 : vector<16x32xf32>
    %c25 = arith.constant 25 : index
    %c0_252 = arith.constant 0 : index
    %821 = vector.load %arg5[%c25, %c0_252] : memref<48x192xf32, #tpu.memory_space<vmem>>, vector<1x32xf32>
    %c26 = arith.constant 26 : index
    %c0_253 = arith.constant 0 : index
    %822 = vector.load %arg5[%c26, %c0_253] : memref<48x192xf32, #tpu.memory_space<vmem>>, vector<1x32xf32>
    %cst_254 = arith.constant dense<0.000000e+00> : vector<16xf32>
    %823 = vector.multi_reduction <add>, %820, %cst_254 [1] : vector<16x32xf32> to vector<16xf32>
    %824 = vector.shape_cast %823 : vector<16xf32> to vector<16x1xf32>
    %cst_255 = arith.constant 3.200000e+01 : f32
    %825 = vector.broadcast %cst_255 : f32 to vector<16x1xf32>
    %826 = arith.divf %824, %825 : vector<16x1xf32>
    %827 = vector.broadcast %826 : vector<16x1xf32> to vector<16x32xf32>
    %828 = arith.subf %820, %827 : vector<16x32xf32>
    %829 = arith.mulf %828, %828 : vector<16x32xf32>
    %cst_256 = arith.constant dense<0.000000e+00> : vector<16xf32>
    %830 = vector.multi_reduction <add>, %829, %cst_256 [1] : vector<16x32xf32> to vector<16xf32>
    %831 = vector.shape_cast %830 : vector<16xf32> to vector<16x1xf32>
    %cst_257 = arith.constant 3.200000e+01 : f32
    %832 = vector.broadcast %cst_257 : f32 to vector<16x1xf32>
    %833 = arith.divf %831, %832 : vector<16x1xf32>
    %cst_258 = arith.constant 9.99999974E-6 : f32
    %834 = vector.broadcast %cst_258 : f32 to vector<16x1xf32>
    %835 = arith.addf %833, %834 : vector<16x1xf32>
    %836 = math.rsqrt %835 : vector<16x1xf32>
    %837 = vector.broadcast %836 : vector<16x1xf32> to vector<16x32xf32>
    %838 = arith.mulf %828, %837 : vector<16x32xf32>
    %839 = vector.broadcast %821 : vector<1x32xf32> to vector<16x32xf32>
    %840 = arith.mulf %838, %839 : vector<16x32xf32>
    %841 = vector.broadcast %822 : vector<1x32xf32> to vector<16x32xf32>
    %842 = arith.addf %840, %841 : vector<16x32xf32>
    %c160 = arith.constant 160 : index
    %c0_259 = arith.constant 0 : index
    %843 = vector.load %arg4[%c160, %c0_259] : memref<544x128xf32, #tpu.memory_space<vmem>>, vector<32x64xf32>
    %cst_260 = arith.constant dense<0.000000e+00> : vector<16x64xf32>
    %844 = tpu.matmul %842, %843, %cst_260 {dimension_numbers = #tpu.dot_dimension_numbers<[1], [0], [0], [1], [0, 0, 1, 1], [], []>} : vector<16x32xf32>, vector<32x64xf32>, vector<16x64xf32> -> vector<16x64xf32>
    %c21 = arith.constant 21 : index
    %c0_261 = arith.constant 0 : index
    %845 = vector.load %arg5[%c21, %c0_261] : memref<48x192xf32, #tpu.memory_space<vmem>>, vector<1x64xf32>
    %846 = vector.broadcast %845 : vector<1x64xf32> to vector<16x64xf32>
    %847 = arith.addf %844, %846 : vector<16x64xf32>
    %cst_262 = arith.constant 0.000000e+00 : f32
    %848 = vector.broadcast %cst_262 : f32 to vector<16x64xf32>
    %849 = arith.maximumf %847, %848 : vector<16x64xf32>
    %c192_263 = arith.constant 192 : index
    %c0_264 = arith.constant 0 : index
    %850 = vector.load %arg4[%c192_263, %c0_264] : memref<544x128xf32, #tpu.memory_space<vmem>>, vector<64x32xf32>
    %cst_265 = arith.constant dense<0.000000e+00> : vector<16x32xf32>
    %851 = tpu.matmul %849, %850, %cst_265 {dimension_numbers = #tpu.dot_dimension_numbers<[1], [0], [0], [1], [0, 0, 1, 1], [], []>} : vector<16x64xf32>, vector<64x32xf32>, vector<16x32xf32> -> vector<16x32xf32>
    %c22 = arith.constant 22 : index
    %c0_266 = arith.constant 0 : index
    %852 = vector.load %arg5[%c22, %c0_266] : memref<48x192xf32, #tpu.memory_space<vmem>>, vector<1x32xf32>
    %853 = vector.broadcast %852 : vector<1x32xf32> to vector<16x32xf32>
    %854 = arith.addf %851, %853 : vector<16x32xf32>
    %855 = arith.addf %842, %854 : vector<16x32xf32>
    %c27 = arith.constant 27 : index
    %c0_267 = arith.constant 0 : index
    %856 = vector.load %arg5[%c27, %c0_267] : memref<48x192xf32, #tpu.memory_space<vmem>>, vector<1x32xf32>
    %c28 = arith.constant 28 : index
    %c0_268 = arith.constant 0 : index
    %857 = vector.load %arg5[%c28, %c0_268] : memref<48x192xf32, #tpu.memory_space<vmem>>, vector<1x32xf32>
    %cst_269 = arith.constant dense<0.000000e+00> : vector<16xf32>
    %858 = vector.multi_reduction <add>, %855, %cst_269 [1] : vector<16x32xf32> to vector<16xf32>
    %859 = vector.shape_cast %858 : vector<16xf32> to vector<16x1xf32>
    %cst_270 = arith.constant 3.200000e+01 : f32
    %860 = vector.broadcast %cst_270 : f32 to vector<16x1xf32>
    %861 = arith.divf %859, %860 : vector<16x1xf32>
    %862 = vector.broadcast %861 : vector<16x1xf32> to vector<16x32xf32>
    %863 = arith.subf %855, %862 : vector<16x32xf32>
    %864 = arith.mulf %863, %863 : vector<16x32xf32>
    %cst_271 = arith.constant dense<0.000000e+00> : vector<16xf32>
    %865 = vector.multi_reduction <add>, %864, %cst_271 [1] : vector<16x32xf32> to vector<16xf32>
    %866 = vector.shape_cast %865 : vector<16xf32> to vector<16x1xf32>
    %cst_272 = arith.constant 3.200000e+01 : f32
    %867 = vector.broadcast %cst_272 : f32 to vector<16x1xf32>
    %868 = arith.divf %866, %867 : vector<16x1xf32>
    %cst_273 = arith.constant 9.99999974E-6 : f32
    %869 = vector.broadcast %cst_273 : f32 to vector<16x1xf32>
    %870 = arith.addf %868, %869 : vector<16x1xf32>
    %871 = math.rsqrt %870 : vector<16x1xf32>
    %872 = vector.broadcast %871 : vector<16x1xf32> to vector<16x32xf32>
    %873 = arith.mulf %863, %872 : vector<16x32xf32>
    %874 = vector.broadcast %856 : vector<1x32xf32> to vector<16x32xf32>
    %875 = arith.mulf %873, %874 : vector<16x32xf32>
    %876 = vector.broadcast %857 : vector<1x32xf32> to vector<16x32xf32>
    %877 = arith.addf %875, %876 : vector<16x32xf32>
    %c256_274 = arith.constant 256 : index
    %c0_275 = arith.constant 0 : index
    %878 = vector.load %arg4[%c256_274, %c0_275] : memref<544x128xf32, #tpu.memory_space<vmem>>, vector<32x96xf32>
    %cst_276 = arith.constant dense<0.000000e+00> : vector<16x96xf32>
    %879 = tpu.matmul %877, %878, %cst_276 {dimension_numbers = #tpu.dot_dimension_numbers<[1], [0], [0], [1], [0, 0, 1, 1], [], []>} : vector<16x32xf32>, vector<32x96xf32>, vector<16x96xf32> -> vector<16x96xf32>
    %c29 = arith.constant 29 : index
    %c0_277 = arith.constant 0 : index
    %880 = vector.load %arg5[%c29, %c0_277] : memref<48x192xf32, #tpu.memory_space<vmem>>, vector<1x96xf32>
    %881 = vector.broadcast %880 : vector<1x96xf32> to vector<16x96xf32>
    %882 = arith.addf %879, %881 : vector<16x96xf32>
    %883 = vector.extract_strided_slice %882 {offsets = [0, 0], sizes = [16, 32], strides = [1, 1]} : vector<16x96xf32> to vector<16x32xf32>
    %884 = vector.extract_strided_slice %882 {offsets = [0, 32], sizes = [16, 32], strides = [1, 1]} : vector<16x96xf32> to vector<16x32xf32>
    %885 = vector.extract_strided_slice %882 {offsets = [0, 64], sizes = [16, 32], strides = [1, 1]} : vector<16x96xf32> to vector<16x32xf32>
    %c288 = arith.constant 288 : index
    %c0_278 = arith.constant 0 : index
    %886 = vector.load %arg4[%c288, %c0_278] : memref<544x128xf32, #tpu.memory_space<vmem>>, vector<32x32xf32>
    %887 = vector.extract_strided_slice %883 {offsets = [0, 0], sizes = [16, 4], strides = [1, 1]} : vector<16x32xf32> to vector<16x4xf32>
    %888 = vector.extract_strided_slice %884 {offsets = [0, 0], sizes = [16, 4], strides = [1, 1]} : vector<16x32xf32> to vector<16x4xf32>
    %cst_279 = arith.constant dense<0.000000e+00> : vector<16x16xf32>
    %889 = tpu.matmul %887, %888, %cst_279 {dimension_numbers = #tpu.dot_dimension_numbers<[1], [1], [0], [0], [0, 0, 1, 0], [], []>} : vector<16x4xf32>, vector<16x4xf32>, vector<16x16xf32> -> vector<16x16xf32>
    %890 = arith.addf %889, %4 : vector<16x16xf32>
    %cst_280 = arith.constant dense<0xFF800000> : vector<16xf32>
    %891 = vector.multi_reduction <maximumf>, %890, %cst_280 [1] : vector<16x16xf32> to vector<16xf32>
    %892 = vector.shape_cast %891 : vector<16xf32> to vector<16x1xf32>
    %893 = vector.broadcast %892 : vector<16x1xf32> to vector<16x16xf32>
    %894 = arith.subf %890, %893 : vector<16x16xf32>
    %895 = math.exp %894 : vector<16x16xf32>
    %cst_281 = arith.constant dense<0.000000e+00> : vector<16xf32>
    %896 = vector.multi_reduction <add>, %895, %cst_281 [1] : vector<16x16xf32> to vector<16xf32>
    %897 = vector.shape_cast %896 : vector<16xf32> to vector<16x1xf32>
    %898 = tpu.reciprocal %897 {approx = true} : vector<16x1xf32> -> vector<16x1xf32>
    %899 = vector.broadcast %898 : vector<16x1xf32> to vector<16x16xf32>
    %900 = arith.mulf %895, %899 : vector<16x16xf32>
    %901 = vector.extract_strided_slice %885 {offsets = [0, 0], sizes = [16, 4], strides = [1, 1]} : vector<16x32xf32> to vector<16x4xf32>
    %cst_282 = arith.constant dense<0.000000e+00> : vector<16x4xf32>
    %902 = tpu.matmul %900, %901, %cst_282 {dimension_numbers = #tpu.dot_dimension_numbers<[1], [0], [0], [1], [0, 0, 1, 1], [], []>} : vector<16x16xf32>, vector<16x4xf32>, vector<16x4xf32> -> vector<16x4xf32>
    %903 = vector.extract_strided_slice %886 {offsets = [0, 0], sizes = [4, 32], strides = [1, 1]} : vector<32x32xf32> to vector<4x32xf32>
    %cst_283 = arith.constant dense<0.000000e+00> : vector<16x32xf32>
    %904 = tpu.matmul %902, %903, %cst_283 {dimension_numbers = #tpu.dot_dimension_numbers<[1], [0], [0], [1], [0, 0, 1, 1], [], []>} : vector<16x4xf32>, vector<4x32xf32>, vector<16x32xf32> -> vector<16x32xf32>
    %905 = vector.extract_strided_slice %883 {offsets = [0, 4], sizes = [16, 4], strides = [1, 1]} : vector<16x32xf32> to vector<16x4xf32>
    %906 = vector.extract_strided_slice %884 {offsets = [0, 4], sizes = [16, 4], strides = [1, 1]} : vector<16x32xf32> to vector<16x4xf32>
    %cst_284 = arith.constant dense<0.000000e+00> : vector<16x16xf32>
    %907 = tpu.matmul %905, %906, %cst_284 {dimension_numbers = #tpu.dot_dimension_numbers<[1], [1], [0], [0], [0, 0, 1, 0], [], []>} : vector<16x4xf32>, vector<16x4xf32>, vector<16x16xf32> -> vector<16x16xf32>
    %908 = arith.addf %907, %4 : vector<16x16xf32>
    %cst_285 = arith.constant dense<0xFF800000> : vector<16xf32>
    %909 = vector.multi_reduction <maximumf>, %908, %cst_285 [1] : vector<16x16xf32> to vector<16xf32>
    %910 = vector.shape_cast %909 : vector<16xf32> to vector<16x1xf32>
    %911 = vector.broadcast %910 : vector<16x1xf32> to vector<16x16xf32>
    %912 = arith.subf %908, %911 : vector<16x16xf32>
    %913 = math.exp %912 : vector<16x16xf32>
    %cst_286 = arith.constant dense<0.000000e+00> : vector<16xf32>
    %914 = vector.multi_reduction <add>, %913, %cst_286 [1] : vector<16x16xf32> to vector<16xf32>
    %915 = vector.shape_cast %914 : vector<16xf32> to vector<16x1xf32>
    %916 = tpu.reciprocal %915 {approx = true} : vector<16x1xf32> -> vector<16x1xf32>
    %917 = vector.broadcast %916 : vector<16x1xf32> to vector<16x16xf32>
    %918 = arith.mulf %913, %917 : vector<16x16xf32>
    %919 = vector.extract_strided_slice %885 {offsets = [0, 4], sizes = [16, 4], strides = [1, 1]} : vector<16x32xf32> to vector<16x4xf32>
    %cst_287 = arith.constant dense<0.000000e+00> : vector<16x4xf32>
    %920 = tpu.matmul %918, %919, %cst_287 {dimension_numbers = #tpu.dot_dimension_numbers<[1], [0], [0], [1], [0, 0, 1, 1], [], []>} : vector<16x16xf32>, vector<16x4xf32>, vector<16x4xf32> -> vector<16x4xf32>
    %921 = vector.extract_strided_slice %886 {offsets = [4, 0], sizes = [4, 32], strides = [1, 1]} : vector<32x32xf32> to vector<4x32xf32>
    %cst_288 = arith.constant dense<0.000000e+00> : vector<16x32xf32>
    %922 = tpu.matmul %920, %921, %cst_288 {dimension_numbers = #tpu.dot_dimension_numbers<[1], [0], [0], [1], [0, 0, 1, 1], [], []>} : vector<16x4xf32>, vector<4x32xf32>, vector<16x32xf32> -> vector<16x32xf32>
    %923 = arith.addf %904, %922 : vector<16x32xf32>
    %924 = vector.extract_strided_slice %883 {offsets = [0, 8], sizes = [16, 4], strides = [1, 1]} : vector<16x32xf32> to vector<16x4xf32>
    %925 = vector.extract_strided_slice %884 {offsets = [0, 8], sizes = [16, 4], strides = [1, 1]} : vector<16x32xf32> to vector<16x4xf32>
    %cst_289 = arith.constant dense<0.000000e+00> : vector<16x16xf32>
    %926 = tpu.matmul %924, %925, %cst_289 {dimension_numbers = #tpu.dot_dimension_numbers<[1], [1], [0], [0], [0, 0, 1, 0], [], []>} : vector<16x4xf32>, vector<16x4xf32>, vector<16x16xf32> -> vector<16x16xf32>
    %927 = arith.addf %926, %4 : vector<16x16xf32>
    %cst_290 = arith.constant dense<0xFF800000> : vector<16xf32>
    %928 = vector.multi_reduction <maximumf>, %927, %cst_290 [1] : vector<16x16xf32> to vector<16xf32>
    %929 = vector.shape_cast %928 : vector<16xf32> to vector<16x1xf32>
    %930 = vector.broadcast %929 : vector<16x1xf32> to vector<16x16xf32>
    %931 = arith.subf %927, %930 : vector<16x16xf32>
    %932 = math.exp %931 : vector<16x16xf32>
    %cst_291 = arith.constant dense<0.000000e+00> : vector<16xf32>
    %933 = vector.multi_reduction <add>, %932, %cst_291 [1] : vector<16x16xf32> to vector<16xf32>
    %934 = vector.shape_cast %933 : vector<16xf32> to vector<16x1xf32>
    %935 = tpu.reciprocal %934 {approx = true} : vector<16x1xf32> -> vector<16x1xf32>
    %936 = vector.broadcast %935 : vector<16x1xf32> to vector<16x16xf32>
    %937 = arith.mulf %932, %936 : vector<16x16xf32>
    %938 = vector.extract_strided_slice %885 {offsets = [0, 8], sizes = [16, 4], strides = [1, 1]} : vector<16x32xf32> to vector<16x4xf32>
    %cst_292 = arith.constant dense<0.000000e+00> : vector<16x4xf32>
    %939 = tpu.matmul %937, %938, %cst_292 {dimension_numbers = #tpu.dot_dimension_numbers<[1], [0], [0], [1], [0, 0, 1, 1], [], []>} : vector<16x16xf32>, vector<16x4xf32>, vector<16x4xf32> -> vector<16x4xf32>
    %940 = vector.extract_strided_slice %886 {offsets = [8, 0], sizes = [4, 32], strides = [1, 1]} : vector<32x32xf32> to vector<4x32xf32>
    %cst_293 = arith.constant dense<0.000000e+00> : vector<16x32xf32>
    %941 = tpu.matmul %939, %940, %cst_293 {dimension_numbers = #tpu.dot_dimension_numbers<[1], [0], [0], [1], [0, 0, 1, 1], [], []>} : vector<16x4xf32>, vector<4x32xf32>, vector<16x32xf32> -> vector<16x32xf32>
    %942 = arith.addf %923, %941 : vector<16x32xf32>
    %943 = vector.extract_strided_slice %883 {offsets = [0, 12], sizes = [16, 4], strides = [1, 1]} : vector<16x32xf32> to vector<16x4xf32>
    %944 = vector.extract_strided_slice %884 {offsets = [0, 12], sizes = [16, 4], strides = [1, 1]} : vector<16x32xf32> to vector<16x4xf32>
    %cst_294 = arith.constant dense<0.000000e+00> : vector<16x16xf32>
    %945 = tpu.matmul %943, %944, %cst_294 {dimension_numbers = #tpu.dot_dimension_numbers<[1], [1], [0], [0], [0, 0, 1, 0], [], []>} : vector<16x4xf32>, vector<16x4xf32>, vector<16x16xf32> -> vector<16x16xf32>
    %946 = arith.addf %945, %4 : vector<16x16xf32>
    %cst_295 = arith.constant dense<0xFF800000> : vector<16xf32>
    %947 = vector.multi_reduction <maximumf>, %946, %cst_295 [1] : vector<16x16xf32> to vector<16xf32>
    %948 = vector.shape_cast %947 : vector<16xf32> to vector<16x1xf32>
    %949 = vector.broadcast %948 : vector<16x1xf32> to vector<16x16xf32>
    %950 = arith.subf %946, %949 : vector<16x16xf32>
    %951 = math.exp %950 : vector<16x16xf32>
    %cst_296 = arith.constant dense<0.000000e+00> : vector<16xf32>
    %952 = vector.multi_reduction <add>, %951, %cst_296 [1] : vector<16x16xf32> to vector<16xf32>
    %953 = vector.shape_cast %952 : vector<16xf32> to vector<16x1xf32>
    %954 = tpu.reciprocal %953 {approx = true} : vector<16x1xf32> -> vector<16x1xf32>
    %955 = vector.broadcast %954 : vector<16x1xf32> to vector<16x16xf32>
    %956 = arith.mulf %951, %955 : vector<16x16xf32>
    %957 = vector.extract_strided_slice %885 {offsets = [0, 12], sizes = [16, 4], strides = [1, 1]} : vector<16x32xf32> to vector<16x4xf32>
    %cst_297 = arith.constant dense<0.000000e+00> : vector<16x4xf32>
    %958 = tpu.matmul %956, %957, %cst_297 {dimension_numbers = #tpu.dot_dimension_numbers<[1], [0], [0], [1], [0, 0, 1, 1], [], []>} : vector<16x16xf32>, vector<16x4xf32>, vector<16x4xf32> -> vector<16x4xf32>
    %959 = vector.extract_strided_slice %886 {offsets = [12, 0], sizes = [4, 32], strides = [1, 1]} : vector<32x32xf32> to vector<4x32xf32>
    %cst_298 = arith.constant dense<0.000000e+00> : vector<16x32xf32>
    %960 = tpu.matmul %958, %959, %cst_298 {dimension_numbers = #tpu.dot_dimension_numbers<[1], [0], [0], [1], [0, 0, 1, 1], [], []>} : vector<16x4xf32>, vector<4x32xf32>, vector<16x32xf32> -> vector<16x32xf32>
    %961 = arith.addf %942, %960 : vector<16x32xf32>
    %962 = vector.extract_strided_slice %883 {offsets = [0, 16], sizes = [16, 4], strides = [1, 1]} : vector<16x32xf32> to vector<16x4xf32>
    %963 = vector.extract_strided_slice %884 {offsets = [0, 16], sizes = [16, 4], strides = [1, 1]} : vector<16x32xf32> to vector<16x4xf32>
    %cst_299 = arith.constant dense<0.000000e+00> : vector<16x16xf32>
    %964 = tpu.matmul %962, %963, %cst_299 {dimension_numbers = #tpu.dot_dimension_numbers<[1], [1], [0], [0], [0, 0, 1, 0], [], []>} : vector<16x4xf32>, vector<16x4xf32>, vector<16x16xf32> -> vector<16x16xf32>
    %965 = arith.addf %964, %4 : vector<16x16xf32>
    %cst_300 = arith.constant dense<0xFF800000> : vector<16xf32>
    %966 = vector.multi_reduction <maximumf>, %965, %cst_300 [1] : vector<16x16xf32> to vector<16xf32>
    %967 = vector.shape_cast %966 : vector<16xf32> to vector<16x1xf32>
    %968 = vector.broadcast %967 : vector<16x1xf32> to vector<16x16xf32>
    %969 = arith.subf %965, %968 : vector<16x16xf32>
    %970 = math.exp %969 : vector<16x16xf32>
    %cst_301 = arith.constant dense<0.000000e+00> : vector<16xf32>
    %971 = vector.multi_reduction <add>, %970, %cst_301 [1] : vector<16x16xf32> to vector<16xf32>
    %972 = vector.shape_cast %971 : vector<16xf32> to vector<16x1xf32>
    %973 = tpu.reciprocal %972 {approx = true} : vector<16x1xf32> -> vector<16x1xf32>
    %974 = vector.broadcast %973 : vector<16x1xf32> to vector<16x16xf32>
    %975 = arith.mulf %970, %974 : vector<16x16xf32>
    %976 = vector.extract_strided_slice %885 {offsets = [0, 16], sizes = [16, 4], strides = [1, 1]} : vector<16x32xf32> to vector<16x4xf32>
    %cst_302 = arith.constant dense<0.000000e+00> : vector<16x4xf32>
    %977 = tpu.matmul %975, %976, %cst_302 {dimension_numbers = #tpu.dot_dimension_numbers<[1], [0], [0], [1], [0, 0, 1, 1], [], []>} : vector<16x16xf32>, vector<16x4xf32>, vector<16x4xf32> -> vector<16x4xf32>
    %978 = vector.extract_strided_slice %886 {offsets = [16, 0], sizes = [4, 32], strides = [1, 1]} : vector<32x32xf32> to vector<4x32xf32>
    %cst_303 = arith.constant dense<0.000000e+00> : vector<16x32xf32>
    %979 = tpu.matmul %977, %978, %cst_303 {dimension_numbers = #tpu.dot_dimension_numbers<[1], [0], [0], [1], [0, 0, 1, 1], [], []>} : vector<16x4xf32>, vector<4x32xf32>, vector<16x32xf32> -> vector<16x32xf32>
    %980 = arith.addf %961, %979 : vector<16x32xf32>
    %981 = vector.extract_strided_slice %883 {offsets = [0, 20], sizes = [16, 4], strides = [1, 1]} : vector<16x32xf32> to vector<16x4xf32>
    %982 = vector.extract_strided_slice %884 {offsets = [0, 20], sizes = [16, 4], strides = [1, 1]} : vector<16x32xf32> to vector<16x4xf32>
    %cst_304 = arith.constant dense<0.000000e+00> : vector<16x16xf32>
    %983 = tpu.matmul %981, %982, %cst_304 {dimension_numbers = #tpu.dot_dimension_numbers<[1], [1], [0], [0], [0, 0, 1, 0], [], []>} : vector<16x4xf32>, vector<16x4xf32>, vector<16x16xf32> -> vector<16x16xf32>
    %984 = arith.addf %983, %4 : vector<16x16xf32>
    %cst_305 = arith.constant dense<0xFF800000> : vector<16xf32>
    %985 = vector.multi_reduction <maximumf>, %984, %cst_305 [1] : vector<16x16xf32> to vector<16xf32>
    %986 = vector.shape_cast %985 : vector<16xf32> to vector<16x1xf32>
    %987 = vector.broadcast %986 : vector<16x1xf32> to vector<16x16xf32>
    %988 = arith.subf %984, %987 : vector<16x16xf32>
    %989 = math.exp %988 : vector<16x16xf32>
    %cst_306 = arith.constant dense<0.000000e+00> : vector<16xf32>
    %990 = vector.multi_reduction <add>, %989, %cst_306 [1] : vector<16x16xf32> to vector<16xf32>
    %991 = vector.shape_cast %990 : vector<16xf32> to vector<16x1xf32>
    %992 = tpu.reciprocal %991 {approx = true} : vector<16x1xf32> -> vector<16x1xf32>
    %993 = vector.broadcast %992 : vector<16x1xf32> to vector<16x16xf32>
    %994 = arith.mulf %989, %993 : vector<16x16xf32>
    %995 = vector.extract_strided_slice %885 {offsets = [0, 20], sizes = [16, 4], strides = [1, 1]} : vector<16x32xf32> to vector<16x4xf32>
    %cst_307 = arith.constant dense<0.000000e+00> : vector<16x4xf32>
    %996 = tpu.matmul %994, %995, %cst_307 {dimension_numbers = #tpu.dot_dimension_numbers<[1], [0], [0], [1], [0, 0, 1, 1], [], []>} : vector<16x16xf32>, vector<16x4xf32>, vector<16x4xf32> -> vector<16x4xf32>
    %997 = vector.extract_strided_slice %886 {offsets = [20, 0], sizes = [4, 32], strides = [1, 1]} : vector<32x32xf32> to vector<4x32xf32>
    %cst_308 = arith.constant dense<0.000000e+00> : vector<16x32xf32>
    %998 = tpu.matmul %996, %997, %cst_308 {dimension_numbers = #tpu.dot_dimension_numbers<[1], [0], [0], [1], [0, 0, 1, 1], [], []>} : vector<16x4xf32>, vector<4x32xf32>, vector<16x32xf32> -> vector<16x32xf32>
    %999 = arith.addf %980, %998 : vector<16x32xf32>
    %1000 = vector.extract_strided_slice %883 {offsets = [0, 24], sizes = [16, 4], strides = [1, 1]} : vector<16x32xf32> to vector<16x4xf32>
    %1001 = vector.extract_strided_slice %884 {offsets = [0, 24], sizes = [16, 4], strides = [1, 1]} : vector<16x32xf32> to vector<16x4xf32>
    %cst_309 = arith.constant dense<0.000000e+00> : vector<16x16xf32>
    %1002 = tpu.matmul %1000, %1001, %cst_309 {dimension_numbers = #tpu.dot_dimension_numbers<[1], [1], [0], [0], [0, 0, 1, 0], [], []>} : vector<16x4xf32>, vector<16x4xf32>, vector<16x16xf32> -> vector<16x16xf32>
    %1003 = arith.addf %1002, %4 : vector<16x16xf32>
    %cst_310 = arith.constant dense<0xFF800000> : vector<16xf32>
    %1004 = vector.multi_reduction <maximumf>, %1003, %cst_310 [1] : vector<16x16xf32> to vector<16xf32>
    %1005 = vector.shape_cast %1004 : vector<16xf32> to vector<16x1xf32>
    %1006 = vector.broadcast %1005 : vector<16x1xf32> to vector<16x16xf32>
    %1007 = arith.subf %1003, %1006 : vector<16x16xf32>
    %1008 = math.exp %1007 : vector<16x16xf32>
    %cst_311 = arith.constant dense<0.000000e+00> : vector<16xf32>
    %1009 = vector.multi_reduction <add>, %1008, %cst_311 [1] : vector<16x16xf32> to vector<16xf32>
    %1010 = vector.shape_cast %1009 : vector<16xf32> to vector<16x1xf32>
    %1011 = tpu.reciprocal %1010 {approx = true} : vector<16x1xf32> -> vector<16x1xf32>
    %1012 = vector.broadcast %1011 : vector<16x1xf32> to vector<16x16xf32>
    %1013 = arith.mulf %1008, %1012 : vector<16x16xf32>
    %1014 = vector.extract_strided_slice %885 {offsets = [0, 24], sizes = [16, 4], strides = [1, 1]} : vector<16x32xf32> to vector<16x4xf32>
    %cst_312 = arith.constant dense<0.000000e+00> : vector<16x4xf32>
    %1015 = tpu.matmul %1013, %1014, %cst_312 {dimension_numbers = #tpu.dot_dimension_numbers<[1], [0], [0], [1], [0, 0, 1, 1], [], []>} : vector<16x16xf32>, vector<16x4xf32>, vector<16x4xf32> -> vector<16x4xf32>
    %1016 = vector.extract_strided_slice %886 {offsets = [24, 0], sizes = [4, 32], strides = [1, 1]} : vector<32x32xf32> to vector<4x32xf32>
    %cst_313 = arith.constant dense<0.000000e+00> : vector<16x32xf32>
    %1017 = tpu.matmul %1015, %1016, %cst_313 {dimension_numbers = #tpu.dot_dimension_numbers<[1], [0], [0], [1], [0, 0, 1, 1], [], []>} : vector<16x4xf32>, vector<4x32xf32>, vector<16x32xf32> -> vector<16x32xf32>
    %1018 = arith.addf %999, %1017 : vector<16x32xf32>
    %1019 = vector.extract_strided_slice %883 {offsets = [0, 28], sizes = [16, 4], strides = [1, 1]} : vector<16x32xf32> to vector<16x4xf32>
    %1020 = vector.extract_strided_slice %884 {offsets = [0, 28], sizes = [16, 4], strides = [1, 1]} : vector<16x32xf32> to vector<16x4xf32>
    %cst_314 = arith.constant dense<0.000000e+00> : vector<16x16xf32>
    %1021 = tpu.matmul %1019, %1020, %cst_314 {dimension_numbers = #tpu.dot_dimension_numbers<[1], [1], [0], [0], [0, 0, 1, 0], [], []>} : vector<16x4xf32>, vector<16x4xf32>, vector<16x16xf32> -> vector<16x16xf32>
    %1022 = arith.addf %1021, %4 : vector<16x16xf32>
    %cst_315 = arith.constant dense<0xFF800000> : vector<16xf32>
    %1023 = vector.multi_reduction <maximumf>, %1022, %cst_315 [1] : vector<16x16xf32> to vector<16xf32>
    %1024 = vector.shape_cast %1023 : vector<16xf32> to vector<16x1xf32>
    %1025 = vector.broadcast %1024 : vector<16x1xf32> to vector<16x16xf32>
    %1026 = arith.subf %1022, %1025 : vector<16x16xf32>
    %1027 = math.exp %1026 : vector<16x16xf32>
    %cst_316 = arith.constant dense<0.000000e+00> : vector<16xf32>
    %1028 = vector.multi_reduction <add>, %1027, %cst_316 [1] : vector<16x16xf32> to vector<16xf32>
    %1029 = vector.shape_cast %1028 : vector<16xf32> to vector<16x1xf32>
    %1030 = tpu.reciprocal %1029 {approx = true} : vector<16x1xf32> -> vector<16x1xf32>
    %1031 = vector.broadcast %1030 : vector<16x1xf32> to vector<16x16xf32>
    %1032 = arith.mulf %1027, %1031 : vector<16x16xf32>
    %1033 = vector.extract_strided_slice %885 {offsets = [0, 28], sizes = [16, 4], strides = [1, 1]} : vector<16x32xf32> to vector<16x4xf32>
    %cst_317 = arith.constant dense<0.000000e+00> : vector<16x4xf32>
    %1034 = tpu.matmul %1032, %1033, %cst_317 {dimension_numbers = #tpu.dot_dimension_numbers<[1], [0], [0], [1], [0, 0, 1, 1], [], []>} : vector<16x16xf32>, vector<16x4xf32>, vector<16x4xf32> -> vector<16x4xf32>
    %1035 = vector.extract_strided_slice %886 {offsets = [28, 0], sizes = [4, 32], strides = [1, 1]} : vector<32x32xf32> to vector<4x32xf32>
    %cst_318 = arith.constant dense<0.000000e+00> : vector<16x32xf32>
    %1036 = tpu.matmul %1034, %1035, %cst_318 {dimension_numbers = #tpu.dot_dimension_numbers<[1], [0], [0], [1], [0, 0, 1, 1], [], []>} : vector<16x4xf32>, vector<4x32xf32>, vector<16x32xf32> -> vector<16x32xf32>
    %1037 = arith.addf %1018, %1036 : vector<16x32xf32>
    %c30 = arith.constant 30 : index
    %c0_319 = arith.constant 0 : index
    %1038 = vector.load %arg5[%c30, %c0_319] : memref<48x192xf32, #tpu.memory_space<vmem>>, vector<1x32xf32>
    %1039 = vector.broadcast %1038 : vector<1x32xf32> to vector<16x32xf32>
    %1040 = arith.addf %1037, %1039 : vector<16x32xf32>
    %1041 = arith.addf %877, %1040 : vector<16x32xf32>
    %c36 = arith.constant 36 : index
    %c0_320 = arith.constant 0 : index
    %1042 = vector.load %arg5[%c36, %c0_320] : memref<48x192xf32, #tpu.memory_space<vmem>>, vector<1x32xf32>
    %c37 = arith.constant 37 : index
    %c0_321 = arith.constant 0 : index
    %1043 = vector.load %arg5[%c37, %c0_321] : memref<48x192xf32, #tpu.memory_space<vmem>>, vector<1x32xf32>
    %cst_322 = arith.constant dense<0.000000e+00> : vector<16xf32>
    %1044 = vector.multi_reduction <add>, %1041, %cst_322 [1] : vector<16x32xf32> to vector<16xf32>
    %1045 = vector.shape_cast %1044 : vector<16xf32> to vector<16x1xf32>
    %cst_323 = arith.constant 3.200000e+01 : f32
    %1046 = vector.broadcast %cst_323 : f32 to vector<16x1xf32>
    %1047 = arith.divf %1045, %1046 : vector<16x1xf32>
    %1048 = vector.broadcast %1047 : vector<16x1xf32> to vector<16x32xf32>
    %1049 = arith.subf %1041, %1048 : vector<16x32xf32>
    %1050 = arith.mulf %1049, %1049 : vector<16x32xf32>
    %cst_324 = arith.constant dense<0.000000e+00> : vector<16xf32>
    %1051 = vector.multi_reduction <add>, %1050, %cst_324 [1] : vector<16x32xf32> to vector<16xf32>
    %1052 = vector.shape_cast %1051 : vector<16xf32> to vector<16x1xf32>
    %cst_325 = arith.constant 3.200000e+01 : f32
    %1053 = vector.broadcast %cst_325 : f32 to vector<16x1xf32>
    %1054 = arith.divf %1052, %1053 : vector<16x1xf32>
    %cst_326 = arith.constant 9.99999974E-6 : f32
    %1055 = vector.broadcast %cst_326 : f32 to vector<16x1xf32>
    %1056 = arith.addf %1054, %1055 : vector<16x1xf32>
    %1057 = math.rsqrt %1056 : vector<16x1xf32>
    %1058 = vector.broadcast %1057 : vector<16x1xf32> to vector<16x32xf32>
    %1059 = arith.mulf %1049, %1058 : vector<16x32xf32>
    %1060 = vector.broadcast %1042 : vector<1x32xf32> to vector<16x32xf32>
    %1061 = arith.mulf %1059, %1060 : vector<16x32xf32>
    %1062 = vector.broadcast %1043 : vector<1x32xf32> to vector<16x32xf32>
    %1063 = arith.addf %1061, %1062 : vector<16x32xf32>
    %c320_327 = arith.constant 320 : index
    %c0_328 = arith.constant 0 : index
    %1064 = vector.load %arg4[%c320_327, %c0_328] : memref<544x128xf32, #tpu.memory_space<vmem>>, vector<32x32xf32>
    %cst_329 = arith.constant dense<0.000000e+00> : vector<16x32xf32>
    %1065 = tpu.matmul %1063, %1064, %cst_329 {dimension_numbers = #tpu.dot_dimension_numbers<[1], [0], [0], [1], [0, 0, 1, 1], [], []>} : vector<16x32xf32>, vector<32x32xf32>, vector<16x32xf32> -> vector<16x32xf32>
    %c31 = arith.constant 31 : index
    %c0_330 = arith.constant 0 : index
    %1066 = vector.load %arg5[%c31, %c0_330] : memref<48x192xf32, #tpu.memory_space<vmem>>, vector<1x32xf32>
    %1067 = vector.broadcast %1066 : vector<1x32xf32> to vector<16x32xf32>
    %1068 = arith.addf %1065, %1067 : vector<16x32xf32>
    %c352 = arith.constant 352 : index
    %c0_331 = arith.constant 0 : index
    %1069 = vector.load %arg4[%c352, %c0_331] : memref<544x128xf32, #tpu.memory_space<vmem>>, vector<32x64xf32>
    %cst_332 = arith.constant dense<0.000000e+00> : vector<16x64xf32>
    %1070 = tpu.matmul %463, %1069, %cst_332 {dimension_numbers = #tpu.dot_dimension_numbers<[1], [0], [0], [1], [0, 0, 1, 1], [], []>} : vector<16x32xf32>, vector<32x64xf32>, vector<16x64xf32> -> vector<16x64xf32>
    %c32_333 = arith.constant 32 : index
    %c0_334 = arith.constant 0 : index
    %1071 = vector.load %arg5[%c32_333, %c0_334] : memref<48x192xf32, #tpu.memory_space<vmem>>, vector<1x64xf32>
    %1072 = vector.broadcast %1071 : vector<1x64xf32> to vector<16x64xf32>
    %1073 = arith.addf %1070, %1072 : vector<16x64xf32>
    %1074 = vector.extract_strided_slice %1073 {offsets = [0, 0], sizes = [16, 32], strides = [1, 1]} : vector<16x64xf32> to vector<16x32xf32>
    %1075 = vector.extract_strided_slice %1073 {offsets = [0, 32], sizes = [16, 32], strides = [1, 1]} : vector<16x64xf32> to vector<16x32xf32>
    %c384_335 = arith.constant 384 : index
    %c0_336 = arith.constant 0 : index
    %1076 = vector.load %arg4[%c384_335, %c0_336] : memref<544x128xf32, #tpu.memory_space<vmem>>, vector<32x32xf32>
    %1077 = vector.extract_strided_slice %1068 {offsets = [0, 0], sizes = [16, 4], strides = [1, 1]} : vector<16x32xf32> to vector<16x4xf32>
    %1078 = vector.extract_strided_slice %1074 {offsets = [0, 0], sizes = [16, 4], strides = [1, 1]} : vector<16x32xf32> to vector<16x4xf32>
    %cst_337 = arith.constant dense<0.000000e+00> : vector<16x16xf32>
    %1079 = tpu.matmul %1077, %1078, %cst_337 {dimension_numbers = #tpu.dot_dimension_numbers<[1], [1], [0], [0], [0, 0, 1, 0], [], []>} : vector<16x4xf32>, vector<16x4xf32>, vector<16x16xf32> -> vector<16x16xf32>
    %1080 = arith.addf %1079, %5 : vector<16x16xf32>
    %cst_338 = arith.constant dense<0xFF800000> : vector<16xf32>
    %1081 = vector.multi_reduction <maximumf>, %1080, %cst_338 [1] : vector<16x16xf32> to vector<16xf32>
    %1082 = vector.shape_cast %1081 : vector<16xf32> to vector<16x1xf32>
    %1083 = vector.broadcast %1082 : vector<16x1xf32> to vector<16x16xf32>
    %1084 = arith.subf %1080, %1083 : vector<16x16xf32>
    %1085 = math.exp %1084 : vector<16x16xf32>
    %cst_339 = arith.constant dense<0.000000e+00> : vector<16xf32>
    %1086 = vector.multi_reduction <add>, %1085, %cst_339 [1] : vector<16x16xf32> to vector<16xf32>
    %1087 = vector.shape_cast %1086 : vector<16xf32> to vector<16x1xf32>
    %1088 = tpu.reciprocal %1087 {approx = true} : vector<16x1xf32> -> vector<16x1xf32>
    %1089 = vector.broadcast %1088 : vector<16x1xf32> to vector<16x16xf32>
    %1090 = arith.mulf %1085, %1089 : vector<16x16xf32>
    %1091 = vector.extract_strided_slice %1075 {offsets = [0, 0], sizes = [16, 4], strides = [1, 1]} : vector<16x32xf32> to vector<16x4xf32>
    %cst_340 = arith.constant dense<0.000000e+00> : vector<16x4xf32>
    %1092 = tpu.matmul %1090, %1091, %cst_340 {dimension_numbers = #tpu.dot_dimension_numbers<[1], [0], [0], [1], [0, 0, 1, 1], [], []>} : vector<16x16xf32>, vector<16x4xf32>, vector<16x4xf32> -> vector<16x4xf32>
    %1093 = vector.extract_strided_slice %1076 {offsets = [0, 0], sizes = [4, 32], strides = [1, 1]} : vector<32x32xf32> to vector<4x32xf32>
    %cst_341 = arith.constant dense<0.000000e+00> : vector<16x32xf32>
    %1094 = tpu.matmul %1092, %1093, %cst_341 {dimension_numbers = #tpu.dot_dimension_numbers<[1], [0], [0], [1], [0, 0, 1, 1], [], []>} : vector<16x4xf32>, vector<4x32xf32>, vector<16x32xf32> -> vector<16x32xf32>
    %1095 = vector.extract_strided_slice %1068 {offsets = [0, 4], sizes = [16, 4], strides = [1, 1]} : vector<16x32xf32> to vector<16x4xf32>
    %1096 = vector.extract_strided_slice %1074 {offsets = [0, 4], sizes = [16, 4], strides = [1, 1]} : vector<16x32xf32> to vector<16x4xf32>
    %cst_342 = arith.constant dense<0.000000e+00> : vector<16x16xf32>
    %1097 = tpu.matmul %1095, %1096, %cst_342 {dimension_numbers = #tpu.dot_dimension_numbers<[1], [1], [0], [0], [0, 0, 1, 0], [], []>} : vector<16x4xf32>, vector<16x4xf32>, vector<16x16xf32> -> vector<16x16xf32>
    %1098 = arith.addf %1097, %5 : vector<16x16xf32>
    %cst_343 = arith.constant dense<0xFF800000> : vector<16xf32>
    %1099 = vector.multi_reduction <maximumf>, %1098, %cst_343 [1] : vector<16x16xf32> to vector<16xf32>
    %1100 = vector.shape_cast %1099 : vector<16xf32> to vector<16x1xf32>
    %1101 = vector.broadcast %1100 : vector<16x1xf32> to vector<16x16xf32>
    %1102 = arith.subf %1098, %1101 : vector<16x16xf32>
    %1103 = math.exp %1102 : vector<16x16xf32>
    %cst_344 = arith.constant dense<0.000000e+00> : vector<16xf32>
    %1104 = vector.multi_reduction <add>, %1103, %cst_344 [1] : vector<16x16xf32> to vector<16xf32>
    %1105 = vector.shape_cast %1104 : vector<16xf32> to vector<16x1xf32>
    %1106 = tpu.reciprocal %1105 {approx = true} : vector<16x1xf32> -> vector<16x1xf32>
    %1107 = vector.broadcast %1106 : vector<16x1xf32> to vector<16x16xf32>
    %1108 = arith.mulf %1103, %1107 : vector<16x16xf32>
    %1109 = vector.extract_strided_slice %1075 {offsets = [0, 4], sizes = [16, 4], strides = [1, 1]} : vector<16x32xf32> to vector<16x4xf32>
    %cst_345 = arith.constant dense<0.000000e+00> : vector<16x4xf32>
    %1110 = tpu.matmul %1108, %1109, %cst_345 {dimension_numbers = #tpu.dot_dimension_numbers<[1], [0], [0], [1], [0, 0, 1, 1], [], []>} : vector<16x16xf32>, vector<16x4xf32>, vector<16x4xf32> -> vector<16x4xf32>
    %1111 = vector.extract_strided_slice %1076 {offsets = [4, 0], sizes = [4, 32], strides = [1, 1]} : vector<32x32xf32> to vector<4x32xf32>
    %cst_346 = arith.constant dense<0.000000e+00> : vector<16x32xf32>
    %1112 = tpu.matmul %1110, %1111, %cst_346 {dimension_numbers = #tpu.dot_dimension_numbers<[1], [0], [0], [1], [0, 0, 1, 1], [], []>} : vector<16x4xf32>, vector<4x32xf32>, vector<16x32xf32> -> vector<16x32xf32>
    %1113 = arith.addf %1094, %1112 : vector<16x32xf32>
    %1114 = vector.extract_strided_slice %1068 {offsets = [0, 8], sizes = [16, 4], strides = [1, 1]} : vector<16x32xf32> to vector<16x4xf32>
    %1115 = vector.extract_strided_slice %1074 {offsets = [0, 8], sizes = [16, 4], strides = [1, 1]} : vector<16x32xf32> to vector<16x4xf32>
    %cst_347 = arith.constant dense<0.000000e+00> : vector<16x16xf32>
    %1116 = tpu.matmul %1114, %1115, %cst_347 {dimension_numbers = #tpu.dot_dimension_numbers<[1], [1], [0], [0], [0, 0, 1, 0], [], []>} : vector<16x4xf32>, vector<16x4xf32>, vector<16x16xf32> -> vector<16x16xf32>
    %1117 = arith.addf %1116, %5 : vector<16x16xf32>
    %cst_348 = arith.constant dense<0xFF800000> : vector<16xf32>
    %1118 = vector.multi_reduction <maximumf>, %1117, %cst_348 [1] : vector<16x16xf32> to vector<16xf32>
    %1119 = vector.shape_cast %1118 : vector<16xf32> to vector<16x1xf32>
    %1120 = vector.broadcast %1119 : vector<16x1xf32> to vector<16x16xf32>
    %1121 = arith.subf %1117, %1120 : vector<16x16xf32>
    %1122 = math.exp %1121 : vector<16x16xf32>
    %cst_349 = arith.constant dense<0.000000e+00> : vector<16xf32>
    %1123 = vector.multi_reduction <add>, %1122, %cst_349 [1] : vector<16x16xf32> to vector<16xf32>
    %1124 = vector.shape_cast %1123 : vector<16xf32> to vector<16x1xf32>
    %1125 = tpu.reciprocal %1124 {approx = true} : vector<16x1xf32> -> vector<16x1xf32>
    %1126 = vector.broadcast %1125 : vector<16x1xf32> to vector<16x16xf32>
    %1127 = arith.mulf %1122, %1126 : vector<16x16xf32>
    %1128 = vector.extract_strided_slice %1075 {offsets = [0, 8], sizes = [16, 4], strides = [1, 1]} : vector<16x32xf32> to vector<16x4xf32>
    %cst_350 = arith.constant dense<0.000000e+00> : vector<16x4xf32>
    %1129 = tpu.matmul %1127, %1128, %cst_350 {dimension_numbers = #tpu.dot_dimension_numbers<[1], [0], [0], [1], [0, 0, 1, 1], [], []>} : vector<16x16xf32>, vector<16x4xf32>, vector<16x4xf32> -> vector<16x4xf32>
    %1130 = vector.extract_strided_slice %1076 {offsets = [8, 0], sizes = [4, 32], strides = [1, 1]} : vector<32x32xf32> to vector<4x32xf32>
    %cst_351 = arith.constant dense<0.000000e+00> : vector<16x32xf32>
    %1131 = tpu.matmul %1129, %1130, %cst_351 {dimension_numbers = #tpu.dot_dimension_numbers<[1], [0], [0], [1], [0, 0, 1, 1], [], []>} : vector<16x4xf32>, vector<4x32xf32>, vector<16x32xf32> -> vector<16x32xf32>
    %1132 = arith.addf %1113, %1131 : vector<16x32xf32>
    %1133 = vector.extract_strided_slice %1068 {offsets = [0, 12], sizes = [16, 4], strides = [1, 1]} : vector<16x32xf32> to vector<16x4xf32>
    %1134 = vector.extract_strided_slice %1074 {offsets = [0, 12], sizes = [16, 4], strides = [1, 1]} : vector<16x32xf32> to vector<16x4xf32>
    %cst_352 = arith.constant dense<0.000000e+00> : vector<16x16xf32>
    %1135 = tpu.matmul %1133, %1134, %cst_352 {dimension_numbers = #tpu.dot_dimension_numbers<[1], [1], [0], [0], [0, 0, 1, 0], [], []>} : vector<16x4xf32>, vector<16x4xf32>, vector<16x16xf32> -> vector<16x16xf32>
    %1136 = arith.addf %1135, %5 : vector<16x16xf32>
    %cst_353 = arith.constant dense<0xFF800000> : vector<16xf32>
    %1137 = vector.multi_reduction <maximumf>, %1136, %cst_353 [1] : vector<16x16xf32> to vector<16xf32>
    %1138 = vector.shape_cast %1137 : vector<16xf32> to vector<16x1xf32>
    %1139 = vector.broadcast %1138 : vector<16x1xf32> to vector<16x16xf32>
    %1140 = arith.subf %1136, %1139 : vector<16x16xf32>
    %1141 = math.exp %1140 : vector<16x16xf32>
    %cst_354 = arith.constant dense<0.000000e+00> : vector<16xf32>
    %1142 = vector.multi_reduction <add>, %1141, %cst_354 [1] : vector<16x16xf32> to vector<16xf32>
    %1143 = vector.shape_cast %1142 : vector<16xf32> to vector<16x1xf32>
    %1144 = tpu.reciprocal %1143 {approx = true} : vector<16x1xf32> -> vector<16x1xf32>
    %1145 = vector.broadcast %1144 : vector<16x1xf32> to vector<16x16xf32>
    %1146 = arith.mulf %1141, %1145 : vector<16x16xf32>
    %1147 = vector.extract_strided_slice %1075 {offsets = [0, 12], sizes = [16, 4], strides = [1, 1]} : vector<16x32xf32> to vector<16x4xf32>
    %cst_355 = arith.constant dense<0.000000e+00> : vector<16x4xf32>
    %1148 = tpu.matmul %1146, %1147, %cst_355 {dimension_numbers = #tpu.dot_dimension_numbers<[1], [0], [0], [1], [0, 0, 1, 1], [], []>} : vector<16x16xf32>, vector<16x4xf32>, vector<16x4xf32> -> vector<16x4xf32>
    %1149 = vector.extract_strided_slice %1076 {offsets = [12, 0], sizes = [4, 32], strides = [1, 1]} : vector<32x32xf32> to vector<4x32xf32>
    %cst_356 = arith.constant dense<0.000000e+00> : vector<16x32xf32>
    %1150 = tpu.matmul %1148, %1149, %cst_356 {dimension_numbers = #tpu.dot_dimension_numbers<[1], [0], [0], [1], [0, 0, 1, 1], [], []>} : vector<16x4xf32>, vector<4x32xf32>, vector<16x32xf32> -> vector<16x32xf32>
    %1151 = arith.addf %1132, %1150 : vector<16x32xf32>
    %1152 = vector.extract_strided_slice %1068 {offsets = [0, 16], sizes = [16, 4], strides = [1, 1]} : vector<16x32xf32> to vector<16x4xf32>
    %1153 = vector.extract_strided_slice %1074 {offsets = [0, 16], sizes = [16, 4], strides = [1, 1]} : vector<16x32xf32> to vector<16x4xf32>
    %cst_357 = arith.constant dense<0.000000e+00> : vector<16x16xf32>
    %1154 = tpu.matmul %1152, %1153, %cst_357 {dimension_numbers = #tpu.dot_dimension_numbers<[1], [1], [0], [0], [0, 0, 1, 0], [], []>} : vector<16x4xf32>, vector<16x4xf32>, vector<16x16xf32> -> vector<16x16xf32>
    %1155 = arith.addf %1154, %5 : vector<16x16xf32>
    %cst_358 = arith.constant dense<0xFF800000> : vector<16xf32>
    %1156 = vector.multi_reduction <maximumf>, %1155, %cst_358 [1] : vector<16x16xf32> to vector<16xf32>
    %1157 = vector.shape_cast %1156 : vector<16xf32> to vector<16x1xf32>
    %1158 = vector.broadcast %1157 : vector<16x1xf32> to vector<16x16xf32>
    %1159 = arith.subf %1155, %1158 : vector<16x16xf32>
    %1160 = math.exp %1159 : vector<16x16xf32>
    %cst_359 = arith.constant dense<0.000000e+00> : vector<16xf32>
    %1161 = vector.multi_reduction <add>, %1160, %cst_359 [1] : vector<16x16xf32> to vector<16xf32>
    %1162 = vector.shape_cast %1161 : vector<16xf32> to vector<16x1xf32>
    %1163 = tpu.reciprocal %1162 {approx = true} : vector<16x1xf32> -> vector<16x1xf32>
    %1164 = vector.broadcast %1163 : vector<16x1xf32> to vector<16x16xf32>
    %1165 = arith.mulf %1160, %1164 : vector<16x16xf32>
    %1166 = vector.extract_strided_slice %1075 {offsets = [0, 16], sizes = [16, 4], strides = [1, 1]} : vector<16x32xf32> to vector<16x4xf32>
    %cst_360 = arith.constant dense<0.000000e+00> : vector<16x4xf32>
    %1167 = tpu.matmul %1165, %1166, %cst_360 {dimension_numbers = #tpu.dot_dimension_numbers<[1], [0], [0], [1], [0, 0, 1, 1], [], []>} : vector<16x16xf32>, vector<16x4xf32>, vector<16x4xf32> -> vector<16x4xf32>
    %1168 = vector.extract_strided_slice %1076 {offsets = [16, 0], sizes = [4, 32], strides = [1, 1]} : vector<32x32xf32> to vector<4x32xf32>
    %cst_361 = arith.constant dense<0.000000e+00> : vector<16x32xf32>
    %1169 = tpu.matmul %1167, %1168, %cst_361 {dimension_numbers = #tpu.dot_dimension_numbers<[1], [0], [0], [1], [0, 0, 1, 1], [], []>} : vector<16x4xf32>, vector<4x32xf32>, vector<16x32xf32> -> vector<16x32xf32>
    %1170 = arith.addf %1151, %1169 : vector<16x32xf32>
    %1171 = vector.extract_strided_slice %1068 {offsets = [0, 20], sizes = [16, 4], strides = [1, 1]} : vector<16x32xf32> to vector<16x4xf32>
    %1172 = vector.extract_strided_slice %1074 {offsets = [0, 20], sizes = [16, 4], strides = [1, 1]} : vector<16x32xf32> to vector<16x4xf32>
    %cst_362 = arith.constant dense<0.000000e+00> : vector<16x16xf32>
    %1173 = tpu.matmul %1171, %1172, %cst_362 {dimension_numbers = #tpu.dot_dimension_numbers<[1], [1], [0], [0], [0, 0, 1, 0], [], []>} : vector<16x4xf32>, vector<16x4xf32>, vector<16x16xf32> -> vector<16x16xf32>
    %1174 = arith.addf %1173, %5 : vector<16x16xf32>
    %cst_363 = arith.constant dense<0xFF800000> : vector<16xf32>
    %1175 = vector.multi_reduction <maximumf>, %1174, %cst_363 [1] : vector<16x16xf32> to vector<16xf32>
    %1176 = vector.shape_cast %1175 : vector<16xf32> to vector<16x1xf32>
    %1177 = vector.broadcast %1176 : vector<16x1xf32> to vector<16x16xf32>
    %1178 = arith.subf %1174, %1177 : vector<16x16xf32>
    %1179 = math.exp %1178 : vector<16x16xf32>
    %cst_364 = arith.constant dense<0.000000e+00> : vector<16xf32>
    %1180 = vector.multi_reduction <add>, %1179, %cst_364 [1] : vector<16x16xf32> to vector<16xf32>
    %1181 = vector.shape_cast %1180 : vector<16xf32> to vector<16x1xf32>
    %1182 = tpu.reciprocal %1181 {approx = true} : vector<16x1xf32> -> vector<16x1xf32>
    %1183 = vector.broadcast %1182 : vector<16x1xf32> to vector<16x16xf32>
    %1184 = arith.mulf %1179, %1183 : vector<16x16xf32>
    %1185 = vector.extract_strided_slice %1075 {offsets = [0, 20], sizes = [16, 4], strides = [1, 1]} : vector<16x32xf32> to vector<16x4xf32>
    %cst_365 = arith.constant dense<0.000000e+00> : vector<16x4xf32>
    %1186 = tpu.matmul %1184, %1185, %cst_365 {dimension_numbers = #tpu.dot_dimension_numbers<[1], [0], [0], [1], [0, 0, 1, 1], [], []>} : vector<16x16xf32>, vector<16x4xf32>, vector<16x4xf32> -> vector<16x4xf32>
    %1187 = vector.extract_strided_slice %1076 {offsets = [20, 0], sizes = [4, 32], strides = [1, 1]} : vector<32x32xf32> to vector<4x32xf32>
    %cst_366 = arith.constant dense<0.000000e+00> : vector<16x32xf32>
    %1188 = tpu.matmul %1186, %1187, %cst_366 {dimension_numbers = #tpu.dot_dimension_numbers<[1], [0], [0], [1], [0, 0, 1, 1], [], []>} : vector<16x4xf32>, vector<4x32xf32>, vector<16x32xf32> -> vector<16x32xf32>
    %1189 = arith.addf %1170, %1188 : vector<16x32xf32>
    %1190 = vector.extract_strided_slice %1068 {offsets = [0, 24], sizes = [16, 4], strides = [1, 1]} : vector<16x32xf32> to vector<16x4xf32>
    %1191 = vector.extract_strided_slice %1074 {offsets = [0, 24], sizes = [16, 4], strides = [1, 1]} : vector<16x32xf32> to vector<16x4xf32>
    %cst_367 = arith.constant dense<0.000000e+00> : vector<16x16xf32>
    %1192 = tpu.matmul %1190, %1191, %cst_367 {dimension_numbers = #tpu.dot_dimension_numbers<[1], [1], [0], [0], [0, 0, 1, 0], [], []>} : vector<16x4xf32>, vector<16x4xf32>, vector<16x16xf32> -> vector<16x16xf32>
    %1193 = arith.addf %1192, %5 : vector<16x16xf32>
    %cst_368 = arith.constant dense<0xFF800000> : vector<16xf32>
    %1194 = vector.multi_reduction <maximumf>, %1193, %cst_368 [1] : vector<16x16xf32> to vector<16xf32>
    %1195 = vector.shape_cast %1194 : vector<16xf32> to vector<16x1xf32>
    %1196 = vector.broadcast %1195 : vector<16x1xf32> to vector<16x16xf32>
    %1197 = arith.subf %1193, %1196 : vector<16x16xf32>
    %1198 = math.exp %1197 : vector<16x16xf32>
    %cst_369 = arith.constant dense<0.000000e+00> : vector<16xf32>
    %1199 = vector.multi_reduction <add>, %1198, %cst_369 [1] : vector<16x16xf32> to vector<16xf32>
    %1200 = vector.shape_cast %1199 : vector<16xf32> to vector<16x1xf32>
    %1201 = tpu.reciprocal %1200 {approx = true} : vector<16x1xf32> -> vector<16x1xf32>
    %1202 = vector.broadcast %1201 : vector<16x1xf32> to vector<16x16xf32>
    %1203 = arith.mulf %1198, %1202 : vector<16x16xf32>
    %1204 = vector.extract_strided_slice %1075 {offsets = [0, 24], sizes = [16, 4], strides = [1, 1]} : vector<16x32xf32> to vector<16x4xf32>
    %cst_370 = arith.constant dense<0.000000e+00> : vector<16x4xf32>
    %1205 = tpu.matmul %1203, %1204, %cst_370 {dimension_numbers = #tpu.dot_dimension_numbers<[1], [0], [0], [1], [0, 0, 1, 1], [], []>} : vector<16x16xf32>, vector<16x4xf32>, vector<16x4xf32> -> vector<16x4xf32>
    %1206 = vector.extract_strided_slice %1076 {offsets = [24, 0], sizes = [4, 32], strides = [1, 1]} : vector<32x32xf32> to vector<4x32xf32>
    %cst_371 = arith.constant dense<0.000000e+00> : vector<16x32xf32>
    %1207 = tpu.matmul %1205, %1206, %cst_371 {dimension_numbers = #tpu.dot_dimension_numbers<[1], [0], [0], [1], [0, 0, 1, 1], [], []>} : vector<16x4xf32>, vector<4x32xf32>, vector<16x32xf32> -> vector<16x32xf32>
    %1208 = arith.addf %1189, %1207 : vector<16x32xf32>
    %1209 = vector.extract_strided_slice %1068 {offsets = [0, 28], sizes = [16, 4], strides = [1, 1]} : vector<16x32xf32> to vector<16x4xf32>
    %1210 = vector.extract_strided_slice %1074 {offsets = [0, 28], sizes = [16, 4], strides = [1, 1]} : vector<16x32xf32> to vector<16x4xf32>
    %cst_372 = arith.constant dense<0.000000e+00> : vector<16x16xf32>
    %1211 = tpu.matmul %1209, %1210, %cst_372 {dimension_numbers = #tpu.dot_dimension_numbers<[1], [1], [0], [0], [0, 0, 1, 0], [], []>} : vector<16x4xf32>, vector<16x4xf32>, vector<16x16xf32> -> vector<16x16xf32>
    %1212 = arith.addf %1211, %5 : vector<16x16xf32>
    %cst_373 = arith.constant dense<0xFF800000> : vector<16xf32>
    %1213 = vector.multi_reduction <maximumf>, %1212, %cst_373 [1] : vector<16x16xf32> to vector<16xf32>
    %1214 = vector.shape_cast %1213 : vector<16xf32> to vector<16x1xf32>
    %1215 = vector.broadcast %1214 : vector<16x1xf32> to vector<16x16xf32>
    %1216 = arith.subf %1212, %1215 : vector<16x16xf32>
    %1217 = math.exp %1216 : vector<16x16xf32>
    %cst_374 = arith.constant dense<0.000000e+00> : vector<16xf32>
    %1218 = vector.multi_reduction <add>, %1217, %cst_374 [1] : vector<16x16xf32> to vector<16xf32>
    %1219 = vector.shape_cast %1218 : vector<16xf32> to vector<16x1xf32>
    %1220 = tpu.reciprocal %1219 {approx = true} : vector<16x1xf32> -> vector<16x1xf32>
    %1221 = vector.broadcast %1220 : vector<16x1xf32> to vector<16x16xf32>
    %1222 = arith.mulf %1217, %1221 : vector<16x16xf32>
    %1223 = vector.extract_strided_slice %1075 {offsets = [0, 28], sizes = [16, 4], strides = [1, 1]} : vector<16x32xf32> to vector<16x4xf32>
    %cst_375 = arith.constant dense<0.000000e+00> : vector<16x4xf32>
    %1224 = tpu.matmul %1222, %1223, %cst_375 {dimension_numbers = #tpu.dot_dimension_numbers<[1], [0], [0], [1], [0, 0, 1, 1], [], []>} : vector<16x16xf32>, vector<16x4xf32>, vector<16x4xf32> -> vector<16x4xf32>
    %1225 = vector.extract_strided_slice %1076 {offsets = [28, 0], sizes = [4, 32], strides = [1, 1]} : vector<32x32xf32> to vector<4x32xf32>
    %cst_376 = arith.constant dense<0.000000e+00> : vector<16x32xf32>
    %1226 = tpu.matmul %1224, %1225, %cst_376 {dimension_numbers = #tpu.dot_dimension_numbers<[1], [0], [0], [1], [0, 0, 1, 1], [], []>} : vector<16x4xf32>, vector<4x32xf32>, vector<16x32xf32> -> vector<16x32xf32>
    %1227 = arith.addf %1208, %1226 : vector<16x32xf32>
    %c33 = arith.constant 33 : index
    %c0_377 = arith.constant 0 : index
    %1228 = vector.load %arg5[%c33, %c0_377] : memref<48x192xf32, #tpu.memory_space<vmem>>, vector<1x32xf32>
    %1229 = vector.broadcast %1228 : vector<1x32xf32> to vector<16x32xf32>
    %1230 = arith.addf %1227, %1229 : vector<16x32xf32>
    %1231 = arith.addf %1063, %1230 : vector<16x32xf32>
    %c38 = arith.constant 38 : index
    %c0_378 = arith.constant 0 : index
    %1232 = vector.load %arg5[%c38, %c0_378] : memref<48x192xf32, #tpu.memory_space<vmem>>, vector<1x32xf32>
    %c39 = arith.constant 39 : index
    %c0_379 = arith.constant 0 : index
    %1233 = vector.load %arg5[%c39, %c0_379] : memref<48x192xf32, #tpu.memory_space<vmem>>, vector<1x32xf32>
    %cst_380 = arith.constant dense<0.000000e+00> : vector<16xf32>
    %1234 = vector.multi_reduction <add>, %1231, %cst_380 [1] : vector<16x32xf32> to vector<16xf32>
    %1235 = vector.shape_cast %1234 : vector<16xf32> to vector<16x1xf32>
    %cst_381 = arith.constant 3.200000e+01 : f32
    %1236 = vector.broadcast %cst_381 : f32 to vector<16x1xf32>
    %1237 = arith.divf %1235, %1236 : vector<16x1xf32>
    %1238 = vector.broadcast %1237 : vector<16x1xf32> to vector<16x32xf32>
    %1239 = arith.subf %1231, %1238 : vector<16x32xf32>
    %1240 = arith.mulf %1239, %1239 : vector<16x32xf32>
    %cst_382 = arith.constant dense<0.000000e+00> : vector<16xf32>
    %1241 = vector.multi_reduction <add>, %1240, %cst_382 [1] : vector<16x32xf32> to vector<16xf32>
    %1242 = vector.shape_cast %1241 : vector<16xf32> to vector<16x1xf32>
    %cst_383 = arith.constant 3.200000e+01 : f32
    %1243 = vector.broadcast %cst_383 : f32 to vector<16x1xf32>
    %1244 = arith.divf %1242, %1243 : vector<16x1xf32>
    %cst_384 = arith.constant 9.99999974E-6 : f32
    %1245 = vector.broadcast %cst_384 : f32 to vector<16x1xf32>
    %1246 = arith.addf %1244, %1245 : vector<16x1xf32>
    %1247 = math.rsqrt %1246 : vector<16x1xf32>
    %1248 = vector.broadcast %1247 : vector<16x1xf32> to vector<16x32xf32>
    %1249 = arith.mulf %1239, %1248 : vector<16x32xf32>
    %1250 = vector.broadcast %1232 : vector<1x32xf32> to vector<16x32xf32>
    %1251 = arith.mulf %1249, %1250 : vector<16x32xf32>
    %1252 = vector.broadcast %1233 : vector<1x32xf32> to vector<16x32xf32>
    %1253 = arith.addf %1251, %1252 : vector<16x32xf32>
    %c416 = arith.constant 416 : index
    %c0_385 = arith.constant 0 : index
    %1254 = vector.load %arg4[%c416, %c0_385] : memref<544x128xf32, #tpu.memory_space<vmem>>, vector<32x64xf32>
    %cst_386 = arith.constant dense<0.000000e+00> : vector<16x64xf32>
    %1255 = tpu.matmul %1253, %1254, %cst_386 {dimension_numbers = #tpu.dot_dimension_numbers<[1], [0], [0], [1], [0, 0, 1, 1], [], []>} : vector<16x32xf32>, vector<32x64xf32>, vector<16x64xf32> -> vector<16x64xf32>
    %c34 = arith.constant 34 : index
    %c0_387 = arith.constant 0 : index
    %1256 = vector.load %arg5[%c34, %c0_387] : memref<48x192xf32, #tpu.memory_space<vmem>>, vector<1x64xf32>
    %1257 = vector.broadcast %1256 : vector<1x64xf32> to vector<16x64xf32>
    %1258 = arith.addf %1255, %1257 : vector<16x64xf32>
    %cst_388 = arith.constant 0.000000e+00 : f32
    %1259 = vector.broadcast %cst_388 : f32 to vector<16x64xf32>
    %1260 = arith.maximumf %1258, %1259 : vector<16x64xf32>
    %c448_389 = arith.constant 448 : index
    %c0_390 = arith.constant 0 : index
    %1261 = vector.load %arg4[%c448_389, %c0_390] : memref<544x128xf32, #tpu.memory_space<vmem>>, vector<64x32xf32>
    %cst_391 = arith.constant dense<0.000000e+00> : vector<16x32xf32>
    %1262 = tpu.matmul %1260, %1261, %cst_391 {dimension_numbers = #tpu.dot_dimension_numbers<[1], [0], [0], [1], [0, 0, 1, 1], [], []>} : vector<16x64xf32>, vector<64x32xf32>, vector<16x32xf32> -> vector<16x32xf32>
    %c35 = arith.constant 35 : index
    %c0_392 = arith.constant 0 : index
    %1263 = vector.load %arg5[%c35, %c0_392] : memref<48x192xf32, #tpu.memory_space<vmem>>, vector<1x32xf32>
    %1264 = vector.broadcast %1263 : vector<1x32xf32> to vector<16x32xf32>
    %1265 = arith.addf %1262, %1264 : vector<16x32xf32>
    %1266 = arith.addf %1253, %1265 : vector<16x32xf32>
    %c40 = arith.constant 40 : index
    %c0_393 = arith.constant 0 : index
    %1267 = vector.load %arg5[%c40, %c0_393] : memref<48x192xf32, #tpu.memory_space<vmem>>, vector<1x32xf32>
    %c41 = arith.constant 41 : index
    %c0_394 = arith.constant 0 : index
    %1268 = vector.load %arg5[%c41, %c0_394] : memref<48x192xf32, #tpu.memory_space<vmem>>, vector<1x32xf32>
    %cst_395 = arith.constant dense<0.000000e+00> : vector<16xf32>
    %1269 = vector.multi_reduction <add>, %1266, %cst_395 [1] : vector<16x32xf32> to vector<16xf32>
    %1270 = vector.shape_cast %1269 : vector<16xf32> to vector<16x1xf32>
    %cst_396 = arith.constant 3.200000e+01 : f32
    %1271 = vector.broadcast %cst_396 : f32 to vector<16x1xf32>
    %1272 = arith.divf %1270, %1271 : vector<16x1xf32>
    %1273 = vector.broadcast %1272 : vector<16x1xf32> to vector<16x32xf32>
    %1274 = arith.subf %1266, %1273 : vector<16x32xf32>
    %1275 = arith.mulf %1274, %1274 : vector<16x32xf32>
    %cst_397 = arith.constant dense<0.000000e+00> : vector<16xf32>
    %1276 = vector.multi_reduction <add>, %1275, %cst_397 [1] : vector<16x32xf32> to vector<16xf32>
    %1277 = vector.shape_cast %1276 : vector<16xf32> to vector<16x1xf32>
    %cst_398 = arith.constant 3.200000e+01 : f32
    %1278 = vector.broadcast %cst_398 : f32 to vector<16x1xf32>
    %1279 = arith.divf %1277, %1278 : vector<16x1xf32>
    %cst_399 = arith.constant 9.99999974E-6 : f32
    %1280 = vector.broadcast %cst_399 : f32 to vector<16x1xf32>
    %1281 = arith.addf %1279, %1280 : vector<16x1xf32>
    %1282 = math.rsqrt %1281 : vector<16x1xf32>
    %1283 = vector.broadcast %1282 : vector<16x1xf32> to vector<16x32xf32>
    %1284 = arith.mulf %1274, %1283 : vector<16x32xf32>
    %1285 = vector.broadcast %1267 : vector<1x32xf32> to vector<16x32xf32>
    %1286 = arith.mulf %1284, %1285 : vector<16x32xf32>
    %1287 = vector.broadcast %1268 : vector<1x32xf32> to vector<16x32xf32>
    %1288 = arith.addf %1286, %1287 : vector<16x32xf32>
    %c512 = arith.constant 512 : index
    %c0_400 = arith.constant 0 : index
    %1289 = vector.load %arg4[%c512, %c0_400] : memref<544x128xf32, #tpu.memory_space<vmem>>, vector<32x64xf32>
    %cst_401 = arith.constant dense<0.000000e+00> : vector<16x64xf32>
    %1290 = tpu.matmul %1288, %1289, %cst_401 {dimension_numbers = #tpu.dot_dimension_numbers<[1], [0], [0], [1], [0, 0, 1, 1], [], []>} : vector<16x32xf32>, vector<32x64xf32>, vector<16x64xf32> -> vector<16x64xf32>
    %c0_402 = arith.constant 0 : index
    %c0_403 = arith.constant 0 : index
    %1291 = vector.load %arg6[%c0_402, %c0_403] : memref<16x128xf32, #tpu.memory_space<vmem>>, vector<16x64xf32>
    tpu.vector_store %arg6[%c0_402, %c0_403], %1290 {strides = array<i32>} : memref<16x128xf32, #tpu.memory_space<vmem>>, vector<16x64xf32>,
    %c0_404 = arith.constant 0 : index
    %c64_405 = arith.constant 64 : index
    %1292 = vector.load %arg6[%c0_404, %c64_405] : memref<16x128xf32, #tpu.memory_space<vmem>>, vector<16x32xf32>
    tpu.vector_store %arg6[%c0_404, %c64_405], %448 {strides = array<i32>} : memref<16x128xf32, #tpu.memory_space<vmem>>, vector<16x32xf32>,
    %c0_406 = arith.constant 0 : index
    %c96_407 = arith.constant 96 : index
    %1293 = vector.load %arg6[%c0_406, %c96_407] : memref<16x128xf32, #tpu.memory_space<vmem>>, vector<16x32xf32>
    tpu.vector_store %arg6[%c0_406, %c96_407], %466 {strides = array<i32>} : memref<16x128xf32, #tpu.memory_space<vmem>>, vector<16x32xf32>,
    return
  }
  func.func @transform_0(%arg0: i32) -> (i32, i32) {
    %c0_i32 = arith.constant 0 : i32
    %c0_i32_0 = arith.constant 0 : i32
    return %arg0, %c0_i32 : i32, i32
  }
  func.func @transform_1(%arg0: i32) -> (i32, i32) {
    %c0_i32 = arith.constant 0 : i32
    %c0_i32_0 = arith.constant 0 : i32
    return %arg0, %c0_i32 : i32, i32
  }
  func.func @transform_2(%arg0: i32) -> (i32, i32) {
    %c0_i32 = arith.constant 0 : i32
    %c0_i32_0 = arith.constant 0 : i32
    %c0_i32_1 = arith.constant 0 : i32
    return %c0_i32, %c0_i32_0 : i32, i32
  }
  func.func @transform_3(%arg0: i32) -> (i32, i32) {
    %c0_i32 = arith.constant 0 : i32
    %c0_i32_0 = arith.constant 0 : i32
    %c0_i32_1 = arith.constant 0 : i32
    return %c0_i32, %c0_i32_0 : i32, i32
  }
  func.func @transform_4(%arg0: i32) -> (i32, i32) {
    %c0_i32 = arith.constant 0 : i32
    %c0_i32_0 = arith.constant 0 : i32
    %c0_i32_1 = arith.constant 0 : i32
    return %c0_i32, %c0_i32_0 : i32, i32
  }
  func.func @transform_5(%arg0: i32) -> (i32, i32) {
    %c0_i32 = arith.constant 0 : i32
    %c0_i32_0 = arith.constant 0 : i32
    return %arg0, %c0_i32 : i32, i32
  }
}

</mosaic_0001>

<bundles_post_ra>
// kernel: forward.1
= control target key start
LH: loop header
LB: loop body
LE: loop exit
PB: predicated region body
PF: predicated region fallthrough
CT: control target
= control target key end

     0   :  { %v18582_v3 = vmov 0.0   ;;  %vm56_vm0 = vcmask 523264   ;;  %v46_v19 = vlaneseq  ;;  %vm154_vm1 = vcmask 64512   ;;  %s18583_s6 = smov 64   ;;  %s18584_s11 = smov 56   ;;  %s21137_s2 = inlined_call_operand.vmem [shape: f32[512,192], index: 2, kind: input, shape index: {}]   ;;  %s21138_s0 = inlined_call_operand.vmem [shape: f32[16,128], index: 0, kind: input, shape index: {}]   ;;  %s21139_s4 = inlined_call_operand.vmem [shape: f32[48,192], index: 4, kind: input, shape index: {}]   ;;  %s21140_s1 = inlined_call_operand.vmem [shape: f32[48,16], index: 1, kind: input, shape index: {}]   ;;  %s21141_s3 = inlined_call_operand.vmem [shape: f32[544,128], index: 3, kind: input, shape index: {}]   ;;  %s21142_s5 = inlined_call_operand.vmem [shape: f32[16,128], index: 5, kind: output, shape index: {}]  }
   0x1   :  { %v43_v0 = vld [vmem:[%s21137_s2 + $0x78] sm:$0xff]  ;;  %v42_v1 = vld [vmem:[%s21137_s2 + $0x70] sm:$0xff]  ;;  %v41_v2 = vld [vmem:[%s21137_s2 + $0x68] sm:$0xff]  ;;  %127 = vmatprep.mubr.f32.mxu0 %v18582_v3  ;;  %vm238_vm2 = vcmask 130048   ;;  %s18585_s12 = smov 120   ;;  %s21149_s13 = smov 48  }
   0x2   :  { %79 = vmatprep.subr.mxu0 %v43_v0  ;;  %v40_v4 = vld [vmem:[%s21137_s2 + $0x60] sm:$0xff]  ;;  %v39_v5 = vld [vmem:[%s21137_s2 + $0x58] sm:$0xff]  ;;  %v38_v6 = vld [vmem:[%s21137_s2 + $0x50] sm:$0xff]  ;;  %v18698_v20 = vshrl.u32 %v46_v19, 7  ;;  %s18587_s14 = smov 104   ;;  %s18588_s17 = smov 112  }
   0x3   :  { %80 = vmatpush1.msra.mxu0 %v42_v1  ;;  %v37_v7 = vld [vmem:[%s21137_s2 + $0x48] sm:$0xff]  ;;  %v36_v8 = vld [vmem:[%s21137_s2 + $0x40] sm:$0xff]  ;;  %v35_v9 = vld [vmem:[%s21137_s2 + $0x38] sm:$0xff]  ;;  %s21145_s18 = smov 40   ;;  %s18590_s21 = smov 32   ;;  %vm5340_vm3 = vcmask 261120  }
   0x4   :  { %81 = vmatprep.subr.mxu0 %v41_v2  ;;  %v34_v10 = vld [vmem:[%s21137_s2 + $0x30] sm:$0xff]  ;;  %v33_v11 = vld [vmem:[%s21137_s2 + $0x28] sm:$0xff]  ;;  %v32_v12 = vld [vmem:[%s21137_s2 + $0x20] sm:$0xff]  ;;  %v48_v21 = vsub.s32 0, %v18698_v20  ;;  %v52_v29 = vsub.s32 1, %v18698_v20  ;;  %s18591_s22 = smov 96  }
   0x5   :  { %82 = vmatpush1.msra.mxu0 %v40_v4  ;;  %v31_v13 = vld [vmem:[%s21137_s2 + $0x18] sm:$0xff]  ;;  %v30_v14 = vld [vmem:[%s21137_s2 + $0x10] sm:$0xff]  ;;  %v29_v15 = vld [vmem:[%s21137_s2 + $0x8] sm:$0xff]  ;;  %s18592_s25 = smov 24   ;;  %s18593_s26 = smov 88   ;;  %vm5430_vm4 = vcmask 31744  }
   0x6   :  { %83 = vmatprep.subr.mxu0 %v39_v5  ;;  %v28_v16 = vld [vmem:[%s21137_s2] sm:$0xff]  ;;  %v21_v18 = vld [vmem:[%s21138_s0 + $0x8] sm:$0xff]  ;;  %s18594_s29 = smov 16   ;;  %s18595_s30 = smov 80   ;;  %vm5831_vm5 = vcmask 1043456   ;;  %vm15870_vm6 = vcmask 785920  }
   0x7   :  { %84 = vmatpush1.msra.mxu0 %v38_v6  ;;  %v20_v17 = vld [vmem:[%s21138_s0] sm:$0xff]  ;;  %v18741_v38 = vld [vmem:[%s21140_s1 + $0x8] sm:$0xff]  ;;  %s18596_s9 = smov 8   ;;  %s18597_s10 = smov 72   ;;  %vm15881_vm7 = vcmask 1048320  }
   0x8   :  { %85 = vmatprep.subr.mxu0 %v37_v7  ;;  %v44_v22 = vld [vmem:[%s21139_s4] ss:$8 sm:$0x3]  ;;  %s18599_s8 = smov 124   ;;  %s18601_s23 = smov 84  }
   0x9   :  { %86 = vmatpush1.msra.mxu0 %v36_v8  ;;  %v49_v23 = vrot.slane %v44_v22, %v48_v21  ;;  %v53_v32 = vrot.slane %v44_v22, %v52_v29  ;;  %v18736_v37 = vld [vmem:[%s21140_s1] sm:$0xff]  ;;  %v141_v22 = vld [vmem:[%s21137_s2 + $0x90] sm:$0xff]  ;;  %s18602_s24 = smov 116   ;;  %s21151_s7 = smov 52  }
   0xa   :  { %87 = vmatprep.subr.mxu0 %v35_v9  ;;  %s18605_s15 = smov 108   ;;  %s21147_s19 = smov 44  }
   0xb   :  { %88 = vmatpush1.msra.mxu0 %v34_v10  ;;  %s18607_s20 = smov 68   ;;  %s18608_s27 = smov 100  }
   0xc   :  { %89 = vmatprep.subr.mxu0 %v33_v11  ;;  %s21143_s16 = smov 36   ;;  %s21157_s28 = smov 36  }
   0xd   :  { %90 = vmatpush1.msra.mxu0 %v32_v12 }
   0xe   :  { %91 = vmatprep.subr.mxu0 %v31_v13 }
   0xf   :  { %92 = vmatpush1.msra.mxu0 %v30_v14 }
  0x10   :  { %93 = vmatprep.subr.mxu0 %v29_v15 }
  0x11   :  { %94 = vmatpush1.msra.mxu0 %v28_v16 }
  0x12   :  { %15888 = vmatmul.mubr.msk.f32.vlgmr.msra.gmra.mxu0 %vm56_vm0, %v20_v17 }
  0x13   :  { %133 = vmatprep.mubr.f32.mxu0 %v18582_v3 }
  0x16   :  { %15889 = vmatmul.mubr.msk.f32.gmra.mxu0 %vm56_vm0, %v21_v18 }
  0xd2   :  { %v129_v24 = vpop.f32.mrf.mxu0 }
  0xd3   :  { %v18706_v25 = vadd.f32 %v129_v24, %v49_v23 }
  0xd4   :  { %v131_v26 = vpop.f32.mrf.mxu0 }
  0xd5   :  { %16985 = vmatprep.mubr.msk.f32.mxu1 %vm154_vm1, %v18706_v25  ;;  %v18726_v35 = vadd.f32 %v131_v26, %v53_v32 }
  0xd6   :  { %v135_v27 = vpop.f32.mrf.mxu0 }
  0xd7   :  { %v18710_v28 = vadd.f32 %v135_v27, %v49_v23  ;;  %v140_v27 = vld [vmem:[%s21137_s2 + $0x80] sm:$0xff] }
  0xd8   :  { %v137_v31 = vpop.f32.mrf.mxu0 }
  0xd9   :  { %152 = vrot.lane.b32.xlu0 %v18710_v28, %s18583_s6  ;;  %v18721_v34 = vadd.f32 %v137_v31, %v53_v32 }
  0xdd   :  { %150 = vrot.lane.b32.xlu0 %v18706_v25, %s18583_s6 }
 0x14b   :  { %v153_v30 = vpop.permute.xlu0 %152 }
 0x14c   :  { %16981 = vmatprep.subr.msk.mxu1 %vm154_vm1, %v153_v30 }
 0x14d   :  { %16982 = vmatpush3.xpose.msk.msra.mxu1 %vm154_vm1, %v153_v30 }
 0x14f   :  { %v151_v33 = vpop.permute.xlu0 %150 }
 0x150   :  { %16983 = vmatprep.subr.msk.mxu1 %vm154_vm1, %v151_v33 }
 0x151   :  { %16984 = vmatpush3.xpose.msk.msra.mxu1 %vm154_vm1, %v151_v33 }
 0x152   :  { %16988 = vmatprep.subr.mxu1 %v18721_v34 }
 0x154   :  { %16986 = vmatmul.mubr.msk.f32.vlgmr.msra.gmra.mxu1 %vm154_vm1, %v18710_v28 }
 0x155   :  { %16989 = vmatpush3.msra.mxu1 %v18721_v34 }
 0x156   :  { %16990 = vmatprep.subr.mxu1 %v18726_v35 }
 0x157   :  { %16991 = vmatpush3.msra.mxu1 %v18726_v35 }
 0x214   :  { %v16987_v36 = vpop.f32.mrf.mxu1 }
 0x215   :  { %v235_v41 = vadd.f32 %v16987_v36, %v18741_v38 }
 0x216   :  { %v229_v39 = vpop.f32.mrf.mxu1 }
 0x217   :  { %v230_v40 = vadd.f32 %v229_v39, %v18736_v37  ;;  %v242_v43 = vsel %vm238_vm2, %v235_v41, -inf }
 0x219   :  { %v239_v42 = vsel %vm238_vm2, %v230_v40, -inf }
 0x21a   :  { %240 = vmax.xlane.f32.xlu1 %v239_v42 }
 0x21e   :  { %243 = vmax.xlane.f32.xlu1 %v242_v43 }
 0x2a3   :  { %v241_v44 = vpop.xlane.xlu1 %240 }
 0x2a4   :  { %v245_v45 = vsub.f32 %v230_v40, %v241_v44 }
 0x2a6   :  { %v247_v46 = vmul.f32 1.442695, %v245_v45 }
 0x2a7   :  { %v244_v47 = vpop.xlane.xlu1 %243 }
 0x2a8   :  { %18134 = vpow2.f32 %v247_v46  ;;  %v246_v48 = vsub.f32 %v235_v41, %v244_v47 }
 0x2aa   :  { %v249_v49 = vmul.f32 1.442695, %v246_v48 }
 0x2ac   :  { %18136 = vpow2.f32 %v249_v49 }
 0x2b5   :  { %v18135_v50 = vpop.eup %18134 }
 0x2b6   :  { %v251_v51 = vsel %vm238_vm2, %v18135_v50, 0.0 }
 0x2b7   :  { %252 = vadd.xlane.f32.xlu0 %v251_v51 }
 0x2b9   :  { %v18137_v52 = vpop.eup %18136 }
 0x2ba   :  { %v254_v53 = vsel %vm238_vm2, %v18137_v52, 0.0 }
 0x2bb   :  { %255 = vadd.xlane.f32.xlu1 %v254_v53 }
 0x2cc   :  { %348 = vrot.lane.b32.xlu1 %v18710_v28, %s18584_s11 }
 0x2d0   :  { %346 = vrot.lane.b32.xlu1 %v18706_v25, %s18584_s11 }
 0x2d4   :  { %342 = vrot.lane.b32.xlu1 %v18706_v25, %s18585_s12 }
 0x2d8   :  { %344 = vrot.lane.b32.xlu1 %v18710_v28, %s18585_s12 }
 0x340   :  { %v253_v54 = vpop.xlane.xlu0 %252 }
 0x341   :  { %18138 = vrcp.f32 %v253_v54 }
 0x344   :  { %v256_v55 = vpop.xlane.xlu1 %255 }
 0x345   :  { %18140 = vrcp.f32 %v256_v55 }
 0x348   :  { %v349_v56 = vpop.permute.xlu1 %348 }
 0x349   :  { %16995 = vmatprep.subr.msk.mxu1 %vm154_vm1, %v349_v56 }
 0x34c   :  { %v347_v58 = vpop.permute.xlu1 %346 }
 0x34e   :  { %v18139_v57 = vpop.eup %18138 }
 0x34f   :  { %v259_v59 = vmul.f32 %v18139_v57, %v18135_v50 }
 0x350   :  { %v343_v62 = vpop.permute.xlu1 %342 }
 0x351   :  { %16992 = vmatprep.mubr.msk.f32.mxu1 %vm238_vm2, %v259_v59 }
 0x352   :  { %v18141_v60 = vpop.eup %18140 }
 0x353   :  { %v260_v61 = vmul.f32 %v18141_v60, %v18137_v52 }
 0x354   :  { %v345_v63 = vpop.permute.xlu1 %344 }
 0x355   :  { %16993 = vmatmul.mubr.msk.f32.vlgmr.msra.gmra.mxu1 %vm238_vm2, %v260_v61 }
 0x356   :  { %16996 = vmatpush3.xpose.msk.msra.mxu1 %vm154_vm1, %v349_v56  ;;  %16999 = vmatprep.mubr.msk.f32.mxu1 %vm154_vm1, %v343_v62 }
 0x357   :  { %16997 = vmatprep.subr.msk.mxu1 %vm154_vm1, %v347_v58 }
 0x35a   :  { %16998 = vmatpush3.xpose.msk.msra.mxu1 %vm154_vm1, %v347_v58 }
 0x35b   :  { %17009 = vmatprep.subr.mxu1 %v141_v22 }
 0x35d   :  { %17000 = vmatmul.mubr.msk.f32.vlgmr.msra.gmra.mxu1 %vm154_vm1, %v345_v63 }
 0x35e   :  { %17010 = vmatpush3.msra.mxu1 %v141_v22 }
 0x415   :  { %v18765_v0 = vpop.f32.mrf.mxu1 }
 0x417   :  { %v333_v1 = vpop.f32.mrf.mxu1 }
 0x41d   :  { %v17001_v2 = vpop.f32.mrf.mxu1 }
 0x41e   :  { %v430_v4 = vadd.f32 %v17001_v2, %v18741_v38 }
 0x41f   :  { %v424_v5 = vpop.f32.mrf.mxu1 }
 0x420   :  { %v425_v6 = vadd.f32 %v424_v5, %v18736_v37  ;;  %v436_v7 = vsel %vm238_vm2, %v430_v4, -inf }
 0x421   :  { %437 = vmax.xlane.f32.xlu1 %v436_v7 }
 0x422   :  { %v433_v8 = vsel %vm238_vm2, %v425_v6, -inf }
 0x423   :  { %434 = vmax.xlane.f32.xlu0 %v433_v8 }
 0x432   :  { %710 = vrot.lane.b32.xlu1 %v18706_v25, %s21149_s13 }
 0x436   :  { %989 = vrot.lane.b32.xlu1 %v18706_v25, %s18587_s14 }
 0x439   :  { %459 = vrot.lane.b32.xlu0 %v18721_v34, %s18585_s12 }
 0x4aa   :  { %v438_v9 = vpop.xlane.xlu1 %437 }
 0x4ab   :  { %v440_v10 = vsub.f32 %v430_v4, %v438_v9 }
 0x4ac   :  { %v435_v11 = vpop.xlane.xlu0 %434 }
 0x4ad   :  { %v443_v12 = vmul.f32 1.442695, %v440_v10  ;;  %v439_v13 = vsub.f32 %v425_v6, %v435_v11 }
 0x4ae   :  { %v711_v43 = vpop.permute.xlu1 %710 }
 0x4af   :  { %18142 = vpow2.f32 %v443_v12  ;;  %v441_v14 = vmul.f32 1.442695, %v439_v13 }
 0x4b0   :  { %v460_v15 = vpop.permute.xlu0 %459 }
 0x4b1   :  { %18144 = vpow2.f32 %v441_v14  ;;  %17002 = vmatprep.subr.mxu0 %v460_v15 }
 0x4b2   :  { %17003 = vmatpush3.msra.mxu0 %v460_v15  ;;  %v990_v45 = vpop.permute.xlu1 %989 }
 0x4bc   :  { %v18143_v16 = vpop.eup %18142 }
 0x4bd   :  { %v448_v17 = vsel %vm238_vm2, %v18143_v16, 0.0 }
 0x4be   :  { %v18145_v18 = vpop.eup %18144  ;;  %449 = vadd.xlane.f32.xlu0 %v448_v17 }
 0x4bf   :  { %v445_v19 = vsel %vm238_vm2, %v18145_v18, 0.0 }
 0x4c2   :  { %446 = vadd.xlane.f32.xlu0 %v445_v19 }
 0x4d8   :  { %457 = vrot.lane.b32.xlu0 %v18726_v35, %s18585_s12 }
 0x4dc   :  { %712 = vrot.lane.b32.xlu0 %v18710_v28, %s21149_s13 }
 0x4e0   :  { %706 = vrot.lane.b32.xlu0 %v18706_v25, %s18588_s17 }
 0x4e4   :  { %708 = vrot.lane.b32.xlu0 %v18710_v28, %s18588_s17 }
 0x4e8   :  { %995 = vrot.lane.b32.xlu0 %v18710_v28, %s21145_s18 }
 0x4ec   :  { %993 = vrot.lane.b32.xlu0 %v18706_v25, %s21145_s18 }
 0x4f0   :  { %991 = vrot.lane.b32.xlu0 %v18710_v28, %s18587_s14 }
 0x547   :  { %v450_v23 = vpop.xlane.xlu0 %449 }
 0x548   :  { %18146 = vrcp.f32 %v450_v23 }
 0x54b   :  { %v447_v24 = vpop.xlane.xlu0 %446 }
 0x54c   :  { %18148 = vrcp.f32 %v447_v24 }
 0x54f   :  { %v458_v26 = vpop.permute.xlu0 %457 }
 0x550   :  { %17004 = vmatprep.subr.mxu0 %v458_v26 }
 0x551   :  { %17005 = vmatpush3.msra.mxu0 %v458_v26 }
 0x552   :  { %17014 = vmatprep.subr.mxu0 %v140_v27 }
 0x553   :  { %v713_v30 = vpop.permute.xlu0 %712 }
 0x554   :  { %17019 = vmatprep.subr.msk.mxu1 %vm154_vm1, %v713_v30 }
 0x555   :  { %v18147_v31 = vpop.eup %18146 }
 0x556   :  { %v454_v36 = vmul.f32 %v18147_v31, %v18143_v16 }
 0x557   :  { %v707_v39 = vpop.permute.xlu0 %706 }
 0x559   :  { %v18149_v32 = vpop.eup %18148 }
 0x55a   :  { %v453_v33 = vmul.f32 %v18149_v32, %v18145_v18 }
 0x55b   :  { %v709_v41 = vpop.permute.xlu0 %708 }
 0x55c   :  { %17006 = vmatprep.mubr.msk.f32.mxu0 %vm238_vm2, %v453_v33 }
 0x55d   :  { %17007 = vmatmul.mubr.msk.f32.vlgmr.msra.gmra.mxu0 %vm238_vm2, %v454_v36 }
 0x55e   :  { %17016 = vmatprep.mubr.msk.f32.mxu0 %vm154_vm1, %v333_v1  ;;  %17015 = vmatpush3.msra.mxu0 %v140_v27 }
 0x55f   :  { %v996_v44 = vpop.permute.xlu0 %995 }
 0x561   :  { %17017 = vmatmul.mubr.msk.f32.vlgmr.msra.gmra.mxu0 %vm154_vm1, %v18765_v0 }
 0x563   :  { %v994_v46 = vpop.permute.xlu0 %993 }
 0x567   :  { %v992_v47 = vpop.permute.xlu0 %991 }
 0x61d   :  { %v17008_v40 = vpop.f32.mrf.mxu0 }
 0x61f   :  { %v535_v42 = vpop.f32.mrf.mxu0 }
 0x620   :  { %17011 = vmatprep.mubr.msk.f32.mxu1 %vm154_vm1, %v535_v42 }
 0x621   :  { %17012 = vmatmul.mubr.msk.f32.vlgmr.msra.gmra.mxu1 %vm154_vm1, %v17008_v40  ;;  %v142_v40 = vld [vmem:[%s21137_s2 + $0xa0] sm:$0xff] }
 0x622   :  { %17020 = vmatpush3.xpose.msk.msra.mxu1 %vm154_vm1, %v713_v30  ;;  %17023 = vmatprep.mubr.msk.f32.mxu1 %vm154_vm1, %v707_v39 }
 0x623   :  { %17021 = vmatprep.subr.msk.mxu1 %vm154_vm1, %v711_v43 }
 0x626   :  { %17022 = vmatpush3.xpose.msk.msra.mxu1 %vm154_vm1, %v711_v43 }
 0x627   :  { %17038 = vmatprep.subr.msk.mxu1 %vm154_vm1, %v996_v44 }
 0x629   :  { %17024 = vmatmul.mubr.msk.f32.vlgmr.msra.gmra.mxu1 %vm154_vm1, %v709_v41  ;;  %v18869_v41 = vpop.f32.mrf.mxu0 }
 0x62a   :  { %17039 = vmatpush3.xpose.msk.msra.mxu1 %vm154_vm1, %v996_v44  ;;  %17042 = vmatprep.mubr.msk.f32.mxu1 %vm154_vm1, %v990_v45 }
 0x62b   :  { %17040 = vmatprep.subr.msk.mxu1 %vm154_vm1, %v994_v46  ;;  %v18871_v43 = vpop.f32.mrf.mxu0 }
 0x62e   :  { %17041 = vmatpush3.xpose.msk.msra.mxu1 %vm154_vm1, %v994_v46 }
 0x631   :  { %17043 = vmatmul.mubr.msk.f32.vlgmr.msra.gmra.mxu1 %vm154_vm1, %v992_v47 }
 0x6e1   :  { %v18818_v48 = vpop.f32.mrf.mxu1 }
 0x6e3   :  { %v18820_v49 = vpop.f32.mrf.mxu1 }
 0x6e9   :  { %v17025_v50 = vpop.f32.mrf.mxu1 }
 0x6ea   :  { %v794_v51 = vadd.f32 %v17025_v50, %v18741_v38 }
 0x6eb   :  { %v788_v52 = vpop.f32.mrf.mxu1 }
 0x6ec   :  { %v789_v53 = vadd.f32 %v788_v52, %v18736_v37  ;;  %v800_v54 = vsel %vm238_vm2, %v794_v51, -inf }
 0x6ed   :  { %801 = vmax.xlane.f32.xlu0 %v800_v54 }
 0x6ee   :  { %v797_v55 = vsel %vm238_vm2, %v789_v53, -inf }
 0x6ef   :  { %798 = vmax.xlane.f32.xlu1 %v797_v55 }
 0x6f1   :  { %v17044_v2 = vpop.f32.mrf.mxu1 }
 0x6f2   :  { %v1077_v6 = vadd.f32 %v17044_v2, %v18741_v38 }
 0x6f3   :  { %v1071_v4 = vpop.f32.mrf.mxu1 }
 0x6f4   :  { %v1072_v5 = vadd.f32 %v1071_v4, %v18736_v37  ;;  %v1083_v8 = vsel %vm238_vm2, %v1077_v6, -inf }
 0x6f6   :  { %v1080_v7 = vsel %vm238_vm2, %v1072_v5, -inf }
 0x776   :  { %v802_v56 = vpop.xlane.xlu0 %801 }
 0x777   :  { %v804_v57 = vsub.f32 %v794_v51, %v802_v56 }
 0x778   :  { %v799_v58 = vpop.xlane.xlu1 %798 }
 0x779   :  { %v807_v59 = vmul.f32 1.442695, %v804_v57  ;;  %v803_v60 = vsub.f32 %v789_v53, %v799_v58 }
 0x77b   :  { %18150 = vpow2.f32 %v807_v59  ;;  %v805_v61 = vmul.f32 1.442695, %v803_v60 }
 0x77d   :  { %18152 = vpow2.f32 %v805_v61 }
 0x788   :  { %v18151_v62 = vpop.eup %18150 }
 0x789   :  { %v812_v63 = vsel %vm238_vm2, %v18151_v62, 0.0 }
 0x78a   :  { %v18153_v0 = vpop.eup %18152  ;;  %813 = vadd.xlane.f32.xlu1 %v812_v63 }
 0x78b   :  { %v809_v1 = vsel %vm238_vm2, %v18153_v0, 0.0 }
 0x78c   :  { %810 = vadd.xlane.f32.xlu0 %v809_v1  ;;  %v143_v1 = vld [vmem:[%s21137_s2 + $0xb0] sm:$0xff] }
 0x79b   :  { %819 = vrot.lane.b32.xlu1 %v18726_v35, %s18588_s17 }
 0x79f   :  { %1278 = vrot.lane.b32.xlu1 %v18710_v28, %s18590_s21 }
 0x7a2   :  { %821 = vrot.lane.b32.xlu0 %v18721_v34, %s18588_s17 }
 0x7a3   :  { %1272 = vrot.lane.b32.xlu1 %v18706_v25, %s18591_s22 }
 0x7a6   :  { %1276 = vrot.lane.b32.xlu0 %v18706_v25, %s18590_s21 }
 0x7aa   :  { %1274 = vrot.lane.b32.xlu0 %v18710_v28, %s18591_s22 }
 0x7c7   :  { %1081 = vmax.xlane.f32.xlu1 %v1080_v7 }
 0x7c9   :  { %1084 = vmax.xlane.f32.xlu0 %v1083_v8 }
 0x813   :  { %v814_v9 = vpop.xlane.xlu1 %813 }
 0x814   :  { %18154 = vrcp.f32 %v814_v9 }
 0x815   :  { %v811_v10 = vpop.xlane.xlu0 %810 }
 0x816   :  { %18156 = vrcp.f32 %v811_v10 }
 0x817   :  { %v820_v11 = vpop.permute.xlu1 %819 }
 0x819   :  { %v822_v12 = vpop.permute.xlu0 %821 }
 0x81a   :  { %17026 = vmatprep.subr.mxu0 %v822_v12 }
 0x81b   :  { %v1279_v13 = vpop.permute.xlu1 %1278  ;;  %17027 = vmatpush3.msra.mxu0 %v822_v12 }
 0x81c   :  { %17028 = vmatprep.subr.mxu0 %v820_v11  ;;  %17057 = vmatprep.subr.msk.mxu1 %vm154_vm1, %v1279_v13 }
 0x81d   :  { %17029 = vmatpush3.msra.mxu0 %v820_v11  ;;  %17058 = vmatpush3.xpose.msk.msra.mxu1 %vm154_vm1, %v1279_v13  ;;  %v1277_v14 = vpop.permute.xlu0 %1276  ;;  %v703_v13 = vadd.f32 %v18869_v41, %v18818_v48 }
 0x81e   :  { %17059 = vmatprep.subr.msk.mxu1 %vm154_vm1, %v1277_v14  ;;  %17033 = vmatprep.subr.mxu0 %v142_v40 }
 0x81f   :  { %v1273_v15 = vpop.permute.xlu1 %1272 }
 0x820   :  { %17061 = vmatprep.mubr.msk.f32.mxu1 %vm154_vm1, %v1273_v15 }
 0x821   :  { %17060 = vmatpush3.xpose.msk.msra.mxu1 %vm154_vm1, %v1277_v14  ;;  %v18155_v16 = vpop.eup %18154  ;;  %v1275_v18 = vpop.permute.xlu0 %1274 }
 0x822   :  { %v818_v22 = vmul.f32 %v18155_v16, %v18151_v62 }
 0x823   :  { %v18157_v17 = vpop.eup %18156 }
 0x824   :  { %17062 = vmatmul.mubr.msk.f32.vlgmr.msra.gmra.mxu1 %vm154_vm1, %v1275_v18  ;;  %v817_v19 = vmul.f32 %v18157_v17, %v18153_v0 }
 0x826   :  { %17030 = vmatprep.mubr.msk.f32.mxu0 %vm238_vm2, %v817_v19 }
 0x827   :  { %17031 = vmatmul.mubr.msk.f32.vlgmr.msra.gmra.mxu0 %vm238_vm2, %v818_v22 }
 0x828   :  { %17034 = vmatpush3.msra.mxu0 %v142_v40 }
 0x850   :  { %v1082_v23 = vpop.xlane.xlu1 %1081 }
 0x851   :  { %v1086_v24 = vsub.f32 %v1072_v5, %v1082_v23 }
 0x852   :  { %v1085_v26 = vpop.xlane.xlu0 %1084 }
 0x853   :  { %v1088_v27 = vmul.f32 1.442695, %v1086_v24  ;;  %v1087_v30 = vsub.f32 %v1077_v6, %v1085_v26 }
 0x855   :  { %18158 = vpow2.f32 %v1088_v27  ;;  %v1090_v31 = vmul.f32 1.442695, %v1087_v30 }
 0x857   :  { %18160 = vpow2.f32 %v1090_v31 }
 0x862   :  { %v18159_v32 = vpop.eup %18158 }
 0x863   :  { %v1092_v33 = vsel %vm238_vm2, %v18159_v32, 0.0 }
 0x864   :  { %v18161_v36 = vpop.eup %18160  ;;  %1093 = vadd.xlane.f32.xlu0 %v1092_v33 }
 0x865   :  { %v1095_v39 = vsel %vm238_vm2, %v18161_v36, 0.0 }
 0x866   :  { %1096 = vadd.xlane.f32.xlu1 %v1095_v39 }
 0x877   :  { %1102 = vrot.lane.b32.xlu1 %v18726_v35, %s18587_s14 }
 0x87a   :  { %1104 = vrot.lane.b32.xlu0 %v18721_v34, %s18587_s14 }
 0x87b   :  { %1561 = vrot.lane.b32.xlu1 %v18710_v28, %s18592_s25 }
 0x87e   :  { %1559 = vrot.lane.b32.xlu0 %v18706_v25, %s18592_s25 }
 0x87f   :  { %1555 = vrot.lane.b32.xlu1 %v18706_v25, %s18593_s26 }
 0x882   :  { %1557 = vrot.lane.b32.xlu0 %v18710_v28, %s18593_s26 }
 0x8e4   :  { %v17063_v42 = vpop.f32.mrf.mxu1 }
 0x8e5   :  { %v1360_v44 = vadd.f32 %v17063_v42, %v18741_v38 }
 0x8e6   :  { %v1354_v45 = vpop.f32.mrf.mxu1 }
 0x8e7   :  { %v1355_v46 = vadd.f32 %v1354_v45, %v18736_v37  ;;  %v17032_v47 = vpop.f32.mrf.mxu0  ;;  %v1366_v50 = vsel %vm238_vm2, %v1360_v44, -inf }
 0x8e8   :  { %1367 = vmax.xlane.f32.xlu0 %v1366_v50 }
 0x8e9   :  { %v897_v51 = vpop.f32.mrf.mxu0  ;;  %v1363_v52 = vsel %vm238_vm2, %v1355_v46, -inf }
 0x8ea   :  { %17035 = vmatprep.mubr.msk.f32.mxu0 %vm154_vm1, %v897_v51  ;;  %1364 = vmax.xlane.f32.xlu1 %v1363_v52 }
 0x8eb   :  { %17036 = vmatmul.mubr.msk.f32.vlgmr.msra.gmra.mxu0 %vm154_vm1, %v17032_v47 }
 0x8ed   :  { %v1094_v53 = vpop.xlane.xlu0 %1093 }
 0x8ee   :  { %18162 = vrcp.f32 %v1094_v53 }
 0x8ef   :  { %v1097_v54 = vpop.xlane.xlu1 %1096 }
 0x8f0   :  { %18164 = vrcp.f32 %v1097_v54 }
 0x8f1   :  { %v1105_v55 = vpop.permute.xlu0 %1104 }
 0x8f2   :  { %17045 = vmatprep.subr.mxu0 %v1105_v55 }
 0x8f3   :  { %v1103_v56 = vpop.permute.xlu1 %1102  ;;  %17046 = vmatpush3.msra.mxu0 %v1105_v55 }
 0x8f4   :  { %17047 = vmatprep.subr.mxu0 %v1103_v56 }
 0x8f5   :  { %17048 = vmatpush3.msra.mxu0 %v1103_v56  ;;  %v1560_v58 = vpop.permute.xlu0 %1559 }
 0x8f6   :  { %17052 = vmatprep.subr.mxu0 %v143_v1 }
 0x8f7   :  { %v1562_v57 = vpop.permute.xlu1 %1561 }
 0x8f8   :  { %17076 = vmatprep.subr.msk.mxu1 %vm154_vm1, %v1562_v57 }
 0x8f9   :  { %17077 = vmatpush3.xpose.msk.msra.mxu1 %vm154_vm1, %v1562_v57  ;;  %v1558_v0 = vpop.permute.xlu0 %1557 }
 0x8fa   :  { %17078 = vmatprep.subr.msk.mxu1 %vm154_vm1, %v1560_v58 }
 0x8fb   :  { %v18163_v59 = vpop.eup %18162  ;;  %v1556_v60 = vpop.permute.xlu1 %1555 }
 0x8fc   :  { %17080 = vmatprep.mubr.msk.f32.mxu1 %vm154_vm1, %v1556_v60  ;;  %v1100_v61 = vmul.f32 %v18163_v59, %v18159_v32 }
 0x8fd   :  { %v18165_v62 = vpop.eup %18164  ;;  %17079 = vmatpush3.xpose.msk.msra.mxu1 %vm154_vm1, %v1560_v58  ;;  %v144_v58 = vld [vmem:[%s21137_s2 + $0xc0] sm:$0xff] }
 0x8fe   :  { %17049 = vmatprep.mubr.msk.f32.mxu0 %vm238_vm2, %v1100_v61  ;;  %v1101_v63 = vmul.f32 %v18165_v62, %v18161_v36 }
 0x900   :  { %17050 = vmatmul.mubr.msk.f32.vlgmr.msra.gmra.mxu0 %vm238_vm2, %v1101_v63  ;;  %17081 = vmatmul.mubr.msk.f32.vlgmr.msra.gmra.mxu1 %vm154_vm1, %v1558_v0 }
 0x901   :  { %17053 = vmatpush3.msra.mxu0 %v143_v1 }
 0x971   :  { %v1368_v2 = vpop.xlane.xlu0 %1367 }
 0x972   :  { %v1370_v4 = vsub.f32 %v1360_v44, %v1368_v2 }
 0x973   :  { %v1365_v5 = vpop.xlane.xlu1 %1364 }
 0x974   :  { %v1373_v6 = vmul.f32 1.442695, %v1370_v4  ;;  %v1369_v7 = vsub.f32 %v1355_v46, %v1365_v5 }
 0x976   :  { %18166 = vpow2.f32 %v1373_v6  ;;  %v1371_v8 = vmul.f32 1.442695, %v1369_v7 }
 0x978   :  { %18168 = vpow2.f32 %v1371_v8 }
 0x983   :  { %v18167_v9 = vpop.eup %18166 }
 0x984   :  { %v1378_v10 = vsel %vm238_vm2, %v18167_v9, 0.0 }
 0x985   :  { %v18169_v11 = vpop.eup %18168  ;;  %1379 = vadd.xlane.f32.xlu1 %v1378_v10 }
 0x986   :  { %v1375_v12 = vsel %vm238_vm2, %v18169_v11, 0.0 }
 0x987   :  { %1376 = vadd.xlane.f32.xlu0 %v1375_v12 }
 0x996   :  { %1385 = vrot.lane.b32.xlu1 %v18726_v35, %s18591_s22 }
 0x99a   :  { %1844 = vrot.lane.b32.xlu1 %v18710_v28, %s18594_s29 }
 0x99d   :  { %1387 = vrot.lane.b32.xlu0 %v18721_v34, %s18591_s22 }
 0x99e   :  { %1838 = vrot.lane.b32.xlu1 %v18706_v25, %s18595_s30 }
 0x9a1   :  { %1842 = vrot.lane.b32.xlu0 %v18706_v25, %s18594_s29 }
 0x9a5   :  { %1840 = vrot.lane.b32.xlu0 %v18710_v28, %s18595_s30 }
 0x9ab   :  { %v17037_v14 = vpop.f32.mrf.mxu0 }
 0x9ac   :  { %v18906_v15 = vadd.f32 %v17037_v14, %v703_v13 }
 0x9ad   :  { %v18908_v16 = vpop.f32.mrf.mxu0 }
 0x9c0   :  { %v17051_v17 = vpop.f32.mrf.mxu0  ;;  %v17082_v18 = vpop.f32.mrf.mxu1 }
 0x9c1   :  { %v1643_v19 = vadd.f32 %v17082_v18, %v18741_v38  ;;  %v145_v18 = vld [vmem:[%s21137_s2 + $0xd0] sm:$0xff] }
 0x9c2   :  { %v1180_v22 = vpop.f32.mrf.mxu0  ;;  %v1637_v23 = vpop.f32.mrf.mxu1 }
 0x9c3   :  { %v1638_v24 = vadd.f32 %v1637_v23, %v18736_v37  ;;  %17054 = vmatprep.mubr.msk.f32.mxu0 %vm154_vm1, %v1180_v22  ;;  %v1649_v26 = vsel %vm238_vm2, %v1643_v19, -inf }
 0x9c4   :  { %17055 = vmatmul.mubr.msk.f32.vlgmr.msra.gmra.mxu0 %vm154_vm1, %v17051_v17  ;;  %1650 = vmax.xlane.f32.xlu0 %v1649_v26 }
 0x9c5   :  { %v1646_v48 = vsel %vm238_vm2, %v1638_v24, -inf }
 0x9c6   :  { %1647 = vmax.xlane.f32.xlu1 %v1646_v48 }
 0xa0e   :  { %v1380_v27 = vpop.xlane.xlu1 %1379 }
 0xa0f   :  { %18170 = vrcp.f32 %v1380_v27 }
 0xa10   :  { %v1377_v30 = vpop.xlane.xlu0 %1376 }
 0xa11   :  { %18172 = vrcp.f32 %v1377_v30 }
 0xa12   :  { %v1386_v31 = vpop.permute.xlu1 %1385 }
 0xa14   :  { %v1388_v32 = vpop.permute.xlu0 %1387 }
 0xa15   :  { %17064 = vmatprep.subr.mxu0 %v1388_v32 }
 0xa16   :  { %v1845_v33 = vpop.permute.xlu1 %1844  ;;  %17065 = vmatpush3.msra.mxu0 %v1388_v32 }
 0xa17   :  { %17066 = vmatprep.subr.mxu0 %v1386_v31  ;;  %17095 = vmatprep.subr.msk.mxu1 %vm154_vm1, %v1845_v33 }
 0xa18   :  { %17067 = vmatpush3.msra.mxu0 %v1386_v31  ;;  %17096 = vmatpush3.xpose.msk.msra.mxu1 %vm154_vm1, %v1845_v33  ;;  %v1843_v36 = vpop.permute.xlu0 %1842 }
 0xa19   :  { %17097 = vmatprep.subr.msk.mxu1 %vm154_vm1, %v1843_v36  ;;  %17071 = vmatprep.subr.mxu0 %v144_v58 }
 0xa1a   :  { %v1839_v39 = vpop.permute.xlu1 %1838 }
 0xa1b   :  { %17099 = vmatprep.mubr.msk.f32.mxu1 %vm154_vm1, %v1839_v39 }
 0xa1c   :  { %17098 = vmatpush3.xpose.msk.msra.mxu1 %vm154_vm1, %v1843_v36  ;;  %v18171_v40 = vpop.eup %18170  ;;  %v1841_v42 = vpop.permute.xlu0 %1840 }
 0xa1d   :  { %v1384_v45 = vmul.f32 %v18171_v40, %v18167_v9 }
 0xa1e   :  { %v18173_v41 = vpop.eup %18172 }
 0xa1f   :  { %17100 = vmatmul.mubr.msk.f32.vlgmr.msra.gmra.mxu1 %vm154_vm1, %v1841_v42  ;;  %v1383_v44 = vmul.f32 %v18173_v41, %v18169_v11 }
 0xa21   :  { %17068 = vmatprep.mubr.msk.f32.mxu0 %vm238_vm2, %v1383_v44 }
 0xa22   :  { %17069 = vmatmul.mubr.msk.f32.vlgmr.msra.gmra.mxu0 %vm238_vm2, %v1384_v45 }
 0xa23   :  { %17072 = vmatpush3.msra.mxu0 %v144_v58 }
 0xa4d   :  { %v1651_v46 = vpop.xlane.xlu0 %1650 }
 0xa4e   :  { %v1653_v47 = vsub.f32 %v1643_v19, %v1651_v46 }
 0xa4f   :  { %v1648_v50 = vpop.xlane.xlu1 %1647 }
 0xa50   :  { %v1656_v51 = vmul.f32 1.442695, %v1653_v47  ;;  %v1652_v52 = vsub.f32 %v1638_v24, %v1648_v50 }
 0xa52   :  { %18174 = vpow2.f32 %v1656_v51  ;;  %v1654_v53 = vmul.f32 1.442695, %v1652_v52 }
 0xa54   :  { %18176 = vpow2.f32 %v1654_v53 }
 0xa5f   :  { %v18175_v54 = vpop.eup %18174 }
 0xa60   :  { %v1661_v55 = vsel %vm238_vm2, %v18175_v54, 0.0 }
 0xa61   :  { %v18177_v56 = vpop.eup %18176  ;;  %1662 = vadd.xlane.f32.xlu1 %v1661_v55 }
 0xa62   :  { %v1658_v57 = vsel %vm238_vm2, %v18177_v56, 0.0 }
 0xa63   :  { %1659 = vadd.xlane.f32.xlu0 %v1658_v57 }
 0xa72   :  { %1668 = vrot.lane.b32.xlu1 %v18726_v35, %s18593_s26 }
 0xa76   :  { %2127 = vrot.lane.b32.xlu1 %v18710_v28, %s18596_s9 }
 0xa79   :  { %1670 = vrot.lane.b32.xlu0 %v18721_v34, %s18593_s26 }
 0xa7a   :  { %2121 = vrot.lane.b32.xlu1 %v18706_v25, %s18597_s10 }
 0xa7d   :  { %2125 = vrot.lane.b32.xlu0 %v18706_v25, %s18596_s9 }
 0xa81   :  { %2123 = vrot.lane.b32.xlu0 %v18710_v28, %s18597_s10 }
 0xa84   :  { %v17056_v59 = vpop.f32.mrf.mxu0 }
 0xa85   :  { %v1271_v60 = vadd.f32 %v17056_v59, %v18906_v15 }
 0xa86   :  { %v18942_v62 = vpop.f32.mrf.mxu0 }
 0xadf   :  { %v17101_v61 = vpop.f32.mrf.mxu1 }
 0xae0   :  { %v1926_v63 = vadd.f32 %v17101_v61, %v18741_v38 }
 0xae1   :  { %v1920_v0 = vpop.f32.mrf.mxu1 }
 0xae2   :  { %v1921_v1 = vadd.f32 %v1920_v0, %v18736_v37  ;;  %v17070_v2 = vpop.f32.mrf.mxu0  ;;  %v1932_v4 = vsel %vm238_vm2, %v1926_v63, -inf }
 0xae3   :  { %1933 = vmax.xlane.f32.xlu0 %v1932_v4 }
 0xae4   :  { %v1463_v5 = vpop.f32.mrf.mxu0  ;;  %v1929_v25 = vsel %vm238_vm2, %v1921_v1, -inf }
 0xae5   :  { %17073 = vmatprep.mubr.msk.f32.mxu0 %vm154_vm1, %v1463_v5  ;;  %1930 = vmax.xlane.f32.xlu1 %v1929_v25  ;;  %v146_v5 = vld [vmem:[%s21137_s2 + $0xe0] sm:$0xff] }
 0xae6   :  { %17074 = vmatmul.mubr.msk.f32.vlgmr.msra.gmra.mxu0 %vm154_vm1, %v17070_v2 }
 0xaea   :  { %v1663_v28 = vpop.xlane.xlu1 %1662 }
 0xaeb   :  { %18178 = vrcp.f32 %v1663_v28 }
 0xaec   :  { %v1660_v6 = vpop.xlane.xlu0 %1659 }
 0xaed   :  { %18180 = vrcp.f32 %v1660_v6 }
 0xaee   :  { %v1669_v7 = vpop.permute.xlu1 %1668 }
 0xaf0   :  { %v1671_v8 = vpop.permute.xlu0 %1670 }
 0xaf1   :  { %17083 = vmatprep.subr.mxu0 %v1671_v8 }
 0xaf2   :  { %v2128_v9 = vpop.permute.xlu1 %2127  ;;  %17084 = vmatpush3.msra.mxu0 %v1671_v8 }
 0xaf3   :  { %17085 = vmatprep.subr.mxu0 %v1669_v7  ;;  %17114 = vmatprep.subr.msk.mxu1 %vm154_vm1, %v2128_v9 }
 0xaf4   :  { %17086 = vmatpush3.msra.mxu0 %v1669_v7  ;;  %17115 = vmatpush3.xpose.msk.msra.mxu1 %vm154_vm1, %v2128_v9  ;;  %v2126_v10 = vpop.permute.xlu0 %2125 }
 0xaf5   :  { %17116 = vmatprep.subr.msk.mxu1 %vm154_vm1, %v2126_v10  ;;  %17090 = vmatprep.subr.mxu0 %v145_v18 }
 0xaf6   :  { %v2122_v11 = vpop.permute.xlu1 %2121 }
 0xaf7   :  { %17118 = vmatprep.mubr.msk.f32.mxu1 %vm154_vm1, %v2122_v11 }
 0xaf8   :  { %17117 = vmatpush3.xpose.msk.msra.mxu1 %vm154_vm1, %v2126_v10  ;;  %v18179_v12 = vpop.eup %18178  ;;  %v2124_v14 = vpop.permute.xlu0 %2123 }
 0xaf9   :  { %v1667_v17 = vmul.f32 %v18179_v12, %v18175_v54 }
 0xafa   :  { %v18181_v13 = vpop.eup %18180 }
 0xafb   :  { %17119 = vmatmul.mubr.msk.f32.vlgmr.msra.gmra.mxu1 %vm154_vm1, %v2124_v14  ;;  %v1666_v15 = vmul.f32 %v18181_v13, %v18177_v56 }
 0xafd   :  { %17087 = vmatprep.mubr.msk.f32.mxu0 %vm238_vm2, %v1666_v15  ;;  %v147_v15 = vld [vmem:[%s21137_s2 + $0xf0] sm:$0xff] }
 0xafe   :  { %17088 = vmatmul.mubr.msk.f32.vlgmr.msra.gmra.mxu0 %vm238_vm2, %v1667_v17 }
 0xaff   :  { %17091 = vmatpush3.msra.mxu0 %v145_v18 }
 0xb6c   :  { %v1934_v19 = vpop.xlane.xlu0 %1933 }
 0xb6d   :  { %v1936_v22 = vsub.f32 %v1926_v63, %v1934_v19 }
 0xb6e   :  { %v1931_v23 = vpop.xlane.xlu1 %1930 }
 0xb6f   :  { %v1939_v24 = vmul.f32 1.442695, %v1936_v22  ;;  %v1935_v26 = vsub.f32 %v1921_v1, %v1931_v23 }
 0xb71   :  { %18182 = vpow2.f32 %v1939_v24  ;;  %v1937_v48 = vmul.f32 1.442695, %v1935_v26  ;;  %v698_v24 = vadd.f32 %v18871_v43, %v18820_v49  ;;  %v18570_v49 = vld [vmem:[%s21138_s0 + $0x8] sm:$0xff] }
 0xb73   :  { %18184 = vpow2.f32 %v1937_v48  ;;  %v987_v26 = vadd.f32 %v18908_v16, %v698_v24  ;;  %v2534_v24 = vld [vmem:[%s21137_s2 + $0x180] sm:$0xff] }
 0xb75   :  { %v1270_v48 = vadd.f32 %v18942_v62, %v987_v26  ;;  %v18571_v62 = vld [vmem:[%s21138_s0] sm:$0xff] }
 0xb76   :  { %v2450_v26 = vld [vmem:[%s21139_s4 + $0x2] ss:$0 sm:$0xff] }
 0xb7e   :  { %v18183_v27 = vpop.eup %18182 }
 0xb7f   :  { %v1944_v30 = vsel %vm238_vm2, %v18183_v27, 0.0 }
 0xb80   :  { %v18185_v31 = vpop.eup %18184  ;;  %1945 = vadd.xlane.f32.xlu1 %v1944_v30 }
 0xb81   :  { %v1941_v32 = vsel %vm238_vm2, %v18185_v31, 0.0 }
 0xb82   :  { %1942 = vadd.xlane.f32.xlu0 %v1941_v32  ;;  %v2404_v32 = vld [vmem:[%s21139_s4 + $0x1] ss:$0 sm:$0xff] }
 0xb91   :  { %1951 = vrot.lane.b32.xlu1 %v18726_v35, %s18595_s30 }
 0xb98   :  { %1953 = vrot.lane.b32.xlu0 %v18721_v34, %s18595_s30 }
 0xba6   :  { %v17075_v33 = vpop.f32.mrf.mxu0 }
 0xba7   :  { %v1554_v36 = vadd.f32 %v17075_v33, %v1271_v60 }
 0xba8   :  { %v18967_v40 = vpop.f32.mrf.mxu0 }
 0xbbb   :  { %v17120_v39 = vpop.f32.mrf.mxu1 }
 0xbbc   :  { %v2209_v41 = vadd.f32 %v17120_v39, %v18741_v38 }
 0xbbd   :  { %v2203_v42 = vpop.f32.mrf.mxu1 }
 0xbbe   :  { %v2204_v44 = vadd.f32 %v2203_v42, %v18736_v37  ;;  %v17089_v45 = vpop.f32.mrf.mxu0  ;;  %v2215_v46 = vsel %vm238_vm2, %v2209_v41, -inf }
 0xbbf   :  { %2216 = vmax.xlane.f32.xlu0 %v2215_v46 }
 0xbc0   :  { %v1746_v47 = vpop.f32.mrf.mxu0  ;;  %v2212_v50 = vsel %vm238_vm2, %v2204_v44, -inf }
 0xbc1   :  { %17092 = vmatprep.mubr.msk.f32.mxu0 %vm154_vm1, %v1746_v47  ;;  %2213 = vmax.xlane.f32.xlu1 %v2212_v50 }
 0xbc2   :  { %17093 = vmatmul.mubr.msk.f32.vlgmr.msra.gmra.mxu0 %vm154_vm1, %v17089_v45 }
 0xc09   :  { %v1946_v51 = vpop.xlane.xlu1 %1945 }
 0xc0a   :  { %18186 = vrcp.f32 %v1946_v51 }
 0xc0b   :  { %v1943_v52 = vpop.xlane.xlu0 %1942 }
 0xc0c   :  { %18188 = vrcp.f32 %v1943_v52 }
 0xc0d   :  { %v1952_v53 = vpop.permute.xlu1 %1951 }
 0xc0f   :  { %v1954_v38 = vpop.permute.xlu0 %1953 }
 0xc10   :  { %17102 = vmatprep.subr.mxu0 %v1954_v38 }
 0xc11   :  { %17103 = vmatpush3.msra.mxu0 %v1954_v38 }
 0xc12   :  { %17104 = vmatprep.subr.mxu0 %v1952_v53 }
 0xc13   :  { %17105 = vmatpush3.msra.mxu0 %v1952_v53 }
 0xc14   :  { %17109 = vmatprep.subr.mxu0 %v146_v5 }
 0xc17   :  { %v18187_v37 = vpop.eup %18186 }
 0xc18   :  { %v1950_v56 = vmul.f32 %v18187_v37, %v18183_v27  ;;  %v1553_v27 = vadd.f32 %v18967_v40, %v1270_v48 }
 0xc19   :  { %v18189_v54 = vpop.eup %18188 }
 0xc1a   :  { %v1949_v55 = vmul.f32 %v18189_v54, %v18185_v31 }
 0xc1c   :  { %17106 = vmatprep.mubr.msk.f32.mxu0 %vm238_vm2, %v1949_v55 }
 0xc1d   :  { %17107 = vmatmul.mubr.msk.f32.vlgmr.msra.gmra.mxu0 %vm238_vm2, %v1950_v56  ;;  %v2449_v56 = vld [vmem:[%s21137_s2 + $0x170] sm:$0xff] }
 0xc1e   :  { %17110 = vmatpush3.msra.mxu0 %v146_v5  ;;  %17133 = vmatprep.subr.mxu1 %v2449_v56  ;;  %v2538_v5 = vld [vmem:[%s21137_s2 + $0x1c0] sm:$0xff] }
 0xc1f   :  { %17134 = vmatpush3.msra.mxu1 %v2449_v56  ;;  %v2671_v56 = vld [vmem:[%s21137_s2 + $0x268] sm:$0xff] }
 0xc48   :  { %v2217_v57 = vpop.xlane.xlu0 %2216 }
 0xc49   :  { %v2219_v58 = vsub.f32 %v2209_v41, %v2217_v57  ;;  %v2448_v57 = vld [vmem:[%s21137_s2 + $0x160] sm:$0xff] }
 0xc4a   :  { %v2214_v59 = vpop.xlane.xlu1 %2213  ;;  %17135 = vmatprep.subr.mxu1 %v2448_v57 }
 0xc4b   :  { %v2222_v60 = vmul.f32 1.442695, %v2219_v58  ;;  %v2218_v61 = vsub.f32 %v2204_v44, %v2214_v59  ;;  %v2447_v58 = vld [vmem:[%s21137_s2 + $0x150] sm:$0xff]  ;;  %17136 = vmatpush3.msra.mxu1 %v2448_v57  ;;  %v2446_v59 = vld [vmem:[%s21137_s2 + $0x140] sm:$0xff] }
 0xc4c   :  { %17137 = vmatprep.subr.mxu1 %v2447_v58  ;;  %v2670_v57 = vld [vmem:[%s21137_s2 + $0x260] sm:$0xff] }
 0xc4d   :  { %18190 = vpow2.f32 %v2222_v60  ;;  %v2220_v63 = vmul.f32 1.442695, %v2218_v61  ;;  %17138 = vmatpush3.msra.mxu1 %v2447_v58  ;;  %v2445_v60 = vld [vmem:[%s21137_s2 + $0x130] sm:$0xff]  ;;  %v2444_v61 = vld [vmem:[%s21137_s2 + $0x120] sm:$0xff]  ;;  %v2669_v58 = vld [vmem:[%s21137_s2 + $0x258] sm:$0xff] }
 0xc4e   :  { %17139 = vmatprep.subr.mxu1 %v2446_v59 }
 0xc4f   :  { %18192 = vpow2.f32 %v2220_v63  ;;  %17140 = vmatpush3.msra.mxu1 %v2446_v59  ;;  %v2443_v63 = vld [vmem:[%s21137_s2 + $0x110] sm:$0xff] }
 0xc50   :  { %17141 = vmatprep.subr.mxu1 %v2445_v60  ;;  %v2668_v59 = vld [vmem:[%s21137_s2 + $0x250] sm:$0xff] }
 0xc51   :  { %17142 = vmatpush3.msra.mxu1 %v2445_v60  ;;  %v2667_v60 = vld [vmem:[%s21137_s2 + $0x248] sm:$0xff] }
 0xc52   :  { %17143 = vmatprep.subr.mxu1 %v2444_v61 }
 0xc53   :  { %17144 = vmatpush3.msra.mxu1 %v2444_v61  ;;  %v2666_v61 = vld [vmem:[%s21137_s2 + $0x240] sm:$0xff] }
 0xc54   :  { %17145 = vmatprep.subr.mxu1 %v2443_v63 }
 0xc55   :  { %17146 = vmatpush3.msra.mxu1 %v2443_v63  ;;  %v2665_v63 = vld [vmem:[%s21137_s2 + $0x238] sm:$0xff] }
 0xc5a   :  { %v18191_v0 = vpop.eup %18190 }
 0xc5b   :  { %v2227_v1 = vsel %vm238_vm2, %v18191_v0, 0.0 }
 0xc5c   :  { %v18193_v2 = vpop.eup %18192  ;;  %2228 = vadd.xlane.f32.xlu1 %v2227_v1  ;;  %v2541_v1 = vld [vmem:[%s21137_s2 + $0x1f0] sm:$0xff] }
 0xc5d   :  { %v2224_v4 = vsel %vm238_vm2, %v18193_v2, 0.0 }
 0xc5e   :  { %2225 = vadd.xlane.f32.xlu0 %v2224_v4  ;;  %v2539_v4 = vld [vmem:[%s21137_s2 + $0x1d0] sm:$0xff] }
 0xc6d   :  { %2234 = vrot.lane.b32.xlu1 %v18726_v35, %s18597_s10 }
 0xc74   :  { %2236 = vrot.lane.b32.xlu0 %v18721_v34, %s18597_s10 }
 0xc82   :  { %v17094_v25 = vpop.f32.mrf.mxu0 }
 0xc83   :  { %v1837_v28 = vadd.f32 %v17094_v25, %v1554_v36 }
 0xc84   :  { %v1827_v6 = vpop.f32.mrf.mxu0 }
 0xc85   :  { %v1836_v30 = vadd.f32 %v1827_v6, %v1553_v27 }
 0xcdd   :  { %v17108_v7 = vpop.f32.mrf.mxu0 }
 0xcdf   :  { %v2029_v8 = vpop.f32.mrf.mxu0 }
 0xce0   :  { %17111 = vmatprep.mubr.msk.f32.mxu0 %vm154_vm1, %v2029_v8 }
 0xce1   :  { %17112 = vmatmul.mubr.msk.f32.vlgmr.msra.gmra.mxu0 %vm154_vm1, %v17108_v7 }
 0xce5   :  { %v2229_v9 = vpop.xlane.xlu1 %2228 }
 0xce6   :  { %18194 = vrcp.f32 %v2229_v9 }
 0xce7   :  { %v2226_v10 = vpop.xlane.xlu0 %2225 }
 0xce8   :  { %18196 = vrcp.f32 %v2226_v10 }
 0xce9   :  { %v2235_v12 = vpop.permute.xlu1 %2234 }
 0xceb   :  { %v2237_v11 = vpop.permute.xlu0 %2236 }
 0xcec   :  { %17121 = vmatprep.subr.mxu0 %v2237_v11 }
 0xced   :  { %17122 = vmatpush3.msra.mxu0 %v2237_v11  ;;  %v2409_v11 = vld [vmem:[%s21139_s4 + $0x4] ss:$0 sm:$0xff] }
 0xcee   :  { %17123 = vmatprep.subr.mxu0 %v2235_v12 }
 0xcef   :  { %17124 = vmatpush3.msra.mxu0 %v2235_v12 }
 0xcf0   :  { %17128 = vmatprep.subr.mxu0 %v147_v15 }
 0xcf3   :  { %v18195_v34 = vpop.eup %18194 }
 0xcf4   :  { %v2233_v14 = vmul.f32 %v18195_v34, %v18191_v0  ;;  %v2442_v0 = vld [vmem:[%s21137_s2 + $0x100] sm:$0xff] }
 0xcf5   :  { %v18197_v35 = vpop.eup %18196  ;;  %17147 = vmatprep.subr.mxu1 %v2442_v0 }
 0xcf6   :  { %v2232_v13 = vmul.f32 %v18197_v35, %v18193_v2  ;;  %17148 = vmatpush3.msra.mxu1 %v2442_v0  ;;  %v2540_v2 = vld [vmem:[%s21137_s2 + $0x1e0] sm:$0xff]  ;;  %v2664_v0 = vld [vmem:[%s21137_s2 + $0x230] sm:$0xff] }
 0xcf8   :  { %17125 = vmatprep.mubr.msk.f32.mxu0 %vm238_vm2, %v2232_v13 }
 0xcf9   :  { %17126 = vmatmul.mubr.msk.f32.vlgmr.msra.gmra.mxu0 %vm238_vm2, %v2233_v14  ;;  %v2410_v14 = vld [vmem:[%s21139_s4 + $0x5] ss:$0 sm:$0xff] }
 0xcfa   :  { %17129 = vmatpush3.msra.mxu0 %v147_v15 }
 0xcfb   :  { %17152 = vmatprep.subr.mxu0 %v2541_v1 }
 0xda1   :  { %v17113_v17 = vpop.f32.mrf.mxu0 }
 0xda2   :  { %v2120_v18 = vadd.f32 %v17113_v17, %v1837_v28 }
 0xda3   :  { %v2110_v19 = vpop.f32.mrf.mxu0 }
 0xda4   :  { %v2119_v33 = vadd.f32 %v2110_v19, %v1836_v30  ;;  %v2537_v19 = vld [vmem:[%s21137_s2 + $0x1b0] sm:$0xff] }
 0xdb9   :  { %v17127_v22 = vpop.f32.mrf.mxu0 }
 0xdbb   :  { %v2312_v23 = vpop.f32.mrf.mxu0 }
 0xdbc   :  { %17130 = vmatprep.mubr.msk.f32.mxu0 %vm154_vm1, %v2312_v23  ;;  %v2535_v23 = vld [vmem:[%s21137_s2 + $0x190] sm:$0xff] }
 0xdbd   :  { %17131 = vmatmul.mubr.msk.f32.vlgmr.msra.gmra.mxu0 %vm154_vm1, %v17127_v22  ;;  %v2536_v22 = vld [vmem:[%s21137_s2 + $0x1a0] sm:$0xff] }
 0xdbe   :  { %17153 = vmatpush3.msra.mxu0 %v2541_v1  ;;  %v2663_v1 = vld [vmem:[%s21137_s2 + $0x228] sm:$0xff] }
 0xdbf   :  { %17154 = vmatprep.subr.mxu0 %v2540_v2 }
 0xdc0   :  { %17155 = vmatpush3.msra.mxu0 %v2540_v2  ;;  %v2662_v2 = vld [vmem:[%s21137_s2 + $0x220] sm:$0xff] }
 0xdc1   :  { %17156 = vmatprep.subr.mxu0 %v2539_v4 }
 0xdc2   :  { %17157 = vmatpush3.msra.mxu0 %v2539_v4  ;;  %v2661_v4 = vld [vmem:[%s21137_s2 + $0x218] sm:$0xff] }
 0xdc3   :  { %17158 = vmatprep.subr.mxu0 %v2538_v5 }
 0xdc4   :  { %17159 = vmatpush3.msra.mxu0 %v2538_v5  ;;  %v2660_v5 = vld [vmem:[%s21137_s2 + $0x210] sm:$0xff] }
 0xdc5   :  { %17160 = vmatprep.subr.mxu0 %v2537_v19 }
 0xdc6   :  { %17161 = vmatpush3.msra.mxu0 %v2537_v19 }
 0xdc7   :  { %17162 = vmatprep.subr.mxu0 %v2536_v22 }
 0xdc8   :  { %17163 = vmatpush3.msra.mxu0 %v2536_v22 }
 0xdc9   :  { %17164 = vmatprep.subr.mxu0 %v2535_v23 }
 0xdca   :  { %17165 = vmatpush3.msra.mxu0 %v2535_v23  ;;  %v15958_v23 = vld [vmem:[%s21139_s4 + $0x10] ss:$8 sm:$0x3] }
 0xdcb   :  { %17166 = vmatprep.subr.mxu0 %v2534_v24 }
 0xdcc   :  { %17167 = vmatpush3.msra.mxu0 %v2534_v24  ;;  %v2680_v24 = vrot.slane %v15958_v23, %v48_v21 }
 0xe7d   :  { %v17132_v31 = vpop.f32.mrf.mxu0 }
 0xe7e   :  { %v2403_v36 = vadd.f32 %v17132_v31, %v2120_v18 }
 0xe7f   :  { %v2393_v39 = vpop.f32.mrf.mxu0 }
 0xe80   :  { %v2406_v41 = vadd.f32 %v2404_v32, %v2403_v36  ;;  %v2402_v42 = vadd.f32 %v2393_v39, %v2119_v33  ;;  %v2542_v36 = vld [vmem:[%s21139_s4 + $0x3] ss:$0 sm:$0xff] }
 0xe82   :  { %v2405_v44 = vadd.f32 %v2404_v32, %v2402_v42  ;;  %v2408_v43 = vadd.f32 %v18570_v49, %v2406_v41 }
 0xe84   :  { %v2414_v16 = vsel %vm56_vm0, %v2408_v43, 0.0  ;;  %v2407_v40 = vadd.f32 %v18571_v62, %v2405_v44 }
 0xe85   :  { %2415 = vadd.xlane.f32.xlu0 %v2414_v16 }
 0xe86   :  { %v2411_v45 = vsel %vm56_vm0, %v2407_v40, 0.0 }
 0xe87   :  { %2412 = vadd.xlane.f32.xlu1 %v2411_v45 }
 0xf0e   :  { %v2416_v46 = vpop.xlane.xlu0 %2415 }
 0xf0f   :  { %v2419_v47 = vmul.f32 0.015625, %v2416_v46 }
 0xf10   :  { %v2413_v50 = vpop.xlane.xlu1 %2412 }
 0xf11   :  { %v2421_v51 = vsub.f32 %v2408_v43, %v2419_v47  ;;  %v2418_v52 = vmul.f32 0.015625, %v2413_v50 }
 0xf13   :  { %v2420_v38 = vsub.f32 %v2407_v40, %v2418_v52  ;;  %v2423_v53 = vmul.f32 %v2421_v51, %v2421_v51 }
 0xf15   :  { %v2427_v37 = vsel %vm56_vm0, %v2423_v53, 0.0  ;;  %v2422_v54 = vmul.f32 %v2420_v38, %v2420_v38 }
 0xf16   :  { %2428 = vadd.xlane.f32.xlu1 %v2427_v37 }
 0xf17   :  { %v2424_v55 = vsel %vm56_vm0, %v2422_v54, 0.0  ;;  %v2673_v54 = vld [vmem:[%s21137_s2 + $0x278] sm:$0xff] }
 0xf18   :  { %2425 = vadd.xlane.f32.xlu0 %v2424_v55  ;;  %v2672_v55 = vld [vmem:[%s21137_s2 + $0x270] sm:$0xff]  ;;  %2709 = vmatprep.subr.mxu1 %v2673_v54 }
 0xf9f   :  { %v2429_v25 = vpop.xlane.xlu1 %2428 }
 0xfa0   :  { %v2431_v28 = vmul.f32 0.015625, %v2429_v25  ;;  %v2659_v25 = vld [vmem:[%s21137_s2 + $0x208] sm:$0xff] }
 0xfa1   :  { %v2426_v6 = vpop.xlane.xlu0 %2425 }
 0xfa2   :  { %v2433_v7 = vadd.f32 1e-05, %v2431_v28  ;;  %v2430_v8 = vmul.f32 0.015625, %v2426_v6  ;;  %v2658_v28 = vld [vmem:[%s21137_s2 + $0x200] sm:$0xff] }
 0xfa4   :  { %18198 = vrsqrt.f32 %v2433_v7  ;;  %v2432_v9 = vadd.f32 1e-05, %v2430_v8 }
 0xfa6   :  { %18200 = vrsqrt.f32 %v2432_v9 }
 0xfb1   :  { %v18199_v10 = vpop.eup %18198 }
 0xfb2   :  { %v2437_v12 = vmul.f32 %v18199_v10, %v2421_v51 }
 0xfb3   :  { %v18201_v34 = vpop.eup %18200 }
 0xfb4   :  { %v2436_v35 = vmul.f32 %v18201_v34, %v2420_v38  ;;  %v2439_v13 = vmul.f32 %v2437_v12, %v2409_v11 }
 0xfb6   :  { %v2438_v15 = vmul.f32 %v2436_v35, %v2409_v11  ;;  %v2441_v18 = vadd.f32 %v2439_v13, %v2410_v14 }
 0xfb8   :  { %v2440_v17 = vadd.f32 %v2438_v15, %v2410_v14  ;;  %v2626_v14 = vld [vmem:[%s21139_s4 + $0x6] ss:$0 sm:$0xff] }
 0xfba   :  { %17149 = vmatprep.mubr.msk.f32.mxu1 %vm56_vm0, %v2440_v17 }
 0xfbb   :  { %17150 = vmatmul.mubr.msk.f32.vlgmr.msra.gmra.mxu1 %vm56_vm0, %v2441_v18 }
 0xfbc   :  { %2757 = vmatprep.mubr.f32.mxu1 %v18582_v3  ;;  %2710 = vmatpush1.msra.mxu1 %v2672_v55 }
 0xfbd   :  { %2711 = vmatprep.subr.mxu1 %v2671_v56 }
 0xfbe   :  { %2712 = vmatpush1.msra.mxu1 %v2670_v57 }
 0xfbf   :  { %2713 = vmatprep.subr.mxu1 %v2669_v58 }
 0xfc0   :  { %2714 = vmatpush1.msra.mxu1 %v2668_v59 }
 0xfc1   :  { %2715 = vmatprep.subr.mxu1 %v2667_v60 }
 0xfc2   :  { %2716 = vmatpush1.msra.mxu1 %v2666_v61 }
 0xfc3   :  { %2717 = vmatprep.subr.mxu1 %v2665_v63 }
 0xfc4   :  { %2718 = vmatpush1.msra.mxu1 %v2664_v0 }
 0xfc5   :  { %2719 = vmatprep.subr.mxu1 %v2663_v1 }
 0xfc6   :  { %2720 = vmatpush1.msra.mxu1 %v2662_v2 }
 0xfc7   :  { %2721 = vmatprep.subr.mxu1 %v2661_v4 }
 0xfc8   :  { %2722 = vmatpush1.msra.mxu1 %v2660_v5 }
 0xfc9   :  { %2723 = vmatprep.subr.mxu1 %v2659_v25 }
 0xfca   :  { %2724 = vmatpush1.msra.mxu1 %v2658_v28 }
0x107b   :  { %v17151_v48 = vpop.f32.mrf.mxu1 }
0x107c   :  { %v2529_v27 = vadd.f32 %v17151_v48, %v2450_v26 }
0x107d   :  { %v2523_v30 = vpop.f32.mrf.mxu1 }
0x107e   :  { %v2524_v31 = vadd.f32 %v2523_v30, %v2450_v26  ;;  %v2533_v33 = vmax.f32 %v2529_v27, 0.0 }
0x1080   :  { %v2532_v32 = vmax.f32 %v2524_v31, 0.0 }
0x1082   :  { %17168 = vmatprep.mubr.msk.f32.mxu0 %vm56_vm0, %v2532_v32 }
0x1083   :  { %17169 = vmatmul.mubr.msk.f32.vlgmr.msra.gmra.mxu0 %vm56_vm0, %v2533_v33  ;;  %v2684_v33 = vrot.slane %v15958_v23, %v52_v29  ;;  %v19179_v29 = vld [vmem:[%s21140_s1 + $0x8] sm:$0xff] }
0x1143   :  { %v17170_v39 = vpop.f32.mrf.mxu0 }
0x1144   :  { %v2621_v41 = vadd.f32 %v17170_v39, %v2542_v36 }
0x1145   :  { %v2615_v42 = vpop.f32.mrf.mxu0 }
0x1146   :  { %v2616_v44 = vadd.f32 %v2615_v42, %v2542_v36  ;;  %v2625_v49 = vadd.f32 %v2621_v41, %v2441_v18 }
0x1148   :  { %v2631_v43 = vsel %vm56_vm0, %v2625_v49, 0.0  ;;  %v2624_v16 = vadd.f32 %v2616_v44, %v2440_v17  ;;  %v2627_v17 = vld [vmem:[%s21139_s4 + $0x7] ss:$0 sm:$0xff] }
0x1149   :  { %2632 = vadd.xlane.f32.xlu1 %v2631_v43  ;;  %v19185_v44 = vld [vmem:[%s21140_s1] sm:$0xff] }
0x114a   :  { %v2628_v62 = vsel %vm56_vm0, %v2624_v16, 0.0 }
0x114b   :  { %2629 = vadd.xlane.f32.xlu0 %v2628_v62 }
0x11d2   :  { %v2633_v40 = vpop.xlane.xlu1 %2632 }
0x11d3   :  { %v2635_v45 = vmul.f32 0.015625, %v2633_v40 }
0x11d4   :  { %v2630_v46 = vpop.xlane.xlu0 %2629 }
0x11d5   :  { %v2637_v47 = vsub.f32 %v2625_v49, %v2635_v45  ;;  %v2634_v50 = vmul.f32 0.015625, %v2630_v46 }
0x11d7   :  { %v2636_v51 = vsub.f32 %v2624_v16, %v2634_v50  ;;  %v2639_v52 = vmul.f32 %v2637_v47, %v2637_v47 }
0x11d9   :  { %v2643_v38 = vsel %vm56_vm0, %v2639_v52, 0.0  ;;  %v2638_v53 = vmul.f32 %v2636_v51, %v2636_v51 }
0x11da   :  { %2644 = vadd.xlane.f32.xlu1 %v2643_v38 }
0x11db   :  { %v2640_v37 = vsel %vm56_vm0, %v2638_v53, 0.0 }
0x11dc   :  { %2641 = vadd.xlane.f32.xlu0 %v2640_v37 }
0x1263   :  { %v2645_v6 = vpop.xlane.xlu1 %2644 }
0x1264   :  { %v2647_v7 = vmul.f32 0.015625, %v2645_v6 }
0x1265   :  { %v2642_v8 = vpop.xlane.xlu0 %2641 }
0x1266   :  { %v2649_v9 = vadd.f32 1e-05, %v2647_v7  ;;  %v2646_v10 = vmul.f32 0.015625, %v2642_v8 }
0x1268   :  { %18202 = vrsqrt.f32 %v2649_v9  ;;  %v2648_v11 = vadd.f32 1e-05, %v2646_v10 }
0x126a   :  { %18204 = vrsqrt.f32 %v2648_v11 }
0x1275   :  { %v18203_v12 = vpop.eup %18202 }
0x1276   :  { %v2653_v13 = vmul.f32 %v18203_v12, %v2637_v47 }
0x1277   :  { %v18205_v34 = vpop.eup %18204 }
0x1278   :  { %v2652_v35 = vmul.f32 %v18205_v34, %v2636_v51  ;;  %v2655_v19 = vmul.f32 %v2653_v13, %v2626_v14 }
0x127a   :  { %v2654_v15 = vmul.f32 %v2652_v35, %v2626_v14  ;;  %v19141_v22 = vadd.f32 %v2655_v19, %v2627_v17 }
0x127c   :  { %v19136_v18 = vadd.f32 %v2654_v15, %v2627_v17  ;;  %v2771_v15 = vld [vmem:[%s21137_s2 + $0x290] sm:$0xff] }
0x127e   :  { %15959 = vmatmul.mubr.msk.f32.vlgmr.msra.gmra.mxu1 %vm56_vm0, %v19136_v18 }
0x127f   :  { %2763 = vmatprep.mubr.f32.mxu1 %v18582_v3 }
0x1282   :  { %15960 = vmatmul.mubr.msk.f32.gmra.mxu1 %vm56_vm0, %v19141_v22 }
0x133e   :  { %v2759_v26 = vpop.f32.mrf.mxu1 }
0x133f   :  { %v19150_v48 = vadd.f32 %v2759_v26, %v2680_v24 }
0x1340   :  { %v2761_v27 = vpop.f32.mrf.mxu1 }
0x1341   :  { %2780 = vrot.lane.b32.xlu1 %v19150_v48, %s18583_s6  ;;  %17175 = vmatprep.mubr.msk.f32.mxu0 %vm154_vm1, %v19150_v48  ;;  %v19169_v39 = vadd.f32 %v2761_v27, %v2684_v33  ;;  %v2770_v27 = vld [vmem:[%s21137_s2 + $0x280] sm:$0xff] }
0x1342   :  { %v2765_v3 = vpop.f32.mrf.mxu1 }
0x1343   :  { %v19156_v30 = vadd.f32 %v2765_v3, %v2680_v24 }
0x1344   :  { %v2767_v21 = vpop.f32.mrf.mxu1 }
0x1345   :  { %2782 = vrot.lane.b32.xlu0 %v19156_v30, %s18583_s6  ;;  %v19165_v36 = vadd.f32 %v2767_v21, %v2684_v33 }
0x13b3   :  { %v2781_v32 = vpop.permute.xlu1 %2780 }
0x13b7   :  { %v2783_v31 = vpop.permute.xlu0 %2782 }
0x13b8   :  { %17171 = vmatprep.subr.msk.mxu0 %vm154_vm1, %v2783_v31 }
0x13b9   :  { %17172 = vmatpush3.xpose.msk.msra.mxu0 %vm154_vm1, %v2783_v31 }
0x13ba   :  { %17173 = vmatprep.subr.msk.mxu0 %vm154_vm1, %v2781_v32 }
0x13bd   :  { %17174 = vmatpush3.xpose.msk.msra.mxu0 %vm154_vm1, %v2781_v32 }
0x13be   :  { %17178 = vmatprep.subr.mxu0 %v19165_v36 }
0x13c0   :  { %17176 = vmatmul.mubr.msk.f32.vlgmr.msra.gmra.mxu0 %vm154_vm1, %v19156_v30 }
0x13c1   :  { %17179 = vmatpush3.msra.mxu0 %v19165_v36 }
0x13c2   :  { %17180 = vmatprep.subr.mxu0 %v19169_v39 }
0x13c3   :  { %17181 = vmatpush3.msra.mxu0 %v19169_v39 }
0x1480   :  { %v17177_v20 = vpop.f32.mrf.mxu0 }
0x1481   :  { %v2864_v41 = vadd.f32 %v19179_v29, %v17177_v20 }
0x1482   :  { %v2858_v42 = vpop.f32.mrf.mxu0 }
0x1483   :  { %v2859_v49 = vadd.f32 %v19185_v44, %v2858_v42  ;;  %v2870_v43 = vsel %vm238_vm2, %v2864_v41, -inf }
0x1484   :  { %2871 = vmax.xlane.f32.xlu0 %v2870_v43 }
0x1485   :  { %v2867_v16 = vsel %vm238_vm2, %v2859_v49, -inf }
0x1486   :  { %2868 = vmax.xlane.f32.xlu1 %v2867_v16 }
0x150d   :  { %v2872_v62 = vpop.xlane.xlu0 %2871 }
0x150e   :  { %v2874_v40 = vsub.f32 %v2864_v41, %v2872_v62 }
0x150f   :  { %v2869_v45 = vpop.xlane.xlu1 %2868 }
0x1510   :  { %v2877_v46 = vmul.f32 1.442695, %v2874_v40  ;;  %v2873_v47 = vsub.f32 %v2859_v49, %v2869_v45 }
0x1512   :  { %18206 = vpow2.f32 %v2877_v46  ;;  %v2875_v50 = vmul.f32 1.442695, %v2873_v47 }
0x1514   :  { %18208 = vpow2.f32 %v2875_v50 }
0x151f   :  { %v18207_v51 = vpop.eup %18206 }
0x1520   :  { %v2882_v52 = vsel %vm238_vm2, %v18207_v51, 0.0 }
0x1521   :  { %v18209_v38 = vpop.eup %18208  ;;  %2883 = vadd.xlane.f32.xlu1 %v2882_v52 }
0x1522   :  { %v2879_v53 = vsel %vm238_vm2, %v18209_v38, 0.0 }
0x1523   :  { %2880 = vadd.xlane.f32.xlu0 %v2879_v53 }
0x1532   :  { %2974 = vrot.lane.b32.xlu1 %v19150_v48, %s18584_s11 }
0x1536   :  { %2970 = vrot.lane.b32.xlu1 %v19150_v48, %s18585_s12 }
0x1539   :  { %2976 = vrot.lane.b32.xlu0 %v19156_v30, %s18584_s11 }
0x153d   :  { %2972 = vrot.lane.b32.xlu0 %v19156_v30, %s18585_s12 }
0x15aa   :  { %v2884_v37 = vpop.xlane.xlu1 %2883 }
0x15ab   :  { %18210 = vrcp.f32 %v2884_v37 }
0x15ac   :  { %v2881_v54 = vpop.xlane.xlu0 %2880 }
0x15ad   :  { %18212 = vrcp.f32 %v2881_v54 }
0x15ae   :  { %v2975_v56 = vpop.permute.xlu1 %2974 }
0x15b0   :  { %v2977_v55 = vpop.permute.xlu0 %2976 }
0x15b1   :  { %17185 = vmatprep.subr.msk.mxu0 %vm154_vm1, %v2977_v55 }
0x15b2   :  { %v2971_v61 = vpop.permute.xlu1 %2970 }
0x15b4   :  { %v2973_v63 = vpop.permute.xlu0 %2972 }
0x15b8   :  { %v18211_v57 = vpop.eup %18210 }
0x15b9   :  { %v2888_v60 = vmul.f32 %v18211_v57, %v18207_v51 }
0x15ba   :  { %v18213_v58 = vpop.eup %18212 }
0x15bb   :  { %v2887_v59 = vmul.f32 %v18213_v58, %v18209_v38 }
0x15bd   :  { %17182 = vmatprep.mubr.msk.f32.mxu0 %vm238_vm2, %v2887_v59 }
0x15be   :  { %17183 = vmatmul.mubr.msk.f32.vlgmr.msra.gmra.mxu0 %vm238_vm2, %v2888_v60 }
0x15bf   :  { %17186 = vmatpush3.xpose.msk.msra.mxu0 %vm154_vm1, %v2977_v55  ;;  %17189 = vmatprep.mubr.msk.f32.mxu0 %vm154_vm1, %v2971_v61 }
0x15c0   :  { %17187 = vmatprep.subr.msk.mxu0 %vm154_vm1, %v2975_v56 }
0x15c3   :  { %17188 = vmatpush3.xpose.msk.msra.mxu0 %vm154_vm1, %v2975_v56 }
0x15c4   :  { %17199 = vmatprep.subr.mxu0 %v2771_v15 }
0x15c6   :  { %17190 = vmatmul.mubr.msk.f32.vlgmr.msra.gmra.mxu0 %vm154_vm1, %v2973_v63 }
0x15c7   :  { %17200 = vmatpush3.msra.mxu0 %v2771_v15 }
0x167e   :  { %v17184_v0 = vpop.f32.mrf.mxu0 }
0x1680   :  { %v2961_v1 = vpop.f32.mrf.mxu0 }
0x1686   :  { %v17191_v2 = vpop.f32.mrf.mxu0 }
0x1687   :  { %v3058_v4 = vadd.f32 %v19179_v29, %v17191_v2 }
0x1688   :  { %v3052_v5 = vpop.f32.mrf.mxu0 }
0x1689   :  { %v3053_v25 = vadd.f32 %v19185_v44, %v3052_v5  ;;  %v3064_v28 = vsel %vm238_vm2, %v3058_v4, -inf }
0x168a   :  { %3065 = vmax.xlane.f32.xlu0 %v3064_v28 }
0x168b   :  { %v3061_v6 = vsel %vm238_vm2, %v3053_v25, -inf }
0x168c   :  { %3062 = vmax.xlane.f32.xlu1 %v3061_v6 }
0x1713   :  { %v3066_v7 = vpop.xlane.xlu0 %3065 }
0x1714   :  { %v3068_v8 = vsub.f32 %v3058_v4, %v3066_v7 }
0x1715   :  { %v3063_v9 = vpop.xlane.xlu1 %3062 }
0x1716   :  { %v3071_v10 = vmul.f32 1.442695, %v3068_v8  ;;  %v3067_v11 = vsub.f32 %v3053_v25, %v3063_v9 }
0x1718   :  { %18214 = vpow2.f32 %v3071_v10  ;;  %v3069_v12 = vmul.f32 1.442695, %v3067_v11 }
0x171a   :  { %18216 = vpow2.f32 %v3069_v12 }
0x1725   :  { %v18215_v34 = vpop.eup %18214 }
0x1726   :  { %v3076_v35 = vsel %vm238_vm2, %v18215_v34, 0.0 }
0x1727   :  { %v18217_v13 = vpop.eup %18216  ;;  %3077 = vadd.xlane.f32.xlu1 %v3076_v35 }
0x1728   :  { %v3073_v14 = vsel %vm238_vm2, %v18217_v13, 0.0 }
0x1729   :  { %3074 = vadd.xlane.f32.xlu0 %v3073_v14 }
0x1738   :  { %3085 = vrot.lane.b32.xlu1 %v19169_v39, %s18585_s12 }
0x173c   :  { %3340 = vrot.lane.b32.xlu1 %v19156_v30, %s21149_s13 }
0x173f   :  { %3087 = vrot.lane.b32.xlu0 %v19165_v36, %s18585_s12 }
0x1740   :  { %3334 = vrot.lane.b32.xlu1 %v19150_v48, %s18588_s17 }
0x1743   :  { %3338 = vrot.lane.b32.xlu0 %v19150_v48, %s21149_s13 }
0x1744   :  { %3623 = vrot.lane.b32.xlu1 %v19156_v30, %s21145_s18 }
0x1747   :  { %3336 = vrot.lane.b32.xlu0 %v19156_v30, %s18588_s17 }
0x1748   :  { %3617 = vrot.lane.b32.xlu1 %v19150_v48, %s18587_s14 }
0x174b   :  { %3621 = vrot.lane.b32.xlu0 %v19150_v48, %s21145_s18 }
0x174f   :  { %3619 = vrot.lane.b32.xlu0 %v19156_v30, %s18587_s14 }
0x17b0   :  { %v3078_v17 = vpop.xlane.xlu1 %3077 }
0x17b1   :  { %18218 = vrcp.f32 %v3078_v17 }
0x17b2   :  { %v3075_v19 = vpop.xlane.xlu0 %3074 }
0x17b3   :  { %18220 = vrcp.f32 %v3075_v19 }
0x17b4   :  { %v3086_v23 = vpop.permute.xlu1 %3085 }
0x17b6   :  { %v3088_v24 = vpop.permute.xlu0 %3087 }
0x17b7   :  { %17192 = vmatprep.subr.mxu1 %v3088_v24 }
0x17b8   :  { %17193 = vmatpush3.msra.mxu1 %v3088_v24  ;;  %v3341_v26 = vpop.permute.xlu1 %3340 }
0x17b9   :  { %17194 = vmatprep.subr.mxu1 %v3086_v23  ;;  %17209 = vmatprep.subr.msk.mxu0 %vm154_vm1, %v3341_v26 }
0x17ba   :  { %17195 = vmatpush3.msra.mxu1 %v3086_v23  ;;  %v3339_v41 = vpop.permute.xlu0 %3338 }
0x17bb   :  { %17204 = vmatprep.subr.mxu1 %v2770_v27 }
0x17bc   :  { %v3335_v33 = vpop.permute.xlu1 %3334 }
0x17be   :  { %v18219_v3 = vpop.eup %18218  ;;  %v3337_v43 = vpop.permute.xlu0 %3336 }
0x17bf   :  { %v3082_v32 = vmul.f32 %v18219_v3, %v18215_v34 }
0x17c0   :  { %v18221_v31 = vpop.eup %18220  ;;  %v3624_v49 = vpop.permute.xlu1 %3623 }
0x17c1   :  { %v3081_v21 = vmul.f32 %v18221_v31, %v18217_v13 }
0x17c2   :  { %v3622_v62 = vpop.permute.xlu0 %3621 }
0x17c3   :  { %17196 = vmatprep.mubr.msk.f32.mxu1 %vm238_vm2, %v3081_v21 }
0x17c4   :  { %17197 = vmatmul.mubr.msk.f32.vlgmr.msra.gmra.mxu1 %vm238_vm2, %v3082_v32  ;;  %v3618_v16 = vpop.permute.xlu1 %3617  ;;  %v2772_v32 = vld [vmem:[%s21137_s2 + $0x2a0] sm:$0xff] }
0x17c5   :  { %17206 = vmatprep.mubr.msk.f32.mxu1 %vm154_vm1, %v2961_v1  ;;  %17205 = vmatpush3.msra.mxu1 %v2770_v27 }
0x17c6   :  { %v3620_v40 = vpop.permute.xlu0 %3619 }
0x17c8   :  { %17207 = vmatmul.mubr.msk.f32.vlgmr.msra.gmra.mxu1 %vm154_vm1, %v17184_v0 }
0x1884   :  { %v17198_v20 = vpop.f32.mrf.mxu1 }
0x1886   :  { %v3163_v42 = vpop.f32.mrf.mxu1 }
0x1887   :  { %17201 = vmatprep.mubr.msk.f32.mxu0 %vm154_vm1, %v3163_v42 }
0x1888   :  { %17202 = vmatmul.mubr.msk.f32.vlgmr.msra.gmra.mxu0 %vm154_vm1, %v17198_v20 }
0x1889   :  { %17210 = vmatpush3.xpose.msk.msra.mxu0 %vm154_vm1, %v3341_v26  ;;  %17213 = vmatprep.mubr.msk.f32.mxu0 %vm154_vm1, %v3335_v33  ;;  %v19309_v33 = vpop.f32.mrf.mxu1 }
0x188a   :  { %17211 = vmatprep.subr.msk.mxu0 %vm154_vm1, %v3339_v41 }
0x188d   :  { %17212 = vmatpush3.xpose.msk.msra.mxu0 %vm154_vm1, %v3339_v41  ;;  %v19311_v41 = vpop.f32.mrf.mxu1 }
0x188e   :  { %17228 = vmatprep.subr.msk.mxu0 %vm154_vm1, %v3624_v49 }
0x1890   :  { %17214 = vmatmul.mubr.msk.f32.vlgmr.msra.gmra.mxu0 %vm154_vm1, %v3337_v43 }
0x1891   :  { %17229 = vmatpush3.xpose.msk.msra.mxu0 %vm154_vm1, %v3624_v49  ;;  %17232 = vmatprep.mubr.msk.f32.mxu0 %vm154_vm1, %v3618_v16 }
0x1892   :  { %17230 = vmatprep.subr.msk.mxu0 %vm154_vm1, %v3622_v62 }
0x1895   :  { %17231 = vmatpush3.xpose.msk.msra.mxu0 %vm154_vm1, %v3622_v62 }
0x1898   :  { %17233 = vmatmul.mubr.msk.f32.vlgmr.msra.gmra.mxu0 %vm154_vm1, %v3620_v40 }
0x1948   :  { %v19258_v45 = vpop.f32.mrf.mxu0 }
0x194a   :  { %v19260_v46 = vpop.f32.mrf.mxu0 }
0x1950   :  { %v17215_v47 = vpop.f32.mrf.mxu0 }
0x1951   :  { %v3422_v50 = vadd.f32 %v19179_v29, %v17215_v47 }
0x1952   :  { %v3416_v51 = vpop.f32.mrf.mxu0 }
0x1953   :  { %v3417_v52 = vadd.f32 %v19185_v44, %v3416_v51  ;;  %v3428_v38 = vsel %vm238_vm2, %v3422_v50, -inf }
0x1954   :  { %3429 = vmax.xlane.f32.xlu0 %v3428_v38 }
0x1955   :  { %v3425_v53 = vsel %vm238_vm2, %v3417_v52, -inf }
0x1956   :  { %3426 = vmax.xlane.f32.xlu1 %v3425_v53 }
0x1958   :  { %v17234_v0 = vpop.f32.mrf.mxu0 }
0x1959   :  { %v3705_v4 = vadd.f32 %v19179_v29, %v17234_v0 }
0x195a   :  { %v3699_v1 = vpop.f32.mrf.mxu0 }
0x195b   :  { %v3700_v2 = vadd.f32 %v19185_v44, %v3699_v1  ;;  %v3711_v25 = vsel %vm238_vm2, %v3705_v4, -inf }
0x195d   :  { %v3708_v5 = vsel %vm238_vm2, %v3700_v2, -inf }
0x19dd   :  { %v3430_v37 = vpop.xlane.xlu0 %3429 }
0x19de   :  { %v3432_v54 = vsub.f32 %v3422_v50, %v3430_v37 }
0x19df   :  { %v3427_v55 = vpop.xlane.xlu1 %3426 }
0x19e0   :  { %v3435_v56 = vmul.f32 1.442695, %v3432_v54  ;;  %v3431_v57 = vsub.f32 %v3417_v52, %v3427_v55 }
0x19e2   :  { %18222 = vpow2.f32 %v3435_v56  ;;  %v3433_v58 = vmul.f32 1.442695, %v3431_v57 }
0x19e4   :  { %18224 = vpow2.f32 %v3433_v58 }
0x19ef   :  { %v18223_v59 = vpop.eup %18222 }
0x19f0   :  { %v3440_v60 = vsel %vm238_vm2, %v18223_v59, 0.0 }
0x19f1   :  { %v18225_v61 = vpop.eup %18224  ;;  %3441 = vadd.xlane.f32.xlu1 %v3440_v60  ;;  %v2773_v60 = vld [vmem:[%s21137_s2 + $0x2b0] sm:$0xff] }
0x19f2   :  { %v3437_v63 = vsel %vm238_vm2, %v18225_v61, 0.0 }
0x19f3   :  { %3438 = vadd.xlane.f32.xlu0 %v3437_v63 }
0x1a02   :  { %3447 = vrot.lane.b32.xlu1 %v19169_v39, %s18588_s17 }
0x1a06   :  { %3906 = vrot.lane.b32.xlu1 %v19156_v30, %s18590_s21 }
0x1a09   :  { %3449 = vrot.lane.b32.xlu0 %v19165_v36, %s18588_s17 }
0x1a0a   :  { %3900 = vrot.lane.b32.xlu1 %v19150_v48, %s18591_s22 }
0x1a0d   :  { %3904 = vrot.lane.b32.xlu0 %v19150_v48, %s18590_s21 }
0x1a11   :  { %3902 = vrot.lane.b32.xlu0 %v19156_v30, %s18591_s22 }
0x1a2e   :  { %3709 = vmax.xlane.f32.xlu1 %v3708_v5 }
0x1a30   :  { %3712 = vmax.xlane.f32.xlu0 %v3711_v25 }
0x1a7a   :  { %v3442_v28 = vpop.xlane.xlu1 %3441 }
0x1a7b   :  { %18226 = vrcp.f32 %v3442_v28 }
0x1a7c   :  { %v3439_v6 = vpop.xlane.xlu0 %3438 }
0x1a7d   :  { %18228 = vrcp.f32 %v3439_v6 }
0x1a7e   :  { %v3448_v7 = vpop.permute.xlu1 %3447 }
0x1a80   :  { %v3450_v8 = vpop.permute.xlu0 %3449 }
0x1a81   :  { %17216 = vmatprep.subr.mxu1 %v3450_v8 }
0x1a82   :  { %17217 = vmatpush3.msra.mxu1 %v3450_v8  ;;  %v3907_v9 = vpop.permute.xlu1 %3906 }
0x1a83   :  { %17218 = vmatprep.subr.mxu1 %v3448_v7  ;;  %17247 = vmatprep.subr.msk.mxu0 %vm154_vm1, %v3907_v9 }
0x1a84   :  { %v3905_v10 = vpop.permute.xlu0 %3904  ;;  %17219 = vmatpush3.msra.mxu1 %v3448_v7  ;;  %17248 = vmatpush3.xpose.msk.msra.mxu0 %vm154_vm1, %v3907_v9  ;;  %v3331_v7 = vadd.f32 %v19309_v33, %v19258_v45 }
0x1a85   :  { %17249 = vmatprep.subr.msk.mxu0 %vm154_vm1, %v3905_v10  ;;  %17223 = vmatprep.subr.mxu1 %v2772_v32 }
0x1a86   :  { %v3901_v11 = vpop.permute.xlu1 %3900 }
0x1a87   :  { %17251 = vmatprep.mubr.msk.f32.mxu0 %vm154_vm1, %v3901_v11 }
0x1a88   :  { %17250 = vmatpush3.xpose.msk.msra.mxu0 %vm154_vm1, %v3905_v10  ;;  %v18227_v12 = vpop.eup %18226  ;;  %v3903_v35 = vpop.permute.xlu0 %3902 }
0x1a89   :  { %v3446_v14 = vmul.f32 %v18227_v12, %v18223_v59 }
0x1a8a   :  { %v18229_v34 = vpop.eup %18228 }
0x1a8b   :  { %17252 = vmatmul.mubr.msk.f32.vlgmr.msra.gmra.mxu0 %vm154_vm1, %v3903_v35  ;;  %v3445_v13 = vmul.f32 %v18229_v34, %v18225_v61 }
0x1a8d   :  { %17220 = vmatprep.mubr.msk.f32.mxu1 %vm238_vm2, %v3445_v13 }
0x1a8e   :  { %17221 = vmatmul.mubr.msk.f32.vlgmr.msra.gmra.mxu1 %vm238_vm2, %v3446_v14 }
0x1a8f   :  { %17224 = vmatpush3.msra.mxu1 %v2772_v32 }
0x1ab7   :  { %v3710_v15 = vpop.xlane.xlu1 %3709 }
0x1ab8   :  { %v3714_v17 = vsub.f32 %v3700_v2, %v3710_v15 }
0x1ab9   :  { %v3713_v19 = vpop.xlane.xlu0 %3712 }
0x1aba   :  { %v3716_v23 = vmul.f32 1.442695, %v3714_v17  ;;  %v3715_v24 = vsub.f32 %v3705_v4, %v3713_v19 }
0x1abc   :  { %18230 = vpow2.f32 %v3716_v23  ;;  %v3718_v26 = vmul.f32 1.442695, %v3715_v24 }
0x1abe   :  { %18232 = vpow2.f32 %v3718_v26 }
0x1ac9   :  { %v18231_v27 = vpop.eup %18230 }
0x1aca   :  { %v3720_v3 = vsel %vm238_vm2, %v18231_v27, 0.0 }
0x1acb   :  { %v18233_v31 = vpop.eup %18232  ;;  %3721 = vadd.xlane.f32.xlu0 %v3720_v3 }
0x1acc   :  { %v3723_v21 = vsel %vm238_vm2, %v18233_v31, 0.0 }
0x1acd   :  { %3724 = vadd.xlane.f32.xlu1 %v3723_v21 }
0x1ade   :  { %3730 = vrot.lane.b32.xlu1 %v19169_v39, %s18587_s14 }
0x1ae1   :  { %3732 = vrot.lane.b32.xlu0 %v19165_v36, %s18587_s14 }
0x1ae2   :  { %4189 = vrot.lane.b32.xlu1 %v19156_v30, %s18592_s25 }
0x1ae5   :  { %4187 = vrot.lane.b32.xlu0 %v19150_v48, %s18592_s25  ;;  %s18604_s25 = smov 76  }
0x1ae6   :  { %4183 = vrot.lane.b32.xlu1 %v19150_v48, %s18593_s26 }
0x1ae9   :  { %4185 = vrot.lane.b32.xlu0 %v19156_v30, %s18593_s26 }
0x1b4b   :  { %v17253_v20 = vpop.f32.mrf.mxu0 }
0x1b4c   :  { %v3988_v42 = vadd.f32 %v19179_v29, %v17253_v20 }
0x1b4d   :  { %v3982_v49 = vpop.f32.mrf.mxu0 }
0x1b4e   :  { %v3983_v43 = vadd.f32 %v19185_v44, %v3982_v49  ;;  %v17222_v16 = vpop.f32.mrf.mxu1  ;;  %v3994_v62 = vsel %vm238_vm2, %v3988_v42, -inf }
0x1b4f   :  { %3995 = vmax.xlane.f32.xlu0 %v3994_v62 }
0x1b50   :  { %v3525_v40 = vpop.f32.mrf.mxu1  ;;  %v3991_v47 = vsel %vm238_vm2, %v3983_v43, -inf }
0x1b51   :  { %17225 = vmatprep.mubr.msk.f32.mxu1 %vm154_vm1, %v3525_v40  ;;  %3992 = vmax.xlane.f32.xlu1 %v3991_v47 }
0x1b52   :  { %17226 = vmatmul.mubr.msk.f32.vlgmr.msra.gmra.mxu1 %vm154_vm1, %v17222_v16 }
0x1b54   :  { %v3722_v50 = vpop.xlane.xlu0 %3721 }
0x1b55   :  { %18234 = vrcp.f32 %v3722_v50 }
0x1b56   :  { %v3725_v51 = vpop.xlane.xlu1 %3724 }
0x1b57   :  { %18236 = vrcp.f32 %v3725_v51 }
0x1b58   :  { %v3733_v52 = vpop.permute.xlu0 %3732 }
0x1b59   :  { %17235 = vmatprep.subr.mxu1 %v3733_v52 }
0x1b5a   :  { %17236 = vmatpush3.msra.mxu1 %v3733_v52  ;;  %v3731_v38 = vpop.permute.xlu1 %3730 }
0x1b5b   :  { %17237 = vmatprep.subr.mxu1 %v3731_v38 }
0x1b5c   :  { %17238 = vmatpush3.msra.mxu1 %v3731_v38  ;;  %v4188_v37 = vpop.permute.xlu0 %4187  ;;  %v2774_v38 = vld [vmem:[%s21137_s2 + $0x2c0] sm:$0xff] }
0x1b5d   :  { %17242 = vmatprep.subr.mxu1 %v2773_v60 }
0x1b5e   :  { %v4190_v53 = vpop.permute.xlu1 %4189 }
0x1b5f   :  { %17266 = vmatprep.subr.msk.mxu0 %vm154_vm1, %v4190_v53 }
0x1b60   :  { %17267 = vmatpush3.xpose.msk.msra.mxu0 %vm154_vm1, %v4190_v53  ;;  %v4186_v59 = vpop.permute.xlu0 %4185 }
0x1b61   :  { %17268 = vmatprep.subr.msk.mxu0 %vm154_vm1, %v4188_v37 }
0x1b62   :  { %v18235_v54 = vpop.eup %18234  ;;  %v4184_v55 = vpop.permute.xlu1 %4183 }
0x1b63   :  { %17270 = vmatprep.mubr.msk.f32.mxu0 %vm154_vm1, %v4184_v55  ;;  %v3728_v56 = vmul.f32 %v18235_v54, %v18231_v27 }
0x1b64   :  { %v18237_v57 = vpop.eup %18236  ;;  %17269 = vmatpush3.xpose.msk.msra.mxu0 %vm154_vm1, %v4188_v37 }
0x1b65   :  { %17239 = vmatprep.mubr.msk.f32.mxu1 %vm238_vm2, %v3728_v56  ;;  %v3729_v58 = vmul.f32 %v18237_v57, %v18233_v31 }
0x1b67   :  { %17240 = vmatmul.mubr.msk.f32.vlgmr.msra.gmra.mxu1 %vm238_vm2, %v3729_v58  ;;  %17271 = vmatmul.mubr.msk.f32.vlgmr.msra.gmra.mxu0 %vm154_vm1, %v4186_v59 }
0x1b68   :  { %17243 = vmatpush3.msra.mxu1 %v2773_v60 }
0x1bd8   :  { %v3996_v61 = vpop.xlane.xlu0 %3995 }
0x1bd9   :  { %v3998_v63 = vsub.f32 %v3988_v42, %v3996_v61 }
0x1bda   :  { %v3993_v0 = vpop.xlane.xlu1 %3992 }
0x1bdb   :  { %v4001_v1 = vmul.f32 1.442695, %v3998_v63  ;;  %v3997_v2 = vsub.f32 %v3983_v43, %v3993_v0 }
0x1bdd   :  { %18238 = vpow2.f32 %v4001_v1  ;;  %v3999_v4 = vmul.f32 1.442695, %v3997_v2 }
0x1bdf   :  { %18240 = vpow2.f32 %v3999_v4 }
0x1bea   :  { %v18239_v5 = vpop.eup %18238 }
0x1beb   :  { %v4006_v25 = vsel %vm238_vm2, %v18239_v5, 0.0 }
0x1bec   :  { %v18241_v28 = vpop.eup %18240  ;;  %4007 = vadd.xlane.f32.xlu1 %v4006_v25 }
0x1bed   :  { %v4003_v6 = vsel %vm238_vm2, %v18241_v28, 0.0 }
0x1bee   :  { %4004 = vadd.xlane.f32.xlu0 %v4003_v6 }
0x1bfd   :  { %4013 = vrot.lane.b32.xlu1 %v19169_v39, %s18591_s22 }
0x1c01   :  { %4472 = vrot.lane.b32.xlu1 %v19156_v30, %s18594_s29 }
0x1c04   :  { %4015 = vrot.lane.b32.xlu0 %v19165_v36, %s18591_s22 }
0x1c05   :  { %4466 = vrot.lane.b32.xlu1 %v19150_v48, %s18595_s30 }
0x1c08   :  { %4470 = vrot.lane.b32.xlu0 %v19150_v48, %s18594_s29  ;;  %s21154_s29 = smov 48  }
0x1c0c   :  { %4468 = vrot.lane.b32.xlu0 %v19156_v30, %s18595_s30 }
0x1c12   :  { %v17227_v8 = vpop.f32.mrf.mxu1 }
0x1c13   :  { %v19346_v9 = vadd.f32 %v17227_v8, %v3331_v7 }
0x1c14   :  { %v19348_v10 = vpop.f32.mrf.mxu1 }
0x1c27   :  { %v17241_v11 = vpop.f32.mrf.mxu1  ;;  %v17272_v12 = vpop.f32.mrf.mxu0 }
0x1c28   :  { %v4271_v34 = vadd.f32 %v19179_v29, %v17272_v12 }
0x1c29   :  { %v3808_v35 = vpop.f32.mrf.mxu1  ;;  %v4265_v13 = vpop.f32.mrf.mxu0 }
0x1c2a   :  { %v4266_v14 = vadd.f32 %v19185_v44, %v4265_v13  ;;  %17244 = vmatprep.mubr.msk.f32.mxu1 %vm154_vm1, %v3808_v35  ;;  %v4277_v15 = vsel %vm238_vm2, %v4271_v34, -inf }
0x1c2b   :  { %17245 = vmatmul.mubr.msk.f32.vlgmr.msra.gmra.mxu1 %vm154_vm1, %v17241_v11  ;;  %4278 = vmax.xlane.f32.xlu0 %v4277_v15 }
0x1c2c   :  { %v4274_v45 = vsel %vm238_vm2, %v4266_v14, -inf }
0x1c2d   :  { %4275 = vmax.xlane.f32.xlu1 %v4274_v45 }
0x1c75   :  { %v4008_v17 = vpop.xlane.xlu1 %4007 }
0x1c76   :  { %18242 = vrcp.f32 %v4008_v17 }
0x1c77   :  { %v4005_v19 = vpop.xlane.xlu0 %4004 }
0x1c78   :  { %18244 = vrcp.f32 %v4005_v19 }
0x1c79   :  { %v4014_v23 = vpop.permute.xlu1 %4013 }
0x1c7b   :  { %v4016_v24 = vpop.permute.xlu0 %4015 }
0x1c7c   :  { %17254 = vmatprep.subr.mxu1 %v4016_v24 }
0x1c7d   :  { %17255 = vmatpush3.msra.mxu1 %v4016_v24  ;;  %v4473_v26 = vpop.permute.xlu1 %4472 }
0x1c7e   :  { %17256 = vmatprep.subr.mxu1 %v4014_v23  ;;  %17285 = vmatprep.subr.msk.mxu0 %vm154_vm1, %v4473_v26 }
0x1c7f   :  { %v4471_v27 = vpop.permute.xlu0 %4470  ;;  %17257 = vmatpush3.msra.mxu1 %v4014_v23  ;;  %17286 = vmatpush3.xpose.msk.msra.mxu0 %vm154_vm1, %v4473_v26 }
0x1c80   :  { %17287 = vmatprep.subr.msk.mxu0 %vm154_vm1, %v4471_v27  ;;  %17261 = vmatprep.subr.mxu1 %v2774_v38 }
0x1c81   :  { %v4467_v3 = vpop.permute.xlu1 %4466 }
0x1c82   :  { %17289 = vmatprep.mubr.msk.f32.mxu0 %vm154_vm1, %v4467_v3 }
0x1c83   :  { %17288 = vmatpush3.xpose.msk.msra.mxu0 %vm154_vm1, %v4471_v27  ;;  %v18243_v31 = vpop.eup %18242  ;;  %v4469_v32 = vpop.permute.xlu0 %4468 }
0x1c84   :  { %v4012_v20 = vmul.f32 %v18243_v31, %v18239_v5 }
0x1c85   :  { %v18245_v21 = vpop.eup %18244 }
0x1c86   :  { %17290 = vmatmul.mubr.msk.f32.vlgmr.msra.gmra.mxu0 %vm154_vm1, %v4469_v32  ;;  %v4011_v33 = vmul.f32 %v18245_v21, %v18241_v28 }
0x1c88   :  { %17258 = vmatprep.mubr.msk.f32.mxu1 %vm238_vm2, %v4011_v33 }
0x1c89   :  { %17259 = vmatmul.mubr.msk.f32.vlgmr.msra.gmra.mxu1 %vm238_vm2, %v4012_v20 }
0x1c8a   :  { %17262 = vmatpush3.msra.mxu1 %v2774_v38 }
0x1cb4   :  { %v4279_v42 = vpop.xlane.xlu0 %4278 }
0x1cb5   :  { %v4281_v49 = vsub.f32 %v4271_v34, %v4279_v42 }
0x1cb6   :  { %v4276_v43 = vpop.xlane.xlu1 %4275 }
0x1cb7   :  { %v4284_v16 = vmul.f32 1.442695, %v4281_v49  ;;  %v4280_v62 = vsub.f32 %v4266_v14, %v4276_v43 }
0x1cb9   :  { %18246 = vpow2.f32 %v4284_v16  ;;  %v4282_v40 = vmul.f32 1.442695, %v4280_v62 }
0x1cbb   :  { %18248 = vpow2.f32 %v4282_v40 }
0x1cc6   :  { %v18247_v47 = vpop.eup %18246 }
0x1cc7   :  { %v4289_v50 = vsel %vm238_vm2, %v18247_v47, 0.0 }
0x1cc8   :  { %v18249_v51 = vpop.eup %18248  ;;  %4290 = vadd.xlane.f32.xlu1 %v4289_v50 }
0x1cc9   :  { %v4286_v52 = vsel %vm238_vm2, %v18249_v51, 0.0 }
0x1cca   :  { %4287 = vadd.xlane.f32.xlu0 %v4286_v52 }
0x1cd9   :  { %4296 = vrot.lane.b32.xlu1 %v19169_v39, %s18593_s26 }
0x1cdd   :  { %4755 = vrot.lane.b32.xlu1 %v19156_v30, %s18596_s9 }
0x1ce0   :  { %4298 = vrot.lane.b32.xlu0 %v19165_v36, %s18593_s26 }
0x1ce1   :  { %4749 = vrot.lane.b32.xlu1 %v19150_v48, %s18597_s10 }
0x1ce4   :  { %4753 = vrot.lane.b32.xlu0 %v19150_v48, %s18596_s9  ;;  %s18600_s9 = smov 60  }
0x1ce8   :  { %4751 = vrot.lane.b32.xlu0 %v19156_v30, %s18597_s10 }
0x1ceb   :  { %v17246_v53 = vpop.f32.mrf.mxu1 }
0x1cec   :  { %v3899_v37 = vadd.f32 %v17246_v53, %v19346_v9  ;;  %v2775_v9 = vld [vmem:[%s21137_s2 + $0x2d0] sm:$0xff] }
0x1ced   :  { %v19382_v55 = vpop.f32.mrf.mxu1 }
0x1d46   :  { %v17291_v54 = vpop.f32.mrf.mxu0 }
0x1d47   :  { %v4554_v56 = vadd.f32 %v19179_v29, %v17291_v54 }
0x1d48   :  { %v4548_v57 = vpop.f32.mrf.mxu0 }
0x1d49   :  { %v4549_v58 = vadd.f32 %v19185_v44, %v4548_v57  ;;  %v17260_v59 = vpop.f32.mrf.mxu1  ;;  %v4560_v60 = vsel %vm238_vm2, %v4554_v56, -inf }
0x1d4a   :  { %4561 = vmax.xlane.f32.xlu0 %v4560_v60 }
0x1d4b   :  { %v4091_v61 = vpop.f32.mrf.mxu1  ;;  %v4557_v48 = vsel %vm238_vm2, %v4549_v58, -inf }
0x1d4c   :  { %17263 = vmatprep.mubr.msk.f32.mxu1 %vm154_vm1, %v4091_v61  ;;  %4558 = vmax.xlane.f32.xlu1 %v4557_v48 }
0x1d4d   :  { %17264 = vmatmul.mubr.msk.f32.vlgmr.msra.gmra.mxu1 %vm154_vm1, %v17260_v59  ;;  %v2776_v59 = vld [vmem:[%s21137_s2 + $0x2e0] sm:$0xff] }
0x1d51   :  { %v4291_v30 = vpop.xlane.xlu1 %4290 }
0x1d52   :  { %18250 = vrcp.f32 %v4291_v30 }
0x1d53   :  { %v4288_v63 = vpop.xlane.xlu0 %4287 }
0x1d54   :  { %18252 = vrcp.f32 %v4288_v63 }
0x1d55   :  { %v4297_v0 = vpop.permute.xlu1 %4296 }
0x1d57   :  { %v4299_v1 = vpop.permute.xlu0 %4298 }
0x1d58   :  { %17273 = vmatprep.subr.mxu1 %v4299_v1 }
0x1d59   :  { %17274 = vmatpush3.msra.mxu1 %v4299_v1  ;;  %v4756_v2 = vpop.permute.xlu1 %4755 }
0x1d5a   :  { %17275 = vmatprep.subr.mxu1 %v4297_v0  ;;  %17304 = vmatprep.subr.msk.mxu0 %vm154_vm1, %v4756_v2 }
0x1d5b   :  { %v4754_v4 = vpop.permute.xlu0 %4753  ;;  %17276 = vmatpush3.msra.mxu1 %v4297_v0  ;;  %17305 = vmatpush3.xpose.msk.msra.mxu0 %vm154_vm1, %v4756_v2 }
0x1d5c   :  { %17306 = vmatprep.subr.msk.mxu0 %vm154_vm1, %v4754_v4  ;;  %17280 = vmatprep.subr.mxu1 %v2775_v9 }
0x1d5d   :  { %v4750_v5 = vpop.permute.xlu1 %4749 }
0x1d5e   :  { %17308 = vmatprep.mubr.msk.f32.mxu0 %vm154_vm1, %v4750_v5 }
0x1d5f   :  { %17307 = vmatpush3.xpose.msk.msra.mxu0 %vm154_vm1, %v4754_v4  ;;  %v18251_v25 = vpop.eup %18250  ;;  %v4752_v6 = vpop.permute.xlu0 %4751 }
0x1d60   :  { %v4295_v8 = vmul.f32 %v18251_v25, %v18247_v47 }
0x1d61   :  { %v18253_v28 = vpop.eup %18252 }
0x1d62   :  { %17309 = vmatmul.mubr.msk.f32.vlgmr.msra.gmra.mxu0 %vm154_vm1, %v4752_v6  ;;  %v4294_v7 = vmul.f32 %v18253_v28, %v18249_v51  ;;  %v2777_v28 = vld [vmem:[%s21137_s2 + $0x2f0] sm:$0xff] }
0x1d64   :  { %17277 = vmatprep.mubr.msk.f32.mxu1 %vm238_vm2, %v4294_v7 }
0x1d65   :  { %17278 = vmatmul.mubr.msk.f32.vlgmr.msra.gmra.mxu1 %vm238_vm2, %v4295_v8 }
0x1d66   :  { %17281 = vmatpush3.msra.mxu1 %v2775_v9 }
0x1dd3   :  { %v4562_v11 = vpop.xlane.xlu0 %4561 }
0x1dd4   :  { %v4564_v12 = vsub.f32 %v4554_v56, %v4562_v11 }
0x1dd5   :  { %v4559_v34 = vpop.xlane.xlu1 %4558 }
0x1dd6   :  { %v4567_v35 = vmul.f32 1.442695, %v4564_v12  ;;  %v4563_v13 = vsub.f32 %v4549_v58, %v4559_v34  ;;  %v3326_v12 = vadd.f32 %v19311_v41, %v19260_v46 }
0x1dd8   :  { %18254 = vpow2.f32 %v4567_v35  ;;  %v4565_v14 = vmul.f32 1.442695, %v4563_v13  ;;  %v3615_v34 = vadd.f32 %v19348_v10, %v3326_v12  ;;  %v5163_v12 = vld [vmem:[%s21137_s2 + $0x3a0] sm:$0xff] }
0x1dda   :  { %18256 = vpow2.f32 %v4565_v14  ;;  %v3898_v35 = vadd.f32 %v19382_v55, %v3615_v34  ;;  %v5162_v34 = vld [vmem:[%s21137_s2 + $0x390] sm:$0xff] }
0x1de5   :  { %v18255_v15 = vpop.eup %18254 }
0x1de6   :  { %v4572_v45 = vsel %vm238_vm2, %v18255_v15, 0.0 }
0x1de7   :  { %v18257_v17 = vpop.eup %18256  ;;  %4573 = vadd.xlane.f32.xlu1 %v4572_v45  ;;  %v5032_v45 = vld [vmem:[%s21139_s4 + $0x11] ss:$0 sm:$0xff] }
0x1de8   :  { %v4569_v19 = vsel %vm238_vm2, %v18257_v17, 0.0 }
0x1de9   :  { %4570 = vadd.xlane.f32.xlu0 %v4569_v19 }
0x1df8   :  { %4579 = vrot.lane.b32.xlu1 %v19169_v39, %s18595_s30 }
0x1dff   :  { %4581 = vrot.lane.b32.xlu0 %v19165_v36, %s18595_s30 }
0x1e0d   :  { %v17265_v23 = vpop.f32.mrf.mxu1 }
0x1e0e   :  { %v4182_v24 = vadd.f32 %v17265_v23, %v3899_v37 }
0x1e0f   :  { %v19407_v27 = vpop.f32.mrf.mxu1 }
0x1e10   :  { %v4181_v13 = vadd.f32 %v19407_v27, %v3898_v35  ;;  %v5161_v35 = vld [vmem:[%s21137_s2 + $0x380] sm:$0xff] }
0x1e22   :  { %v17310_v26 = vpop.f32.mrf.mxu0 }
0x1e23   :  { %v4837_v3 = vadd.f32 %v19179_v29, %v17310_v26 }
0x1e24   :  { %v4831_v31 = vpop.f32.mrf.mxu0 }
0x1e25   :  { %v4832_v21 = vadd.f32 %v19185_v44, %v4831_v31  ;;  %v17279_v32 = vpop.f32.mrf.mxu1  ;;  %v4843_v33 = vsel %vm238_vm2, %v4837_v3, -inf }
0x1e26   :  { %4844 = vmax.xlane.f32.xlu0 %v4843_v33 }
0x1e27   :  { %v4374_v20 = vpop.f32.mrf.mxu1  ;;  %v4840_v42 = vsel %vm238_vm2, %v4832_v21, -inf }
0x1e28   :  { %17282 = vmatprep.mubr.msk.f32.mxu1 %vm154_vm1, %v4374_v20  ;;  %4841 = vmax.xlane.f32.xlu1 %v4840_v42 }
0x1e29   :  { %17283 = vmatmul.mubr.msk.f32.vlgmr.msra.gmra.mxu1 %vm154_vm1, %v17279_v32 }
0x1e70   :  { %v4574_v49 = vpop.xlane.xlu1 %4573 }
0x1e71   :  { %18258 = vrcp.f32 %v4574_v49 }
0x1e72   :  { %v4571_v43 = vpop.xlane.xlu0 %4570 }
0x1e73   :  { %18260 = vrcp.f32 %v4571_v43 }
0x1e74   :  { %v4580_v16 = vpop.permute.xlu1 %4579 }
0x1e76   :  { %v4582_v29 = vpop.permute.xlu0 %4581 }
0x1e77   :  { %17292 = vmatprep.subr.mxu1 %v4582_v29 }
0x1e78   :  { %17293 = vmatpush3.msra.mxu1 %v4582_v29  ;;  %v5075_v29 = vld [vmem:[%s21137_s2 + $0x360] sm:$0xff] }
0x1e79   :  { %17294 = vmatprep.subr.mxu1 %v4580_v16 }
0x1e7a   :  { %17295 = vmatpush3.msra.mxu1 %v4580_v16  ;;  %v18574_v16 = vld [vmem:[%s21138_s0 + $0x8] sm:$0xff] }
0x1e7b   :  { %17299 = vmatprep.subr.mxu1 %v2776_v59 }
0x1e7e   :  { %v18259_v44 = vpop.eup %18258 }
0x1e7f   :  { %v4578_v47 = vmul.f32 %v18259_v44, %v18255_v15  ;;  %v5074_v44 = vld [vmem:[%s21137_s2 + $0x350] sm:$0xff] }
0x1e80   :  { %v18261_v62 = vpop.eup %18260 }
0x1e81   :  { %v4577_v40 = vmul.f32 %v18261_v62, %v18257_v17  ;;  %v5073_v62 = vld [vmem:[%s21137_s2 + $0x340] sm:$0xff] }
0x1e83   :  { %17296 = vmatprep.mubr.msk.f32.mxu1 %vm238_vm2, %v4577_v40  ;;  %v5072_v40 = vld [vmem:[%s21137_s2 + $0x330] sm:$0xff] }
0x1e84   :  { %17297 = vmatmul.mubr.msk.f32.vlgmr.msra.gmra.mxu1 %vm238_vm2, %v4578_v47  ;;  %v18575_v47 = vld [vmem:[%s21138_s0] sm:$0xff] }
0x1e85   :  { %17300 = vmatpush3.msra.mxu1 %v2776_v59 }
0x1eaf   :  { %v4845_v50 = vpop.xlane.xlu0 %4844 }
0x1eb0   :  { %v4847_v51 = vsub.f32 %v4837_v3, %v4845_v50  ;;  %v5071_v50 = vld [vmem:[%s21137_s2 + $0x320] sm:$0xff] }
0x1eb1   :  { %v4842_v52 = vpop.xlane.xlu1 %4841 }
0x1eb2   :  { %v4850_v38 = vmul.f32 1.442695, %v4847_v51  ;;  %v4846_v53 = vsub.f32 %v4832_v21, %v4842_v52  ;;  %v5070_v51 = vld [vmem:[%s21137_s2 + $0x310] sm:$0xff]  ;;  %v5069_v52 = vld [vmem:[%s21137_s2 + $0x300] sm:$0xff] }
0x1eb4   :  { %18262 = vpow2.f32 %v4850_v38  ;;  %v4848_v37 = vmul.f32 1.442695, %v4846_v53  ;;  %v5334_v38 = vld [vmem:[%s21141_s3 + $0x18] sm:$0xff]  ;;  %v5168_v53 = vld [vmem:[%s21137_s2 + $0x3f0] sm:$0xff] }
0x1eb6   :  { %18264 = vpow2.f32 %v4848_v37  ;;  %v5167_v37 = vld [vmem:[%s21137_s2 + $0x3e0] sm:$0xff] }
0x1ec1   :  { %v18263_v54 = vpop.eup %18262 }
0x1ec2   :  { %v4855_v56 = vsel %vm238_vm2, %v18263_v54, 0.0 }
0x1ec3   :  { %v18265_v57 = vpop.eup %18264  ;;  %4856 = vadd.xlane.f32.xlu1 %v4855_v56  ;;  %v5165_v56 = vld [vmem:[%s21137_s2 + $0x3c0] sm:$0xff] }
0x1ec4   :  { %v4852_v58 = vsel %vm238_vm2, %v18265_v57, 0.0 }
0x1ec5   :  { %4853 = vadd.xlane.f32.xlu0 %v4852_v58 }
0x1ed4   :  { %4862 = vrot.lane.b32.xlu1 %v19169_v39, %s18597_s10 }
0x1edb   :  { %4864 = vrot.lane.b32.xlu0 %v19165_v36, %s18597_s10 }
0x1ee9   :  { %v17284_v60 = vpop.f32.mrf.mxu1 }
0x1eea   :  { %v4465_v61 = vadd.f32 %v17284_v60, %v4182_v24 }
0x1eeb   :  { %v4455_v48 = vpop.f32.mrf.mxu1 }
0x1eec   :  { %v4464_v14 = vadd.f32 %v4455_v48, %v4181_v13  ;;  %v5077_v13 = vld [vmem:[%s21139_s4 + $0x12] ss:$0 sm:$0xff] }
0x1f44   :  { %v17298_v30 = vpop.f32.mrf.mxu1 }
0x1f46   :  { %v4657_v63 = vpop.f32.mrf.mxu1 }
0x1f47   :  { %17301 = vmatprep.mubr.msk.f32.mxu1 %vm154_vm1, %v4657_v63  ;;  %v5037_v63 = vld [vmem:[%s21139_s4 + $0x14] ss:$0 sm:$0xff] }
0x1f48   :  { %17302 = vmatmul.mubr.msk.f32.vlgmr.msra.gmra.mxu1 %vm154_vm1, %v17298_v30 }
0x1f4c   :  { %v4857_v0 = vpop.xlane.xlu1 %4856 }
0x1f4d   :  { %18266 = vrcp.f32 %v4857_v0 }
0x1f4e   :  { %v4854_v1 = vpop.xlane.xlu0 %4853 }
0x1f4f   :  { %18268 = vrcp.f32 %v4854_v1 }
0x1f50   :  { %v4863_v4 = vpop.permute.xlu1 %4862 }
0x1f52   :  { %v4865_v2 = vpop.permute.xlu0 %4864 }
0x1f53   :  { %17311 = vmatprep.subr.mxu1 %v4865_v2 }
0x1f54   :  { %17312 = vmatpush3.msra.mxu1 %v4865_v2 }
0x1f55   :  { %17313 = vmatprep.subr.mxu1 %v4863_v4 }
0x1f56   :  { %17314 = vmatpush3.msra.mxu1 %v4863_v4 }
0x1f57   :  { %17318 = vmatprep.subr.mxu1 %v2777_v28 }
0x1f5a   :  { %v18267_v36 = vpop.eup %18266 }
0x1f5b   :  { %v4861_v25 = vmul.f32 %v18267_v36, %v18263_v54  ;;  %v5166_v54 = vld [vmem:[%s21137_s2 + $0x3d0] sm:$0xff] }
0x1f5c   :  { %v18269_v39 = vpop.eup %18268  ;;  %v5038_v36 = vld [vmem:[%s21139_s4 + $0x15] ss:$0 sm:$0xff] }
0x1f5d   :  { %v4860_v5 = vmul.f32 %v18269_v39, %v18265_v57 }
0x1f5f   :  { %17315 = vmatprep.mubr.msk.f32.mxu1 %vm238_vm2, %v4860_v5 }
0x1f60   :  { %17316 = vmatmul.mubr.msk.f32.vlgmr.msra.gmra.mxu1 %vm238_vm2, %v4861_v25 }
0x1f61   :  { %17319 = vmatpush3.msra.mxu1 %v2777_v28 }
0x1f62   :  { %17342 = vmatprep.subr.mxu1 %v5168_v53 }
0x2008   :  { %v17303_v6 = vpop.f32.mrf.mxu1 }
0x2009   :  { %v4748_v7 = vadd.f32 %v17303_v6, %v4465_v61  ;;  %v5333_v6 = vld [vmem:[%s21141_s3 + $0x10] sm:$0xff] }
0x200a   :  { %v4738_v8 = vpop.f32.mrf.mxu1 }
0x200b   :  { %v4747_v17 = vadd.f32 %v4738_v8, %v4464_v14  ;;  %v5331_v8 = vld [vmem:[%s21141_s3] sm:$0xff] }
0x2020   :  { %v17317_v9 = vpop.f32.mrf.mxu1 }
0x2022   :  { %v4940_v11 = vpop.f32.mrf.mxu1 }
0x2023   :  { %17320 = vmatprep.mubr.msk.f32.mxu1 %vm154_vm1, %v4940_v11  ;;  %v5164_v11 = vld [vmem:[%s21137_s2 + $0x3b0] sm:$0xff] }
0x2024   :  { %17321 = vmatmul.mubr.msk.f32.vlgmr.msra.gmra.mxu1 %vm154_vm1, %v17317_v9 }
0x2025   :  { %17343 = vmatpush3.msra.mxu1 %v5168_v53 }
0x2026   :  { %17344 = vmatprep.subr.mxu1 %v5167_v37 }
0x2027   :  { %17345 = vmatpush3.msra.mxu1 %v5167_v37 }
0x2028   :  { %17346 = vmatprep.subr.mxu1 %v5166_v54 }
0x2029   :  { %17347 = vmatpush3.msra.mxu1 %v5166_v54 }
0x202a   :  { %17348 = vmatprep.subr.mxu1 %v5165_v56 }
0x202b   :  { %17349 = vmatpush3.msra.mxu1 %v5165_v56 }
0x202c   :  { %17350 = vmatprep.subr.mxu1 %v5164_v11 }
0x202d   :  { %17351 = vmatpush3.msra.mxu1 %v5164_v11 }
0x202e   :  { %17352 = vmatprep.subr.mxu1 %v5163_v12 }
0x202f   :  { %17353 = vmatpush3.msra.mxu1 %v5163_v12 }
0x2030   :  { %17354 = vmatprep.subr.mxu1 %v5162_v34 }
0x2031   :  { %17355 = vmatpush3.msra.mxu1 %v5162_v34 }
0x2032   :  { %17356 = vmatprep.subr.mxu1 %v5161_v35 }
0x2033   :  { %17357 = vmatpush3.msra.mxu1 %v5161_v35 }
0x20e4   :  { %v17322_v15 = vpop.f32.mrf.mxu1 }
0x20e5   :  { %v5031_v19 = vadd.f32 %v17322_v15, %v4748_v7  ;;  %v5332_v7 = vld [vmem:[%s21141_s3 + $0x8] sm:$0xff] }
0x20e6   :  { %v5021_v23 = vpop.f32.mrf.mxu1 }
0x20e7   :  { %v5034_v24 = vadd.f32 %v5032_v45, %v5031_v19  ;;  %v5030_v26 = vadd.f32 %v5021_v23, %v4747_v17 }
0x20e9   :  { %v5033_v3 = vadd.f32 %v5032_v45, %v5030_v26  ;;  %v5036_v46 = vadd.f32 %v5034_v24, %v19141_v22  ;;  %v5335_v24 = vld [vmem:[%s21139_s4 + $0x20] ss:$0 sm:$0xff] }
0x20eb   :  { %v5042_v41 = vsel %vm56_vm0, %v5036_v46, 0.0  ;;  %v5035_v10 = vadd.f32 %v5033_v3, %v19136_v18  ;;  %v5076_v18 = vld [vmem:[%s21137_s2 + $0x370] sm:$0xff]  ;;  %s18598_s2 = smov 92  }
0x20ec   :  { %5043 = vadd.xlane.f32.xlu0 %v5042_v41  ;;  %17323 = vmatprep.subr.mxu0 %v5076_v18 }
0x20ed   :  { %v5039_v55 = vsel %vm56_vm0, %v5035_v10, 0.0  ;;  %17324 = vmatpush3.msra.mxu0 %v5076_v18 }
0x20ee   :  { %5040 = vadd.xlane.f32.xlu1 %v5039_v55  ;;  %17325 = vmatprep.subr.mxu0 %v5075_v29 }
0x20ef   :  { %17326 = vmatpush3.msra.mxu0 %v5075_v29 }
0x20f0   :  { %17327 = vmatprep.subr.mxu0 %v5074_v44 }
0x20f1   :  { %17328 = vmatpush3.msra.mxu0 %v5074_v44 }
0x20f2   :  { %17329 = vmatprep.subr.mxu0 %v5073_v62 }
0x20f3   :  { %17330 = vmatpush3.msra.mxu0 %v5073_v62 }
0x20f4   :  { %17331 = vmatprep.subr.mxu0 %v5072_v40 }
0x20f5   :  { %17332 = vmatpush3.msra.mxu0 %v5072_v40 }
0x20f6   :  { %17333 = vmatprep.subr.mxu0 %v5071_v50 }
0x20f7   :  { %17334 = vmatpush3.msra.mxu0 %v5071_v50 }
0x20f8   :  { %17335 = vmatprep.subr.mxu0 %v5070_v51 }
0x20f9   :  { %17336 = vmatpush3.msra.mxu0 %v5070_v51 }
0x20fa   :  { %17337 = vmatprep.subr.mxu0 %v5069_v52 }
0x20fb   :  { %17338 = vmatpush3.msra.mxu0 %v5069_v52 }
0x20fc   :  { %17361 = vmatprep.subr.mxu0 %v5334_v38 }
0x2175   :  { %v5044_v27 = vpop.xlane.xlu0 %5043 }
0x2176   :  { %v5046_v31 = vmul.f32 0.015625, %v5044_v27 }
0x2177   :  { %v5041_v21 = vpop.xlane.xlu1 %5040 }
0x2178   :  { %v5048_v32 = vsub.f32 %v5036_v46, %v5046_v31  ;;  %v5045_v33 = vmul.f32 0.015625, %v5041_v21 }
0x217a   :  { %v5047_v20 = vsub.f32 %v5035_v10, %v5045_v33  ;;  %v5050_v42 = vmul.f32 %v5048_v32, %v5048_v32 }
0x217c   :  { %v5054_v49 = vsel %vm56_vm0, %v5050_v42, 0.0  ;;  %v5049_v43 = vmul.f32 %v5047_v20, %v5047_v20  ;;  %v19578_v42 = vld [vmem:[%s21140_s1 + $0x18] sm:$0xff] }
0x217d   :  { %5055 = vadd.xlane.f32.xlu1 %v5054_v49 }
0x217e   :  { %v5051_v22 = vsel %vm56_vm0, %v5049_v43, 0.0  ;;  %v19583_v43 = vld [vmem:[%s21140_s1 + $0x10] sm:$0xff] }
0x217f   :  { %5052 = vadd.xlane.f32.xlu0 %v5051_v22 }
0x218e   :  { %5338 = vrot.lane.b32.xlu1 %v18574_v16, %s18583_s6 }
0x2195   :  { %5336 = vrot.lane.b32.xlu0 %v18575_v47, %s18583_s6 }
0x2206   :  { %v5056_v57 = vpop.xlane.xlu1 %5055 }
0x2207   :  { %v5058_v58 = vmul.f32 0.015625, %v5056_v57 }
0x2208   :  { %v5053_v59 = vpop.xlane.xlu0 %5052 }
0x2209   :  { %v5060_v60 = vadd.f32 1e-05, %v5058_v58  ;;  %v5057_v61 = vmul.f32 0.015625, %v5053_v59 }
0x220a   :  { %v5339_v9 = vpop.permute.xlu1 %5338 }
0x220b   :  { %18270 = vrsqrt.f32 %v5060_v60  ;;  %v5059_v48 = vadd.f32 1e-05, %v5057_v61 }
0x220c   :  { %v5337_v28 = vpop.permute.xlu0 %5336 }
0x220d   :  { %18272 = vrsqrt.f32 %v5059_v48 }
0x2218   :  { %v18271_v30 = vpop.eup %18270 }
0x2219   :  { %v5064_v0 = vmul.f32 %v18271_v30, %v5048_v32 }
0x221a   :  { %v18273_v1 = vpop.eup %18272 }
0x221b   :  { %v5063_v2 = vmul.f32 %v18273_v1, %v5047_v20  ;;  %v5066_v4 = vmul.f32 %v5064_v0, %v5037_v63 }
0x221d   :  { %v5065_v39 = vmul.f32 %v5063_v2, %v5037_v63  ;;  %v19504_v25 = vadd.f32 %v5066_v4, %v5038_v36 }
0x221f   :  { %v19502_v5 = vadd.f32 %v5065_v39, %v5038_v36 }
0x2221   :  { %17339 = vmatprep.mubr.msk.f32.mxu0 %vm56_vm0, %v19502_v5 }
0x2222   :  { %17340 = vmatmul.mubr.msk.f32.vlgmr.msra.gmra.mxu0 %vm56_vm0, %v19504_v25 }
0x2223   :  { %17362 = vmatpush3.msra.mxu0 %v5334_v38  ;;  %17369 = vmatprep.mubr.msk.f32.mxu0 %vm5340_vm3, %v5337_v28 }
0x2224   :  { %17363 = vmatprep.subr.mxu0 %v5333_v6 }
0x2225   :  { %17364 = vmatpush3.msra.mxu0 %v5333_v6 }
0x2226   :  { %17365 = vmatprep.subr.mxu0 %v5332_v7 }
0x2227   :  { %17366 = vmatpush3.msra.mxu0 %v5332_v7 }
0x2228   :  { %17367 = vmatprep.subr.mxu0 %v5331_v8 }
0x2229   :  { %17368 = vmatpush3.msra.mxu0 %v5331_v8  ;;  %v5420_v8 = vld [vmem:[%s21141_s3 + $0x20] sm:$0xff] }
0x222a   :  { %17370 = vmatmul.mubr.msk.f32.vlgmr.msra.gmra.mxu0 %vm5340_vm3, %v5339_v9 }
0x22e2   :  { %v17341_v14 = vpop.f32.mrf.mxu0 }
0x22e3   :  { %v5156_v15 = vadd.f32 %v17341_v14, %v5077_v13 }
0x22e4   :  { %v5150_v45 = vpop.f32.mrf.mxu0 }
0x22e5   :  { %v5151_v17 = vadd.f32 %v5150_v45, %v5077_v13  ;;  %v5160_v23 = vmax.f32 %v5156_v15, 0.0 }
0x22e7   :  { %v5159_v19 = vmax.f32 %v5151_v17, 0.0  ;;  %v5824_v17 = vrot.slane %v5420_v8, 4 }
0x22e9   :  { %17358 = vmatprep.mubr.msk.f32.mxu1 %vm56_vm0, %v5159_v19 }
0x22ea   :  { %v17371_v26 = vpop.f32.mrf.mxu0  ;;  %17359 = vmatmul.mubr.msk.f32.vlgmr.msra.gmra.mxu1 %vm56_vm0, %v5160_v23 }
0x22eb   :  { %v19541_v3 = vadd.f32 %v17371_v26, %v5335_v24 }
0x22ec   :  { %v5411_v46 = vpop.f32.mrf.mxu0 }
0x22ed   :  { %v19543_v41 = vadd.f32 %v5411_v46, %v5335_v24  ;;  %5428 = vrot.lane.b32.xlu1 %v19541_v3, %s18591_s22 }
0x22ef   :  { %5426 = vrot.lane.b32.xlu0 %v19543_v41, %s18591_s22  ;;  %17376 = vmatprep.mubr.msk.f32.mxu1 %vm5430_vm4, %v19543_v41 }
0x22f1   :  { %5629 = vrot.lane.b32.xlu1 %v19541_v3, %s18598_s2 }
0x22f3   :  { %5627 = vrot.lane.b32.xlu0 %v19543_v41, %s18598_s2 }
0x22f5   :  { %5623 = vrot.lane.b32.xlu1 %v19543_v41, %s18599_s8 }
0x22f7   :  { %5625 = vrot.lane.b32.xlu0 %v19541_v3, %s18599_s8 }
0x235f   :  { %v5429_v10 = vpop.permute.xlu1 %5428 }
0x2360   :  { %17372 = vmatprep.subr.msk.mxu1 %vm5430_vm4, %v5429_v10 }
0x2361   :  { %17373 = vmatpush3.xpose.msk.msra.mxu1 %vm5430_vm4, %v5429_v10  ;;  %v5427_v55 = vpop.permute.xlu0 %5426 }
0x2362   :  { %17374 = vmatprep.subr.msk.mxu1 %vm5430_vm4, %v5427_v55 }
0x2363   :  { %v5630_v27 = vpop.permute.xlu1 %5629 }
0x2365   :  { %17375 = vmatpush3.xpose.msk.msra.mxu1 %vm5430_vm4, %v5427_v55  ;;  %v5628_v21 = vpop.permute.xlu0 %5627 }
0x2366   :  { %17386 = vmatprep.subr.msk.mxu1 %vm5430_vm4, %v5630_v27 }
0x2367   :  { %v5624_v31 = vpop.permute.xlu1 %5623 }
0x2368   :  { %17377 = vmatmul.mubr.msk.f32.vlgmr.msra.gmra.mxu1 %vm5430_vm4, %v19541_v3 }
0x2369   :  { %17387 = vmatpush3.xpose.msk.msra.mxu1 %vm5430_vm4, %v5630_v27  ;;  %17390 = vmatprep.mubr.msk.f32.mxu1 %vm5430_vm4, %v5624_v31  ;;  %v5626_v32 = vpop.permute.xlu0 %5625 }
0x236a   :  { %17388 = vmatprep.subr.msk.mxu1 %vm5430_vm4, %v5628_v21 }
0x236d   :  { %17389 = vmatpush3.xpose.msk.msra.mxu1 %vm5430_vm4, %v5628_v21 }
0x236e   :  { %17405 = vmatprep.subr.msk.mxu1 %vm5831_vm5, %v5420_v8 }
0x2370   :  { %17391 = vmatmul.mubr.msk.f32.vlgmr.msra.gmra.mxu1 %vm5430_vm4, %v5626_v32 }
0x2371   :  { %17406 = vmatpush3.msk.msra.mxu1 %vm5831_vm5, %v5420_v8 }
0x23aa   :  { %v19571_v33 = vpop.f32.mrf.mxu1 }
0x23ac   :  { %v19573_v20 = vpop.f32.mrf.mxu1 }
0x2428   :  { %v17378_v49 = vpop.f32.mrf.mxu1 }
0x2429   :  { %v5511_v22 = vadd.f32 %v17378_v49, %v19578_v42 }
0x242a   :  { %v5505_v18 = vpop.f32.mrf.mxu1 }
0x242b   :  { %v5506_v29 = vadd.f32 %v5505_v18, %v19583_v43  ;;  %v5517_v16 = vsel %vm238_vm2, %v5511_v22, -inf }
0x242c   :  { %5518 = vmax.xlane.f32.xlu0 %v5517_v16 }
0x242d   :  { %v5514_v44 = vsel %vm238_vm2, %v5506_v29, -inf }
0x242e   :  { %5515 = vmax.xlane.f32.xlu1 %v5514_v44 }
0x2430   :  { %v17392_v62 = vpop.f32.mrf.mxu1 }
0x2431   :  { %v5711_v40 = vadd.f32 %v17392_v62, %v19578_v42 }
0x2432   :  { %v5705_v47 = vpop.f32.mrf.mxu1 }
0x2433   :  { %v5706_v50 = vadd.f32 %v5705_v47, %v19583_v43  ;;  %v5717_v51 = vsel %vm238_vm2, %v5711_v40, -inf }
0x2434   :  { %5718 = vmax.xlane.f32.xlu1 %v5717_v51 }
0x2435   :  { %v5714_v52 = vsel %vm238_vm2, %v5706_v50, -inf }
0x2436   :  { %5715 = vmax.xlane.f32.xlu0 %v5714_v52 }
0x2445   :  { %5536 = vrot.lane.b32.xlu1 %v19543_v41, %s18583_s6 }
0x244c   :  { %5538 = vrot.lane.b32.xlu0 %v19541_v3, %s18583_s6 }
0x24b5   :  { %v5519_v38 = vpop.xlane.xlu0 %5518 }
0x24b6   :  { %v5521_v53 = vsub.f32 %v5511_v22, %v5519_v38 }
0x24b7   :  { %v5516_v37 = vpop.xlane.xlu1 %5515 }
0x24b8   :  { %v5524_v54 = vmul.f32 1.442695, %v5521_v53  ;;  %v5520_v56 = vsub.f32 %v5506_v29, %v5516_v37 }
0x24ba   :  { %18274 = vpow2.f32 %v5524_v54  ;;  %v5522_v57 = vmul.f32 1.442695, %v5520_v56 }
0x24bc   :  { %18276 = vpow2.f32 %v5522_v57 }
0x24bd   :  { %v5719_v58 = vpop.xlane.xlu1 %5718 }
0x24be   :  { %v5721_v59 = vsub.f32 %v5711_v40, %v5719_v58 }
0x24bf   :  { %v5716_v60 = vpop.xlane.xlu0 %5715 }
0x24c0   :  { %v5724_v61 = vmul.f32 1.442695, %v5721_v59  ;;  %v5720_v48 = vsub.f32 %v5706_v50, %v5716_v60 }
0x24c1   :  { %v5537_v0 = vpop.permute.xlu1 %5536 }
0x24c2   :  { %18278 = vpow2.f32 %v5724_v61  ;;  %v5722_v30 = vmul.f32 1.442695, %v5720_v48 }
0x24c3   :  { %v5539_v63 = vpop.permute.xlu0 %5538 }
0x24c4   :  { %18280 = vpow2.f32 %v5722_v30  ;;  %17379 = vmatprep.subr.mxu0 %v5539_v63 }
0x24c5   :  { %17380 = vmatpush3.msra.mxu0 %v5539_v63 }
0x24c6   :  { %17381 = vmatprep.subr.mxu0 %v5537_v0 }
0x24c7   :  { %v18275_v1 = vpop.eup %18274  ;;  %17382 = vmatpush3.msra.mxu0 %v5537_v0 }
0x24c8   :  { %v5529_v2 = vsel %vm238_vm2, %v18275_v1, 0.0 }
0x24c9   :  { %v18277_v4 = vpop.eup %18276  ;;  %5530 = vadd.xlane.f32.xlu1 %v5529_v2 }
0x24ca   :  { %v5526_v36 = vsel %vm238_vm2, %v18277_v4, 0.0 }
0x24cb   :  { %5527 = vadd.xlane.f32.xlu0 %v5526_v36 }
0x24cf   :  { %v18279_v39 = vpop.eup %18278 }
0x24d0   :  { %v5729_v28 = vsel %vm238_vm2, %v18279_v39, 0.0 }
0x24d1   :  { %v18281_v6 = vpop.eup %18280  ;;  %5730 = vadd.xlane.f32.xlu1 %v5729_v28 }
0x24d2   :  { %v5726_v7 = vsel %vm238_vm2, %v18281_v6, 0.0 }
0x24d3   :  { %5727 = vadd.xlane.f32.xlu0 %v5726_v7 }
0x24e2   :  { %5738 = vrot.lane.b32.xlu1 %v19541_v3, %s18600_s9 }
0x24e6   :  { %5998 = vrot.lane.b32.xlu1 %v19541_v3, %s18593_s26 }
0x24e9   :  { %5736 = vrot.lane.b32.xlu0 %v19543_v41, %s18600_s9 }
0x24ea   :  { %5992 = vrot.lane.b32.xlu1 %v19543_v41, %s18585_s12 }
0x24ed   :  { %5996 = vrot.lane.b32.xlu0 %v19543_v41, %s18593_s26 }
0x24ee   :  { %6284 = vrot.lane.b32.xlu1 %v19541_v3, %s18601_s23 }
0x24f1   :  { %5994 = vrot.lane.b32.xlu0 %v19541_v3, %s18585_s12 }
0x24f2   :  { %6278 = vrot.lane.b32.xlu1 %v19543_v41, %s18602_s24 }
0x24f5   :  { %6282 = vrot.lane.b32.xlu0 %v19543_v41, %s18601_s23 }
0x24f9   :  { %6280 = vrot.lane.b32.xlu0 %v19541_v3, %s18602_s24 }
0x2552   :  { %v5531_v9 = vpop.xlane.xlu1 %5530 }
0x2553   :  { %18282 = vrcp.f32 %v5531_v9 }
0x2554   :  { %v5528_v11 = vpop.xlane.xlu0 %5527 }
0x2555   :  { %18284 = vrcp.f32 %v5528_v11 }
0x255a   :  { %v5731_v12 = vpop.xlane.xlu1 %5730 }
0x255b   :  { %18286 = vrcp.f32 %v5731_v12 }
0x255c   :  { %v5728_v34 = vpop.xlane.xlu0 %5727 }
0x255d   :  { %18288 = vrcp.f32 %v5728_v34 }
0x255e   :  { %v5739_v35 = vpop.permute.xlu1 %5738 }
0x255f   :  { %17393 = vmatprep.subr.mxu0 %v5739_v35 }
0x2560   :  { %v18283_v13 = vpop.eup %18282  ;;  %v5737_v19 = vpop.permute.xlu0 %5736 }
0x2561   :  { %v5535_v45 = vmul.f32 %v18283_v13, %v18275_v1 }
0x2562   :  { %v18285_v14 = vpop.eup %18284  ;;  %v5999_v10 = vpop.permute.xlu1 %5998 }
0x2563   :  { %v5534_v15 = vmul.f32 %v18285_v14, %v18277_v4 }
0x2564   :  { %v5997_v32 = vpop.permute.xlu0 %5996 }
0x2565   :  { %17383 = vmatprep.mubr.msk.f32.mxu0 %vm238_vm2, %v5534_v15 }
0x2566   :  { %17384 = vmatmul.mubr.msk.f32.vlgmr.msra.gmra.mxu0 %vm238_vm2, %v5535_v45  ;;  %v5993_v31 = vpop.permute.xlu1 %5992 }
0x2567   :  { %17394 = vmatpush3.msra.mxu0 %v5739_v35 }
0x2568   :  { %17395 = vmatprep.subr.mxu0 %v5737_v19  ;;  %v18287_v23 = vpop.eup %18286  ;;  %v5995_v18 = vpop.permute.xlu0 %5994 }
0x2569   :  { %17396 = vmatpush3.msra.mxu0 %v5737_v19  ;;  %v5735_v46 = vmul.f32 %v18287_v23, %v18279_v39 }
0x256a   :  { %v18289_v24 = vpop.eup %18288  ;;  %17400 = vmatprep.subr.msk.mxu0 %vm5831_vm5, %v5824_v17  ;;  %v6285_v22 = vpop.permute.xlu1 %6284 }
0x256b   :  { %v5734_v26 = vmul.f32 %v18289_v24, %v18281_v6 }
0x256c   :  { %v6283_v16 = vpop.permute.xlu0 %6282 }
0x256d   :  { %17397 = vmatprep.mubr.msk.f32.mxu0 %vm238_vm2, %v5734_v26 }
0x256e   :  { %17398 = vmatmul.mubr.msk.f32.vlgmr.msra.gmra.mxu0 %vm238_vm2, %v5735_v46  ;;  %v6279_v29 = vpop.permute.xlu1 %6278 }
0x256f   :  { %17401 = vmatpush3.msk.msra.mxu0 %vm5831_vm5, %v5824_v17 }
0x2570   :  { %17410 = vmatprep.subr.msk.mxu0 %vm5430_vm4, %v5999_v10  ;;  %v6281_v44 = vpop.permute.xlu0 %6280 }
0x2626   :  { %v17385_v55 = vpop.f32.mrf.mxu0 }
0x2628   :  { %v5614_v27 = vpop.f32.mrf.mxu0 }
0x2629   :  { %17407 = vmatprep.mubr.msk.f32.mxu1 %vm5430_vm4, %v5614_v27 }
0x262a   :  { %17408 = vmatmul.mubr.msk.f32.vlgmr.msra.gmra.mxu1 %vm5430_vm4, %v17385_v55 }
0x262e   :  { %v17399_v21 = vpop.f32.mrf.mxu0 }
0x2630   :  { %v5814_v49 = vpop.f32.mrf.mxu0 }
0x2631   :  { %17402 = vmatprep.mubr.msk.f32.mxu0 %vm5430_vm4, %v5814_v49 }
0x2632   :  { %17403 = vmatmul.mubr.msk.f32.vlgmr.msra.gmra.mxu0 %vm5430_vm4, %v17399_v21  ;;  %v5421_v21 = vld [vmem:[%s21141_s3 + $0x28] sm:$0xff] }
0x2633   :  { %17411 = vmatpush3.xpose.msk.msra.mxu0 %vm5430_vm4, %v5999_v10  ;;  %17414 = vmatprep.mubr.msk.f32.mxu0 %vm5430_vm4, %v5993_v31 }
0x2634   :  { %17412 = vmatprep.subr.msk.mxu0 %vm5430_vm4, %v5997_v32 }
0x2637   :  { %17413 = vmatpush3.xpose.msk.msra.mxu0 %vm5430_vm4, %v5997_v32 }
0x2638   :  { %17429 = vmatprep.subr.msk.mxu0 %vm5430_vm4, %v6285_v22 }
0x263a   :  { %17415 = vmatmul.mubr.msk.f32.vlgmr.msra.gmra.mxu0 %vm5430_vm4, %v5995_v18 }
0x263b   :  { %17430 = vmatpush3.xpose.msk.msra.mxu0 %vm5430_vm4, %v6285_v22  ;;  %17433 = vmatprep.mubr.msk.f32.mxu0 %vm5430_vm4, %v6279_v29 }
0x263c   :  { %17431 = vmatprep.subr.msk.mxu0 %vm5430_vm4, %v6283_v16 }
0x263f   :  { %17432 = vmatpush3.xpose.msk.msra.mxu0 %vm5430_vm4, %v6283_v16 }
0x2642   :  { %17434 = vmatmul.mubr.msk.f32.vlgmr.msra.gmra.mxu0 %vm5430_vm4, %v6281_v44 }
0x26ea   :  { %v17409_v62 = vpop.f32.mrf.mxu1 }
0x26ec   :  { %v19701_v49 = vpop.f32.mrf.mxu1 }
0x26f2   :  { %v17404_v40 = vpop.f32.mrf.mxu0 }
0x26f3   :  { %v19648_v47 = vadd.f32 %v17409_v62, %v17404_v40 }
0x26f4   :  { %v19650_v50 = vpop.f32.mrf.mxu0 }
0x26fa   :  { %v17416_v51 = vpop.f32.mrf.mxu0 }
0x26fb   :  { %v6080_v52 = vadd.f32 %v17416_v51, %v19578_v42 }
0x26fc   :  { %v6074_v38 = vpop.f32.mrf.mxu0 }
0x26fd   :  { %v6075_v53 = vadd.f32 %v6074_v38, %v19583_v43  ;;  %v6086_v37 = vsel %vm238_vm2, %v6080_v52, -inf }
0x26fe   :  { %6087 = vmax.xlane.f32.xlu0 %v6086_v37 }
0x26ff   :  { %v6083_v54 = vsel %vm238_vm2, %v6075_v53, -inf }
0x2700   :  { %6084 = vmax.xlane.f32.xlu1 %v6083_v54 }
0x2702   :  { %v17435_v1 = vpop.f32.mrf.mxu0 }
0x2703   :  { %v6366_v36 = vadd.f32 %v17435_v1, %v19578_v42 }
0x2704   :  { %v6360_v2 = vpop.f32.mrf.mxu0 }
0x2705   :  { %v6361_v4 = vadd.f32 %v6360_v2, %v19583_v43  ;;  %v6372_v28 = vsel %vm238_vm2, %v6366_v36, -inf }
0x2707   :  { %v6369_v39 = vsel %vm238_vm2, %v6361_v4, -inf }
0x2787   :  { %v6088_v56 = vpop.xlane.xlu0 %6087 }
0x2788   :  { %v6090_v57 = vsub.f32 %v6080_v52, %v6088_v56 }
0x2789   :  { %v6085_v58 = vpop.xlane.xlu1 %6084 }
0x278a   :  { %v6093_v59 = vmul.f32 1.442695, %v6090_v57  ;;  %v6089_v60 = vsub.f32 %v6075_v53, %v6085_v58  ;;  %v6478_v53 = vrot.slane %v5421_v21, 4 }
0x278c   :  { %18290 = vpow2.f32 %v6093_v59  ;;  %v6091_v61 = vmul.f32 1.442695, %v6089_v60 }
0x278e   :  { %18292 = vpow2.f32 %v6091_v61 }
0x2799   :  { %v18291_v48 = vpop.eup %18290 }
0x279a   :  { %v6098_v30 = vsel %vm238_vm2, %v18291_v48, 0.0 }
0x279b   :  { %v18293_v63 = vpop.eup %18292  ;;  %6099 = vadd.xlane.f32.xlu1 %v6098_v30 }
0x279c   :  { %v6095_v0 = vsel %vm238_vm2, %v18293_v63, 0.0 }
0x279d   :  { %6096 = vadd.xlane.f32.xlu0 %v6095_v0 }
0x27ac   :  { %6105 = vrot.lane.b32.xlu1 %v19543_v41, %s18584_s11 }
0x27b0   :  { %6570 = vrot.lane.b32.xlu1 %v19541_v3, %s18595_s30 }
0x27b3   :  { %6107 = vrot.lane.b32.xlu0 %v19541_v3, %s18584_s11 }
0x27b4   :  { %6564 = vrot.lane.b32.xlu1 %v19543_v41, %s18588_s17 }
0x27b7   :  { %6568 = vrot.lane.b32.xlu0 %v19543_v41, %s18595_s30 }
0x27bb   :  { %6566 = vrot.lane.b32.xlu0 %v19541_v3, %s18588_s17 }
0x27d8   :  { %6370 = vmax.xlane.f32.xlu1 %v6369_v39 }
0x27da   :  { %6373 = vmax.xlane.f32.xlu0 %v6372_v28 }
0x2824   :  { %v6100_v6 = vpop.xlane.xlu1 %6099 }
0x2825   :  { %18294 = vrcp.f32 %v6100_v6 }
0x2826   :  { %v6097_v7 = vpop.xlane.xlu0 %6096 }
0x2827   :  { %18296 = vrcp.f32 %v6097_v7 }
0x2828   :  { %v6106_v8 = vpop.permute.xlu1 %6105 }
0x282a   :  { %v6108_v9 = vpop.permute.xlu0 %6107 }
0x282b   :  { %17417 = vmatprep.subr.mxu1 %v6108_v9 }
0x282c   :  { %17418 = vmatpush3.msra.mxu1 %v6108_v9  ;;  %v6571_v11 = vpop.permute.xlu1 %6570 }
0x282d   :  { %17419 = vmatprep.subr.mxu1 %v6106_v8  ;;  %17448 = vmatprep.subr.msk.mxu0 %vm5430_vm4, %v6571_v11 }
0x282e   :  { %v6569_v12 = vpop.permute.xlu0 %6568  ;;  %17420 = vmatpush3.msra.mxu1 %v6106_v8  ;;  %17449 = vmatpush3.xpose.msk.msra.mxu0 %vm5430_vm4, %v6571_v11 }
0x282f   :  { %17450 = vmatprep.subr.msk.mxu0 %vm5430_vm4, %v6569_v12  ;;  %17424 = vmatprep.subr.msk.mxu1 %vm5831_vm5, %v5421_v21 }
0x2830   :  { %v6565_v34 = vpop.permute.xlu1 %6564 }
0x2831   :  { %17452 = vmatprep.mubr.msk.f32.mxu0 %vm5430_vm4, %v6565_v34 }
0x2832   :  { %17451 = vmatpush3.xpose.msk.msra.mxu0 %vm5430_vm4, %v6569_v12  ;;  %v18295_v35 = vpop.eup %18294  ;;  %v6567_v14 = vpop.permute.xlu0 %6566 }
0x2833   :  { %v6104_v45 = vmul.f32 %v18295_v35, %v18291_v48 }
0x2834   :  { %v18297_v13 = vpop.eup %18296 }
0x2835   :  { %17453 = vmatmul.mubr.msk.f32.vlgmr.msra.gmra.mxu0 %vm5430_vm4, %v6567_v14  ;;  %v6103_v15 = vmul.f32 %v18297_v13, %v18293_v63 }
0x2837   :  { %17421 = vmatprep.mubr.msk.f32.mxu1 %vm238_vm2, %v6103_v15 }
0x2838   :  { %17422 = vmatmul.mubr.msk.f32.vlgmr.msra.gmra.mxu1 %vm238_vm2, %v6104_v45 }
0x2839   :  { %17425 = vmatpush3.msk.msra.mxu1 %vm5831_vm5, %v5421_v21 }
0x2861   :  { %v6371_v17 = vpop.xlane.xlu1 %6370 }
0x2862   :  { %v6375_v19 = vsub.f32 %v6361_v4, %v6371_v17 }
0x2863   :  { %v6374_v23 = vpop.xlane.xlu0 %6373 }
0x2864   :  { %v6377_v24 = vmul.f32 1.442695, %v6375_v19  ;;  %v6376_v26 = vsub.f32 %v6366_v36, %v6374_v23 }
0x2866   :  { %18298 = vpow2.f32 %v6377_v24  ;;  %v6379_v46 = vmul.f32 1.442695, %v6376_v26 }
0x2868   :  { %18300 = vpow2.f32 %v6379_v46 }
0x2873   :  { %v18299_v10 = vpop.eup %18298 }
0x2874   :  { %v6381_v55 = vsel %vm238_vm2, %v18299_v10, 0.0 }
0x2875   :  { %v18301_v27 = vpop.eup %18300  ;;  %6382 = vadd.xlane.f32.xlu0 %v6381_v55 }
0x2876   :  { %v6384_v31 = vsel %vm238_vm2, %v18301_v27, 0.0 }
0x2877   :  { %6385 = vadd.xlane.f32.xlu1 %v6384_v31 }
0x2888   :  { %6391 = vrot.lane.b32.xlu1 %v19543_v41, %s21151_s7 }
0x288b   :  { %6393 = vrot.lane.b32.xlu0 %v19541_v3, %s21151_s7 }
0x288c   :  { %6856 = vrot.lane.b32.xlu1 %v19541_v3, %s18604_s25 }
0x288f   :  { %6854 = vrot.lane.b32.xlu0 %v19543_v41, %s18604_s25 }
0x2890   :  { %6850 = vrot.lane.b32.xlu1 %v19543_v41, %s18605_s15 }
0x2893   :  { %6852 = vrot.lane.b32.xlu0 %v19541_v3, %s18605_s15 }
0x28f5   :  { %v17454_v32 = vpop.f32.mrf.mxu0 }
0x28f6   :  { %v6652_v22 = vadd.f32 %v17454_v32, %v19578_v42 }
0x28f7   :  { %v6646_v18 = vpop.f32.mrf.mxu0 }
0x28f8   :  { %v6647_v29 = vadd.f32 %v6646_v18, %v19583_v43  ;;  %v17423_v16 = vpop.f32.mrf.mxu1  ;;  %v6658_v44 = vsel %vm238_vm2, %v6652_v22, -inf }
0x28f9   :  { %6659 = vmax.xlane.f32.xlu0 %v6658_v44 }
0x28fa   :  { %v6183_v62 = vpop.f32.mrf.mxu1  ;;  %v6655_v40 = vsel %vm238_vm2, %v6647_v29, -inf }
0x28fb   :  { %17426 = vmatprep.mubr.msk.f32.mxu1 %vm5430_vm4, %v6183_v62  ;;  %6656 = vmax.xlane.f32.xlu1 %v6655_v40 }
0x28fc   :  { %17427 = vmatmul.mubr.msk.f32.vlgmr.msra.gmra.mxu1 %vm5430_vm4, %v17423_v16 }
0x28fe   :  { %v6383_v51 = vpop.xlane.xlu0 %6382 }
0x28ff   :  { %18302 = vrcp.f32 %v6383_v51 }
0x2900   :  { %v6386_v52 = vpop.xlane.xlu1 %6385 }
0x2901   :  { %18304 = vrcp.f32 %v6386_v52 }
0x2902   :  { %v6394_v38 = vpop.permute.xlu0 %6393 }
0x2903   :  { %17436 = vmatprep.subr.mxu1 %v6394_v38 }
0x2904   :  { %17437 = vmatpush3.msra.mxu1 %v6394_v38  ;;  %v6392_v37 = vpop.permute.xlu1 %6391  ;;  %v5422_v38 = vld [vmem:[%s21141_s3 + $0x30] sm:$0xff] }
0x2905   :  { %17438 = vmatprep.subr.mxu1 %v6392_v37 }
0x2906   :  { %17439 = vmatpush3.msra.mxu1 %v6392_v37  ;;  %v6855_v56 = vpop.permute.xlu0 %6854 }
0x2907   :  { %17443 = vmatprep.subr.msk.mxu1 %vm5831_vm5, %v6478_v53 }
0x2908   :  { %v6857_v54 = vpop.permute.xlu1 %6856 }
0x2909   :  { %17467 = vmatprep.subr.msk.mxu0 %vm5430_vm4, %v6857_v54 }
0x290a   :  { %17468 = vmatpush3.xpose.msk.msra.mxu0 %vm5430_vm4, %v6857_v54  ;;  %v6853_v48 = vpop.permute.xlu0 %6852 }
0x290b   :  { %17469 = vmatprep.subr.msk.mxu0 %vm5430_vm4, %v6855_v56 }
0x290c   :  { %v18303_v57 = vpop.eup %18302  ;;  %v6851_v58 = vpop.permute.xlu1 %6850 }
0x290d   :  { %17471 = vmatprep.mubr.msk.f32.mxu0 %vm5430_vm4, %v6851_v58  ;;  %v6389_v59 = vmul.f32 %v18303_v57, %v18299_v10 }
0x290e   :  { %v18305_v60 = vpop.eup %18304  ;;  %17470 = vmatpush3.xpose.msk.msra.mxu0 %vm5430_vm4, %v6855_v56 }
0x290f   :  { %17440 = vmatprep.mubr.msk.f32.mxu1 %vm238_vm2, %v6389_v59  ;;  %v6390_v61 = vmul.f32 %v18305_v60, %v18301_v27 }
0x2911   :  { %17441 = vmatmul.mubr.msk.f32.vlgmr.msra.gmra.mxu1 %vm238_vm2, %v6390_v61  ;;  %17472 = vmatmul.mubr.msk.f32.vlgmr.msra.gmra.mxu0 %vm5430_vm4, %v6853_v48 }
0x2912   :  { %17444 = vmatpush3.msk.msra.mxu1 %vm5831_vm5, %v6478_v53 }
0x2982   :  { %v6660_v30 = vpop.xlane.xlu0 %6659 }
0x2983   :  { %v6662_v63 = vsub.f32 %v6652_v22, %v6660_v30 }
0x2984   :  { %v6657_v0 = vpop.xlane.xlu1 %6656 }
0x2985   :  { %v6665_v1 = vmul.f32 1.442695, %v6662_v63  ;;  %v6661_v2 = vsub.f32 %v6647_v29, %v6657_v0 }
0x2987   :  { %18306 = vpow2.f32 %v6665_v1  ;;  %v6663_v4 = vmul.f32 1.442695, %v6661_v2 }
0x2989   :  { %18308 = vpow2.f32 %v6663_v4  ;;  %v7050_v4 = vrot.slane %v5422_v38, 4 }
0x2994   :  { %v18307_v36 = vpop.eup %18306 }
0x2995   :  { %v6670_v39 = vsel %vm238_vm2, %v18307_v36, 0.0 }
0x2996   :  { %v18309_v28 = vpop.eup %18308  ;;  %6671 = vadd.xlane.f32.xlu1 %v6670_v39 }
0x2997   :  { %v6667_v6 = vsel %vm238_vm2, %v18309_v28, 0.0 }
0x2998   :  { %6668 = vadd.xlane.f32.xlu0 %v6667_v6 }
0x29a7   :  { %6677 = vrot.lane.b32.xlu1 %v19543_v41, %s21149_s13 }
0x29ab   :  { %7142 = vrot.lane.b32.xlu1 %v19541_v3, %s18597_s10 }
0x29ae   :  { %6679 = vrot.lane.b32.xlu0 %v19541_v3, %s21149_s13  ;;  %s21155_s13 = smov 44  }
0x29af   :  { %7136 = vrot.lane.b32.xlu1 %v19543_v41, %s18587_s14 }
0x29b2   :  { %7140 = vrot.lane.b32.xlu0 %v19543_v41, %s18597_s10 }
0x29b6   :  { %7138 = vrot.lane.b32.xlu0 %v19541_v3, %s18587_s14 }
0x29bc   :  { %v17428_v7 = vpop.f32.mrf.mxu1 }
0x29bd   :  { %v19734_v8 = vadd.f32 %v17428_v7, %v19648_v47 }
0x29be   :  { %v19736_v9 = vpop.f32.mrf.mxu1 }
0x29d1   :  { %v17442_v11 = vpop.f32.mrf.mxu1  ;;  %v17473_v12 = vpop.f32.mrf.mxu0 }
0x29d2   :  { %v6938_v34 = vadd.f32 %v17473_v12, %v19578_v42 }
0x29d3   :  { %v6469_v35 = vpop.f32.mrf.mxu1  ;;  %v6932_v13 = vpop.f32.mrf.mxu0 }
0x29d4   :  { %v6933_v14 = vadd.f32 %v6932_v13, %v19583_v43  ;;  %17445 = vmatprep.mubr.msk.f32.mxu1 %vm5430_vm4, %v6469_v35  ;;  %v6944_v15 = vsel %vm238_vm2, %v6938_v34, -inf }
0x29d5   :  { %17446 = vmatmul.mubr.msk.f32.vlgmr.msra.gmra.mxu1 %vm5430_vm4, %v17442_v11  ;;  %6945 = vmax.xlane.f32.xlu0 %v6944_v15 }
0x29d6   :  { %v6941_v47 = vsel %vm238_vm2, %v6933_v14, -inf }
0x29d7   :  { %6942 = vmax.xlane.f32.xlu1 %v6941_v47 }
0x2a1f   :  { %v6672_v45 = vpop.xlane.xlu1 %6671 }
0x2a20   :  { %18310 = vrcp.f32 %v6672_v45 }
0x2a21   :  { %v6669_v17 = vpop.xlane.xlu0 %6668 }
0x2a22   :  { %18312 = vrcp.f32 %v6669_v17 }
0x2a23   :  { %v6678_v19 = vpop.permute.xlu1 %6677 }
0x2a25   :  { %v6680_v23 = vpop.permute.xlu0 %6679 }
0x2a26   :  { %17455 = vmatprep.subr.mxu1 %v6680_v23 }
0x2a27   :  { %17456 = vmatpush3.msra.mxu1 %v6680_v23  ;;  %v7143_v24 = vpop.permute.xlu1 %7142 }
0x2a28   :  { %17457 = vmatprep.subr.mxu1 %v6678_v19  ;;  %17486 = vmatprep.subr.msk.mxu0 %vm5430_vm4, %v7143_v24 }
0x2a29   :  { %v7141_v26 = vpop.permute.xlu0 %7140  ;;  %17458 = vmatpush3.msra.mxu1 %v6678_v19  ;;  %17487 = vmatpush3.xpose.msk.msra.mxu0 %vm5430_vm4, %v7143_v24  ;;  %v5984_v24 = vadd.f32 %v19701_v49, %v19650_v50 }
0x2a2a   :  { %17488 = vmatprep.subr.msk.mxu0 %vm5430_vm4, %v7141_v26  ;;  %17462 = vmatprep.subr.msk.mxu1 %vm5831_vm5, %v5422_v38 }
0x2a2b   :  { %v7137_v46 = vpop.permute.xlu1 %7136 }
0x2a2c   :  { %17490 = vmatprep.mubr.msk.f32.mxu0 %vm5430_vm4, %v7137_v46 }
0x2a2d   :  { %17489 = vmatpush3.xpose.msk.msra.mxu0 %vm5430_vm4, %v7141_v26  ;;  %v18311_v10 = vpop.eup %18310  ;;  %v7139_v27 = vpop.permute.xlu0 %7138  ;;  %v6276_v26 = vadd.f32 %v19736_v9, %v5984_v24 }
0x2a2e   :  { %v6676_v21 = vmul.f32 %v18311_v10, %v18307_v36 }
0x2a2f   :  { %v18313_v55 = vpop.eup %18312 }
0x2a30   :  { %17491 = vmatmul.mubr.msk.f32.vlgmr.msra.gmra.mxu0 %vm5430_vm4, %v7139_v27  ;;  %v6675_v31 = vmul.f32 %v18313_v55, %v18309_v28 }
0x2a32   :  { %17459 = vmatprep.mubr.msk.f32.mxu1 %vm238_vm2, %v6675_v31 }
0x2a33   :  { %17460 = vmatmul.mubr.msk.f32.vlgmr.msra.gmra.mxu1 %vm238_vm2, %v6676_v21 }
0x2a34   :  { %17463 = vmatpush3.msk.msra.mxu1 %vm5831_vm5, %v5422_v38 }
0x2a5e   :  { %v6946_v32 = vpop.xlane.xlu0 %6945 }
0x2a5f   :  { %v6948_v22 = vsub.f32 %v6938_v34, %v6946_v32 }
0x2a60   :  { %v6943_v18 = vpop.xlane.xlu1 %6942 }
0x2a61   :  { %v6951_v29 = vmul.f32 1.442695, %v6948_v22  ;;  %v6947_v16 = vsub.f32 %v6933_v14, %v6943_v18 }
0x2a63   :  { %18314 = vpow2.f32 %v6951_v29  ;;  %v6949_v44 = vmul.f32 1.442695, %v6947_v16 }
0x2a65   :  { %18316 = vpow2.f32 %v6949_v44 }
0x2a70   :  { %v18315_v62 = vpop.eup %18314 }
0x2a71   :  { %v6956_v40 = vsel %vm238_vm2, %v18315_v62, 0.0 }
0x2a72   :  { %v18317_v51 = vpop.eup %18316  ;;  %6957 = vadd.xlane.f32.xlu1 %v6956_v40 }
0x2a73   :  { %v6953_v52 = vsel %vm238_vm2, %v18317_v51, 0.0 }
0x2a74   :  { %6954 = vadd.xlane.f32.xlu0 %v6953_v52 }
0x2a83   :  { %6963 = vrot.lane.b32.xlu1 %v19543_v41, %s21147_s19 }
0x2a87   :  { %7428 = vrot.lane.b32.xlu1 %v19541_v3, %s18607_s20 }
0x2a8a   :  { %6965 = vrot.lane.b32.xlu0 %v19541_v3, %s21147_s19 }
0x2a8b   :  { %7422 = vrot.lane.b32.xlu1 %v19543_v41, %s18608_s27 }
0x2a8e   :  { %7426 = vrot.lane.b32.xlu0 %v19543_v41, %s18607_s20 }
0x2a92   :  { %7424 = vrot.lane.b32.xlu0 %v19541_v3, %s18608_s27 }
0x2a95   :  { %v17447_v53 = vpop.f32.mrf.mxu1 }
0x2a96   :  { %v19772_v37 = vadd.f32 %v17447_v53, %v19734_v8 }
0x2a97   :  { %v6553_v56 = vpop.f32.mrf.mxu1 }
0x2a98   :  { %v6562_v10 = vadd.f32 %v6553_v56, %v6276_v26 }
0x2af0   :  { %v17492_v54 = vpop.f32.mrf.mxu0 }
0x2af1   :  { %v7224_v57 = vadd.f32 %v17492_v54, %v19578_v42 }
0x2af2   :  { %v7218_v58 = vpop.f32.mrf.mxu0 }
0x2af3   :  { %v7219_v59 = vadd.f32 %v7218_v58, %v19583_v43  ;;  %v17461_v60 = vpop.f32.mrf.mxu1  ;;  %v7230_v61 = vsel %vm238_vm2, %v7224_v57, -inf }
0x2af4   :  { %7231 = vmax.xlane.f32.xlu0 %v7230_v61 }
0x2af5   :  { %v6755_v48 = vpop.f32.mrf.mxu1  ;;  %v7227_v30 = vsel %vm238_vm2, %v7219_v59, -inf }
0x2af6   :  { %17464 = vmatprep.mubr.msk.f32.mxu1 %vm5430_vm4, %v6755_v48  ;;  %7228 = vmax.xlane.f32.xlu1 %v7227_v30  ;;  %v5423_v48 = vld [vmem:[%s21141_s3 + $0x38] sm:$0xff] }
0x2af7   :  { %17465 = vmatmul.mubr.msk.f32.vlgmr.msra.gmra.mxu1 %vm5430_vm4, %v17461_v60 }
0x2afb   :  { %v6958_v63 = vpop.xlane.xlu1 %6957 }
0x2afc   :  { %18318 = vrcp.f32 %v6958_v63 }
0x2afd   :  { %v6955_v0 = vpop.xlane.xlu0 %6954 }
0x2afe   :  { %18320 = vrcp.f32 %v6955_v0 }
0x2aff   :  { %v6964_v1 = vpop.permute.xlu1 %6963 }
0x2b01   :  { %v6966_v2 = vpop.permute.xlu0 %6965 }
0x2b02   :  { %17474 = vmatprep.subr.mxu1 %v6966_v2 }
0x2b03   :  { %17475 = vmatpush3.msra.mxu1 %v6966_v2  ;;  %v7429_v36 = vpop.permute.xlu1 %7428 }
0x2b04   :  { %17476 = vmatprep.subr.mxu1 %v6964_v1  ;;  %17505 = vmatprep.subr.msk.mxu0 %vm5430_vm4, %v7429_v36 }
0x2b05   :  { %v7427_v39 = vpop.permute.xlu0 %7426  ;;  %17477 = vmatpush3.msra.mxu1 %v6964_v1  ;;  %17506 = vmatpush3.xpose.msk.msra.mxu0 %vm5430_vm4, %v7429_v36 }
0x2b06   :  { %17507 = vmatprep.subr.msk.mxu0 %vm5430_vm4, %v7427_v39  ;;  %17481 = vmatprep.subr.msk.mxu1 %vm5831_vm5, %v7050_v4 }
0x2b07   :  { %v7423_v28 = vpop.permute.xlu1 %7422 }
0x2b08   :  { %17509 = vmatprep.mubr.msk.f32.mxu0 %vm5430_vm4, %v7423_v28  ;;  %v7622_v28 = vrot.slane %v5423_v48, 4 }
0x2b09   :  { %17508 = vmatpush3.xpose.msk.msra.mxu0 %vm5430_vm4, %v7427_v39  ;;  %v18319_v6 = vpop.eup %18318  ;;  %v7425_v8 = vpop.permute.xlu0 %7424 }
0x2b0a   :  { %v6962_v12 = vmul.f32 %v18319_v6, %v18315_v62 }
0x2b0b   :  { %v18321_v7 = vpop.eup %18320 }
0x2b0c   :  { %17510 = vmatmul.mubr.msk.f32.vlgmr.msra.gmra.mxu0 %vm5430_vm4, %v7425_v8  ;;  %v6961_v11 = vmul.f32 %v18321_v7, %v18317_v51 }
0x2b0e   :  { %17478 = vmatprep.mubr.msk.f32.mxu1 %vm238_vm2, %v6961_v11 }
0x2b0f   :  { %17479 = vmatmul.mubr.msk.f32.vlgmr.msra.gmra.mxu1 %vm238_vm2, %v6962_v12 }
0x2b10   :  { %17482 = vmatpush3.msk.msra.mxu1 %vm5831_vm5, %v7050_v4 }
0x2b7d   :  { %v7232_v34 = vpop.xlane.xlu0 %7231 }
0x2b7e   :  { %v7234_v35 = vsub.f32 %v7224_v57, %v7232_v34 }
0x2b7f   :  { %v7229_v13 = vpop.xlane.xlu1 %7228 }
0x2b80   :  { %v7237_v14 = vmul.f32 1.442695, %v7234_v35  ;;  %v7233_v15 = vsub.f32 %v7219_v59, %v7229_v13 }
0x2b82   :  { %18322 = vpow2.f32 %v7237_v14  ;;  %v7235_v47 = vmul.f32 1.442695, %v7233_v15 }
0x2b84   :  { %18324 = vpow2.f32 %v7235_v47 }
0x2b8f   :  { %v18323_v45 = vpop.eup %18322 }
0x2b90   :  { %v7242_v17 = vsel %vm238_vm2, %v18323_v45, 0.0 }
0x2b91   :  { %v18325_v19 = vpop.eup %18324  ;;  %7243 = vadd.xlane.f32.xlu1 %v7242_v17 }
0x2b92   :  { %v7239_v23 = vsel %vm238_vm2, %v18325_v19, 0.0 }
0x2b93   :  { %7240 = vadd.xlane.f32.xlu0 %v7239_v23 }
0x2ba2   :  { %7249 = vrot.lane.b32.xlu1 %v19543_v41, %s21145_s18 }
0x2ba9   :  { %7251 = vrot.lane.b32.xlu0 %v19541_v3, %s21145_s18  ;;  %s21156_s18 = smov 40  }
0x2bb7   :  { %v17466_v46 = vpop.f32.mrf.mxu1 }
0x2bb8   :  { %v6849_v55 = vadd.f32 %v17466_v46, %v19772_v37 }
0x2bb9   :  { %v6839_v27 = vpop.f32.mrf.mxu1 }
0x2bba   :  { %v19800_v31 = vadd.f32 %v6839_v27, %v6562_v10  ;;  %v19838_v10 = vld [vmem:[%s21138_s0 + $0x8] sm:$0xff] }
0x2bcc   :  { %v17511_v21 = vpop.f32.mrf.mxu0 }
0x2bcd   :  { %v7510_v32 = vadd.f32 %v17511_v21, %v19578_v42 }
0x2bce   :  { %v7504_v22 = vpop.f32.mrf.mxu0 }
0x2bcf   :  { %v7505_v18 = vadd.f32 %v7504_v22, %v19583_v43  ;;  %v17480_v29 = vpop.f32.mrf.mxu1  ;;  %v7516_v16 = vsel %vm238_vm2, %v7510_v32, -inf }
0x2bd0   :  { %7517 = vmax.xlane.f32.xlu0 %v7516_v16 }
0x2bd1   :  { %v7041_v50 = vpop.f32.mrf.mxu1  ;;  %v7513_v49 = vsel %vm238_vm2, %v7505_v18, -inf }
0x2bd2   :  { %17483 = vmatprep.mubr.msk.f32.mxu1 %vm5430_vm4, %v7041_v50  ;;  %7514 = vmax.xlane.f32.xlu1 %v7513_v49 }
0x2bd3   :  { %17484 = vmatmul.mubr.msk.f32.vlgmr.msra.gmra.mxu1 %vm5430_vm4, %v17480_v29 }
0x2c1a   :  { %v7244_v9 = vpop.xlane.xlu1 %7243 }
0x2c1b   :  { %18326 = vrcp.f32 %v7244_v9 }
0x2c1c   :  { %v7241_v44 = vpop.xlane.xlu0 %7240 }
0x2c1d   :  { %18328 = vrcp.f32 %v7241_v44 }
0x2c1e   :  { %v7250_v62 = vpop.permute.xlu1 %7249 }
0x2c20   :  { %v7252_v42 = vpop.permute.xlu0 %7251 }
0x2c21   :  { %17493 = vmatprep.subr.mxu1 %v7252_v42 }
0x2c22   :  { %17494 = vmatpush3.msra.mxu1 %v7252_v42 }
0x2c23   :  { %17495 = vmatprep.subr.mxu1 %v7250_v62 }
0x2c24   :  { %17496 = vmatpush3.msra.mxu1 %v7250_v62 }
0x2c25   :  { %17500 = vmatprep.subr.msk.mxu1 %vm5831_vm5, %v5423_v48 }
0x2c28   :  { %v18327_v43 = vpop.eup %18326 }
0x2c29   :  { %v7248_v52 = vmul.f32 %v18327_v43, %v18323_v45  ;;  %v7708_v45 = vld [vmem:[%s21139_s4 + $0x21] ss:$0 sm:$0xff] }
0x2c2a   :  { %v18329_v40 = vpop.eup %18328 }
0x2c2b   :  { %v7247_v51 = vmul.f32 %v18329_v40, %v18325_v19 }
0x2c2d   :  { %17497 = vmatprep.mubr.msk.f32.mxu1 %vm238_vm2, %v7247_v51 }
0x2c2e   :  { %17498 = vmatmul.mubr.msk.f32.vlgmr.msra.gmra.mxu1 %vm238_vm2, %v7248_v52 }
0x2c2f   :  { %17501 = vmatpush3.msk.msra.mxu1 %vm5831_vm5, %v5423_v48 }
0x2c59   :  { %v7518_v38 = vpop.xlane.xlu0 %7517 }
0x2c5a   :  { %v7520_v53 = vsub.f32 %v7510_v32, %v7518_v38  ;;  %v5169_v32 = vld [vmem:[%s21139_s4 + $0x13] ss:$0 sm:$0xff] }
0x2c5b   :  { %v7515_v37 = vpop.xlane.xlu1 %7514  ;;  %v5248_v22 = vadd.f32 %v19571_v33, %v5169_v32  ;;  %v5243_v29 = vadd.f32 %v19573_v20, %v5169_v32 }
0x2c5c   :  { %v7523_v54 = vmul.f32 1.442695, %v7520_v53  ;;  %v7519_v56 = vsub.f32 %v7505_v18, %v7515_v37 }
0x2c5d   :  { %v5252_v18 = vadd.f32 %v5248_v22, %v19504_v25  ;;  %v5251_v50 = vadd.f32 %v5243_v29, %v19502_v5 }
0x2c5e   :  { %18330 = vpow2.f32 %v7523_v54  ;;  %v7521_v57 = vmul.f32 1.442695, %v7519_v56 }
0x2c5f   :  { %v5258_v16 = vsel %vm56_vm0, %v5252_v18, 0.0  ;;  %v5255_v49 = vsel %vm56_vm0, %v5251_v50, 0.0 }
0x2c60   :  { %18332 = vpow2.f32 %v7521_v57 }
0x2c6b   :  { %v18331_v58 = vpop.eup %18330 }
0x2c6c   :  { %v7528_v59 = vsel %vm238_vm2, %v18331_v58, 0.0 }
0x2c6d   :  { %v18333_v60 = vpop.eup %18332  ;;  %7529 = vadd.xlane.f32.xlu1 %v7528_v59 }
0x2c6e   :  { %v7525_v61 = vsel %vm238_vm2, %v18333_v60, 0.0 }
0x2c6f   :  { %7526 = vadd.xlane.f32.xlu0 %v7525_v61 }
0x2c7e   :  { %7535 = vrot.lane.b32.xlu1 %v19543_v41, %s21143_s16 }
0x2c85   :  { %7537 = vrot.lane.b32.xlu0 %v19541_v3, %s21143_s16 }
0x2c93   :  { %v17485_v30 = vpop.f32.mrf.mxu1 }
0x2c94   :  { %v7135_v63 = vadd.f32 %v17485_v30, %v6849_v55 }
0x2c95   :  { %v7125_v0 = vpop.f32.mrf.mxu1 }
0x2c96   :  { %v7134_v12 = vadd.f32 %v7125_v0, %v19800_v31  ;;  %v19844_v31 = vld [vmem:[%s21138_s0] sm:$0xff] }
0x2cee   :  { %v17499_v1 = vpop.f32.mrf.mxu1 }
0x2cf0   :  { %v7327_v2 = vpop.f32.mrf.mxu1 }
0x2cf1   :  { %17502 = vmatprep.mubr.msk.f32.mxu1 %vm5430_vm4, %v7327_v2 }
0x2cf2   :  { %17503 = vmatmul.mubr.msk.f32.vlgmr.msra.gmra.mxu1 %vm5430_vm4, %v17499_v1 }
0x2cf6   :  { %v7530_v4 = vpop.xlane.xlu1 %7529 }
0x2cf7   :  { %18334 = vrcp.f32 %v7530_v4 }
0x2cf8   :  { %v7527_v36 = vpop.xlane.xlu0 %7526 }
0x2cf9   :  { %18336 = vrcp.f32 %v7527_v36  ;;  %v5253_v36 = vld [vmem:[%s21139_s4 + $0x16] ss:$0 sm:$0xff] }
0x2cfa   :  { %v7536_v41 = vpop.permute.xlu1 %7535 }
0x2cfc   :  { %v7538_v39 = vpop.permute.xlu0 %7537 }
0x2cfd   :  { %17512 = vmatprep.subr.mxu1 %v7538_v39 }
0x2cfe   :  { %17513 = vmatpush3.msra.mxu1 %v7538_v39 }
0x2cff   :  { %17514 = vmatprep.subr.mxu1 %v7536_v41 }
0x2d00   :  { %17515 = vmatpush3.msra.mxu1 %v7536_v41 }
0x2d01   :  { %17519 = vmatprep.subr.msk.mxu1 %vm5831_vm5, %v7622_v28 }
0x2d04   :  { %v18335_v3 = vpop.eup %18334 }
0x2d05   :  { %v7534_v8 = vmul.f32 %v18335_v3, %v18331_v58 }
0x2d06   :  { %v18337_v6 = vpop.eup %18336 }
0x2d07   :  { %v7533_v7 = vmul.f32 %v18337_v6, %v18333_v60 }
0x2d09   :  { %17516 = vmatprep.mubr.msk.f32.mxu1 %vm238_vm2, %v7533_v7 }
0x2d0a   :  { %17517 = vmatmul.mubr.msk.f32.vlgmr.msra.gmra.mxu1 %vm238_vm2, %v7534_v8 }
0x2d0b   :  { %17520 = vmatpush3.msk.msra.mxu1 %vm5831_vm5, %v7622_v28  ;;  %v5254_v28 = vld [vmem:[%s21139_s4 + $0x17] ss:$0 sm:$0xff] }
0x2db2   :  { %v17504_v11 = vpop.f32.mrf.mxu1 }
0x2db3   :  { %v7421_v34 = vadd.f32 %v17504_v11, %v7135_v63 }
0x2db4   :  { %v7411_v35 = vpop.f32.mrf.mxu1 }
0x2db5   :  { %v7420_v13 = vadd.f32 %v7411_v35, %v7134_v12 }
0x2dca   :  { %v17518_v14 = vpop.f32.mrf.mxu1 }
0x2dcc   :  { %v7613_v15 = vpop.f32.mrf.mxu1 }
0x2dcd   :  { %17521 = vmatprep.mubr.msk.f32.mxu1 %vm5430_vm4, %v7613_v15 }
0x2dce   :  { %17522 = vmatmul.mubr.msk.f32.vlgmr.msra.gmra.mxu1 %vm5430_vm4, %v17518_v14 }
0x2e8e   :  { %v17523_v47 = vpop.f32.mrf.mxu1 }
0x2e8f   :  { %v7707_v17 = vadd.f32 %v17523_v47, %v7421_v34 }
0x2e90   :  { %v7697_v19 = vpop.f32.mrf.mxu1 }
0x2e91   :  { %v7710_v23 = vadd.f32 %v7708_v45, %v7707_v17  ;;  %v7706_v24 = vadd.f32 %v7697_v19, %v7420_v13 }
0x2e93   :  { %v7709_v26 = vadd.f32 %v7708_v45, %v7706_v24  ;;  %7715 = vrot.lane.b32.xlu0 %v7710_v23, %s18583_s6 }
0x2e95   :  { %7713 = vrot.lane.b32.xlu1 %v7709_v26, %s18583_s6 }
0x2f05   :  { %v7716_v46 = vpop.permute.xlu0 %7715 }
0x2f06   :  { %v7720_v55 = vadd.f32 %v19838_v10, %v7716_v46 }
0x2f07   :  { %v7714_v27 = vpop.permute.xlu1 %7713 }
0x2f08   :  { %v7719_v21 = vadd.f32 %v19844_v31, %v7714_v27  ;;  %7727 = vrot.lane.b32.xlu0 %v7720_v55, %s18583_s6 }
0x2f0a   :  { %7725 = vrot.lane.b32.xlu1 %v7719_v21, %s18583_s6 }
0x2f27   :  { %5259 = vadd.xlane.f32.xlu0 %v5258_v16 }
0x2f2e   :  { %5256 = vadd.xlane.f32.xlu1 %v5255_v49 }
0x2f7a   :  { %v7728_v9 = vpop.permute.xlu0 %7727 }
0x2f7b   :  { %v7734_v44 = vsel %vm5340_vm3, %v7728_v9, 0.0 }
0x2f7c   :  { %7735 = vadd.xlane.f32.xlu1 %v7734_v44  ;;  %v7726_v42 = vpop.permute.xlu1 %7725  ;;  %v7721_v44 = vld [vmem:[%s21139_s4 + $0x27] ss:$0 sm:$0xff] }
0x2f7d   :  { %v7731_v62 = vsel %vm5340_vm3, %v7726_v42, 0.0  ;;  %v7871_v42 = vld [vmem:[%s21141_s3 + $0x78] sm:$0xff] }
0x2f7e   :  { %7732 = vadd.xlane.f32.xlu0 %v7731_v62  ;;  %v7870_v62 = vld [vmem:[%s21141_s3 + $0x70] sm:$0xff]  ;;  %17535 = vmatprep.subr.mxu1 %v7871_v42 }
0x2f7f   :  { %17536 = vmatpush3.msra.mxu1 %v7871_v42 }
0x2f80   :  { %17537 = vmatprep.subr.mxu1 %v7870_v62 }
0x2f81   :  { %17538 = vmatpush3.msra.mxu1 %v7870_v62 }
0x2fb0   :  { %v5260_v33 = vpop.xlane.xlu0 %5259 }
0x2fb1   :  { %v5262_v25 = vmul.f32 0.015625, %v5260_v33  ;;  %v7869_v33 = vld [vmem:[%s21141_s3 + $0x68] sm:$0xff] }
0x2fb2   :  { %17539 = vmatprep.subr.mxu1 %v7869_v33 }
0x2fb3   :  { %v5264_v43 = vsub.f32 %v5252_v18, %v5262_v25  ;;  %17540 = vmatpush3.msra.mxu1 %v7869_v33 }
0x2fb5   :  { %v5266_v20 = vmul.f32 %v5264_v43, %v5264_v43 }
0x2fb7   :  { %v5257_v40 = vpop.xlane.xlu1 %5256  ;;  %v5270_v51 = vsel %vm56_vm0, %v5266_v20, 0.0  ;;  %v7868_v20 = vld [vmem:[%s21141_s3 + $0x60] sm:$0xff] }
0x2fb8   :  { %v5261_v52 = vmul.f32 0.015625, %v5257_v40  ;;  %5271 = vadd.xlane.f32.xlu1 %v5270_v51  ;;  %17541 = vmatprep.subr.mxu1 %v7868_v20 }
0x2fb9   :  { %17542 = vmatpush3.msra.mxu1 %v7868_v20 }
0x2fba   :  { %v5263_v5 = vsub.f32 %v5251_v50, %v5261_v52  ;;  %v7722_v50 = vld [vmem:[%s21139_s4 + $0x30] ss:$0 sm:$0xff] }
0x2fbc   :  { %v5265_v38 = vmul.f32 %v5263_v5, %v5263_v5 }
0x2fbe   :  { %v5267_v53 = vsel %vm56_vm0, %v5265_v38, 0.0 }
0x2fbf   :  { %5268 = vadd.xlane.f32.xlu0 %v5267_v53  ;;  %v7780_v53 = vld [vmem:[%s21141_s3 + $0x50] sm:$0xff] }
0x3005   :  { %v7736_v37 = vpop.xlane.xlu1 %7735 }
0x3006   :  { %v7739_v54 = vmul.f32 0.03125, %v7736_v37  ;;  %v7779_v37 = vld [vmem:[%s21141_s3 + $0x48] sm:$0xff] }
0x3007   :  { %v7733_v56 = vpop.xlane.xlu0 %7732 }
0x3008   :  { %v19862_v57 = vsub.f32 %v7720_v55, %v7739_v54  ;;  %v7738_v58 = vmul.f32 0.03125, %v7733_v56 }
0x300a   :  { %v7743_v59 = vmul.f32 %v19862_v57, %v19862_v57  ;;  %v19866_v60 = vsub.f32 %v7719_v21, %v7738_v58 }
0x300c   :  { %v7742_v61 = vmul.f32 %v19866_v60, %v19866_v60  ;;  %7748 = vrot.lane.b32.xlu1 %v7743_v59, %s18583_s6 }
0x300e   :  { %7746 = vrot.lane.b32.xlu0 %v7742_v61, %s18583_s6 }
0x3041   :  { %v5272_v48 = vpop.xlane.xlu1 %5271 }
0x3042   :  { %v5274_v30 = vmul.f32 0.015625, %v5272_v48 }
0x3044   :  { %v5276_v63 = vadd.f32 1e-05, %v5274_v30 }
0x3046   :  { %18338 = vrsqrt.f32 %v5276_v63 }
0x3048   :  { %v5269_v0 = vpop.xlane.xlu0 %5268 }
0x3049   :  { %v5273_v1 = vmul.f32 0.015625, %v5269_v0 }
0x304b   :  { %v5275_v2 = vadd.f32 1e-05, %v5273_v1 }
0x304d   :  { %18340 = vrsqrt.f32 %v5275_v2 }
0x3053   :  { %v18339_v4 = vpop.eup %18338 }
0x3054   :  { %v5280_v39 = vmul.f32 %v18339_v4, %v5264_v43 }
0x3056   :  { %v5282_v41 = vmul.f32 %v5280_v39, %v5253_v36 }
0x3058   :  { %v19878_v3 = vadd.f32 %v5282_v41, %v5254_v28 }
0x305a   :  { %v18341_v6 = vpop.eup %18340  ;;  %v5288_v7 = vand.u32 2147483647, %v19878_v3  ;;  %v5286_v26 = vmax.f32 %v19878_v3, 0.0 }
0x305b   :  { %v5279_v8 = vmul.f32 %v18341_v6, %v5263_v5 }
0x305c   :  { %v5290_v11 = vsub.f32 0.0, %v5288_v7  ;;  %v7872_v7 = vld [vmem:[%s21139_s4 + $0x23] ss:$0 sm:$0xff] }
0x305d   :  { %v5281_v12 = vmul.f32 %v5279_v8, %v5253_v36 }
0x305e   :  { %v5293_v34 = vmul.f32 1.442695, %v5290_v11 }
0x305f   :  { %v19881_v35 = vadd.f32 %v5281_v12, %v5254_v28 }
0x3060   :  { %18342 = vpow2.f32 %v5293_v34 }
0x3061   :  { %v5287_v13 = vand.u32 2147483647, %v19881_v35  ;;  %v5285_v18 = vmax.f32 %v19881_v35, 0.0 }
0x3063   :  { %v5289_v14 = vsub.f32 0.0, %v5287_v13 }
0x3065   :  { %v5291_v15 = vmul.f32 1.442695, %v5289_v14  ;;  %v7782_v14 = vld [vmem:[%s21139_s4 + $0x22] ss:$0 sm:$0xff] }
0x3067   :  { %18344 = vpow2.f32 %v5291_v15 }
0x306d   :  { %v18343_v47 = vpop.eup %18342 }
0x306e   :  { %v5296_v45 = vadd.f32 1.0, %v18343_v47 }
0x3070   :  { %18346 = vlog2.f32 %v5296_v45 }
0x3074   :  { %v18345_v17 = vpop.eup %18344 }
0x3075   :  { %v5295_v19 = vadd.f32 1.0, %v18345_v17  ;;  %v19983_v17 = vld [vmem:[%s21140_s1 + $0x28] sm:$0xff] }
0x3077   :  { %18348 = vlog2.f32 %v5295_v19 }
0x307d   :  { %v18347_v23 = vpop.eup %18346 }
0x307e   :  { %v7749_v24 = vpop.permute.xlu1 %7748  ;;  %v5300_v46 = vmul.f32 0.6931472, %v18347_v23  ;;  %v19988_v23 = vld [vmem:[%s21140_s1 + $0x20] sm:$0xff] }
0x307f   :  { %v7755_v55 = vsel %vm5340_vm3, %v7749_v24, 0.0 }
0x3080   :  { %7756 = vadd.xlane.f32.xlu0 %v7755_v55  ;;  %v5302_v27 = vadd.f32 %v5300_v46, %v5286_v26  ;;  %v7747_v49 = vpop.permute.xlu0 %7746 }
0x3081   :  { %v7752_v9 = vsel %vm5340_vm3, %v7747_v49, 0.0 }
0x3082   :  { %v19886_v21 = vadd.f32 0.0001, %v5302_v27 }
0x3084   :  { %5309 = vrot.lane.b32.xlu1 %v19886_v21, %s18583_s6  ;;  %v18349_v32 = vpop.eup %18348 }
0x3085   :  { %v5298_v22 = vmul.f32 0.6931472, %v18349_v32 }
0x3087   :  { %v5301_v29 = vadd.f32 %v5298_v22, %v5285_v18 }
0x3089   :  { %v19891_v16 = vadd.f32 0.0001, %v5301_v29 }
0x3096   :  { %5307 = vrot.lane.b32.xlu0 %v19891_v16, %s18583_s6 }
0x309a   :  { %7773 = vrot.lane.b32.xlu0 %v7722_v50, %s18583_s6 }
0x30a8   :  { %7753 = vadd.xlane.f32.xlu1 %v7752_v9 }
0x30b9   :  { %7767 = vrot.lane.b32.xlu1 %v7721_v44, %s18583_s6 }
0x30f6   :  { %v5310_v25 = vpop.permute.xlu1 %5309 }
0x30f7   :  { %v5314_v43 = vmul.f32 %v19838_v10, %v5310_v25  ;;  %v7781_v10 = vld [vmem:[%s21141_s3 + $0x58] sm:$0xff] }
0x30f8   :  { %17524 = vmatprep.subr.mxu0 %v7781_v10 }
0x30f9   :  { %5319 = vrot.lane.b32.xlu0 %v5314_v43, %s18590_s21  ;;  %17525 = vmatpush3.msra.mxu0 %v7781_v10 }
0x30fa   :  { %17526 = vmatprep.subr.mxu0 %v7780_v53 }
0x30fb   :  { %17527 = vmatpush3.msra.mxu0 %v7780_v53 }
0x30fc   :  { %17528 = vmatprep.subr.mxu0 %v7779_v37 }
0x30fd   :  { %17529 = vmatpush3.msra.mxu0 %v7779_v37 }
0x3109   :  { %v7757_v40 = vpop.xlane.xlu0 %7756 }
0x310a   :  { %v7759_v5 = vmul.f32 0.03125, %v7757_v40 }
0x310c   :  { %v7761_v38 = vadd.f32 1e-05, %v7759_v5 }
0x310d   :  { %v5308_v51 = vpop.permute.xlu0 %5307 }
0x310e   :  { %v5313_v52 = vmul.f32 %v19844_v31, %v5308_v51  ;;  %18350 = vrsqrt.f32 %v7761_v38  ;;  %v7778_v31 = vld [vmem:[%s21141_s3 + $0x40] sm:$0xff] }
0x310f   :  { %17530 = vmatprep.subr.mxu0 %v7778_v31 }
0x3110   :  { %5317 = vrot.lane.b32.xlu1 %v5313_v52, %s18590_s21  ;;  %17531 = vmatpush3.msra.mxu0 %v7778_v31  ;;  %v7954_v31 = vld [vmem:[%s21141_s3 + $0x80] sm:$0xff]  ;;  %s21153_s21 = smov 52  }
0x3111   :  { %v7774_v30 = vpop.permute.xlu0 %7773 }
0x311b   :  { %v18351_v54 = vpop.eup %18350 }
0x311c   :  { %v7765_v61 = vmul.f32 %v18351_v54, %v19862_v57 }
0x3131   :  { %v7754_v56 = vpop.xlane.xlu1 %7753 }
0x3132   :  { %v7758_v58 = vmul.f32 0.03125, %v7754_v56 }
0x3134   :  { %v7760_v59 = vadd.f32 1e-05, %v7758_v58 }
0x3135   :  { %v7768_v48 = vpop.permute.xlu1 %7767 }
0x3136   :  { %18352 = vrsqrt.f32 %v7760_v59  ;;  %v7771_v63 = vmul.f32 %v7768_v48, %v7765_v61 }
0x3138   :  { %v19933_v0 = vadd.f32 %v7774_v30, %v7771_v63 }
0x313a   :  { %7787 = vrot.lane.b32.xlu0 %v19933_v0, %s18583_s6 }
0x3143   :  { %v18353_v1 = vpop.eup %18352 }
0x3144   :  { %v7764_v2 = vmul.f32 %v18353_v1, %v19866_v60 }
0x3146   :  { %v7770_v4 = vmul.f32 %v7768_v48, %v7764_v2 }
0x3148   :  { %v19938_v36 = vadd.f32 %v7774_v30, %v7770_v4 }
0x314a   :  { %7785 = vrot.lane.b32.xlu1 %v19938_v36, %s18583_s6 }
0x316b   :  { %v5320_v57 = vpop.permute.xlu0 %5319 }
0x316c   :  { %v19946_v41 = vadd.f32 %v5320_v57, %v19878_v3 }
0x3182   :  { %v5318_v39 = vpop.permute.xlu1 %5317 }
0x3183   :  { %v19943_v28 = vadd.f32 %v5318_v39, %v19881_v35 }
0x3185   :  { %17543 = vmatprep.mubr.msk.f32.mxu1 %vm5340_vm3, %v19943_v28 }
0x3186   :  { %17544 = vmatmul.mubr.msk.f32.vlgmr.msra.gmra.mxu1 %vm5340_vm3, %v19946_v41 }
0x31ac   :  { %v7788_v6 = vpop.permute.xlu0 %7787 }
0x31bc   :  { %v7786_v60 = vpop.permute.xlu1 %7785 }
0x31bd   :  { %17532 = vmatprep.mubr.msk.f32.mxu0 %vm5340_vm3, %v7786_v60 }
0x31be   :  { %17533 = vmatmul.mubr.msk.f32.vlgmr.msra.gmra.mxu0 %vm5340_vm3, %v7788_v6 }
0x3246   :  { %v17545_v8 = vpop.f32.mrf.mxu1 }
0x3247   :  { %v19957_v11 = vadd.f32 %v17545_v8, %v7872_v7 }
0x3248   :  { %v7945_v12 = vpop.f32.mrf.mxu1 }
0x3249   :  { %v19959_v34 = vadd.f32 %v7945_v12, %v7872_v7  ;;  %17546 = vmatprep.subr.msk.mxu0 %vm5430_vm4, %v19957_v11 }
0x324a   :  { %17547 = vmatpush3.xpose.msk.msra.mxu0 %vm5430_vm4, %v19957_v11 }
0x324b   :  { %17548 = vmatprep.subr.msk.mxu0 %vm5430_vm4, %v19959_v34 }
0x324e   :  { %17549 = vmatpush3.xpose.msk.msra.mxu0 %vm5430_vm4, %v19959_v34 }
0x327e   :  { %v17534_v13 = vpop.f32.mrf.mxu0 }
0x327f   :  { %v19974_v45 = vadd.f32 %v17534_v13, %v7782_v14 }
0x3280   :  { %v7859_v15 = vpop.f32.mrf.mxu0 }
0x3281   :  { %v19972_v47 = vadd.f32 %v7859_v15, %v7782_v14 }
0x3283   :  { %17550 = vmatprep.mubr.msk.f32.mxu0 %vm5430_vm4, %v19972_v47 }
0x3284   :  { %17551 = vmatmul.mubr.msk.f32.vlgmr.msra.gmra.mxu0 %vm5430_vm4, %v19974_v45 }
0x3344   :  { %v17552_v19 = vpop.f32.mrf.mxu0 }
0x3345   :  { %v8042_v24 = vadd.f32 %v17552_v19, %v19983_v17  ;;  %v8355_v19 = vrot.slane %v7954_v31, 4 }
0x3346   :  { %v8036_v26 = vpop.f32.mrf.mxu0 }
0x3347   :  { %v8037_v46 = vadd.f32 %v8036_v26, %v19988_v23  ;;  %v8048_v55 = vsel %vm238_vm2, %v8042_v24, -inf }
0x3348   :  { %8049 = vmax.xlane.f32.xlu0 %v8048_v55 }
0x3349   :  { %v8045_v27 = vsel %vm238_vm2, %v8037_v46, -inf }
0x334a   :  { %8046 = vmax.xlane.f32.xlu1 %v8045_v27 }
0x33d1   :  { %v8050_v32 = vpop.xlane.xlu0 %8049 }
0x33d2   :  { %v8052_v22 = vsub.f32 %v8042_v24, %v8050_v32 }
0x33d3   :  { %v8047_v18 = vpop.xlane.xlu1 %8046 }
0x33d4   :  { %v8055_v29 = vmul.f32 1.442695, %v8052_v22  ;;  %v8051_v50 = vsub.f32 %v8037_v46, %v8047_v18 }
0x33d6   :  { %18354 = vpow2.f32 %v8055_v29  ;;  %v8053_v49 = vmul.f32 1.442695, %v8051_v50 }
0x33d8   :  { %18356 = vpow2.f32 %v8053_v49 }
0x33e3   :  { %v18355_v9 = vpop.eup %18354 }
0x33e4   :  { %v8060_v44 = vsel %vm238_vm2, %v18355_v9, 0.0 }
0x33e5   :  { %v18357_v42 = vpop.eup %18356  ;;  %8061 = vadd.xlane.f32.xlu1 %v8060_v44 }
0x33e6   :  { %v8057_v62 = vsel %vm238_vm2, %v18357_v42, 0.0 }
0x33e7   :  { %8058 = vadd.xlane.f32.xlu0 %v8057_v62 }
0x33f6   :  { %8067 = vrot.lane.b32.xlu1 %v19959_v34, %s18591_s22 }
0x33fa   :  { %8160 = vrot.lane.b32.xlu1 %v19957_v11, %s18599_s8 }
0x33fd   :  { %8069 = vrot.lane.b32.xlu0 %v19957_v11, %s18591_s22 }
0x33fe   :  { %8154 = vrot.lane.b32.xlu1 %v19972_v47, %s18599_s8 }
0x3401   :  { %8158 = vrot.lane.b32.xlu0 %v19959_v34, %s18599_s8 }
0x3405   :  { %8156 = vrot.lane.b32.xlu0 %v19974_v45, %s18599_s8 }
0x346e   :  { %v8062_v33 = vpop.xlane.xlu1 %8061 }
0x346f   :  { %18358 = vrcp.f32 %v8062_v33 }
0x3470   :  { %v8059_v25 = vpop.xlane.xlu0 %8058 }
0x3471   :  { %18360 = vrcp.f32 %v8059_v25 }
0x3472   :  { %v8068_v43 = vpop.permute.xlu1 %8067 }
0x3474   :  { %v8070_v20 = vpop.permute.xlu0 %8069 }
0x3475   :  { %17553 = vmatprep.subr.mxu1 %v8070_v20 }
0x3476   :  { %17554 = vmatpush3.msra.mxu1 %v8070_v20  ;;  %v8161_v40 = vpop.permute.xlu1 %8160 }
0x3477   :  { %17555 = vmatprep.subr.mxu1 %v8068_v43 }
0x3478   :  { %17556 = vmatpush3.msra.mxu1 %v8068_v43  ;;  %v8159_v53 = vpop.permute.xlu0 %8158 }
0x3479   :  { %17560 = vmatprep.subr.msk.mxu1 %vm5430_vm4, %v8161_v40 }
0x347a   :  { %v8155_v10 = vpop.permute.xlu1 %8154 }
0x347c   :  { %v18359_v51 = vpop.eup %18358  ;;  %v8157_v37 = vpop.permute.xlu0 %8156 }
0x347d   :  { %v8066_v38 = vmul.f32 %v18359_v51, %v18355_v9 }
0x347e   :  { %v18361_v52 = vpop.eup %18360 }
0x347f   :  { %v8065_v5 = vmul.f32 %v18361_v52, %v18357_v42 }
0x3481   :  { %17557 = vmatprep.mubr.msk.f32.mxu1 %vm238_vm2, %v8065_v5 }
0x3482   :  { %17558 = vmatmul.mubr.msk.f32.vlgmr.msra.gmra.mxu1 %vm238_vm2, %v8066_v38 }
0x3483   :  { %17561 = vmatpush3.xpose.msk.msra.mxu1 %vm5430_vm4, %v8161_v40  ;;  %17564 = vmatprep.mubr.msk.f32.mxu1 %vm5430_vm4, %v8155_v10 }
0x3484   :  { %17562 = vmatprep.subr.msk.mxu1 %vm5430_vm4, %v8159_v53 }
0x3487   :  { %17563 = vmatpush3.xpose.msk.msra.mxu1 %vm5430_vm4, %v8159_v53 }
0x3488   :  { %17579 = vmatprep.subr.msk.mxu1 %vm5831_vm5, %v7954_v31 }
0x348a   :  { %17565 = vmatmul.mubr.msk.f32.vlgmr.msra.gmra.mxu1 %vm5430_vm4, %v8157_v37 }
0x348b   :  { %17580 = vmatpush3.msk.msra.mxu1 %vm5831_vm5, %v7954_v31 }
0x3542   :  { %v17559_v54 = vpop.f32.mrf.mxu1 }
0x3544   :  { %v8145_v56 = vpop.f32.mrf.mxu1 }
0x3545   :  { %17581 = vmatprep.mubr.msk.f32.mxu1 %vm5430_vm4, %v8145_v56 }
0x3546   :  { %17582 = vmatmul.mubr.msk.f32.vlgmr.msra.gmra.mxu1 %vm5430_vm4, %v17559_v54 }
0x354a   :  { %v17566_v58 = vpop.f32.mrf.mxu1 }
0x354b   :  { %v8242_v59 = vadd.f32 %v17566_v58, %v19983_v17 }
0x354c   :  { %v8236_v61 = vpop.f32.mrf.mxu1 }
0x354d   :  { %v8237_v48 = vadd.f32 %v8236_v61, %v19988_v23  ;;  %v8248_v30 = vsel %vm238_vm2, %v8242_v59, -inf }
0x354e   :  { %8249 = vmax.xlane.f32.xlu0 %v8248_v30 }
0x354f   :  { %v8245_v63 = vsel %vm238_vm2, %v8237_v48, -inf }
0x3550   :  { %8246 = vmax.xlane.f32.xlu1 %v8245_v63 }
0x35d7   :  { %v8250_v1 = vpop.xlane.xlu0 %8249 }
0x35d8   :  { %v8252_v2 = vsub.f32 %v8242_v59, %v8250_v1 }
0x35d9   :  { %v8247_v4 = vpop.xlane.xlu1 %8246 }
0x35da   :  { %v8255_v57 = vmul.f32 1.442695, %v8252_v2  ;;  %v8251_v39 = vsub.f32 %v8237_v48, %v8247_v4 }
0x35dc   :  { %18362 = vpow2.f32 %v8255_v57  ;;  %v8253_v60 = vmul.f32 1.442695, %v8251_v39 }
0x35de   :  { %18364 = vpow2.f32 %v8253_v60 }
0x35e9   :  { %v18363_v6 = vpop.eup %18362 }
0x35ea   :  { %v8260_v7 = vsel %vm238_vm2, %v18363_v6, 0.0 }
0x35eb   :  { %v18365_v8 = vpop.eup %18364  ;;  %8261 = vadd.xlane.f32.xlu1 %v8260_v7 }
0x35ec   :  { %v8257_v12 = vsel %vm238_vm2, %v18365_v8, 0.0 }
0x35ed   :  { %8258 = vadd.xlane.f32.xlu0 %v8257_v12 }
0x35fc   :  { %8267 = vrot.lane.b32.xlu1 %v19959_v34, %s18598_s2 }
0x3600   :  { %8528 = vrot.lane.b32.xlu1 %v19957_v11, %s18585_s12 }
0x3603   :  { %8269 = vrot.lane.b32.xlu0 %v19957_v11, %s18598_s2 }
0x3604   :  { %8522 = vrot.lane.b32.xlu1 %v19972_v47, %s18585_s12 }
0x3607   :  { %8526 = vrot.lane.b32.xlu0 %v19959_v34, %s18585_s12 }
0x3608   :  { %8814 = vrot.lane.b32.xlu1 %v19957_v11, %s18602_s24 }
0x360b   :  { %8524 = vrot.lane.b32.xlu0 %v19974_v45, %s18585_s12 }
0x360c   :  { %8808 = vrot.lane.b32.xlu1 %v19972_v47, %s18602_s24 }
0x360f   :  { %8812 = vrot.lane.b32.xlu0 %v19959_v34, %s18602_s24 }
0x3613   :  { %8810 = vrot.lane.b32.xlu0 %v19974_v45, %s18602_s24 }
0x3674   :  { %v8262_v13 = vpop.xlane.xlu1 %8261 }
0x3675   :  { %18366 = vrcp.f32 %v8262_v13 }
0x3676   :  { %v8259_v14 = vpop.xlane.xlu0 %8258 }
0x3677   :  { %18368 = vrcp.f32 %v8259_v14 }
0x3678   :  { %v8268_v24 = vpop.permute.xlu1 %8267 }
0x367a   :  { %v8270_v15 = vpop.permute.xlu0 %8269 }
0x367b   :  { %17567 = vmatprep.subr.mxu0 %v8270_v15 }
0x367c   :  { %17568 = vmatpush3.msra.mxu0 %v8270_v15  ;;  %v8529_v32 = vpop.permute.xlu1 %8528 }
0x367d   :  { %17569 = vmatprep.subr.mxu0 %v8268_v24 }
0x367e   :  { %17570 = vmatpush3.msra.mxu0 %v8268_v24  ;;  %v8527_v29 = vpop.permute.xlu0 %8526 }
0x367f   :  { %17574 = vmatprep.subr.msk.mxu0 %vm5831_vm5, %v8355_v19 }
0x3680   :  { %v8523_v22 = vpop.permute.xlu1 %8522 }
0x3682   :  { %v18367_v26 = vpop.eup %18366  ;;  %v8525_v9 = vpop.permute.xlu0 %8524 }
0x3683   :  { %v8266_v27 = vmul.f32 %v18367_v26, %v18363_v6 }
0x3684   :  { %v18369_v46 = vpop.eup %18368  ;;  %v8815_v49 = vpop.permute.xlu1 %8814 }
0x3685   :  { %v8265_v55 = vmul.f32 %v18369_v46, %v18365_v8 }
0x3686   :  { %v8813_v42 = vpop.permute.xlu0 %8812 }
0x3687   :  { %17571 = vmatprep.mubr.msk.f32.mxu0 %vm238_vm2, %v8265_v55 }
0x3688   :  { %17572 = vmatmul.mubr.msk.f32.vlgmr.msra.gmra.mxu0 %vm238_vm2, %v8266_v27  ;;  %v8809_v44 = vpop.permute.xlu1 %8808 }
0x3689   :  { %17575 = vmatpush3.msk.msra.mxu0 %vm5831_vm5, %v8355_v19 }
0x368a   :  { %17584 = vmatprep.subr.msk.mxu0 %vm5430_vm4, %v8529_v32  ;;  %v8811_v62 = vpop.permute.xlu0 %8810 }
0x3748   :  { %v17573_v18 = vpop.f32.mrf.mxu0 }
0x374a   :  { %v8345_v50 = vpop.f32.mrf.mxu0 }
0x374b   :  { %17576 = vmatprep.mubr.msk.f32.mxu0 %vm5430_vm4, %v8345_v50 }
0x374c   :  { %17577 = vmatmul.mubr.msk.f32.vlgmr.msra.gmra.mxu0 %vm5430_vm4, %v17573_v18 }
0x374d   :  { %17585 = vmatpush3.xpose.msk.msra.mxu0 %vm5430_vm4, %v8529_v32  ;;  %17588 = vmatprep.mubr.msk.f32.mxu0 %vm5430_vm4, %v8523_v22 }
0x374e   :  { %17586 = vmatprep.subr.msk.mxu0 %vm5430_vm4, %v8527_v29 }
0x3751   :  { %17587 = vmatpush3.xpose.msk.msra.mxu0 %vm5430_vm4, %v8527_v29 }
0x3752   :  { %17603 = vmatprep.subr.msk.mxu0 %vm5430_vm4, %v8815_v49 }
0x3754   :  { %17589 = vmatmul.mubr.msk.f32.vlgmr.msra.gmra.mxu0 %vm5430_vm4, %v8525_v9  ;;  %v7955_v9 = vld [vmem:[%s21141_s3 + $0x88] sm:$0xff] }
0x3755   :  { %17604 = vmatpush3.xpose.msk.msra.mxu0 %vm5430_vm4, %v8815_v49  ;;  %17607 = vmatprep.mubr.msk.f32.mxu0 %vm5430_vm4, %v8809_v44  ;;  %v20120_v44 = vpop.f32.mrf.mxu1 }
0x3756   :  { %17605 = vmatprep.subr.msk.mxu0 %vm5430_vm4, %v8813_v42 }
0x3759   :  { %17606 = vmatpush3.xpose.msk.msra.mxu0 %vm5430_vm4, %v8813_v42 }
0x375c   :  { %17608 = vmatmul.mubr.msk.f32.vlgmr.msra.gmra.mxu0 %vm5430_vm4, %v8811_v62  ;;  %v20122_v62 = vpop.f32.mrf.mxu1 }
0x380c   :  { %v20067_v33 = vpop.f32.mrf.mxu0 }
0x380e   :  { %v20069_v25 = vpop.f32.mrf.mxu0 }
0x3814   :  { %v17590_v43 = vpop.f32.mrf.mxu0 }
0x3815   :  { %v8610_v20 = vadd.f32 %v17590_v43, %v19983_v17 }
0x3816   :  { %v8604_v40 = vpop.f32.mrf.mxu0 }
0x3817   :  { %v8605_v51 = vadd.f32 %v8604_v40, %v19988_v23  ;;  %v8616_v52 = vsel %vm238_vm2, %v8610_v20, -inf }
0x3818   :  { %8617 = vmax.xlane.f32.xlu0 %v8616_v52 }
0x3819   :  { %v8613_v5 = vsel %vm238_vm2, %v8605_v51, -inf }
0x381a   :  { %8614 = vmax.xlane.f32.xlu1 %v8613_v5 }
0x381c   :  { %v17609_v48 = vpop.f32.mrf.mxu0 }
0x381d   :  { %v8896_v1 = vadd.f32 %v17609_v48, %v19983_v17 }
0x381e   :  { %v8890_v30 = vpop.f32.mrf.mxu0 }
0x381f   :  { %v8891_v63 = vadd.f32 %v8890_v30, %v19988_v23  ;;  %v8902_v4 = vsel %vm238_vm2, %v8896_v1, -inf }
0x3821   :  { %v8899_v2 = vsel %vm238_vm2, %v8891_v63, -inf }
0x38a1   :  { %v8618_v38 = vpop.xlane.xlu0 %8617 }
0x38a2   :  { %v8620_v10 = vsub.f32 %v8610_v20, %v8618_v38 }
0x38a3   :  { %v8615_v53 = vpop.xlane.xlu1 %8614 }
0x38a4   :  { %v8623_v37 = vmul.f32 1.442695, %v8620_v10  ;;  %v8619_v31 = vsub.f32 %v8605_v51, %v8615_v53 }
0x38a6   :  { %18370 = vpow2.f32 %v8623_v37  ;;  %v8621_v54 = vmul.f32 1.442695, %v8619_v31  ;;  %v9008_v31 = vrot.slane %v7955_v9, 4 }
0x38a8   :  { %18372 = vpow2.f32 %v8621_v54 }
0x38b3   :  { %v18371_v56 = vpop.eup %18370 }
0x38b4   :  { %v8628_v58 = vsel %vm238_vm2, %v18371_v56, 0.0 }
0x38b5   :  { %v18373_v59 = vpop.eup %18372  ;;  %8629 = vadd.xlane.f32.xlu1 %v8628_v58 }
0x38b6   :  { %v8625_v61 = vsel %vm238_vm2, %v18373_v59, 0.0 }
0x38b7   :  { %8626 = vadd.xlane.f32.xlu0 %v8625_v61 }
0x38c6   :  { %8635 = vrot.lane.b32.xlu1 %v19959_v34, %s18593_s26 }
0x38ca   :  { %9100 = vrot.lane.b32.xlu1 %v19957_v11, %s18588_s17 }
0x38cd   :  { %8637 = vrot.lane.b32.xlu0 %v19957_v11, %s18593_s26 }
0x38ce   :  { %9094 = vrot.lane.b32.xlu1 %v19972_v47, %s18588_s17 }
0x38d1   :  { %9098 = vrot.lane.b32.xlu0 %v19959_v34, %s18588_s17 }
0x38d5   :  { %9096 = vrot.lane.b32.xlu0 %v19974_v45, %s18588_s17 }
0x38f2   :  { %8900 = vmax.xlane.f32.xlu1 %v8899_v2 }
0x38f4   :  { %8903 = vmax.xlane.f32.xlu0 %v8902_v4 }
0x393e   :  { %v8630_v57 = vpop.xlane.xlu1 %8629 }
0x393f   :  { %18374 = vrcp.f32 %v8630_v57 }
0x3940   :  { %v8627_v39 = vpop.xlane.xlu0 %8626 }
0x3941   :  { %18376 = vrcp.f32 %v8627_v39 }
0x3942   :  { %v8636_v60 = vpop.permute.xlu1 %8635 }
0x3944   :  { %v8638_v6 = vpop.permute.xlu0 %8637 }
0x3945   :  { %17591 = vmatprep.subr.mxu1 %v8638_v6 }
0x3946   :  { %17592 = vmatpush3.msra.mxu1 %v8638_v6  ;;  %v9101_v7 = vpop.permute.xlu1 %9100 }
0x3947   :  { %17593 = vmatprep.subr.mxu1 %v8636_v60  ;;  %17622 = vmatprep.subr.msk.mxu0 %vm5430_vm4, %v9101_v7 }
0x3948   :  { %v9099_v8 = vpop.permute.xlu0 %9098  ;;  %17594 = vmatpush3.msra.mxu1 %v8636_v60  ;;  %17623 = vmatpush3.xpose.msk.msra.mxu0 %vm5430_vm4, %v9101_v7 }
0x3949   :  { %17624 = vmatprep.subr.msk.mxu0 %vm5430_vm4, %v9099_v8  ;;  %17598 = vmatprep.subr.msk.mxu1 %vm5831_vm5, %v7955_v9 }
0x394a   :  { %v9095_v12 = vpop.permute.xlu1 %9094 }
0x394b   :  { %17626 = vmatprep.mubr.msk.f32.mxu0 %vm5430_vm4, %v9095_v12 }
0x394c   :  { %17625 = vmatpush3.xpose.msk.msra.mxu0 %vm5430_vm4, %v9099_v8  ;;  %v18375_v13 = vpop.eup %18374  ;;  %v9097_v15 = vpop.permute.xlu0 %9096 }
0x394d   :  { %v8634_v24 = vmul.f32 %v18375_v13, %v18371_v56 }
0x394e   :  { %v18377_v14 = vpop.eup %18376 }
0x394f   :  { %17627 = vmatmul.mubr.msk.f32.vlgmr.msra.gmra.mxu0 %vm5430_vm4, %v9097_v15  ;;  %v8633_v19 = vmul.f32 %v18377_v14, %v18373_v59  ;;  %v8519_v14 = vadd.f32 %v20120_v44, %v20067_v33 }
0x3951   :  { %17595 = vmatprep.mubr.msk.f32.mxu1 %vm238_vm2, %v8633_v19  ;;  %v8514_v19 = vadd.f32 %v20122_v62, %v20069_v25 }
0x3952   :  { %17596 = vmatmul.mubr.msk.f32.vlgmr.msra.gmra.mxu1 %vm238_vm2, %v8634_v24 }
0x3953   :  { %17599 = vmatpush3.msk.msra.mxu1 %vm5831_vm5, %v7955_v9 }
0x397b   :  { %v8901_v26 = vpop.xlane.xlu1 %8900 }
0x397c   :  { %v8905_v46 = vsub.f32 %v8891_v63, %v8901_v26 }
0x397d   :  { %v8904_v55 = vpop.xlane.xlu0 %8903 }
0x397e   :  { %v8907_v27 = vmul.f32 1.442695, %v8905_v46  ;;  %v8906_v32 = vsub.f32 %v8896_v1, %v8904_v55 }
0x3980   :  { %18378 = vpow2.f32 %v8907_v27  ;;  %v8909_v22 = vmul.f32 1.442695, %v8906_v32 }
0x3982   :  { %18380 = vpow2.f32 %v8909_v22 }
0x398d   :  { %v18379_v18 = vpop.eup %18378 }
0x398e   :  { %v8911_v29 = vsel %vm238_vm2, %v18379_v18, 0.0 }
0x398f   :  { %v18381_v50 = vpop.eup %18380  ;;  %8912 = vadd.xlane.f32.xlu0 %v8911_v29 }
0x3990   :  { %v8914_v49 = vsel %vm238_vm2, %v18381_v50, 0.0 }
0x3991   :  { %8915 = vadd.xlane.f32.xlu1 %v8914_v49 }
0x39a2   :  { %8921 = vrot.lane.b32.xlu1 %v19959_v34, %s18601_s23 }
0x39a5   :  { %8923 = vrot.lane.b32.xlu0 %v19957_v11, %s18601_s23 }
0x39a6   :  { %9386 = vrot.lane.b32.xlu1 %v19957_v11, %s18605_s15 }
0x39a9   :  { %9384 = vrot.lane.b32.xlu0 %v19959_v34, %s18605_s15 }
0x39aa   :  { %9380 = vrot.lane.b32.xlu1 %v19972_v47, %s18605_s15 }
0x39ad   :  { %9382 = vrot.lane.b32.xlu0 %v19974_v45, %s18605_s15 }
0x3a0f   :  { %v17628_v42 = vpop.f32.mrf.mxu0 }
0x3a10   :  { %v9182_v43 = vadd.f32 %v17628_v42, %v19983_v17 }
0x3a11   :  { %v9176_v20 = vpop.f32.mrf.mxu0 }
0x3a12   :  { %v9177_v40 = vadd.f32 %v9176_v20, %v19988_v23  ;;  %v17597_v51 = vpop.f32.mrf.mxu1  ;;  %v9188_v52 = vsel %vm238_vm2, %v9182_v43, -inf }
0x3a13   :  { %9189 = vmax.xlane.f32.xlu0 %v9188_v52 }
0x3a14   :  { %v8713_v5 = vpop.f32.mrf.mxu1  ;;  %v9185_v38 = vsel %vm238_vm2, %v9177_v40, -inf }
0x3a15   :  { %17600 = vmatprep.mubr.msk.f32.mxu1 %vm5430_vm4, %v8713_v5  ;;  %9186 = vmax.xlane.f32.xlu1 %v9185_v38 }
0x3a16   :  { %17601 = vmatmul.mubr.msk.f32.vlgmr.msra.gmra.mxu1 %vm5430_vm4, %v17597_v51 }
0x3a18   :  { %v8913_v10 = vpop.xlane.xlu0 %8912 }
0x3a19   :  { %18382 = vrcp.f32 %v8913_v10 }
0x3a1a   :  { %v8916_v53 = vpop.xlane.xlu1 %8915 }
0x3a1b   :  { %18384 = vrcp.f32 %v8916_v53 }
0x3a1c   :  { %v8924_v37 = vpop.permute.xlu0 %8923 }
0x3a1d   :  { %17610 = vmatprep.subr.mxu1 %v8924_v37 }
0x3a1e   :  { %17611 = vmatpush3.msra.mxu1 %v8924_v37  ;;  %v8922_v54 = vpop.permute.xlu1 %8921 }
0x3a1f   :  { %17612 = vmatprep.subr.mxu1 %v8922_v54 }
0x3a20   :  { %17613 = vmatpush3.msra.mxu1 %v8922_v54  ;;  %v9385_v58 = vpop.permute.xlu0 %9384 }
0x3a21   :  { %17617 = vmatprep.subr.msk.mxu1 %vm5831_vm5, %v9008_v31 }
0x3a22   :  { %v9387_v56 = vpop.permute.xlu1 %9386 }
0x3a23   :  { %17641 = vmatprep.subr.msk.mxu0 %vm5430_vm4, %v9387_v56 }
0x3a24   :  { %17642 = vmatpush3.xpose.msk.msra.mxu0 %vm5430_vm4, %v9387_v56  ;;  %v9383_v1 = vpop.permute.xlu0 %9382 }
0x3a25   :  { %17643 = vmatprep.subr.msk.mxu0 %vm5430_vm4, %v9385_v58 }
0x3a26   :  { %v18383_v59 = vpop.eup %18382  ;;  %v9381_v61 = vpop.permute.xlu1 %9380 }
0x3a27   :  { %17645 = vmatprep.mubr.msk.f32.mxu0 %vm5430_vm4, %v9381_v61  ;;  %v8919_v48 = vmul.f32 %v18383_v59, %v18379_v18 }
0x3a28   :  { %v18385_v30 = vpop.eup %18384  ;;  %17644 = vmatpush3.xpose.msk.msra.mxu0 %vm5430_vm4, %v9385_v58 }
0x3a29   :  { %17614 = vmatprep.mubr.msk.f32.mxu1 %vm238_vm2, %v8919_v48  ;;  %v8920_v63 = vmul.f32 %v18385_v30, %v18381_v50  ;;  %v7956_v48 = vld [vmem:[%s21141_s3 + $0x90] sm:$0xff] }
0x3a2b   :  { %17615 = vmatmul.mubr.msk.f32.vlgmr.msra.gmra.mxu1 %vm238_vm2, %v8920_v63  ;;  %17646 = vmatmul.mubr.msk.f32.vlgmr.msra.gmra.mxu0 %vm5430_vm4, %v9383_v1 }
0x3a2c   :  { %17618 = vmatpush3.msk.msra.mxu1 %vm5831_vm5, %v9008_v31 }
0x3a9c   :  { %v9190_v2 = vpop.xlane.xlu0 %9189 }
0x3a9d   :  { %v9192_v4 = vsub.f32 %v9182_v43, %v9190_v2 }
0x3a9e   :  { %v9187_v57 = vpop.xlane.xlu1 %9186 }
0x3a9f   :  { %v9195_v39 = vmul.f32 1.442695, %v9192_v4  ;;  %v9191_v60 = vsub.f32 %v9177_v40, %v9187_v57 }
0x3aa1   :  { %18386 = vpow2.f32 %v9195_v39  ;;  %v9193_v6 = vmul.f32 1.442695, %v9191_v60 }
0x3aa3   :  { %18388 = vpow2.f32 %v9193_v6 }
0x3aae   :  { %v18387_v7 = vpop.eup %18386 }
0x3aaf   :  { %v9200_v8 = vsel %vm238_vm2, %v18387_v7, 0.0 }
0x3ab0   :  { %v18389_v12 = vpop.eup %18388  ;;  %9201 = vadd.xlane.f32.xlu1 %v9200_v8 }
0x3ab1   :  { %v9197_v13 = vsel %vm238_vm2, %v18389_v12, 0.0 }
0x3ab2   :  { %9198 = vadd.xlane.f32.xlu0 %v9197_v13 }
0x3ac1   :  { %9207 = vrot.lane.b32.xlu1 %v19959_v34, %s18595_s30 }
0x3ac5   :  { %9672 = vrot.lane.b32.xlu1 %v19957_v11, %s18587_s14 }
0x3ac8   :  { %9209 = vrot.lane.b32.xlu0 %v19957_v11, %s18595_s30 }
0x3ac9   :  { %9666 = vrot.lane.b32.xlu1 %v19972_v47, %s18587_s14 }
0x3acc   :  { %9670 = vrot.lane.b32.xlu0 %v19959_v34, %s18587_s14 }
0x3ad0   :  { %9668 = vrot.lane.b32.xlu0 %v19974_v45, %s18587_s14 }
0x3ad6   :  { %v17602_v15 = vpop.f32.mrf.mxu1 }
0x3ad7   :  { %v20158_v24 = vadd.f32 %v17602_v15, %v8519_v14  ;;  %v9580_v14 = vrot.slane %v7956_v48, 4 }
0x3ad8   :  { %v8797_v26 = vpop.f32.mrf.mxu1 }
0x3ad9   :  { %v20160_v46 = vadd.f32 %v8797_v26, %v8514_v19 }
0x3aeb   :  { %v17616_v55 = vpop.f32.mrf.mxu1  ;;  %v17647_v27 = vpop.f32.mrf.mxu0 }
0x3aec   :  { %v9468_v32 = vadd.f32 %v17647_v27, %v19983_v17 }
0x3aed   :  { %v8999_v22 = vpop.f32.mrf.mxu1  ;;  %v9462_v18 = vpop.f32.mrf.mxu0 }
0x3aee   :  { %v9463_v29 = vadd.f32 %v9462_v18, %v19988_v23  ;;  %17619 = vmatprep.mubr.msk.f32.mxu1 %vm5430_vm4, %v8999_v22  ;;  %v9474_v33 = vsel %vm238_vm2, %v9468_v32, -inf }
0x3aef   :  { %17620 = vmatmul.mubr.msk.f32.vlgmr.msra.gmra.mxu1 %vm5430_vm4, %v17616_v55  ;;  %9475 = vmax.xlane.f32.xlu0 %v9474_v33 }
0x3af0   :  { %v9471_v25 = vsel %vm238_vm2, %v9463_v29, -inf }
0x3af1   :  { %9472 = vmax.xlane.f32.xlu1 %v9471_v25 }
0x3b39   :  { %v9202_v50 = vpop.xlane.xlu1 %9201 }
0x3b3a   :  { %18390 = vrcp.f32 %v9202_v50 }
0x3b3b   :  { %v9199_v49 = vpop.xlane.xlu0 %9198 }
0x3b3c   :  { %18392 = vrcp.f32 %v9199_v49 }
0x3b3d   :  { %v9208_v9 = vpop.permute.xlu1 %9207 }
0x3b3f   :  { %v9210_v44 = vpop.permute.xlu0 %9209 }
0x3b40   :  { %17629 = vmatprep.subr.mxu1 %v9210_v44 }
0x3b41   :  { %17630 = vmatpush3.msra.mxu1 %v9210_v44  ;;  %v9673_v42 = vpop.permute.xlu1 %9672 }
0x3b42   :  { %17631 = vmatprep.subr.mxu1 %v9208_v9  ;;  %17660 = vmatprep.subr.msk.mxu0 %vm5430_vm4, %v9673_v42 }
0x3b43   :  { %v9671_v62 = vpop.permute.xlu0 %9670  ;;  %17632 = vmatpush3.msra.mxu1 %v9208_v9  ;;  %17661 = vmatpush3.xpose.msk.msra.mxu0 %vm5430_vm4, %v9673_v42 }
0x3b44   :  { %17662 = vmatprep.subr.msk.mxu0 %vm5430_vm4, %v9671_v62  ;;  %17636 = vmatprep.subr.msk.mxu1 %vm5831_vm5, %v7956_v48 }
0x3b45   :  { %v9667_v43 = vpop.permute.xlu1 %9666 }
0x3b46   :  { %17664 = vmatprep.mubr.msk.f32.mxu0 %vm5430_vm4, %v9667_v43 }
0x3b47   :  { %17663 = vmatpush3.xpose.msk.msra.mxu0 %vm5430_vm4, %v9671_v62  ;;  %v18391_v20 = vpop.eup %18390  ;;  %v9669_v51 = vpop.permute.xlu0 %9668 }
0x3b48   :  { %v9206_v5 = vmul.f32 %v18391_v20, %v18387_v7 }
0x3b49   :  { %v18393_v40 = vpop.eup %18392 }
0x3b4a   :  { %17665 = vmatmul.mubr.msk.f32.vlgmr.msra.gmra.mxu0 %vm5430_vm4, %v9669_v51  ;;  %v9205_v52 = vmul.f32 %v18393_v40, %v18389_v12 }
0x3b4c   :  { %17633 = vmatprep.mubr.msk.f32.mxu1 %vm238_vm2, %v9205_v52 }
0x3b4d   :  { %17634 = vmatmul.mubr.msk.f32.vlgmr.msra.gmra.mxu1 %vm238_vm2, %v9206_v5 }
0x3b4e   :  { %17637 = vmatpush3.msk.msra.mxu1 %vm5831_vm5, %v7956_v48 }
0x3b78   :  { %v9476_v38 = vpop.xlane.xlu0 %9475 }
0x3b79   :  { %v9478_v10 = vsub.f32 %v9468_v32, %v9476_v38 }
0x3b7a   :  { %v9473_v53 = vpop.xlane.xlu1 %9472 }
0x3b7b   :  { %v9481_v37 = vmul.f32 1.442695, %v9478_v10  ;;  %v9477_v31 = vsub.f32 %v9463_v29, %v9473_v53 }
0x3b7d   :  { %18394 = vpow2.f32 %v9481_v37  ;;  %v9479_v54 = vmul.f32 1.442695, %v9477_v31 }
0x3b7f   :  { %18396 = vpow2.f32 %v9479_v54 }
0x3b8a   :  { %v18395_v56 = vpop.eup %18394 }
0x3b8b   :  { %v9486_v58 = vsel %vm238_vm2, %v18395_v56, 0.0 }
0x3b8c   :  { %v18397_v59 = vpop.eup %18396  ;;  %9487 = vadd.xlane.f32.xlu1 %v9486_v58 }
0x3b8d   :  { %v9483_v61 = vsel %vm238_vm2, %v18397_v59, 0.0 }
0x3b8e   :  { %9484 = vadd.xlane.f32.xlu0 %v9483_v61 }
0x3b9d   :  { %9493 = vrot.lane.b32.xlu1 %v19959_v34, %s18604_s25 }
0x3ba1   :  { %9958 = vrot.lane.b32.xlu1 %v19957_v11, %s18608_s27 }
0x3ba4   :  { %9495 = vrot.lane.b32.xlu0 %v19957_v11, %s18604_s25 }
0x3ba5   :  { %9952 = vrot.lane.b32.xlu1 %v19972_v47, %s18608_s27 }
0x3ba8   :  { %9956 = vrot.lane.b32.xlu0 %v19959_v34, %s18608_s27 }
0x3bac   :  { %9954 = vrot.lane.b32.xlu0 %v19974_v45, %s18608_s27 }
0x3baf   :  { %v17621_v30 = vpop.f32.mrf.mxu1 }
0x3bb0   :  { %v9093_v63 = vadd.f32 %v17621_v30, %v20158_v24 }
0x3bb1   :  { %v9083_v2 = vpop.f32.mrf.mxu1 }
0x3bb2   :  { %v9092_v20 = vadd.f32 %v9083_v2, %v20160_v46 }
0x3c0a   :  { %v17666_v1 = vpop.f32.mrf.mxu0 }
0x3c0b   :  { %v9754_v4 = vadd.f32 %v17666_v1, %v19983_v17 }
0x3c0c   :  { %v9748_v57 = vpop.f32.mrf.mxu0 }
0x3c0d   :  { %v9749_v39 = vadd.f32 %v9748_v57, %v19988_v23  ;;  %v17635_v60 = vpop.f32.mrf.mxu1  ;;  %v9760_v6 = vsel %vm238_vm2, %v9754_v4, -inf }
0x3c0e   :  { %9761 = vmax.xlane.f32.xlu0 %v9760_v6 }
0x3c0f   :  { %v9285_v47 = vpop.f32.mrf.mxu1  ;;  %v9757_v7 = vsel %vm238_vm2, %v9749_v39, -inf }
0x3c10   :  { %17638 = vmatprep.mubr.msk.f32.mxu1 %vm5430_vm4, %v9285_v47  ;;  %9758 = vmax.xlane.f32.xlu1 %v9757_v7 }
0x3c11   :  { %17639 = vmatmul.mubr.msk.f32.vlgmr.msra.gmra.mxu1 %vm5430_vm4, %v17635_v60 }
0x3c15   :  { %v9488_v45 = vpop.xlane.xlu1 %9487 }
0x3c16   :  { %18398 = vrcp.f32 %v9488_v45  ;;  %v7957_v45 = vld [vmem:[%s21141_s3 + $0x98] sm:$0xff] }
0x3c17   :  { %v9485_v8 = vpop.xlane.xlu0 %9484 }
0x3c18   :  { %18400 = vrcp.f32 %v9485_v8 }
0x3c19   :  { %v9494_v12 = vpop.permute.xlu1 %9493 }
0x3c1b   :  { %v9496_v13 = vpop.permute.xlu0 %9495 }
0x3c1c   :  { %17648 = vmatprep.subr.mxu1 %v9496_v13 }
0x3c1d   :  { %17649 = vmatpush3.msra.mxu1 %v9496_v13  ;;  %v9959_v15 = vpop.permute.xlu1 %9958 }
0x3c1e   :  { %17650 = vmatprep.subr.mxu1 %v9494_v12  ;;  %17679 = vmatprep.subr.msk.mxu0 %vm5430_vm4, %v9959_v15 }
0x3c1f   :  { %v9957_v19 = vpop.permute.xlu0 %9956  ;;  %17651 = vmatpush3.msra.mxu1 %v9494_v12  ;;  %17680 = vmatpush3.xpose.msk.msra.mxu0 %vm5430_vm4, %v9959_v15 }
0x3c20   :  { %17681 = vmatprep.subr.msk.mxu0 %vm5430_vm4, %v9957_v19  ;;  %17655 = vmatprep.subr.msk.mxu1 %vm5831_vm5, %v9580_v14 }
0x3c21   :  { %v9953_v24 = vpop.permute.xlu1 %9952 }
0x3c22   :  { %17683 = vmatprep.mubr.msk.f32.mxu0 %vm5430_vm4, %v9953_v24 }
0x3c23   :  { %17682 = vmatpush3.xpose.msk.msra.mxu0 %vm5430_vm4, %v9957_v19  ;;  %v18399_v26 = vpop.eup %18398  ;;  %v9955_v27 = vpop.permute.xlu0 %9954 }
0x3c24   :  { %v9492_v22 = vmul.f32 %v18399_v26, %v18395_v56 }
0x3c25   :  { %v18401_v55 = vpop.eup %18400 }
0x3c26   :  { %17684 = vmatmul.mubr.msk.f32.vlgmr.msra.gmra.mxu0 %vm5430_vm4, %v9955_v27  ;;  %v9491_v32 = vmul.f32 %v18401_v55, %v18397_v59  ;;  %v10152_v55 = vrot.slane %v7957_v45, 4 }
0x3c28   :  { %17652 = vmatprep.mubr.msk.f32.mxu1 %vm238_vm2, %v9491_v32 }
0x3c29   :  { %17653 = vmatmul.mubr.msk.f32.vlgmr.msra.gmra.mxu1 %vm238_vm2, %v9492_v22 }
0x3c2a   :  { %17656 = vmatpush3.msk.msra.mxu1 %vm5831_vm5, %v9580_v14 }
0x3c97   :  { %v9762_v18 = vpop.xlane.xlu0 %9761 }
0x3c98   :  { %v9764_v29 = vsub.f32 %v9754_v4, %v9762_v18 }
0x3c99   :  { %v9759_v33 = vpop.xlane.xlu1 %9758 }
0x3c9a   :  { %v9767_v25 = vmul.f32 1.442695, %v9764_v29  ;;  %v9763_v50 = vsub.f32 %v9749_v39, %v9759_v33 }
0x3c9c   :  { %18402 = vpow2.f32 %v9767_v25  ;;  %v9765_v49 = vmul.f32 1.442695, %v9763_v50 }
0x3c9e   :  { %18404 = vpow2.f32 %v9765_v49 }
0x3ca9   :  { %v18403_v9 = vpop.eup %18402 }
0x3caa   :  { %v9772_v44 = vsel %vm238_vm2, %v18403_v9, 0.0 }
0x3cab   :  { %v18405_v42 = vpop.eup %18404  ;;  %9773 = vadd.xlane.f32.xlu1 %v9772_v44 }
0x3cac   :  { %v9769_v62 = vsel %vm238_vm2, %v18405_v42, 0.0 }
0x3cad   :  { %9770 = vadd.xlane.f32.xlu0 %v9769_v62 }
0x3cbc   :  { %9779 = vrot.lane.b32.xlu1 %v19959_v34, %s18597_s10 }
0x3cc3   :  { %9781 = vrot.lane.b32.xlu0 %v19957_v11, %s18597_s10 }
0x3cd1   :  { %v17640_v43 = vpop.f32.mrf.mxu1 }
0x3cd2   :  { %v9379_v40 = vadd.f32 %v17640_v43, %v9093_v63 }
0x3cd3   :  { %v9369_v51 = vpop.f32.mrf.mxu1 }
0x3cd4   :  { %v20219_v52 = vadd.f32 %v9369_v51, %v9092_v20 }
0x3ce6   :  { %v17685_v5 = vpop.f32.mrf.mxu0 }
0x3ce7   :  { %v10040_v38 = vadd.f32 %v17685_v5, %v19983_v17 }
0x3ce8   :  { %v10034_v10 = vpop.f32.mrf.mxu0 }
0x3ce9   :  { %v10035_v53 = vadd.f32 %v10034_v10, %v19988_v23  ;;  %v17654_v37 = vpop.f32.mrf.mxu1  ;;  %v10046_v31 = vsel %vm238_vm2, %v10040_v38, -inf }
0x3cea   :  { %10047 = vmax.xlane.f32.xlu0 %v10046_v31 }
0x3ceb   :  { %v9571_v54 = vpop.f32.mrf.mxu1  ;;  %v10043_v56 = vsel %vm238_vm2, %v10035_v53, -inf }
0x3cec   :  { %17657 = vmatprep.mubr.msk.f32.mxu1 %vm5430_vm4, %v9571_v54  ;;  %10044 = vmax.xlane.f32.xlu1 %v10043_v56 }
0x3ced   :  { %17658 = vmatmul.mubr.msk.f32.vlgmr.msra.gmra.mxu1 %vm5430_vm4, %v17654_v37 }
0x3d34   :  { %v9774_v46 = vpop.xlane.xlu1 %9773 }
0x3d35   :  { %18406 = vrcp.f32 %v9774_v46 }
0x3d36   :  { %v9771_v58 = vpop.xlane.xlu0 %9770 }
0x3d37   :  { %18408 = vrcp.f32 %v9771_v58 }
0x3d38   :  { %v9780_v59 = vpop.permute.xlu1 %9779 }
0x3d3a   :  { %v9782_v17 = vpop.permute.xlu0 %9781 }
0x3d3b   :  { %17667 = vmatprep.subr.mxu1 %v9782_v17 }
0x3d3c   :  { %17668 = vmatpush3.msra.mxu1 %v9782_v17 }
0x3d3d   :  { %17669 = vmatprep.subr.mxu1 %v9780_v59 }
0x3d3e   :  { %17670 = vmatpush3.msra.mxu1 %v9780_v59 }
0x3d3f   :  { %17674 = vmatprep.subr.msk.mxu1 %vm5831_vm5, %v7957_v45 }
0x3d42   :  { %v18407_v23 = vpop.eup %18406 }
0x3d43   :  { %v9778_v30 = vmul.f32 %v18407_v23, %v18403_v9 }
0x3d44   :  { %v18409_v61 = vpop.eup %18408 }
0x3d45   :  { %v9777_v48 = vmul.f32 %v18409_v61, %v18405_v42  ;;  %v10238_v42 = vld [vmem:[%s21139_s4 + $0x24] ss:$0 sm:$0xff] }
0x3d47   :  { %17671 = vmatprep.mubr.msk.f32.mxu1 %vm238_vm2, %v9777_v48 }
0x3d48   :  { %17672 = vmatmul.mubr.msk.f32.vlgmr.msra.gmra.mxu1 %vm238_vm2, %v9778_v30 }
0x3d49   :  { %17675 = vmatpush3.msk.msra.mxu1 %vm5831_vm5, %v7957_v45 }
0x3d73   :  { %v10048_v63 = vpop.xlane.xlu0 %10047 }
0x3d74   :  { %v10050_v1 = vsub.f32 %v10040_v38, %v10048_v63 }
0x3d75   :  { %v10045_v2 = vpop.xlane.xlu1 %10044 }
0x3d76   :  { %v10053_v4 = vmul.f32 1.442695, %v10050_v1  ;;  %v10049_v57 = vsub.f32 %v10035_v53, %v10045_v2  ;;  %v10252_v1 = vld [vmem:[%s21139_s4 + $0x32] ss:$0 sm:$0xff]  ;;  %v10251_v2 = vld [vmem:[%s21139_s4 + $0x31] ss:$0 sm:$0xff] }
0x3d78   :  { %18410 = vpow2.f32 %v10053_v4  ;;  %v10051_v39 = vmul.f32 1.442695, %v10049_v57  ;;  %v10310_v4 = vld [vmem:[%s21141_s3 + $0xb8] sm:$0xff]  ;;  %v10309_v57 = vld [vmem:[%s21141_s3 + $0xb0] sm:$0xff] }
0x3d79   :  { %17698 = vmatprep.subr.mxu0 %v10310_v4 }
0x3d7a   :  { %18412 = vpow2.f32 %v10051_v39  ;;  %17699 = vmatpush3.msra.mxu0 %v10310_v4  ;;  %v10308_v39 = vld [vmem:[%s21141_s3 + $0xa8] sm:$0xff] }
0x3d7b   :  { %17700 = vmatprep.subr.mxu0 %v10309_v57 }
0x3d7c   :  { %17701 = vmatpush3.msra.mxu0 %v10309_v57 }
0x3d7d   :  { %17702 = vmatprep.subr.mxu0 %v10308_v39 }
0x3d7e   :  { %17703 = vmatpush3.msra.mxu0 %v10308_v39 }
0x3d85   :  { %v18411_v60 = vpop.eup %18410 }
0x3d86   :  { %v10058_v6 = vsel %vm238_vm2, %v18411_v60, 0.0 }
0x3d87   :  { %v18413_v47 = vpop.eup %18412  ;;  %10059 = vadd.xlane.f32.xlu1 %v10058_v6 }
0x3d88   :  { %v10055_v7 = vsel %vm238_vm2, %v18413_v47, 0.0 }
0x3d89   :  { %10056 = vadd.xlane.f32.xlu0 %v10055_v7 }
0x3d98   :  { %10065 = vrot.lane.b32.xlu1 %v19959_v34, %s18607_s20 }
0x3d9f   :  { %10067 = vrot.lane.b32.xlu0 %v19957_v11, %s18607_s20 }
0x3dad   :  { %v17659_v8 = vpop.f32.mrf.mxu1 }
0x3dae   :  { %v9665_v12 = vadd.f32 %v17659_v8, %v9379_v40 }
0x3daf   :  { %v9655_v13 = vpop.f32.mrf.mxu1 }
0x3db0   :  { %v9664_v29 = vadd.f32 %v9655_v13, %v20219_v52  ;;  %v10406_v13 = vld [vmem:[%s21141_s3 + $0xf8] sm:$0xff] }
0x3e08   :  { %v17673_v14 = vpop.f32.mrf.mxu1 }
0x3e0a   :  { %v9857_v15 = vpop.f32.mrf.mxu1 }
0x3e0b   :  { %17676 = vmatprep.mubr.msk.f32.mxu1 %vm5430_vm4, %v9857_v15  ;;  %v10404_v15 = vld [vmem:[%s21141_s3 + $0xe8] sm:$0xff] }
0x3e0c   :  { %17677 = vmatmul.mubr.msk.f32.vlgmr.msra.gmra.mxu1 %vm5430_vm4, %v17673_v14  ;;  %v10405_v14 = vld [vmem:[%s21141_s3 + $0xf0] sm:$0xff] }
0x3e10   :  { %v10060_v19 = vpop.xlane.xlu1 %10059 }
0x3e11   :  { %18414 = vrcp.f32 %v10060_v19 }
0x3e12   :  { %v10057_v24 = vpop.xlane.xlu0 %10056 }
0x3e13   :  { %18416 = vrcp.f32 %v10057_v24 }
0x3e14   :  { %v10066_v34 = vpop.permute.xlu1 %10065 }
0x3e16   :  { %v10068_v26 = vpop.permute.xlu0 %10067 }
0x3e17   :  { %17686 = vmatprep.subr.mxu1 %v10068_v26 }
0x3e18   :  { %17687 = vmatpush3.msra.mxu1 %v10068_v26 }
0x3e19   :  { %17688 = vmatprep.subr.mxu1 %v10066_v34 }
0x3e1a   :  { %17689 = vmatpush3.msra.mxu1 %v10066_v34 }
0x3e1b   :  { %17693 = vmatprep.subr.msk.mxu1 %vm5831_vm5, %v10152_v55 }
0x3e1e   :  { %v18415_v11 = vpop.eup %18414 }
0x3e1f   :  { %v10064_v22 = vmul.f32 %v18415_v11, %v18411_v60 }
0x3e20   :  { %v18417_v27 = vpop.eup %18416 }
0x3e21   :  { %v10063_v32 = vmul.f32 %v18417_v27, %v18413_v47 }
0x3e23   :  { %17690 = vmatprep.mubr.msk.f32.mxu1 %vm238_vm2, %v10063_v32 }
0x3e24   :  { %17691 = vmatmul.mubr.msk.f32.vlgmr.msra.gmra.mxu1 %vm238_vm2, %v10064_v22 }
0x3e25   :  { %17694 = vmatpush3.msk.msra.mxu1 %vm5831_vm5, %v10152_v55  ;;  %v10403_v55 = vld [vmem:[%s21141_s3 + $0xe0] sm:$0xff] }
0x3e26   :  { %17709 = vmatprep.subr.mxu1 %v10406_v13 }
0x3ecc   :  { %v17678_v18 = vpop.f32.mrf.mxu1 }
0x3ecd   :  { %v9951_v33 = vadd.f32 %v17678_v18, %v9665_v12  ;;  %v10307_v12 = vld [vmem:[%s21141_s3 + $0xa0] sm:$0xff] }
0x3ece   :  { %v9941_v25 = vpop.f32.mrf.mxu1  ;;  %17704 = vmatprep.subr.mxu0 %v10307_v12 }
0x3ecf   :  { %v9950_v50 = vadd.f32 %v9941_v25, %v9664_v29  ;;  %17705 = vmatpush3.msra.mxu0 %v10307_v12 }
0x3ee4   :  { %v17692_v49 = vpop.f32.mrf.mxu1 }
0x3ee6   :  { %v10143_v9 = vpop.f32.mrf.mxu1 }
0x3ee7   :  { %17695 = vmatprep.mubr.msk.f32.mxu1 %vm5430_vm4, %v10143_v9  ;;  %v10400_v9 = vld [vmem:[%s21141_s3 + $0xc8] sm:$0xff] }
0x3ee8   :  { %17696 = vmatmul.mubr.msk.f32.vlgmr.msra.gmra.mxu1 %vm5430_vm4, %v17692_v49  ;;  %v10401_v49 = vld [vmem:[%s21141_s3 + $0xd0] sm:$0xff] }
0x3ee9   :  { %17710 = vmatpush3.msra.mxu1 %v10406_v13 }
0x3eea   :  { %17711 = vmatprep.subr.mxu1 %v10405_v14 }
0x3eeb   :  { %17712 = vmatpush3.msra.mxu1 %v10405_v14 }
0x3eec   :  { %17713 = vmatprep.subr.mxu1 %v10404_v15 }
0x3eed   :  { %17714 = vmatpush3.msra.mxu1 %v10404_v15 }
0x3eee   :  { %17715 = vmatprep.subr.mxu1 %v10403_v55 }
0x3eef   :  { %17716 = vmatpush3.msra.mxu1 %v10403_v55 }
0x3fa8   :  { %v17697_v44 = vpop.f32.mrf.mxu1 }
0x3fa9   :  { %v10237_v62 = vadd.f32 %v17697_v44, %v9951_v33  ;;  %v10399_v44 = vld [vmem:[%s21141_s3 + $0xc0] sm:$0xff] }
0x3faa   :  { %v10227_v43 = vpop.f32.mrf.mxu1 }
0x3fab   :  { %v10240_v20 = vadd.f32 %v10238_v42, %v10237_v62  ;;  %v10236_v40 = vadd.f32 %v10227_v43, %v9950_v50  ;;  %v10402_v50 = vld [vmem:[%s21141_s3 + $0xd8] sm:$0xff] }
0x3fac   :  { %17717 = vmatprep.subr.mxu1 %v10402_v50 }
0x3fad   :  { %v10239_v51 = vadd.f32 %v10238_v42, %v10236_v40  ;;  %10245 = vrot.lane.b32.xlu0 %v10240_v20, %s18583_s6  ;;  %17718 = vmatpush3.msra.mxu1 %v10402_v50  ;;  %v10311_v42 = vld [vmem:[%s21139_s4 + $0x25] ss:$0 sm:$0xff] }
0x3fae   :  { %17719 = vmatprep.subr.mxu1 %v10401_v49 }
0x3faf   :  { %10243 = vrot.lane.b32.xlu1 %v10239_v51, %s18583_s6  ;;  %17720 = vmatpush3.msra.mxu1 %v10401_v49 }
0x3fb0   :  { %17721 = vmatprep.subr.mxu1 %v10400_v9 }
0x3fb1   :  { %17722 = vmatpush3.msra.mxu1 %v10400_v9  ;;  %v10559_v9 = vld [vmem:[%s21139_s4 + $0x35] ss:$0 sm:$0xff] }
0x3fb2   :  { %17723 = vmatprep.subr.mxu1 %v10399_v44 }
0x3fb3   :  { %17724 = vmatpush3.msra.mxu1 %v10399_v44 }
0x401f   :  { %v10246_v52 = vpop.permute.xlu0 %10245 }
0x4020   :  { %v10250_v5 = vadd.f32 %v10246_v52, %v19933_v0 }
0x4021   :  { %v10244_v38 = vpop.permute.xlu1 %10243 }
0x4022   :  { %v10249_v10 = vadd.f32 %v10244_v38, %v19938_v36  ;;  %10257 = vrot.lane.b32.xlu0 %v10250_v5, %s18583_s6 }
0x4024   :  { %10255 = vrot.lane.b32.xlu1 %v10249_v10, %s18583_s6 }
0x4094   :  { %v10258_v53 = vpop.permute.xlu0 %10257 }
0x4095   :  { %v10264_v37 = vsel %vm5340_vm3, %v10258_v53, 0.0 }
0x4096   :  { %10265 = vadd.xlane.f32.xlu0 %v10264_v37  ;;  %v10256_v31 = vpop.permute.xlu1 %10255 }
0x4097   :  { %v10261_v54 = vsel %vm5340_vm3, %v10256_v31, 0.0 }
0x4098   :  { %10262 = vadd.xlane.f32.xlu1 %v10261_v54 }
0x411f   :  { %v10266_v56 = vpop.xlane.xlu0 %10265 }
0x4120   :  { %v10268_v46 = vmul.f32 0.03125, %v10266_v56 }
0x4121   :  { %v10263_v58 = vpop.xlane.xlu1 %10262 }
0x4122   :  { %v10270_v17 = vsub.f32 %v10250_v5, %v10268_v46  ;;  %v10267_v0 = vmul.f32 0.03125, %v10263_v58  ;;  %v10407_v5 = vld [vmem:[%s21139_s4 + $0x26] ss:$0 sm:$0xff] }
0x4124   :  { %v10272_v59 = vmul.f32 %v10270_v17, %v10270_v17  ;;  %v10269_v23 = vsub.f32 %v10249_v10, %v10267_v0 }
0x4126   :  { %v10271_v36 = vmul.f32 %v10269_v23, %v10269_v23  ;;  %10277 = vrot.lane.b32.xlu1 %v10272_v59, %s18583_s6 }
0x4128   :  { %10275 = vrot.lane.b32.xlu0 %v10271_v36, %s18583_s6 }
0x4198   :  { %v10278_v61 = vpop.permute.xlu1 %10277 }
0x4199   :  { %v10284_v48 = vsel %vm5340_vm3, %v10278_v61, 0.0 }
0x419a   :  { %v10276_v30 = vpop.permute.xlu0 %10275  ;;  %10285 = vadd.xlane.f32.xlu0 %v10284_v48 }
0x419b   :  { %v10281_v63 = vsel %vm5340_vm3, %v10276_v30, 0.0 }
0x419c   :  { %10282 = vadd.xlane.f32.xlu1 %v10281_v63 }
0x41ad   :  { %10302 = vrot.lane.b32.xlu1 %v10252_v1, %s18583_s6 }
0x41b0   :  { %10296 = vrot.lane.b32.xlu0 %v10251_v2, %s18583_s6 }
0x4223   :  { %v10286_v60 = vpop.xlane.xlu0 %10285 }
0x4224   :  { %v10288_v6 = vmul.f32 0.03125, %v10286_v60 }
0x4225   :  { %v10283_v47 = vpop.xlane.xlu1 %10282 }
0x4226   :  { %v10290_v7 = vadd.f32 1e-05, %v10288_v6  ;;  %v10287_v45 = vmul.f32 0.03125, %v10283_v47  ;;  %v10500_v6 = vld [vmem:[%s21139_s4 + $0x34] ss:$0 sm:$0xff] }
0x4227   :  { %v10297_v24 = vpop.permute.xlu0 %10296  ;;  %v10499_v47 = vld [vmem:[%s21139_s4 + $0x33] ss:$0 sm:$0xff] }
0x4228   :  { %18418 = vrsqrt.f32 %v10290_v7  ;;  %v10289_v8 = vadd.f32 1e-05, %v10287_v45  ;;  %v10558_v7 = vld [vmem:[%s21141_s3 + $0x118] sm:$0xff]  ;;  %v10557_v45 = vld [vmem:[%s21141_s3 + $0x110] sm:$0xff] }
0x4229   :  { %v10303_v11 = vpop.permute.xlu1 %10302  ;;  %17728 = vmatprep.subr.mxu0 %v10558_v7 }
0x422a   :  { %18420 = vrsqrt.f32 %v10289_v8  ;;  %v10556_v8 = vld [vmem:[%s21141_s3 + $0x108] sm:$0xff] }
0x4235   :  { %v18419_v19 = vpop.eup %18418 }
0x4236   :  { %v10294_v26 = vmul.f32 %v18419_v19, %v10270_v17 }
0x4237   :  { %v18421_v34 = vpop.eup %18420 }
0x4238   :  { %v10293_v27 = vmul.f32 %v18421_v34, %v10269_v23  ;;  %v10300_v32 = vmul.f32 %v10297_v24, %v10294_v26  ;;  %v10555_v26 = vld [vmem:[%s21141_s3 + $0x100] sm:$0xff] }
0x423a   :  { %v10299_v22 = vmul.f32 %v10297_v24, %v10293_v27  ;;  %v10306_v18 = vadd.f32 %v10303_v11, %v10300_v32 }
0x423c   :  { %v10305_v29 = vadd.f32 %v10303_v11, %v10299_v22  ;;  %10316 = vrot.lane.b32.xlu0 %v10306_v18, %s18583_s6 }
0x423e   :  { %10314 = vrot.lane.b32.xlu1 %v10305_v29, %s18583_s6 }
0x42ae   :  { %v10317_v25 = vpop.permute.xlu0 %10316 }
0x42b0   :  { %v10315_v33 = vpop.permute.xlu1 %10314 }
0x42b1   :  { %17706 = vmatprep.mubr.msk.f32.mxu0 %vm5340_vm3, %v10315_v33 }
0x42b2   :  { %17707 = vmatmul.mubr.msk.f32.vlgmr.msra.gmra.mxu0 %vm5340_vm3, %v10317_v25 }
0x42b3   :  { %17729 = vmatpush3.msra.mxu0 %v10558_v7 }
0x42b4   :  { %17730 = vmatprep.subr.mxu0 %v10557_v45 }
0x42b5   :  { %17731 = vmatpush3.msra.mxu0 %v10557_v45  ;;  %v10645_v45 = vld [vmem:[%s21141_s3 + $0x120] sm:$0xff] }
0x42b6   :  { %17732 = vmatprep.subr.mxu0 %v10556_v8 }
0x42b7   :  { %17733 = vmatpush3.msra.mxu0 %v10556_v8 }
0x42b8   :  { %17734 = vmatprep.subr.mxu0 %v10555_v26 }
0x42b9   :  { %17735 = vmatpush3.msra.mxu0 %v10555_v26 }
0x4372   :  { %v17708_v62 = vpop.f32.mrf.mxu0 }
0x4373   :  { %v10394_v43 = vadd.f32 %v17708_v62, %v10311_v42 }
0x4374   :  { %v10388_v20 = vpop.f32.mrf.mxu0 }
0x4375   :  { %v10389_v40 = vadd.f32 %v10388_v20, %v10311_v42  ;;  %v10398_v52 = vmax.f32 %v10394_v43, 0.0 }
0x4377   :  { %v10397_v51 = vmax.f32 %v10389_v40, 0.0 }
0x4379   :  { %17725 = vmatprep.mubr.msk.f32.mxu1 %vm56_vm0, %v10397_v51 }
0x437a   :  { %17726 = vmatmul.mubr.msk.f32.vlgmr.msra.gmra.mxu1 %vm56_vm0, %v10398_v52  ;;  %v20382_v52 = vld [vmem:[%s21140_s1 + $0x18] sm:$0xff] }
0x443a   :  { %v17727_v38 = vpop.f32.mrf.mxu1 }
0x443b   :  { %v10486_v10 = vadd.f32 %v17727_v38, %v10407_v5 }
0x443c   :  { %v10480_v53 = vpop.f32.mrf.mxu1 }
0x443d   :  { %v10481_v37 = vadd.f32 %v10480_v53, %v10407_v5  ;;  %10493 = vrot.lane.b32.xlu0 %v10486_v10, %s18583_s6  ;;  %v20388_v10 = vld [vmem:[%s21140_s1 + $0x10] sm:$0xff] }
0x443f   :  { %10491 = vrot.lane.b32.xlu1 %v10481_v37, %s18583_s6 }
0x44af   :  { %v10494_v31 = vpop.permute.xlu0 %10493 }
0x44b0   :  { %v10498_v54 = vadd.f32 %v10494_v31, %v10306_v18 }
0x44b1   :  { %v10492_v56 = vpop.permute.xlu1 %10491 }
0x44b2   :  { %v10497_v46 = vadd.f32 %v10492_v56, %v10305_v29  ;;  %10505 = vrot.lane.b32.xlu0 %v10498_v54, %s18583_s6 }
0x44b4   :  { %10503 = vrot.lane.b32.xlu1 %v10497_v46, %s18583_s6 }
0x4524   :  { %v10506_v58 = vpop.permute.xlu0 %10505 }
0x4525   :  { %v10512_v17 = vsel %vm5340_vm3, %v10506_v58, 0.0 }
0x4526   :  { %10513 = vadd.xlane.f32.xlu0 %v10512_v17  ;;  %v10504_v0 = vpop.permute.xlu1 %10503 }
0x4527   :  { %v10509_v59 = vsel %vm5340_vm3, %v10504_v0, 0.0 }
0x4528   :  { %10510 = vadd.xlane.f32.xlu1 %v10509_v59 }
0x45af   :  { %v10514_v23 = vpop.xlane.xlu0 %10513 }
0x45b0   :  { %v10516_v36 = vmul.f32 0.03125, %v10514_v23 }
0x45b1   :  { %v10511_v61 = vpop.xlane.xlu1 %10510 }
0x45b2   :  { %v10518_v48 = vsub.f32 %v10498_v54, %v10516_v36  ;;  %v10515_v30 = vmul.f32 0.03125, %v10511_v61 }
0x45b4   :  { %v10520_v63 = vmul.f32 %v10518_v48, %v10518_v48  ;;  %v10517_v1 = vsub.f32 %v10497_v46, %v10515_v30 }
0x45b6   :  { %v10519_v2 = vmul.f32 %v10517_v1, %v10517_v1  ;;  %10525 = vrot.lane.b32.xlu1 %v10520_v63, %s18583_s6 }
0x45b8   :  { %10523 = vrot.lane.b32.xlu0 %v10519_v2, %s18583_s6 }
0x4628   :  { %v10526_v4 = vpop.permute.xlu1 %10525 }
0x4629   :  { %v10532_v57 = vsel %vm5340_vm3, %v10526_v4, 0.0 }
0x462a   :  { %v10524_v39 = vpop.permute.xlu0 %10523  ;;  %10533 = vadd.xlane.f32.xlu0 %v10532_v57 }
0x462b   :  { %v10529_v60 = vsel %vm5340_vm3, %v10524_v39, 0.0 }
0x462c   :  { %10530 = vadd.xlane.f32.xlu1 %v10529_v60 }
0x463d   :  { %10550 = vrot.lane.b32.xlu1 %v10500_v6, %s18583_s6 }
0x4640   :  { %10544 = vrot.lane.b32.xlu0 %v10499_v47, %s18583_s6 }
0x46b3   :  { %v10534_v12 = vpop.xlane.xlu0 %10533 }
0x46b4   :  { %v10536_v13 = vmul.f32 0.03125, %v10534_v12 }
0x46b5   :  { %v10531_v14 = vpop.xlane.xlu1 %10530 }
0x46b6   :  { %v10538_v15 = vadd.f32 1e-05, %v10536_v13  ;;  %v10535_v19 = vmul.f32 0.03125, %v10531_v14 }
0x46b7   :  { %v10545_v34 = vpop.permute.xlu0 %10544 }
0x46b8   :  { %18422 = vrsqrt.f32 %v10538_v15  ;;  %v10537_v24 = vadd.f32 1e-05, %v10535_v19 }
0x46b9   :  { %v10551_v32 = vpop.permute.xlu1 %10550 }
0x46ba   :  { %18424 = vrsqrt.f32 %v10537_v24 }
0x46c5   :  { %v18423_v55 = vpop.eup %18422 }
0x46c6   :  { %v10542_v11 = vmul.f32 %v18423_v55, %v10518_v48 }
0x46c7   :  { %v18425_v27 = vpop.eup %18424 }
0x46c8   :  { %v10541_v22 = vmul.f32 %v18425_v27, %v10517_v1  ;;  %v10548_v18 = vmul.f32 %v10545_v34, %v10542_v11 }
0x46ca   :  { %v10547_v29 = vmul.f32 %v10545_v34, %v10541_v22  ;;  %v20350_v33 = vadd.f32 %v10551_v32, %v10548_v18 }
0x46cc   :  { %v20352_v25 = vadd.f32 %v10551_v32, %v10547_v29  ;;  %10564 = vrot.lane.b32.xlu0 %v20350_v33, %s18583_s6 }
0x46ce   :  { %10562 = vrot.lane.b32.xlu1 %v20352_v25, %s18583_s6 }
0x473e   :  { %v10565_v49 = vpop.permute.xlu0 %10564 }
0x4740   :  { %v10563_v50 = vpop.permute.xlu1 %10562 }
0x4741   :  { %17736 = vmatprep.mubr.msk.f32.mxu0 %vm5340_vm3, %v10563_v50 }
0x4742   :  { %17737 = vmatmul.mubr.msk.f32.vlgmr.msra.gmra.mxu0 %vm5340_vm3, %v10565_v49 }
0x4802   :  { %v17738_v44 = vpop.f32.mrf.mxu0 }
0x4803   :  { %v20363_v42 = vadd.f32 %v17738_v44, %v10559_v9 }
0x4804   :  { %v10636_v62 = vpop.f32.mrf.mxu0 }
0x4805   :  { %v20365_v43 = vadd.f32 %v10636_v62, %v10559_v9  ;;  %10653 = vrot.lane.b32.xlu1 %v20363_v42, %s18591_s22 }
0x4807   :  { %10651 = vrot.lane.b32.xlu0 %v20365_v43, %s18591_s22  ;;  %17743 = vmatprep.mubr.msk.f32.mxu0 %vm5430_vm4, %v20365_v43 }
0x4877   :  { %v10654_v20 = vpop.permute.xlu1 %10653 }
0x4878   :  { %17739 = vmatprep.subr.msk.mxu0 %vm5430_vm4, %v10654_v20 }
0x4879   :  { %17740 = vmatpush3.xpose.msk.msra.mxu0 %vm5430_vm4, %v10654_v20  ;;  %v10652_v40 = vpop.permute.xlu0 %10651  ;;  %v11048_v20 = vrot.slane %v10645_v45, 4 }
0x487a   :  { %17741 = vmatprep.subr.msk.mxu0 %vm5430_vm4, %v10652_v40 }
0x487d   :  { %17742 = vmatpush3.xpose.msk.msra.mxu0 %vm5430_vm4, %v10652_v40 }
0x4880   :  { %17744 = vmatmul.mubr.msk.f32.vlgmr.msra.gmra.mxu0 %vm5430_vm4, %v20363_v42 }
0x4940   :  { %v17745_v51 = vpop.f32.mrf.mxu0 }
0x4941   :  { %v10735_v5 = vadd.f32 %v20382_v52, %v17745_v51 }
0x4942   :  { %v10729_v38 = vpop.f32.mrf.mxu0 }
0x4943   :  { %v10730_v53 = vadd.f32 %v20388_v10, %v10729_v38  ;;  %v10741_v37 = vsel %vm238_vm2, %v10735_v5, -inf }
0x4944   :  { %10742 = vmax.xlane.f32.xlu0 %v10741_v37 }
0x4945   :  { %v10738_v31 = vsel %vm238_vm2, %v10730_v53, -inf }
0x4946   :  { %10739 = vmax.xlane.f32.xlu1 %v10738_v31 }
0x49cd   :  { %v10743_v54 = vpop.xlane.xlu0 %10742 }
0x49ce   :  { %v10745_v56 = vsub.f32 %v10735_v5, %v10743_v54 }
0x49cf   :  { %v10740_v46 = vpop.xlane.xlu1 %10739 }
0x49d0   :  { %v10748_v58 = vmul.f32 1.442695, %v10745_v56  ;;  %v10744_v17 = vsub.f32 %v10730_v53, %v10740_v46 }
0x49d2   :  { %18426 = vpow2.f32 %v10748_v58  ;;  %v10746_v0 = vmul.f32 1.442695, %v10744_v17 }
0x49d4   :  { %18428 = vpow2.f32 %v10746_v0 }
0x49df   :  { %v18427_v59 = vpop.eup %18426 }
0x49e0   :  { %v10753_v23 = vsel %vm238_vm2, %v18427_v59, 0.0 }
0x49e1   :  { %v18429_v36 = vpop.eup %18428  ;;  %10754 = vadd.xlane.f32.xlu1 %v10753_v23 }
0x49e2   :  { %v10750_v61 = vsel %vm238_vm2, %v18429_v36, 0.0 }
0x49e3   :  { %10751 = vadd.xlane.f32.xlu0 %v10750_v61 }
0x49f2   :  { %10760 = vrot.lane.b32.xlu1 %v20365_v43, %s18583_s6 }
0x49f6   :  { %10853 = vrot.lane.b32.xlu1 %v20363_v42, %s18598_s2 }
0x49f9   :  { %10762 = vrot.lane.b32.xlu0 %v20363_v42, %s18583_s6 }
0x49fa   :  { %10847 = vrot.lane.b32.xlu1 %v20365_v43, %s18599_s8 }
0x49fd   :  { %10851 = vrot.lane.b32.xlu0 %v20365_v43, %s18598_s2 }
0x4a01   :  { %10849 = vrot.lane.b32.xlu0 %v20363_v42, %s18599_s8 }
0x4a6a   :  { %v10755_v48 = vpop.xlane.xlu1 %10754 }
0x4a6b   :  { %18430 = vrcp.f32 %v10755_v48 }
0x4a6c   :  { %v10752_v30 = vpop.xlane.xlu0 %10751 }
0x4a6d   :  { %18432 = vrcp.f32 %v10752_v30 }
0x4a6e   :  { %v10761_v63 = vpop.permute.xlu1 %10760 }
0x4a70   :  { %v10763_v1 = vpop.permute.xlu0 %10762 }
0x4a71   :  { %17746 = vmatprep.subr.mxu1 %v10763_v1 }
0x4a72   :  { %17747 = vmatpush3.msra.mxu1 %v10763_v1  ;;  %v10854_v2 = vpop.permute.xlu1 %10853 }
0x4a73   :  { %17748 = vmatprep.subr.mxu1 %v10761_v63 }
0x4a74   :  { %17749 = vmatpush3.msra.mxu1 %v10761_v63  ;;  %v10852_v47 = vpop.permute.xlu0 %10851 }
0x4a75   :  { %17753 = vmatprep.subr.msk.mxu1 %vm5430_vm4, %v10854_v2 }
0x4a76   :  { %v10848_v6 = vpop.permute.xlu1 %10847 }
0x4a78   :  { %v18431_v4 = vpop.eup %18430  ;;  %v10850_v7 = vpop.permute.xlu0 %10849 }
0x4a79   :  { %v10759_v60 = vmul.f32 %v18431_v4, %v18427_v59 }
0x4a7a   :  { %v18433_v57 = vpop.eup %18432 }
0x4a7b   :  { %v10758_v39 = vmul.f32 %v18433_v57, %v18429_v36 }
0x4a7d   :  { %17750 = vmatprep.mubr.msk.f32.mxu1 %vm238_vm2, %v10758_v39 }
0x4a7e   :  { %17751 = vmatmul.mubr.msk.f32.vlgmr.msra.gmra.mxu1 %vm238_vm2, %v10759_v60 }
0x4a7f   :  { %17754 = vmatpush3.xpose.msk.msra.mxu1 %vm5430_vm4, %v10854_v2  ;;  %17757 = vmatprep.mubr.msk.f32.mxu1 %vm5430_vm4, %v10848_v6 }
0x4a80   :  { %17755 = vmatprep.subr.msk.mxu1 %vm5430_vm4, %v10852_v47 }
0x4a83   :  { %17756 = vmatpush3.xpose.msk.msra.mxu1 %vm5430_vm4, %v10852_v47 }
0x4a84   :  { %17772 = vmatprep.subr.msk.mxu1 %vm5831_vm5, %v10645_v45 }
0x4a86   :  { %17758 = vmatmul.mubr.msk.f32.vlgmr.msra.gmra.mxu1 %vm5430_vm4, %v10850_v7 }
0x4a87   :  { %17773 = vmatpush3.msk.msra.mxu1 %vm5831_vm5, %v10645_v45 }
0x4b3e   :  { %v17752_v8 = vpop.f32.mrf.mxu1 }
0x4b40   :  { %v10838_v12 = vpop.f32.mrf.mxu1 }
0x4b41   :  { %17774 = vmatprep.mubr.msk.f32.mxu1 %vm5430_vm4, %v10838_v12 }
0x4b42   :  { %17775 = vmatmul.mubr.msk.f32.vlgmr.msra.gmra.mxu1 %vm5430_vm4, %v17752_v8 }
0x4b46   :  { %v17759_v13 = vpop.f32.mrf.mxu1 }
0x4b47   :  { %v10935_v14 = vadd.f32 %v20382_v52, %v17759_v13 }
0x4b48   :  { %v10929_v15 = vpop.f32.mrf.mxu1 }
0x4b49   :  { %v10930_v19 = vadd.f32 %v20388_v10, %v10929_v15  ;;  %v10941_v24 = vsel %vm238_vm2, %v10935_v14, -inf }
0x4b4a   :  { %10942 = vmax.xlane.f32.xlu0 %v10941_v24 }
0x4b4b   :  { %v10938_v26 = vsel %vm238_vm2, %v10930_v19, -inf }
0x4b4c   :  { %10939 = vmax.xlane.f32.xlu1 %v10938_v26 }
0x4bd3   :  { %v10943_v55 = vpop.xlane.xlu0 %10942 }
0x4bd4   :  { %v10945_v34 = vsub.f32 %v10935_v14, %v10943_v55 }
0x4bd5   :  { %v10940_v11 = vpop.xlane.xlu1 %10939 }
0x4bd6   :  { %v10948_v27 = vmul.f32 1.442695, %v10945_v34  ;;  %v10944_v32 = vsub.f32 %v10930_v19, %v10940_v11 }
0x4bd8   :  { %18434 = vpow2.f32 %v10948_v27  ;;  %v10946_v22 = vmul.f32 1.442695, %v10944_v32 }
0x4bda   :  { %18436 = vpow2.f32 %v10946_v22 }
0x4be5   :  { %v18435_v18 = vpop.eup %18434 }
0x4be6   :  { %v10953_v29 = vsel %vm238_vm2, %v18435_v18, 0.0 }
0x4be7   :  { %v18437_v50 = vpop.eup %18436  ;;  %10954 = vadd.xlane.f32.xlu1 %v10953_v29 }
0x4be8   :  { %v10950_v49 = vsel %vm238_vm2, %v18437_v50, 0.0 }
0x4be9   :  { %10951 = vadd.xlane.f32.xlu0 %v10950_v49 }
0x4bf8   :  { %10960 = vrot.lane.b32.xlu1 %v20365_v43, %s18600_s9 }
0x4bfc   :  { %11221 = vrot.lane.b32.xlu1 %v20363_v42, %s18593_s26 }
0x4bff   :  { %10962 = vrot.lane.b32.xlu0 %v20363_v42, %s18600_s9 }
0x4c00   :  { %11215 = vrot.lane.b32.xlu1 %v20365_v43, %s18585_s12 }
0x4c03   :  { %11219 = vrot.lane.b32.xlu0 %v20365_v43, %s18593_s26 }
0x4c04   :  { %11507 = vrot.lane.b32.xlu1 %v20363_v42, %s18601_s23 }
0x4c07   :  { %11217 = vrot.lane.b32.xlu0 %v20363_v42, %s18585_s12 }
0x4c08   :  { %11501 = vrot.lane.b32.xlu1 %v20365_v43, %s18602_s24 }
0x4c0b   :  { %11505 = vrot.lane.b32.xlu0 %v20365_v43, %s18601_s23 }
0x4c0f   :  { %11503 = vrot.lane.b32.xlu0 %v20363_v42, %s18602_s24 }
0x4c70   :  { %v10955_v9 = vpop.xlane.xlu1 %10954 }
0x4c71   :  { %18438 = vrcp.f32 %v10955_v9 }
0x4c72   :  { %v10952_v44 = vpop.xlane.xlu0 %10951 }
0x4c73   :  { %18440 = vrcp.f32 %v10952_v44 }
0x4c74   :  { %v10961_v40 = vpop.permute.xlu1 %10960 }
0x4c76   :  { %v10963_v62 = vpop.permute.xlu0 %10962 }
0x4c77   :  { %17760 = vmatprep.subr.mxu0 %v10963_v62 }
0x4c78   :  { %17761 = vmatpush3.msra.mxu0 %v10963_v62  ;;  %v11222_v37 = vpop.permute.xlu1 %11221 }
0x4c79   :  { %17762 = vmatprep.subr.mxu0 %v10961_v40 }
0x4c7a   :  { %17763 = vmatpush3.msra.mxu0 %v10961_v40  ;;  %v11220_v56 = vpop.permute.xlu0 %11219 }
0x4c7b   :  { %17767 = vmatprep.subr.msk.mxu0 %vm5831_vm5, %v11048_v20 }
0x4c7c   :  { %v11216_v31 = vpop.permute.xlu1 %11215 }
0x4c7e   :  { %v18439_v51 = vpop.eup %18438  ;;  %v11218_v17 = vpop.permute.xlu0 %11217 }
0x4c7f   :  { %v10959_v53 = vmul.f32 %v18439_v51, %v18435_v18 }
0x4c80   :  { %v18441_v5 = vpop.eup %18440  ;;  %v11508_v58 = vpop.permute.xlu1 %11507 }
0x4c81   :  { %v10958_v38 = vmul.f32 %v18441_v5, %v18437_v50 }
0x4c82   :  { %v11506_v59 = vpop.permute.xlu0 %11505 }
0x4c83   :  { %17764 = vmatprep.mubr.msk.f32.mxu0 %vm238_vm2, %v10958_v38 }
0x4c84   :  { %17765 = vmatmul.mubr.msk.f32.vlgmr.msra.gmra.mxu0 %vm238_vm2, %v10959_v53  ;;  %v11502_v0 = vpop.permute.xlu1 %11501 }
0x4c85   :  { %17768 = vmatpush3.msk.msra.mxu0 %vm5831_vm5, %v11048_v20 }
0x4c86   :  { %17777 = vmatprep.subr.msk.mxu0 %vm5430_vm4, %v11222_v37  ;;  %v11504_v23 = vpop.permute.xlu0 %11503 }
0x4d44   :  { %v17766_v54 = vpop.f32.mrf.mxu0 }
0x4d46   :  { %v11038_v46 = vpop.f32.mrf.mxu0 }
0x4d47   :  { %17769 = vmatprep.mubr.msk.f32.mxu0 %vm5430_vm4, %v11038_v46  ;;  %v10646_v46 = vld [vmem:[%s21141_s3 + $0x128] sm:$0xff] }
0x4d48   :  { %17770 = vmatmul.mubr.msk.f32.vlgmr.msra.gmra.mxu0 %vm5430_vm4, %v17766_v54 }
0x4d49   :  { %17778 = vmatpush3.xpose.msk.msra.mxu0 %vm5430_vm4, %v11222_v37  ;;  %17781 = vmatprep.mubr.msk.f32.mxu0 %vm5430_vm4, %v11216_v31 }
0x4d4a   :  { %17779 = vmatprep.subr.msk.mxu0 %vm5430_vm4, %v11220_v56 }
0x4d4d   :  { %17780 = vmatpush3.xpose.msk.msra.mxu0 %vm5430_vm4, %v11220_v56 }
0x4d4e   :  { %17796 = vmatprep.subr.msk.mxu0 %vm5430_vm4, %v11508_v58 }
0x4d50   :  { %17782 = vmatmul.mubr.msk.f32.vlgmr.msra.gmra.mxu0 %vm5430_vm4, %v11218_v17 }
0x4d51   :  { %17797 = vmatpush3.xpose.msk.msra.mxu0 %vm5430_vm4, %v11508_v58  ;;  %17800 = vmatprep.mubr.msk.f32.mxu0 %vm5430_vm4, %v11502_v0  ;;  %v20519_v58 = vpop.f32.mrf.mxu1 }
0x4d52   :  { %17798 = vmatprep.subr.msk.mxu0 %vm5430_vm4, %v11506_v59 }
0x4d53   :  { %v20521_v0 = vpop.f32.mrf.mxu1 }
0x4d55   :  { %17799 = vmatpush3.xpose.msk.msra.mxu0 %vm5430_vm4, %v11506_v59 }
0x4d58   :  { %17801 = vmatmul.mubr.msk.f32.vlgmr.msra.gmra.mxu0 %vm5430_vm4, %v11504_v23 }
0x4e08   :  { %v20466_v36 = vpop.f32.mrf.mxu0 }
0x4e0a   :  { %v20468_v61 = vpop.f32.mrf.mxu0 }
0x4e10   :  { %v17783_v48 = vpop.f32.mrf.mxu0 }
0x4e11   :  { %v11303_v30 = vadd.f32 %v20382_v52, %v17783_v48 }
0x4e12   :  { %v11297_v63 = vpop.f32.mrf.mxu0 }
0x4e13   :  { %v11298_v1 = vadd.f32 %v20388_v10, %v11297_v63  ;;  %v11309_v2 = vsel %vm238_vm2, %v11303_v30, -inf }
0x4e14   :  { %11310 = vmax.xlane.f32.xlu0 %v11309_v2 }
0x4e15   :  { %v11306_v4 = vsel %vm238_vm2, %v11298_v1, -inf }
0x4e16   :  { %11307 = vmax.xlane.f32.xlu1 %v11306_v4 }
0x4e18   :  { %v17802_v14 = vpop.f32.mrf.mxu0 }
0x4e19   :  { %v11589_v24 = vadd.f32 %v20382_v52, %v17802_v14 }
0x4e1a   :  { %v11583_v15 = vpop.f32.mrf.mxu0 }
0x4e1b   :  { %v11584_v19 = vadd.f32 %v20388_v10, %v11583_v15  ;;  %v11595_v55 = vsel %vm238_vm2, %v11589_v24, -inf }
0x4e1d   :  { %v11592_v26 = vsel %vm238_vm2, %v11584_v19, -inf }
0x4e9d   :  { %v11311_v57 = vpop.xlane.xlu0 %11310 }
0x4e9e   :  { %v11313_v39 = vsub.f32 %v11303_v30, %v11311_v57 }
0x4e9f   :  { %v11308_v60 = vpop.xlane.xlu1 %11307 }
0x4ea0   :  { %v11316_v6 = vmul.f32 1.442695, %v11313_v39  ;;  %v11312_v47 = vsub.f32 %v11298_v1, %v11308_v60  ;;  %v11701_v60 = vrot.slane %v10646_v46, 4 }
0x4ea2   :  { %18442 = vpow2.f32 %v11316_v6  ;;  %v11314_v7 = vmul.f32 1.442695, %v11312_v47 }
0x4ea4   :  { %18444 = vpow2.f32 %v11314_v7 }
0x4eaf   :  { %v18443_v45 = vpop.eup %18442 }
0x4eb0   :  { %v11321_v8 = vsel %vm238_vm2, %v18443_v45, 0.0 }
0x4eb1   :  { %v18445_v12 = vpop.eup %18444  ;;  %11322 = vadd.xlane.f32.xlu1 %v11321_v8 }
0x4eb2   :  { %v11318_v13 = vsel %vm238_vm2, %v18445_v12, 0.0 }
0x4eb3   :  { %11319 = vadd.xlane.f32.xlu0 %v11318_v13 }
0x4ec2   :  { %11328 = vrot.lane.b32.xlu1 %v20365_v43, %s18584_s11 }
0x4ec6   :  { %11793 = vrot.lane.b32.xlu1 %v20363_v42, %s18595_s30 }
0x4ec9   :  { %11330 = vrot.lane.b32.xlu0 %v20363_v42, %s18584_s11 }
0x4eca   :  { %11787 = vrot.lane.b32.xlu1 %v20365_v43, %s18588_s17 }
0x4ecd   :  { %11791 = vrot.lane.b32.xlu0 %v20365_v43, %s18595_s30 }
0x4ed1   :  { %11789 = vrot.lane.b32.xlu0 %v20363_v42, %s18588_s17 }
0x4eee   :  { %11593 = vmax.xlane.f32.xlu1 %v11592_v26 }
0x4ef0   :  { %11596 = vmax.xlane.f32.xlu0 %v11595_v55 }
0x4f3a   :  { %v11323_v34 = vpop.xlane.xlu1 %11322 }
0x4f3b   :  { %18446 = vrcp.f32 %v11323_v34 }
0x4f3c   :  { %v11320_v11 = vpop.xlane.xlu0 %11319 }
0x4f3d   :  { %18448 = vrcp.f32 %v11320_v11 }
0x4f3e   :  { %v11329_v27 = vpop.permute.xlu1 %11328 }
0x4f40   :  { %v11331_v32 = vpop.permute.xlu0 %11330 }
0x4f41   :  { %17784 = vmatprep.subr.mxu1 %v11331_v32 }
0x4f42   :  { %17785 = vmatpush3.msra.mxu1 %v11331_v32  ;;  %v11794_v22 = vpop.permute.xlu1 %11793 }
0x4f43   :  { %17786 = vmatprep.subr.mxu1 %v11329_v27  ;;  %17815 = vmatprep.subr.msk.mxu0 %vm5430_vm4, %v11794_v22 }
0x4f44   :  { %v11792_v18 = vpop.permute.xlu0 %11791  ;;  %17787 = vmatpush3.msra.mxu1 %v11329_v27  ;;  %17816 = vmatpush3.xpose.msk.msra.mxu0 %vm5430_vm4, %v11794_v22 }
0x4f45   :  { %17817 = vmatprep.subr.msk.mxu0 %vm5430_vm4, %v11792_v18  ;;  %17791 = vmatprep.subr.msk.mxu1 %vm5831_vm5, %v10646_v46 }
0x4f46   :  { %v11788_v29 = vpop.permute.xlu1 %11787 }
0x4f47   :  { %17819 = vmatprep.mubr.msk.f32.mxu0 %vm5430_vm4, %v11788_v29  ;;  %v11212_v29 = vadd.f32 %v20519_v58, %v20466_v36 }
0x4f48   :  { %17818 = vmatpush3.xpose.msk.msra.mxu0 %vm5430_vm4, %v11792_v18  ;;  %v18447_v50 = vpop.eup %18446  ;;  %v11790_v9 = vpop.permute.xlu0 %11789 }
0x4f49   :  { %v11327_v62 = vmul.f32 %v18447_v50, %v18443_v45 }
0x4f4a   :  { %v18449_v49 = vpop.eup %18448 }
0x4f4b   :  { %17820 = vmatmul.mubr.msk.f32.vlgmr.msra.gmra.mxu0 %vm5430_vm4, %v11790_v9  ;;  %v11326_v44 = vmul.f32 %v18449_v49, %v18445_v12  ;;  %v11207_v49 = vadd.f32 %v20521_v0, %v20468_v61 }
0x4f4d   :  { %17788 = vmatprep.mubr.msk.f32.mxu1 %vm238_vm2, %v11326_v44 }
0x4f4e   :  { %17789 = vmatmul.mubr.msk.f32.vlgmr.msra.gmra.mxu1 %vm238_vm2, %v11327_v62 }
0x4f4f   :  { %17792 = vmatpush3.msk.msra.mxu1 %vm5831_vm5, %v10646_v46 }
0x4f77   :  { %v11594_v20 = vpop.xlane.xlu1 %11593 }
0x4f78   :  { %v11598_v40 = vsub.f32 %v11584_v19, %v11594_v20 }
0x4f79   :  { %v11597_v51 = vpop.xlane.xlu0 %11596 }
0x4f7a   :  { %v11600_v5 = vmul.f32 1.442695, %v11598_v40  ;;  %v11599_v38 = vsub.f32 %v11589_v24, %v11597_v51 }
0x4f7c   :  { %18450 = vpow2.f32 %v11600_v5  ;;  %v11602_v53 = vmul.f32 1.442695, %v11599_v38 }
0x4f7e   :  { %18452 = vpow2.f32 %v11602_v53 }
0x4f89   :  { %v18451_v37 = vpop.eup %18450 }
0x4f8a   :  { %v11604_v31 = vsel %vm238_vm2, %v18451_v37, 0.0 }
0x4f8b   :  { %v18453_v54 = vpop.eup %18452  ;;  %11605 = vadd.xlane.f32.xlu0 %v11604_v31 }
0x4f8c   :  { %v11607_v56 = vsel %vm238_vm2, %v18453_v54, 0.0 }
0x4f8d   :  { %11608 = vadd.xlane.f32.xlu1 %v11607_v56 }
0x4f9e   :  { %11614 = vrot.lane.b32.xlu1 %v20365_v43, %s21153_s21 }
0x4fa1   :  { %11616 = vrot.lane.b32.xlu0 %v20363_v42, %s21153_s21 }
0x4fa2   :  { %12079 = vrot.lane.b32.xlu1 %v20363_v42, %s18604_s25 }
0x4fa5   :  { %12077 = vrot.lane.b32.xlu0 %v20365_v43, %s18604_s25 }
0x4fa6   :  { %12073 = vrot.lane.b32.xlu1 %v20365_v43, %s18605_s15 }
0x4fa9   :  { %12075 = vrot.lane.b32.xlu0 %v20363_v42, %s18605_s15 }
0x500b   :  { %v17821_v17 = vpop.f32.mrf.mxu0 }
0x500c   :  { %v11875_v59 = vadd.f32 %v20382_v52, %v17821_v17 }
0x500d   :  { %v11869_v23 = vpop.f32.mrf.mxu0 }
0x500e   :  { %v11870_v48 = vadd.f32 %v20388_v10, %v11869_v23  ;;  %v17790_v30 = vpop.f32.mrf.mxu1  ;;  %v11881_v63 = vsel %vm238_vm2, %v11875_v59, -inf }
0x500f   :  { %11882 = vmax.xlane.f32.xlu0 %v11881_v63 }
0x5010   :  { %v11406_v1 = vpop.f32.mrf.mxu1  ;;  %v11878_v2 = vsel %vm238_vm2, %v11870_v48, -inf }
0x5011   :  { %17793 = vmatprep.mubr.msk.f32.mxu1 %vm5430_vm4, %v11406_v1  ;;  %11879 = vmax.xlane.f32.xlu1 %v11878_v2 }
0x5012   :  { %17794 = vmatmul.mubr.msk.f32.vlgmr.msra.gmra.mxu1 %vm5430_vm4, %v17790_v30 }
0x5014   :  { %v11606_v4 = vpop.xlane.xlu0 %11605 }
0x5015   :  { %18454 = vrcp.f32 %v11606_v4 }
0x5016   :  { %v11609_v57 = vpop.xlane.xlu1 %11608 }
0x5017   :  { %18456 = vrcp.f32 %v11609_v57 }
0x5018   :  { %v11617_v39 = vpop.permute.xlu0 %11616 }
0x5019   :  { %17803 = vmatprep.subr.mxu1 %v11617_v39 }
0x501a   :  { %17804 = vmatpush3.msra.mxu1 %v11617_v39  ;;  %v11615_v6 = vpop.permute.xlu1 %11614 }
0x501b   :  { %17805 = vmatprep.subr.mxu1 %v11615_v6 }
0x501c   :  { %17806 = vmatpush3.msra.mxu1 %v11615_v6  ;;  %v12078_v7 = vpop.permute.xlu0 %12077 }
0x501d   :  { %17810 = vmatprep.subr.msk.mxu1 %vm5831_vm5, %v11701_v60 }
0x501e   :  { %v12080_v47 = vpop.permute.xlu1 %12079 }
0x501f   :  { %17834 = vmatprep.subr.msk.mxu0 %vm5430_vm4, %v12080_v47 }
0x5020   :  { %17835 = vmatpush3.xpose.msk.msra.mxu0 %vm5430_vm4, %v12080_v47  ;;  %v12076_v15 = vpop.permute.xlu0 %12075 }
0x5021   :  { %17836 = vmatprep.subr.msk.mxu0 %vm5430_vm4, %v12078_v7 }
0x5022   :  { %v18455_v45 = vpop.eup %18454  ;;  %v12074_v8 = vpop.permute.xlu1 %12073 }
0x5023   :  { %17838 = vmatprep.mubr.msk.f32.mxu0 %vm5430_vm4, %v12074_v8  ;;  %v11612_v12 = vmul.f32 %v18455_v45, %v18451_v37  ;;  %v10647_v45 = vld [vmem:[%s21141_s3 + $0x130] sm:$0xff] }
0x5024   :  { %v18457_v13 = vpop.eup %18456  ;;  %17837 = vmatpush3.xpose.msk.msra.mxu0 %vm5430_vm4, %v12078_v7 }
0x5025   :  { %v11613_v14 = vmul.f32 %v18457_v13, %v18453_v54  ;;  %17807 = vmatprep.mubr.msk.f32.mxu1 %vm238_vm2, %v11612_v12 }
0x5027   :  { %17808 = vmatmul.mubr.msk.f32.vlgmr.msra.gmra.mxu1 %vm238_vm2, %v11613_v14  ;;  %17839 = vmatmul.mubr.msk.f32.vlgmr.msra.gmra.mxu0 %vm5430_vm4, %v12076_v15 }
0x5028   :  { %17811 = vmatpush3.msk.msra.mxu1 %vm5831_vm5, %v11701_v60 }
0x5098   :  { %v11883_v19 = vpop.xlane.xlu0 %11882 }
0x5099   :  { %v11885_v24 = vsub.f32 %v11875_v59, %v11883_v19 }
0x509a   :  { %v11880_v26 = vpop.xlane.xlu1 %11879 }
0x509b   :  { %v11888_v55 = vmul.f32 1.442695, %v11885_v24  ;;  %v11884_v34 = vsub.f32 %v11870_v48, %v11880_v26 }
0x509d   :  { %18458 = vpow2.f32 %v11888_v55  ;;  %v11886_v11 = vmul.f32 1.442695, %v11884_v34 }
0x509f   :  { %18460 = vpow2.f32 %v11886_v11 }
0x50aa   :  { %v18459_v27 = vpop.eup %18458 }
0x50ab   :  { %v11893_v32 = vsel %vm238_vm2, %v18459_v27, 0.0 }
0x50ac   :  { %v18461_v22 = vpop.eup %18460  ;;  %11894 = vadd.xlane.f32.xlu1 %v11893_v32 }
0x50ad   :  { %v11890_v18 = vsel %vm238_vm2, %v18461_v22, 0.0 }
0x50ae   :  { %11891 = vadd.xlane.f32.xlu0 %v11890_v18 }
0x50bd   :  { %11900 = vrot.lane.b32.xlu1 %v20365_v43, %s21154_s29 }
0x50c1   :  { %12365 = vrot.lane.b32.xlu1 %v20363_v42, %s18597_s10 }
0x50c4   :  { %11902 = vrot.lane.b32.xlu0 %v20363_v42, %s21154_s29 }
0x50c5   :  { %12359 = vrot.lane.b32.xlu1 %v20365_v43, %s18587_s14 }
0x50c8   :  { %12363 = vrot.lane.b32.xlu0 %v20365_v43, %s18597_s10 }
0x50cc   :  { %12361 = vrot.lane.b32.xlu0 %v20363_v42, %s18587_s14 }
0x50d2   :  { %v17795_v50 = vpop.f32.mrf.mxu1 }
0x50d3   :  { %v20557_v9 = vadd.f32 %v17795_v50, %v11212_v29  ;;  %v12273_v29 = vrot.slane %v10647_v45, 4 }
0x50d4   :  { %v11490_v44 = vpop.f32.mrf.mxu1 }
0x50d5   :  { %v20559_v62 = vadd.f32 %v11490_v44, %v11207_v49 }
0x50e7   :  { %v17809_v20 = vpop.f32.mrf.mxu1  ;;  %v17840_v40 = vpop.f32.mrf.mxu0 }
0x50e8   :  { %v12161_v51 = vadd.f32 %v20382_v52, %v17840_v40 }
0x50e9   :  { %v11692_v5 = vpop.f32.mrf.mxu1  ;;  %v12155_v38 = vpop.f32.mrf.mxu0 }
0x50ea   :  { %v12156_v53 = vadd.f32 %v20388_v10, %v12155_v38  ;;  %17812 = vmatprep.mubr.msk.f32.mxu1 %vm5430_vm4, %v11692_v5  ;;  %v12167_v36 = vsel %vm238_vm2, %v12161_v51, -inf }
0x50eb   :  { %17813 = vmatmul.mubr.msk.f32.vlgmr.msra.gmra.mxu1 %vm5430_vm4, %v17809_v20  ;;  %12168 = vmax.xlane.f32.xlu0 %v12167_v36 }
0x50ec   :  { %v12164_v61 = vsel %vm238_vm2, %v12156_v53, -inf }
0x50ed   :  { %12165 = vmax.xlane.f32.xlu1 %v12164_v61 }
0x5135   :  { %v11895_v37 = vpop.xlane.xlu1 %11894 }
0x5136   :  { %18462 = vrcp.f32 %v11895_v37 }
0x5137   :  { %v11892_v31 = vpop.xlane.xlu0 %11891 }
0x5138   :  { %18464 = vrcp.f32 %v11892_v31 }
0x5139   :  { %v11901_v54 = vpop.permute.xlu1 %11900 }
0x513b   :  { %v11903_v56 = vpop.permute.xlu0 %11902 }
0x513c   :  { %17822 = vmatprep.subr.mxu1 %v11903_v56 }
0x513d   :  { %17823 = vmatpush3.msra.mxu1 %v11903_v56  ;;  %v12366_v46 = vpop.permute.xlu1 %12365 }
0x513e   :  { %17824 = vmatprep.subr.mxu1 %v11901_v54  ;;  %17853 = vmatprep.subr.msk.mxu0 %vm5430_vm4, %v12366_v46 }
0x513f   :  { %v12364_v58 = vpop.permute.xlu0 %12363  ;;  %17825 = vmatpush3.msra.mxu1 %v11901_v54  ;;  %17854 = vmatpush3.xpose.msk.msra.mxu0 %vm5430_vm4, %v12366_v46 }
0x5140   :  { %17855 = vmatprep.subr.msk.mxu0 %vm5430_vm4, %v12364_v58  ;;  %17829 = vmatprep.subr.msk.mxu1 %vm5831_vm5, %v10647_v45 }
0x5141   :  { %v12360_v17 = vpop.permute.xlu1 %12359 }
0x5142   :  { %17857 = vmatprep.mubr.msk.f32.mxu0 %vm5430_vm4, %v12360_v17 }
0x5143   :  { %17856 = vmatpush3.xpose.msk.msra.mxu0 %vm5430_vm4, %v12364_v58  ;;  %v18463_v0 = vpop.eup %18462  ;;  %v12362_v23 = vpop.permute.xlu0 %12361 }
0x5144   :  { %v11899_v30 = vmul.f32 %v18463_v0, %v18459_v27 }
0x5145   :  { %v18465_v59 = vpop.eup %18464 }
0x5146   :  { %17858 = vmatmul.mubr.msk.f32.vlgmr.msra.gmra.mxu0 %vm5430_vm4, %v12362_v23  ;;  %v11898_v48 = vmul.f32 %v18465_v59, %v18461_v22 }
0x5148   :  { %17826 = vmatprep.mubr.msk.f32.mxu1 %vm238_vm2, %v11898_v48 }
0x5149   :  { %17827 = vmatmul.mubr.msk.f32.vlgmr.msra.gmra.mxu1 %vm238_vm2, %v11899_v30 }
0x514a   :  { %17830 = vmatpush3.msk.msra.mxu1 %vm5831_vm5, %v10647_v45 }
0x5174   :  { %v12169_v63 = vpop.xlane.xlu0 %12168 }
0x5175   :  { %v12171_v1 = vsub.f32 %v12161_v51, %v12169_v63 }
0x5176   :  { %v12166_v2 = vpop.xlane.xlu1 %12165 }
0x5177   :  { %v12174_v4 = vmul.f32 1.442695, %v12171_v1  ;;  %v12170_v57 = vsub.f32 %v12156_v53, %v12166_v2 }
0x5179   :  { %18466 = vpow2.f32 %v12174_v4  ;;  %v12172_v39 = vmul.f32 1.442695, %v12170_v57 }
0x517b   :  { %18468 = vpow2.f32 %v12172_v39 }
0x5186   :  { %v18467_v60 = vpop.eup %18466 }
0x5187   :  { %v12179_v6 = vsel %vm238_vm2, %v18467_v60, 0.0 }
0x5188   :  { %v18469_v47 = vpop.eup %18468  ;;  %12180 = vadd.xlane.f32.xlu1 %v12179_v6 }
0x5189   :  { %v12176_v7 = vsel %vm238_vm2, %v18469_v47, 0.0 }
0x518a   :  { %12177 = vadd.xlane.f32.xlu0 %v12176_v7 }
0x5199   :  { %12186 = vrot.lane.b32.xlu1 %v20365_v43, %s21155_s13 }
0x519d   :  { %12651 = vrot.lane.b32.xlu1 %v20363_v42, %s18607_s20 }
0x51a0   :  { %12188 = vrot.lane.b32.xlu0 %v20363_v42, %s21155_s13 }
0x51a1   :  { %12645 = vrot.lane.b32.xlu1 %v20365_v43, %s18608_s27 }
0x51a4   :  { %12649 = vrot.lane.b32.xlu0 %v20365_v43, %s18607_s20 }
0x51a8   :  { %12647 = vrot.lane.b32.xlu0 %v20363_v42, %s18608_s27 }
0x51ab   :  { %v17814_v8 = vpop.f32.mrf.mxu1 }
0x51ac   :  { %v11786_v12 = vadd.f32 %v17814_v8, %v20557_v9 }
0x51ad   :  { %v11776_v14 = vpop.f32.mrf.mxu1 }
0x51ae   :  { %v11785_v0 = vadd.f32 %v11776_v14, %v20559_v62 }
0x5206   :  { %v17859_v13 = vpop.f32.mrf.mxu0 }
0x5207   :  { %v12447_v15 = vadd.f32 %v20382_v52, %v17859_v13 }
0x5208   :  { %v12441_v19 = vpop.f32.mrf.mxu0 }
0x5209   :  { %v12442_v24 = vadd.f32 %v20388_v10, %v12441_v19  ;;  %v17828_v26 = vpop.f32.mrf.mxu1  ;;  %v12453_v55 = vsel %vm238_vm2, %v12447_v15, -inf }
0x520a   :  { %12454 = vmax.xlane.f32.xlu0 %v12453_v55 }
0x520b   :  { %v11978_v34 = vpop.f32.mrf.mxu1  ;;  %v12450_v11 = vsel %vm238_vm2, %v12442_v24, -inf }
0x520c   :  { %17831 = vmatprep.mubr.msk.f32.mxu1 %vm5430_vm4, %v11978_v34  ;;  %12451 = vmax.xlane.f32.xlu1 %v12450_v11 }
0x520d   :  { %17832 = vmatmul.mubr.msk.f32.vlgmr.msra.gmra.mxu1 %vm5430_vm4, %v17828_v26 }
0x5211   :  { %v12181_v27 = vpop.xlane.xlu1 %12180 }
0x5212   :  { %18470 = vrcp.f32 %v12181_v27  ;;  %v10648_v27 = vld [vmem:[%s21141_s3 + $0x138] sm:$0xff] }
0x5213   :  { %v12178_v32 = vpop.xlane.xlu0 %12177 }
0x5214   :  { %18472 = vrcp.f32 %v12178_v32 }
0x5215   :  { %v12187_v22 = vpop.permute.xlu1 %12186 }
0x5217   :  { %v12189_v18 = vpop.permute.xlu0 %12188 }
0x5218   :  { %17841 = vmatprep.subr.mxu1 %v12189_v18 }
0x5219   :  { %17842 = vmatpush3.msra.mxu1 %v12189_v18  ;;  %v12652_v50 = vpop.permute.xlu1 %12651 }
0x521a   :  { %17843 = vmatprep.subr.mxu1 %v12187_v22  ;;  %17872 = vmatprep.subr.msk.mxu0 %vm5430_vm4, %v12652_v50 }
0x521b   :  { %v12650_v49 = vpop.permute.xlu0 %12649  ;;  %17844 = vmatpush3.msra.mxu1 %v12187_v22  ;;  %17873 = vmatpush3.xpose.msk.msra.mxu0 %vm5430_vm4, %v12652_v50 }
0x521c   :  { %17874 = vmatprep.subr.msk.mxu0 %vm5430_vm4, %v12650_v49  ;;  %17848 = vmatprep.subr.msk.mxu1 %vm5831_vm5, %v12273_v29 }
0x521d   :  { %v12646_v9 = vpop.permute.xlu1 %12645 }
0x521e   :  { %17876 = vmatprep.mubr.msk.f32.mxu0 %vm5430_vm4, %v12646_v9 }
0x521f   :  { %17875 = vmatpush3.xpose.msk.msra.mxu0 %vm5430_vm4, %v12650_v49  ;;  %v18471_v44 = vpop.eup %18470  ;;  %v12648_v40 = vpop.permute.xlu0 %12647 }
0x5220   :  { %v12185_v5 = vmul.f32 %v18471_v44, %v18467_v60 }
0x5221   :  { %v18473_v20 = vpop.eup %18472 }
0x5222   :  { %17877 = vmatmul.mubr.msk.f32.vlgmr.msra.gmra.mxu0 %vm5430_vm4, %v12648_v40  ;;  %v12184_v51 = vmul.f32 %v18473_v20, %v18469_v47  ;;  %v12845_v20 = vrot.slane %v10648_v27, 4 }
0x5224   :  { %17845 = vmatprep.mubr.msk.f32.mxu1 %vm238_vm2, %v12184_v51 }
0x5225   :  { %17846 = vmatmul.mubr.msk.f32.vlgmr.msra.gmra.mxu1 %vm238_vm2, %v12185_v5 }
0x5226   :  { %17849 = vmatpush3.msk.msra.mxu1 %vm5831_vm5, %v12273_v29 }
0x5293   :  { %v12455_v38 = vpop.xlane.xlu0 %12454 }
0x5294   :  { %v12457_v53 = vsub.f32 %v12447_v15, %v12455_v38  ;;  %v13093_v38 = vld [vmem:[%s21141_s3 + $0x178] sm:$0xff] }
0x5295   :  { %v12452_v36 = vpop.xlane.xlu1 %12451 }
0x5296   :  { %v12460_v61 = vmul.f32 1.442695, %v12457_v53  ;;  %v12456_v37 = vsub.f32 %v12442_v24, %v12452_v36 }
0x5298   :  { %18474 = vpow2.f32 %v12460_v61  ;;  %v12458_v31 = vmul.f32 1.442695, %v12456_v37 }
0x529a   :  { %18476 = vpow2.f32 %v12458_v31 }
0x52a5   :  { %v18475_v54 = vpop.eup %18474 }
0x52a6   :  { %v12465_v56 = vsel %vm238_vm2, %v18475_v54, 0.0 }
0x52a7   :  { %v18477_v46 = vpop.eup %18476  ;;  %12466 = vadd.xlane.f32.xlu1 %v12465_v56 }
0x52a8   :  { %v12462_v58 = vsel %vm238_vm2, %v18477_v46, 0.0 }
0x52a9   :  { %12463 = vadd.xlane.f32.xlu0 %v12462_v58  ;;  %v13091_v58 = vld [vmem:[%s21141_s3 + $0x168] sm:$0xff] }
0x52b8   :  { %12472 = vrot.lane.b32.xlu1 %v20365_v43, %s21156_s18 }
0x52bf   :  { %12474 = vrot.lane.b32.xlu0 %v20363_v42, %s21156_s18 }
0x52cd   :  { %v17833_v17 = vpop.f32.mrf.mxu1 }
0x52ce   :  { %v12072_v59 = vadd.f32 %v17833_v17, %v11786_v12  ;;  %v13090_v17 = vld [vmem:[%s21141_s3 + $0x160] sm:$0xff] }
0x52cf   :  { %v12062_v23 = vpop.f32.mrf.mxu1 }
0x52d0   :  { %v20618_v48 = vadd.f32 %v12062_v23, %v11785_v0  ;;  %v13002_v0 = vld [vmem:[%s21141_s3 + $0x150] sm:$0xff] }
0x52e2   :  { %v17878_v30 = vpop.f32.mrf.mxu0 }
0x52e3   :  { %v12733_v63 = vadd.f32 %v20382_v52, %v17878_v30 }
0x52e4   :  { %v12727_v1 = vpop.f32.mrf.mxu0 }
0x52e5   :  { %v12728_v2 = vadd.f32 %v20388_v10, %v12727_v1  ;;  %v17847_v4 = vpop.f32.mrf.mxu1  ;;  %v12739_v57 = vsel %vm238_vm2, %v12733_v63, -inf }
0x52e6   :  { %12740 = vmax.xlane.f32.xlu0 %v12739_v57  ;;  %v13094_v57 = vld [vmem:[%s21139_s4 + $0x40] ss:$0 sm:$0xff] }
0x52e7   :  { %v12264_v39 = vpop.f32.mrf.mxu1  ;;  %v12736_v60 = vsel %vm238_vm2, %v12728_v2, -inf }
0x52e8   :  { %17850 = vmatprep.mubr.msk.f32.mxu1 %vm5430_vm4, %v12264_v39  ;;  %12737 = vmax.xlane.f32.xlu1 %v12736_v60 }
0x52e9   :  { %17851 = vmatmul.mubr.msk.f32.vlgmr.msra.gmra.mxu1 %vm5430_vm4, %v17847_v4 }
0x5330   :  { %v12467_v62 = vpop.xlane.xlu1 %12466 }
0x5331   :  { %18478 = vrcp.f32 %v12467_v62 }
0x5332   :  { %v12464_v6 = vpop.xlane.xlu0 %12463 }
0x5333   :  { %18480 = vrcp.f32 %v12464_v6 }
0x5334   :  { %v12473_v47 = vpop.permute.xlu1 %12472 }
0x5336   :  { %v12475_v52 = vpop.permute.xlu0 %12474 }
0x5337   :  { %17860 = vmatprep.subr.mxu1 %v12475_v52 }
0x5338   :  { %17861 = vmatpush3.msra.mxu1 %v12475_v52 }
0x5339   :  { %17862 = vmatprep.subr.mxu1 %v12473_v47 }
0x533a   :  { %17863 = vmatpush3.msra.mxu1 %v12473_v47 }
0x533b   :  { %17867 = vmatprep.subr.msk.mxu1 %vm5831_vm5, %v10648_v27 }
0x533e   :  { %v18479_v10 = vpop.eup %18478 }
0x533f   :  { %v12471_v8 = vmul.f32 %v18479_v10, %v18475_v54 }
0x5340   :  { %v18481_v7 = vpop.eup %18480 }
0x5341   :  { %v12470_v45 = vmul.f32 %v18481_v7, %v18477_v46  ;;  %v13092_v46 = vld [vmem:[%s21141_s3 + $0x170] sm:$0xff] }
0x5343   :  { %17864 = vmatprep.mubr.msk.f32.mxu1 %vm238_vm2, %v12470_v45 }
0x5344   :  { %17865 = vmatmul.mubr.msk.f32.vlgmr.msra.gmra.mxu1 %vm238_vm2, %v12471_v8 }
0x5345   :  { %17868 = vmatpush3.msk.msra.mxu1 %vm5831_vm5, %v10648_v27  ;;  %v12945_v27 = vld [vmem:[%s21139_s4 + $0x45] ss:$0 sm:$0xff] }
0x536f   :  { %v12741_v12 = vpop.xlane.xlu0 %12740 }
0x5370   :  { %v12743_v13 = vsub.f32 %v12733_v63, %v12741_v12 }
0x5371   :  { %v12738_v14 = vpop.xlane.xlu1 %12737 }
0x5372   :  { %v12746_v15 = vmul.f32 1.442695, %v12743_v13  ;;  %v12742_v19 = vsub.f32 %v12728_v2, %v12738_v14 }
0x5374   :  { %18482 = vpow2.f32 %v12746_v15  ;;  %v12744_v24 = vmul.f32 1.442695, %v12742_v19 }
0x5376   :  { %18484 = vpow2.f32 %v12744_v24 }
0x5381   :  { %v18483_v26 = vpop.eup %18482 }
0x5382   :  { %v12751_v55 = vsel %vm238_vm2, %v18483_v26, 0.0 }
0x5383   :  { %v18485_v34 = vpop.eup %18484  ;;  %12752 = vadd.xlane.f32.xlu1 %v12751_v55 }
0x5384   :  { %v12748_v11 = vsel %vm238_vm2, %v18485_v34, 0.0 }
0x5385   :  { %12749 = vadd.xlane.f32.xlu0 %v12748_v11 }
0x5394   :  { %12758 = vrot.lane.b32.xlu1 %v20365_v43, %s21157_s28 }
0x539b   :  { %12760 = vrot.lane.b32.xlu0 %v20363_v42, %s21157_s28 }
0x53a9   :  { %v17852_v32 = vpop.f32.mrf.mxu1 }
0x53aa   :  { %v12358_v22 = vadd.f32 %v17852_v32, %v12072_v59  ;;  %v13001_v59 = vld [vmem:[%s21141_s3 + $0x148] sm:$0xff]  ;;  %v12944_v32 = vld [vmem:[%s21139_s4 + $0x44] ss:$0 sm:$0xff] }
0x53ab   :  { %v12348_v18 = vpop.f32.mrf.mxu1 }
0x53ac   :  { %v12357_v36 = vadd.f32 %v12348_v18, %v20618_v48  ;;  %v12931_v48 = vld [vmem:[%s21139_s4 + $0x36] ss:$0 sm:$0xff] }
0x5404   :  { %v17866_v29 = vpop.f32.mrf.mxu1 }
0x5406   :  { %v12550_v50 = vpop.f32.mrf.mxu1 }
0x5407   :  { %17869 = vmatprep.mubr.msk.f32.mxu1 %vm5430_vm4, %v12550_v50 }
0x5408   :  { %17870 = vmatmul.mubr.msk.f32.vlgmr.msra.gmra.mxu1 %vm5430_vm4, %v17866_v29 }
0x540c   :  { %v12753_v49 = vpop.xlane.xlu1 %12752 }
0x540d   :  { %18486 = vrcp.f32 %v12753_v49 }
0x540e   :  { %v12750_v9 = vpop.xlane.xlu0 %12749 }
0x540f   :  { %18488 = vrcp.f32 %v12750_v9 }
0x5410   :  { %v12759_v43 = vpop.permute.xlu1 %12758 }
0x5412   :  { %v12761_v44 = vpop.permute.xlu0 %12760 }
0x5413   :  { %17879 = vmatprep.subr.mxu1 %v12761_v44 }
0x5414   :  { %17880 = vmatpush3.msra.mxu1 %v12761_v44 }
0x5415   :  { %17881 = vmatprep.subr.mxu1 %v12759_v43 }
0x5416   :  { %17882 = vmatpush3.msra.mxu1 %v12759_v43 }
0x5417   :  { %17886 = vmatprep.subr.msk.mxu1 %vm5831_vm5, %v12845_v20 }
0x541a   :  { %v18487_v42 = vpop.eup %18486 }
0x541b   :  { %v12757_v5 = vmul.f32 %v18487_v42, %v18483_v26 }
0x541c   :  { %v18489_v40 = vpop.eup %18488 }
0x541d   :  { %v12756_v51 = vmul.f32 %v18489_v40, %v18485_v34 }
0x541f   :  { %17883 = vmatprep.mubr.msk.f32.mxu1 %vm238_vm2, %v12756_v51 }
0x5420   :  { %17884 = vmatmul.mubr.msk.f32.vlgmr.msra.gmra.mxu1 %vm238_vm2, %v12757_v5 }
0x5421   :  { %17887 = vmatpush3.msk.msra.mxu1 %vm5831_vm5, %v12845_v20 }
0x5422   :  { %17902 = vmatprep.subr.mxu1 %v13093_v38 }
0x54c8   :  { %v17871_v53 = vpop.f32.mrf.mxu1 }
0x54c9   :  { %v12644_v61 = vadd.f32 %v17871_v53, %v12358_v22 }
0x54ca   :  { %v12634_v37 = vpop.f32.mrf.mxu1 }
0x54cb   :  { %v12643_v31 = vadd.f32 %v12634_v37, %v12357_v36 }
0x54e0   :  { %v17885_v54 = vpop.f32.mrf.mxu1 }
0x54e2   :  { %v12836_v56 = vpop.f32.mrf.mxu1 }
0x54e3   :  { %17888 = vmatprep.mubr.msk.f32.mxu1 %vm5430_vm4, %v12836_v56 }
0x54e4   :  { %17889 = vmatmul.mubr.msk.f32.vlgmr.msra.gmra.mxu1 %vm5430_vm4, %v17885_v54 }
0x54e5   :  { %17903 = vmatpush3.msra.mxu1 %v13093_v38  ;;  %17910 = vmatprep.mubr.msk.f32.mxu1 %vm5340_vm3, %v19943_v28  ;;  %v13003_v28 = vld [vmem:[%s21141_s3 + $0x158] sm:$0xff] }
0x54e6   :  { %17904 = vmatprep.subr.mxu1 %v13092_v46  ;;  %17891 = vmatprep.subr.mxu0 %v13003_v28 }
0x54e7   :  { %17905 = vmatpush3.msra.mxu1 %v13092_v46  ;;  %17892 = vmatpush3.msra.mxu0 %v13003_v28  ;;  %v13004_v46 = vld [vmem:[%s21139_s4 + $0x37] ss:$0 sm:$0xff] }
0x54e8   :  { %17906 = vmatprep.subr.mxu1 %v13091_v58  ;;  %17893 = vmatprep.subr.mxu0 %v13002_v0 }
0x54e9   :  { %17907 = vmatpush3.msra.mxu1 %v13091_v58  ;;  %17894 = vmatpush3.msra.mxu0 %v13002_v0 }
0x54ea   :  { %17908 = vmatprep.subr.mxu1 %v13090_v17  ;;  %17895 = vmatprep.subr.mxu0 %v13001_v59 }
0x54eb   :  { %17909 = vmatpush3.msra.mxu1 %v13090_v17  ;;  %17896 = vmatpush3.msra.mxu0 %v13001_v59  ;;  %v20738_v59 = vld [vmem:[%s21140_s1 + $0x28] sm:$0xff] }
0x54ec   :  { %17911 = vmatmul.mubr.msk.f32.vlgmr.msra.gmra.mxu1 %vm5340_vm3, %v19946_v41  ;;  %v13000_v41 = vld [vmem:[%s21141_s3 + $0x140] sm:$0xff] }
0x54ed   :  { %17897 = vmatprep.subr.mxu0 %v13000_v41 }
0x54ee   :  { %17898 = vmatpush3.msra.mxu0 %v13000_v41 }
0x55a4   :  { %v17890_v23 = vpop.f32.mrf.mxu1 }
0x55a5   :  { %v12930_v30 = vadd.f32 %v17890_v23, %v12644_v61 }
0x55a6   :  { %v12920_v63 = vpop.f32.mrf.mxu1 }
0x55a7   :  { %v12933_v1 = vadd.f32 %v12931_v48, %v12930_v30  ;;  %v12929_v2 = vadd.f32 %v12920_v63, %v12643_v31 }
0x55a9   :  { %v12932_v4 = vadd.f32 %v12931_v48, %v12929_v2  ;;  %12938 = vrot.lane.b32.xlu0 %v12933_v1, %s18583_s6  ;;  %v20744_v48 = vld [vmem:[%s21140_s1 + $0x20] sm:$0xff] }
0x55ab   :  { %12936 = vrot.lane.b32.xlu1 %v12932_v4, %s18583_s6 }
0x55ac   :  { %v17912_v39 = vpop.f32.mrf.mxu1 }
0x55ad   :  { %v20684_v60 = vadd.f32 %v17912_v39, %v13094_v57 }
0x55ae   :  { %v13161_v61 = vpop.f32.mrf.mxu1 }
0x55af   :  { %17913 = vmatprep.subr.msk.mxu0 %vm5430_vm4, %v20684_v60  ;;  %v20715_v54 = vadd.f32 %v13161_v61, %v13094_v57 }
0x561b   :  { %v12939_v62 = vpop.permute.xlu0 %12938 }
0x561c   :  { %v12943_v6 = vadd.f32 %v12939_v62, %v20350_v33 }
0x561d   :  { %v12937_v52 = vpop.permute.xlu1 %12936 }
0x561e   :  { %v12942_v47 = vadd.f32 %v12937_v52, %v20352_v25  ;;  %12950 = vrot.lane.b32.xlu0 %v12943_v6, %s18583_s6 }
0x5620   :  { %12948 = vrot.lane.b32.xlu1 %v12942_v47, %s18583_s6 }
0x5690   :  { %v12951_v10 = vpop.permute.xlu0 %12950 }
0x5691   :  { %v12957_v7 = vsel %vm5340_vm3, %v12951_v10, 0.0 }
0x5692   :  { %12958 = vadd.xlane.f32.xlu0 %v12957_v7  ;;  %v12949_v45 = vpop.permute.xlu1 %12948 }
0x5693   :  { %v12954_v8 = vsel %vm5340_vm3, %v12949_v45, 0.0 }
0x5694   :  { %12955 = vadd.xlane.f32.xlu1 %v12954_v8 }
0x571b   :  { %v12959_v12 = vpop.xlane.xlu0 %12958 }
0x571c   :  { %v12961_v13 = vmul.f32 0.03125, %v12959_v12 }
0x571d   :  { %v12956_v14 = vpop.xlane.xlu1 %12955 }
0x571e   :  { %v12963_v15 = vsub.f32 %v12943_v6, %v12961_v13  ;;  %v12960_v33 = vmul.f32 0.03125, %v12956_v14 }
0x5720   :  { %v12965_v19 = vmul.f32 %v12963_v15, %v12963_v15  ;;  %v12962_v24 = vsub.f32 %v12942_v47, %v12960_v33 }
0x5722   :  { %v12964_v25 = vmul.f32 %v12962_v24, %v12962_v24  ;;  %12970 = vrot.lane.b32.xlu1 %v12965_v19, %s18583_s6 }
0x5724   :  { %12968 = vrot.lane.b32.xlu0 %v12964_v25, %s18583_s6 }
0x5794   :  { %v12971_v26 = vpop.permute.xlu1 %12970 }
0x5795   :  { %v12977_v55 = vsel %vm5340_vm3, %v12971_v26, 0.0 }
0x5796   :  { %v12969_v34 = vpop.permute.xlu0 %12968  ;;  %12978 = vadd.xlane.f32.xlu0 %v12977_v55 }
0x5797   :  { %v12974_v11 = vsel %vm5340_vm3, %v12969_v34, 0.0  ;;  %v13170_v34 = vld [vmem:[%s21141_s3 + $0x180] sm:$0xff] }
0x5798   :  { %12975 = vadd.xlane.f32.xlu1 %v12974_v11 }
0x57a9   :  { %12995 = vrot.lane.b32.xlu1 %v12945_v27, %s18583_s6 }
0x57ac   :  { %12989 = vrot.lane.b32.xlu0 %v12944_v32, %s18583_s6 }
0x581f   :  { %v12979_v22 = vpop.xlane.xlu0 %12978 }
0x5820   :  { %v12981_v18 = vmul.f32 0.03125, %v12979_v22 }
0x5821   :  { %v12976_v29 = vpop.xlane.xlu1 %12975 }
0x5822   :  { %v12983_v50 = vadd.f32 1e-05, %v12981_v18  ;;  %v12980_v49 = vmul.f32 0.03125, %v12976_v29 }
0x5823   :  { %v12990_v20 = vpop.permute.xlu0 %12989 }
0x5824   :  { %18490 = vrsqrt.f32 %v12983_v50  ;;  %v12982_v9 = vadd.f32 1e-05, %v12980_v49 }
0x5825   :  { %v12996_v40 = vpop.permute.xlu1 %12995 }
0x5826   :  { %18492 = vrsqrt.f32 %v12982_v9 }
0x5831   :  { %v18491_v44 = vpop.eup %18490 }
0x5832   :  { %v12987_v43 = vmul.f32 %v18491_v44, %v12963_v15 }
0x5833   :  { %v18493_v42 = vpop.eup %18492 }
0x5834   :  { %v12986_v51 = vmul.f32 %v18493_v42, %v12962_v24  ;;  %v12993_v5 = vmul.f32 %v12990_v20, %v12987_v43 }
0x5836   :  { %v12992_v38 = vmul.f32 %v12990_v20, %v12986_v51  ;;  %v20706_v53 = vadd.f32 %v12996_v40, %v12993_v5 }
0x5838   :  { %v20708_v36 = vadd.f32 %v12996_v40, %v12992_v38  ;;  %13009 = vrot.lane.b32.xlu0 %v20706_v53, %s18583_s6 }
0x583a   :  { %13007 = vrot.lane.b32.xlu1 %v20708_v36, %s18583_s6 }
0x58aa   :  { %v13010_v31 = vpop.permute.xlu0 %13009 }
0x58ac   :  { %v13008_v37 = vpop.permute.xlu1 %13007 }
0x58ad   :  { %17899 = vmatprep.mubr.msk.f32.mxu0 %vm5340_vm3, %v13008_v37 }
0x58ae   :  { %17900 = vmatmul.mubr.msk.f32.vlgmr.msra.gmra.mxu0 %vm5340_vm3, %v13010_v31 }
0x58af   :  { %17914 = vmatpush3.xpose.msk.msra.mxu0 %vm5430_vm4, %v20684_v60 }
0x58b0   :  { %17915 = vmatprep.subr.msk.mxu0 %vm5430_vm4, %v20715_v54 }
0x58b3   :  { %17916 = vmatpush3.xpose.msk.msra.mxu0 %vm5430_vm4, %v20715_v54 }
0x596e   :  { %v17901_v56 = vpop.f32.mrf.mxu0 }
0x596f   :  { %v20729_v28 = vadd.f32 %v17901_v56, %v13004_v46 }
0x5970   :  { %v13081_v58 = vpop.f32.mrf.mxu0 }
0x5971   :  { %v20727_v17 = vadd.f32 %v13081_v58, %v13004_v46  ;;  %v13571_v46 = vrot.slane %v13170_v34, 4 }
0x5973   :  { %17917 = vmatprep.mubr.msk.f32.mxu0 %vm5430_vm4, %v20727_v17 }
0x5974   :  { %17918 = vmatmul.mubr.msk.f32.vlgmr.msra.gmra.mxu0 %vm5430_vm4, %v20729_v28 }
0x5a34   :  { %v17919_v0 = vpop.f32.mrf.mxu0 }
0x5a35   :  { %v13258_v41 = vadd.f32 %v20738_v59, %v17919_v0 }
0x5a36   :  { %v13252_v23 = vpop.f32.mrf.mxu0 }
0x5a37   :  { %v13253_v30 = vadd.f32 %v20744_v48, %v13252_v23  ;;  %v13264_v63 = vsel %vm238_vm2, %v13258_v41, -inf }
0x5a38   :  { %13265 = vmax.xlane.f32.xlu0 %v13264_v63 }
0x5a39   :  { %v13261_v1 = vsel %vm238_vm2, %v13253_v30, -inf }
0x5a3a   :  { %13262 = vmax.xlane.f32.xlu1 %v13261_v1 }
0x5ac1   :  { %v13266_v2 = vpop.xlane.xlu0 %13265 }
0x5ac2   :  { %v13268_v4 = vsub.f32 %v13258_v41, %v13266_v2 }
0x5ac3   :  { %v13263_v57 = vpop.xlane.xlu1 %13262 }
0x5ac4   :  { %v13271_v39 = vmul.f32 1.442695, %v13268_v4  ;;  %v13267_v62 = vsub.f32 %v13253_v30, %v13263_v57 }
0x5ac6   :  { %18494 = vpow2.f32 %v13271_v39  ;;  %v13269_v6 = vmul.f32 1.442695, %v13267_v62 }
0x5ac8   :  { %18496 = vpow2.f32 %v13269_v6 }
0x5ad3   :  { %v18495_v52 = vpop.eup %18494 }
0x5ad4   :  { %v13276_v47 = vsel %vm238_vm2, %v18495_v52, 0.0 }
0x5ad5   :  { %v18497_v10 = vpop.eup %18496  ;;  %13277 = vadd.xlane.f32.xlu1 %v13276_v47 }
0x5ad6   :  { %v13273_v7 = vsel %vm238_vm2, %v18497_v10, 0.0 }
0x5ad7   :  { %13274 = vadd.xlane.f32.xlu0 %v13273_v7 }
0x5ae6   :  { %13283 = vrot.lane.b32.xlu1 %v20715_v54, %s18591_s22 }
0x5aea   :  { %13376 = vrot.lane.b32.xlu1 %v20684_v60, %s18599_s8 }
0x5aed   :  { %13285 = vrot.lane.b32.xlu0 %v20684_v60, %s18591_s22 }
0x5aee   :  { %13370 = vrot.lane.b32.xlu1 %v20727_v17, %s18599_s8 }
0x5af1   :  { %13374 = vrot.lane.b32.xlu0 %v20715_v54, %s18599_s8 }
0x5af5   :  { %13372 = vrot.lane.b32.xlu0 %v20729_v28, %s18599_s8 }
0x5b5e   :  { %v13278_v45 = vpop.xlane.xlu1 %13277 }
0x5b5f   :  { %18498 = vrcp.f32 %v13278_v45 }
0x5b60   :  { %v13275_v8 = vpop.xlane.xlu0 %13274 }
0x5b61   :  { %18500 = vrcp.f32 %v13275_v8 }
0x5b62   :  { %v13284_v12 = vpop.permute.xlu1 %13283 }
0x5b64   :  { %v13286_v13 = vpop.permute.xlu0 %13285 }
0x5b65   :  { %17920 = vmatprep.subr.mxu1 %v13286_v13 }
0x5b66   :  { %17921 = vmatpush3.msra.mxu1 %v13286_v13  ;;  %v13377_v14 = vpop.permute.xlu1 %13376 }
0x5b67   :  { %17922 = vmatprep.subr.mxu1 %v13284_v12 }
0x5b68   :  { %17923 = vmatpush3.msra.mxu1 %v13284_v12  ;;  %v13375_v26 = vpop.permute.xlu0 %13374 }
0x5b69   :  { %17927 = vmatprep.subr.msk.mxu1 %vm5430_vm4, %v13377_v14 }
0x5b6a   :  { %v13371_v25 = vpop.permute.xlu1 %13370 }
0x5b6c   :  { %v18499_v15 = vpop.eup %18498  ;;  %v13373_v55 = vpop.permute.xlu0 %13372 }
0x5b6d   :  { %v13282_v24 = vmul.f32 %v18499_v15, %v18495_v52 }
0x5b6e   :  { %v18501_v33 = vpop.eup %18500 }
0x5b6f   :  { %v13281_v19 = vmul.f32 %v18501_v33, %v18497_v10 }
0x5b71   :  { %17924 = vmatprep.mubr.msk.f32.mxu1 %vm238_vm2, %v13281_v19 }
0x5b72   :  { %17925 = vmatmul.mubr.msk.f32.vlgmr.msra.gmra.mxu1 %vm238_vm2, %v13282_v24 }
0x5b73   :  { %17928 = vmatpush3.xpose.msk.msra.mxu1 %vm5430_vm4, %v13377_v14  ;;  %17931 = vmatprep.mubr.msk.f32.mxu1 %vm5430_vm4, %v13371_v25 }
0x5b74   :  { %17929 = vmatprep.subr.msk.mxu1 %vm5430_vm4, %v13375_v26 }
0x5b77   :  { %17930 = vmatpush3.xpose.msk.msra.mxu1 %vm5430_vm4, %v13375_v26 }
0x5b78   :  { %17946 = vmatprep.subr.msk.mxu1 %vm5831_vm5, %v13170_v34 }
0x5b7a   :  { %17932 = vmatmul.mubr.msk.f32.vlgmr.msra.gmra.mxu1 %vm5430_vm4, %v13373_v55 }
0x5b7b   :  { %17947 = vmatpush3.msk.msra.mxu1 %vm5831_vm5, %v13170_v34 }
0x5c32   :  { %v17926_v11 = vpop.f32.mrf.mxu1 }
0x5c34   :  { %v13361_v27 = vpop.f32.mrf.mxu1 }
0x5c35   :  { %17948 = vmatprep.mubr.msk.f32.mxu1 %vm5430_vm4, %v13361_v27 }
0x5c36   :  { %17949 = vmatmul.mubr.msk.f32.vlgmr.msra.gmra.mxu1 %vm5430_vm4, %v17926_v11 }
0x5c3a   :  { %v17933_v32 = vpop.f32.mrf.mxu1 }
0x5c3b   :  { %v13458_v22 = vadd.f32 %v20738_v59, %v17933_v32 }
0x5c3c   :  { %v13452_v18 = vpop.f32.mrf.mxu1 }
0x5c3d   :  { %v13453_v29 = vadd.f32 %v20744_v48, %v13452_v18  ;;  %v13464_v50 = vsel %vm238_vm2, %v13458_v22, -inf }
0x5c3e   :  { %13465 = vmax.xlane.f32.xlu0 %v13464_v50 }
0x5c3f   :  { %v13461_v49 = vsel %vm238_vm2, %v13453_v29, -inf }
0x5c40   :  { %13462 = vmax.xlane.f32.xlu1 %v13461_v49 }
0x5cc7   :  { %v13466_v9 = vpop.xlane.xlu0 %13465 }
0x5cc8   :  { %v13468_v44 = vsub.f32 %v13458_v22, %v13466_v9 }
0x5cc9   :  { %v13463_v20 = vpop.xlane.xlu1 %13462 }
0x5cca   :  { %v13471_v43 = vmul.f32 1.442695, %v13468_v44  ;;  %v13467_v42 = vsub.f32 %v13453_v29, %v13463_v20 }
0x5ccc   :  { %18502 = vpow2.f32 %v13471_v43  ;;  %v13469_v40 = vmul.f32 1.442695, %v13467_v42 }
0x5cce   :  { %18504 = vpow2.f32 %v13469_v40 }
0x5cd9   :  { %v18503_v51 = vpop.eup %18502 }
0x5cda   :  { %v13476_v5 = vsel %vm238_vm2, %v18503_v51, 0.0 }
0x5cdb   :  { %v18505_v38 = vpop.eup %18504  ;;  %13477 = vadd.xlane.f32.xlu1 %v13476_v5 }
0x5cdc   :  { %v13473_v61 = vsel %vm238_vm2, %v18505_v38, 0.0 }
0x5cdd   :  { %13474 = vadd.xlane.f32.xlu0 %v13473_v61 }
0x5cec   :  { %13483 = vrot.lane.b32.xlu1 %v20715_v54, %s18598_s2 }
0x5cf0   :  { %13744 = vrot.lane.b32.xlu1 %v20684_v60, %s18585_s12 }
0x5cf3   :  { %13485 = vrot.lane.b32.xlu0 %v20684_v60, %s18598_s2 }
0x5cf4   :  { %13738 = vrot.lane.b32.xlu1 %v20727_v17, %s18585_s12 }
0x5cf7   :  { %13742 = vrot.lane.b32.xlu0 %v20715_v54, %s18585_s12 }
0x5cf8   :  { %14030 = vrot.lane.b32.xlu1 %v20684_v60, %s18602_s24 }
0x5cfb   :  { %13740 = vrot.lane.b32.xlu0 %v20729_v28, %s18585_s12 }
0x5cfc   :  { %14024 = vrot.lane.b32.xlu1 %v20727_v17, %s18602_s24 }
0x5cff   :  { %14028 = vrot.lane.b32.xlu0 %v20715_v54, %s18602_s24 }
0x5d03   :  { %14026 = vrot.lane.b32.xlu0 %v20729_v28, %s18602_s24 }
0x5d64   :  { %v13478_v37 = vpop.xlane.xlu1 %13477 }
0x5d65   :  { %18506 = vrcp.f32 %v13478_v37 }
0x5d66   :  { %v13475_v31 = vpop.xlane.xlu0 %13474 }
0x5d67   :  { %18508 = vrcp.f32 %v13475_v31 }
0x5d68   :  { %v13484_v58 = vpop.permute.xlu1 %13483 }
0x5d6a   :  { %v13486_v56 = vpop.permute.xlu0 %13485 }
0x5d6b   :  { %17934 = vmatprep.subr.mxu0 %v13486_v56 }
0x5d6c   :  { %17935 = vmatpush3.msra.mxu0 %v13486_v56  ;;  %v13745_v63 = vpop.permute.xlu1 %13744 }
0x5d6d   :  { %17936 = vmatprep.subr.mxu0 %v13484_v58 }
0x5d6e   :  { %17937 = vmatpush3.msra.mxu0 %v13484_v58  ;;  %v13743_v4 = vpop.permute.xlu0 %13742 }
0x5d6f   :  { %17941 = vmatprep.subr.msk.mxu0 %vm5831_vm5, %v13571_v46 }
0x5d70   :  { %v13739_v1 = vpop.permute.xlu1 %13738 }
0x5d72   :  { %v18507_v0 = vpop.eup %18506  ;;  %v13741_v62 = vpop.permute.xlu0 %13740 }
0x5d73   :  { %v13482_v30 = vmul.f32 %v18507_v0, %v18503_v51 }
0x5d74   :  { %v18509_v41 = vpop.eup %18508  ;;  %v14031_v39 = vpop.permute.xlu1 %14030 }
0x5d75   :  { %v13481_v23 = vmul.f32 %v18509_v41, %v18505_v38 }
0x5d76   :  { %v14029_v52 = vpop.permute.xlu0 %14028 }
0x5d77   :  { %17938 = vmatprep.mubr.msk.f32.mxu0 %vm238_vm2, %v13481_v23 }
0x5d78   :  { %17939 = vmatmul.mubr.msk.f32.vlgmr.msra.gmra.mxu0 %vm238_vm2, %v13482_v30  ;;  %v14025_v6 = vpop.permute.xlu1 %14024 }
0x5d79   :  { %17942 = vmatpush3.msk.msra.mxu0 %vm5831_vm5, %v13571_v46 }
0x5d7a   :  { %17951 = vmatprep.subr.msk.mxu0 %vm5430_vm4, %v13745_v63  ;;  %v14027_v47 = vpop.permute.xlu0 %14026 }
0x5e38   :  { %v17940_v2 = vpop.f32.mrf.mxu0 }
0x5e3a   :  { %v13561_v57 = vpop.f32.mrf.mxu0 }
0x5e3b   :  { %17943 = vmatprep.mubr.msk.f32.mxu0 %vm5430_vm4, %v13561_v57  ;;  %v13171_v57 = vld [vmem:[%s21141_s3 + $0x188] sm:$0xff] }
0x5e3c   :  { %17944 = vmatmul.mubr.msk.f32.vlgmr.msra.gmra.mxu0 %vm5430_vm4, %v17940_v2 }
0x5e3d   :  { %17952 = vmatpush3.xpose.msk.msra.mxu0 %vm5430_vm4, %v13745_v63  ;;  %17955 = vmatprep.mubr.msk.f32.mxu0 %vm5430_vm4, %v13739_v1 }
0x5e3e   :  { %17953 = vmatprep.subr.msk.mxu0 %vm5430_vm4, %v13743_v4 }
0x5e41   :  { %17954 = vmatpush3.xpose.msk.msra.mxu0 %vm5430_vm4, %v13743_v4 }
0x5e42   :  { %17970 = vmatprep.subr.msk.mxu0 %vm5430_vm4, %v14031_v39 }
0x5e44   :  { %17956 = vmatmul.mubr.msk.f32.vlgmr.msra.gmra.mxu0 %vm5430_vm4, %v13741_v62 }
0x5e45   :  { %17971 = vmatpush3.xpose.msk.msra.mxu0 %vm5430_vm4, %v14031_v39  ;;  %17974 = vmatprep.mubr.msk.f32.mxu0 %vm5430_vm4, %v14025_v6  ;;  %v20875_v39 = vpop.f32.mrf.mxu1 }
0x5e46   :  { %17972 = vmatprep.subr.msk.mxu0 %vm5430_vm4, %v14029_v52 }
0x5e47   :  { %v20877_v6 = vpop.f32.mrf.mxu1 }
0x5e49   :  { %17973 = vmatpush3.xpose.msk.msra.mxu0 %vm5430_vm4, %v14029_v52 }
0x5e4c   :  { %17975 = vmatmul.mubr.msk.f32.vlgmr.msra.gmra.mxu0 %vm5430_vm4, %v14027_v47 }
0x5efc   :  { %v20822_v10 = vpop.f32.mrf.mxu0 }
0x5efe   :  { %v20824_v7 = vpop.f32.mrf.mxu0 }
0x5f04   :  { %v17957_v45 = vpop.f32.mrf.mxu0 }
0x5f05   :  { %v13826_v8 = vadd.f32 %v20738_v59, %v17957_v45 }
0x5f06   :  { %v13820_v12 = vpop.f32.mrf.mxu0 }
0x5f07   :  { %v13821_v13 = vadd.f32 %v20744_v48, %v13820_v12  ;;  %v13832_v14 = vsel %vm238_vm2, %v13826_v8, -inf }
0x5f08   :  { %13833 = vmax.xlane.f32.xlu0 %v13832_v14 }
0x5f09   :  { %v13829_v15 = vsel %vm238_vm2, %v13821_v13, -inf }
0x5f0a   :  { %13830 = vmax.xlane.f32.xlu1 %v13829_v15 }
0x5f0c   :  { %v17976_v22 = vpop.f32.mrf.mxu0 }
0x5f0d   :  { %v14112_v50 = vadd.f32 %v20738_v59, %v17976_v22 }
0x5f0e   :  { %v14106_v18 = vpop.f32.mrf.mxu0 }
0x5f0f   :  { %v14107_v29 = vadd.f32 %v20744_v48, %v14106_v18  ;;  %v14118_v9 = vsel %vm238_vm2, %v14112_v50, -inf }
0x5f11   :  { %v14115_v49 = vsel %vm238_vm2, %v14107_v29, -inf }
0x5f91   :  { %v13834_v33 = vpop.xlane.xlu0 %13833 }
0x5f92   :  { %v13836_v19 = vsub.f32 %v13826_v8, %v13834_v33 }
0x5f93   :  { %v13831_v24 = vpop.xlane.xlu1 %13830 }
0x5f94   :  { %v13839_v25 = vmul.f32 1.442695, %v13836_v19  ;;  %v13835_v26 = vsub.f32 %v13821_v13, %v13831_v24  ;;  %v14224_v24 = vrot.slane %v13171_v57, 4 }
0x5f96   :  { %18510 = vpow2.f32 %v13839_v25  ;;  %v13837_v55 = vmul.f32 1.442695, %v13835_v26 }
0x5f98   :  { %18512 = vpow2.f32 %v13837_v55 }
0x5fa3   :  { %v18511_v34 = vpop.eup %18510 }
0x5fa4   :  { %v13844_v11 = vsel %vm238_vm2, %v18511_v34, 0.0 }
0x5fa5   :  { %v18513_v27 = vpop.eup %18512  ;;  %13845 = vadd.xlane.f32.xlu1 %v13844_v11 }
0x5fa6   :  { %v13841_v32 = vsel %vm238_vm2, %v18513_v27, 0.0 }
0x5fa7   :  { %13842 = vadd.xlane.f32.xlu0 %v13841_v32 }
0x5fb6   :  { %13851 = vrot.lane.b32.xlu1 %v20715_v54, %s18593_s26 }
0x5fba   :  { %14316 = vrot.lane.b32.xlu1 %v20684_v60, %s18588_s17 }
0x5fbd   :  { %13853 = vrot.lane.b32.xlu0 %v20684_v60, %s18593_s26 }
0x5fbe   :  { %14310 = vrot.lane.b32.xlu1 %v20727_v17, %s18588_s17 }
0x5fc1   :  { %14314 = vrot.lane.b32.xlu0 %v20715_v54, %s18588_s17 }
0x5fc5   :  { %14312 = vrot.lane.b32.xlu0 %v20729_v28, %s18588_s17 }
0x5fe2   :  { %14116 = vmax.xlane.f32.xlu1 %v14115_v49 }
0x5fe4   :  { %14119 = vmax.xlane.f32.xlu0 %v14118_v9 }
0x602e   :  { %v13846_v44 = vpop.xlane.xlu1 %13845 }
0x602f   :  { %18514 = vrcp.f32 %v13846_v44 }
0x6030   :  { %v13843_v20 = vpop.xlane.xlu0 %13842 }
0x6031   :  { %18516 = vrcp.f32 %v13843_v20 }
0x6032   :  { %v13852_v43 = vpop.permute.xlu1 %13851 }
0x6034   :  { %v13854_v42 = vpop.permute.xlu0 %13853 }
0x6035   :  { %17958 = vmatprep.subr.mxu1 %v13854_v42 }
0x6036   :  { %17959 = vmatpush3.msra.mxu1 %v13854_v42  ;;  %v14317_v40 = vpop.permute.xlu1 %14316 }
0x6037   :  { %17960 = vmatprep.subr.mxu1 %v13852_v43  ;;  %17989 = vmatprep.subr.msk.mxu0 %vm5430_vm4, %v14317_v40 }
0x6038   :  { %v14315_v51 = vpop.permute.xlu0 %14314  ;;  %17961 = vmatpush3.msra.mxu1 %v13852_v43  ;;  %17990 = vmatpush3.xpose.msk.msra.mxu0 %vm5430_vm4, %v14317_v40 }
0x6039   :  { %17991 = vmatprep.subr.msk.mxu0 %vm5430_vm4, %v14315_v51  ;;  %17965 = vmatprep.subr.msk.mxu1 %vm5831_vm5, %v13171_v57 }
0x603a   :  { %v14311_v5 = vpop.permute.xlu1 %14310 }
0x603b   :  { %17993 = vmatprep.mubr.msk.f32.mxu0 %vm5430_vm4, %v14311_v5  ;;  %v13735_v5 = vadd.f32 %v20875_v39, %v20822_v10 }
0x603c   :  { %17992 = vmatpush3.xpose.msk.msra.mxu0 %vm5430_vm4, %v14315_v51  ;;  %v18515_v38 = vpop.eup %18514  ;;  %v14313_v37 = vpop.permute.xlu0 %14312 }
0x603d   :  { %v13850_v56 = vmul.f32 %v18515_v38, %v18511_v34 }
0x603e   :  { %v18517_v61 = vpop.eup %18516 }
0x603f   :  { %17994 = vmatmul.mubr.msk.f32.vlgmr.msra.gmra.mxu0 %vm5430_vm4, %v14313_v37  ;;  %v13849_v31 = vmul.f32 %v18517_v61, %v18513_v27  ;;  %v13730_v61 = vadd.f32 %v20877_v6, %v20824_v7 }
0x6041   :  { %17962 = vmatprep.mubr.msk.f32.mxu1 %vm238_vm2, %v13849_v31 }
0x6042   :  { %17963 = vmatmul.mubr.msk.f32.vlgmr.msra.gmra.mxu1 %vm238_vm2, %v13850_v56 }
0x6043   :  { %17966 = vmatpush3.msk.msra.mxu1 %vm5831_vm5, %v13171_v57 }
0x606b   :  { %v14117_v46 = vpop.xlane.xlu1 %14116 }
0x606c   :  { %v14121_v58 = vsub.f32 %v14107_v29, %v14117_v46 }
0x606d   :  { %v14120_v0 = vpop.xlane.xlu0 %14119 }
0x606e   :  { %v14123_v41 = vmul.f32 1.442695, %v14121_v58  ;;  %v14122_v23 = vsub.f32 %v14112_v50, %v14120_v0 }
0x6070   :  { %18518 = vpow2.f32 %v14123_v41  ;;  %v14125_v30 = vmul.f32 1.442695, %v14122_v23 }
0x6072   :  { %18520 = vpow2.f32 %v14125_v30 }
0x607d   :  { %v18519_v63 = vpop.eup %18518 }
0x607e   :  { %v14127_v1 = vsel %vm238_vm2, %v18519_v63, 0.0 }
0x607f   :  { %v18521_v2 = vpop.eup %18520  ;;  %14128 = vadd.xlane.f32.xlu0 %v14127_v1 }
0x6080   :  { %v14130_v4 = vsel %vm238_vm2, %v18521_v2, 0.0 }
0x6081   :  { %14131 = vadd.xlane.f32.xlu1 %v14130_v4 }
0x6092   :  { %14137 = vrot.lane.b32.xlu1 %v20715_v54, %s18601_s23 }
0x6095   :  { %14139 = vrot.lane.b32.xlu0 %v20684_v60, %s18601_s23 }
0x6096   :  { %14602 = vrot.lane.b32.xlu1 %v20684_v60, %s18605_s15 }
0x6099   :  { %14600 = vrot.lane.b32.xlu0 %v20715_v54, %s18605_s15 }
0x609a   :  { %14596 = vrot.lane.b32.xlu1 %v20727_v17, %s18605_s15 }
0x609d   :  { %14598 = vrot.lane.b32.xlu0 %v20729_v28, %s18605_s15 }
0x60ff   :  { %v17995_v62 = vpop.f32.mrf.mxu0 }
0x6100   :  { %v14398_v52 = vadd.f32 %v20738_v59, %v17995_v62 }
0x6101   :  { %v14392_v47 = vpop.f32.mrf.mxu0 }
0x6102   :  { %v14393_v45 = vadd.f32 %v20744_v48, %v14392_v47  ;;  %v17964_v8 = vpop.f32.mrf.mxu1  ;;  %v14404_v12 = vsel %vm238_vm2, %v14398_v52, -inf }
0x6103   :  { %14405 = vmax.xlane.f32.xlu0 %v14404_v12 }
0x6104   :  { %v13929_v13 = vpop.f32.mrf.mxu1  ;;  %v14401_v14 = vsel %vm238_vm2, %v14393_v45, -inf }
0x6105   :  { %17967 = vmatprep.mubr.msk.f32.mxu1 %vm5430_vm4, %v13929_v13  ;;  %14402 = vmax.xlane.f32.xlu1 %v14401_v14 }
0x6106   :  { %17968 = vmatmul.mubr.msk.f32.vlgmr.msra.gmra.mxu1 %vm5430_vm4, %v17964_v8 }
0x6108   :  { %v14129_v15 = vpop.xlane.xlu0 %14128 }
0x6109   :  { %18522 = vrcp.f32 %v14129_v15 }
0x610a   :  { %v14132_v33 = vpop.xlane.xlu1 %14131 }
0x610b   :  { %18524 = vrcp.f32 %v14132_v33 }
0x610c   :  { %v14140_v19 = vpop.permute.xlu0 %14139 }
0x610d   :  { %17977 = vmatprep.subr.mxu1 %v14140_v19 }
0x610e   :  { %17978 = vmatpush3.msra.mxu1 %v14140_v19  ;;  %v14138_v25 = vpop.permute.xlu1 %14137 }
0x610f   :  { %17979 = vmatprep.subr.mxu1 %v14138_v25 }
0x6110   :  { %17980 = vmatpush3.msra.mxu1 %v14138_v25  ;;  %v14601_v55 = vpop.permute.xlu0 %14600 }
0x6111   :  { %17984 = vmatprep.subr.msk.mxu1 %vm5831_vm5, %v14224_v24 }
0x6112   :  { %v14603_v26 = vpop.permute.xlu1 %14602 }
0x6113   :  { %18008 = vmatprep.subr.msk.mxu0 %vm5430_vm4, %v14603_v26 }
0x6114   :  { %18009 = vmatpush3.xpose.msk.msra.mxu0 %vm5430_vm4, %v14603_v26  ;;  %v14599_v18 = vpop.permute.xlu0 %14598 }
0x6115   :  { %18010 = vmatprep.subr.msk.mxu0 %vm5430_vm4, %v14601_v55 }
0x6116   :  { %v18523_v34 = vpop.eup %18522  ;;  %v14597_v11 = vpop.permute.xlu1 %14596 }
0x6117   :  { %18012 = vmatprep.mubr.msk.f32.mxu0 %vm5430_vm4, %v14597_v11  ;;  %v14135_v27 = vmul.f32 %v18523_v34, %v18519_v63  ;;  %v13172_v34 = vld [vmem:[%s21141_s3 + $0x190] sm:$0xff] }
0x6118   :  { %v18525_v32 = vpop.eup %18524  ;;  %18011 = vmatpush3.xpose.msk.msra.mxu0 %vm5430_vm4, %v14601_v55 }
0x6119   :  { %v14136_v22 = vmul.f32 %v18525_v32, %v18521_v2  ;;  %17981 = vmatprep.mubr.msk.f32.mxu1 %vm238_vm2, %v14135_v27 }
0x611b   :  { %17982 = vmatmul.mubr.msk.f32.vlgmr.msra.gmra.mxu1 %vm238_vm2, %v14136_v22  ;;  %18013 = vmatmul.mubr.msk.f32.vlgmr.msra.gmra.mxu0 %vm5430_vm4, %v14599_v18 }
0x611c   :  { %17985 = vmatpush3.msk.msra.mxu1 %vm5831_vm5, %v14224_v24 }
0x618c   :  { %v14406_v29 = vpop.xlane.xlu0 %14405 }
0x618d   :  { %v14408_v50 = vsub.f32 %v14398_v52, %v14406_v29 }
0x618e   :  { %v14403_v49 = vpop.xlane.xlu1 %14402 }
0x618f   :  { %v14411_v9 = vmul.f32 1.442695, %v14408_v50  ;;  %v14407_v44 = vsub.f32 %v14393_v45, %v14403_v49 }
0x6191   :  { %18526 = vpow2.f32 %v14411_v9  ;;  %v14409_v20 = vmul.f32 1.442695, %v14407_v44 }
0x6193   :  { %18528 = vpow2.f32 %v14409_v20 }
0x619e   :  { %v18527_v43 = vpop.eup %18526 }
0x619f   :  { %v14416_v42 = vsel %vm238_vm2, %v18527_v43, 0.0 }
0x61a0   :  { %v18529_v40 = vpop.eup %18528  ;;  %14417 = vadd.xlane.f32.xlu1 %v14416_v42 }
0x61a1   :  { %v14413_v51 = vsel %vm238_vm2, %v18529_v40, 0.0 }
0x61a2   :  { %14414 = vadd.xlane.f32.xlu0 %v14413_v51 }
0x61b1   :  { %14423 = vrot.lane.b32.xlu1 %v20715_v54, %s18595_s30 }
0x61b5   :  { %14888 = vrot.lane.b32.xlu1 %v20684_v60, %s18587_s14 }
0x61b8   :  { %14425 = vrot.lane.b32.xlu0 %v20684_v60, %s18595_s30 }
0x61b9   :  { %14882 = vrot.lane.b32.xlu1 %v20727_v17, %s18587_s14 }
0x61bc   :  { %14886 = vrot.lane.b32.xlu0 %v20715_v54, %s18587_s14 }
0x61c0   :  { %14884 = vrot.lane.b32.xlu0 %v20729_v28, %s18587_s14 }
0x61c6   :  { %v17969_v38 = vpop.f32.mrf.mxu1 }
0x61c7   :  { %v20913_v37 = vadd.f32 %v17969_v38, %v13735_v5 }
0x61c8   :  { %v14013_v31 = vpop.f32.mrf.mxu1 }
0x61c9   :  { %v20915_v56 = vadd.f32 %v14013_v31, %v13730_v61 }
0x61db   :  { %v17983_v46 = vpop.f32.mrf.mxu1  ;;  %v18014_v58 = vpop.f32.mrf.mxu0 }
0x61dc   :  { %v14684_v0 = vadd.f32 %v20738_v59, %v18014_v58 }
0x61dd   :  { %v14215_v41 = vpop.f32.mrf.mxu1  ;;  %v14678_v23 = vpop.f32.mrf.mxu0 }
0x61de   :  { %v14679_v30 = vadd.f32 %v20744_v48, %v14678_v23  ;;  %17986 = vmatprep.mubr.msk.f32.mxu1 %vm5430_vm4, %v14215_v41  ;;  %v14690_v10 = vsel %vm238_vm2, %v14684_v0, -inf }
0x61df   :  { %17987 = vmatmul.mubr.msk.f32.vlgmr.msra.gmra.mxu1 %vm5430_vm4, %v17983_v46  ;;  %14691 = vmax.xlane.f32.xlu0 %v14690_v10 }
0x61e0   :  { %v14687_v7 = vsel %vm238_vm2, %v14679_v30, -inf }
0x61e1   :  { %14688 = vmax.xlane.f32.xlu1 %v14687_v7 }
0x6229   :  { %v14418_v63 = vpop.xlane.xlu1 %14417 }
0x622a   :  { %18530 = vrcp.f32 %v14418_v63 }
0x622b   :  { %v14415_v1 = vpop.xlane.xlu0 %14414 }
0x622c   :  { %18532 = vrcp.f32 %v14415_v1 }
0x622d   :  { %v14424_v2 = vpop.permute.xlu1 %14423 }
0x622f   :  { %v14426_v4 = vpop.permute.xlu0 %14425 }
0x6230   :  { %17996 = vmatprep.subr.mxu1 %v14426_v4 }
0x6231   :  { %17997 = vmatpush3.msra.mxu1 %v14426_v4  ;;  %v14889_v57 = vpop.permute.xlu1 %14888 }
0x6232   :  { %17998 = vmatprep.subr.mxu1 %v14424_v2  ;;  %18027 = vmatprep.subr.msk.mxu0 %vm5430_vm4, %v14889_v57 }
0x6233   :  { %v14887_v39 = vpop.permute.xlu0 %14886  ;;  %17999 = vmatpush3.msra.mxu1 %v14424_v2  ;;  %18028 = vmatpush3.xpose.msk.msra.mxu0 %vm5430_vm4, %v14889_v57 }
0x6234   :  { %18029 = vmatprep.subr.msk.mxu0 %vm5430_vm4, %v14887_v39  ;;  %18003 = vmatprep.subr.msk.mxu1 %vm5831_vm5, %v13172_v34 }
0x6235   :  { %v14883_v62 = vpop.permute.xlu1 %14882 }
0x6236   :  { %18031 = vmatprep.mubr.msk.f32.mxu0 %vm5430_vm4, %v14883_v62 }
0x6237   :  { %18030 = vmatpush3.xpose.msk.msra.mxu0 %vm5430_vm4, %v14887_v39  ;;  %v18531_v6 = vpop.eup %18530  ;;  %v14885_v47 = vpop.permute.xlu0 %14884 }
0x6238   :  { %v14422_v8 = vmul.f32 %v18531_v6, %v18527_v43 }
0x6239   :  { %v18533_v52 = vpop.eup %18532 }
0x623a   :  { %18032 = vmatmul.mubr.msk.f32.vlgmr.msra.gmra.mxu0 %vm5430_vm4, %v14885_v47  ;;  %v14421_v45 = vmul.f32 %v18533_v52, %v18529_v40  ;;  %v14796_v40 = vrot.slane %v13172_v34, 4 }
0x623c   :  { %18000 = vmatprep.mubr.msk.f32.mxu1 %vm238_vm2, %v14421_v45 }
0x623d   :  { %18001 = vmatmul.mubr.msk.f32.vlgmr.msra.gmra.mxu1 %vm238_vm2, %v14422_v8 }
0x623e   :  { %18004 = vmatpush3.msk.msra.mxu1 %vm5831_vm5, %v13172_v34 }
0x6268   :  { %v14692_v12 = vpop.xlane.xlu0 %14691 }
0x6269   :  { %v14694_v13 = vsub.f32 %v14684_v0, %v14692_v12 }
0x626a   :  { %v14689_v14 = vpop.xlane.xlu1 %14688 }
0x626b   :  { %v14697_v15 = vmul.f32 1.442695, %v14694_v13  ;;  %v14693_v33 = vsub.f32 %v14679_v30, %v14689_v14 }
0x626d   :  { %18534 = vpow2.f32 %v14697_v15  ;;  %v14695_v19 = vmul.f32 1.442695, %v14693_v33 }
0x626f   :  { %18536 = vpow2.f32 %v14695_v19 }
0x627a   :  { %v18535_v24 = vpop.eup %18534 }
0x627b   :  { %v14702_v25 = vsel %vm238_vm2, %v18535_v24, 0.0 }
0x627c   :  { %v18537_v26 = vpop.eup %18536  ;;  %14703 = vadd.xlane.f32.xlu1 %v14702_v25 }
0x627d   :  { %v14699_v55 = vsel %vm238_vm2, %v18537_v26, 0.0 }
0x627e   :  { %14700 = vadd.xlane.f32.xlu0 %v14699_v55 }
0x628d   :  { %14709 = vrot.lane.b32.xlu1 %v20715_v54, %s18604_s25 }
0x6291   :  { %15174 = vrot.lane.b32.xlu1 %v20684_v60, %s18608_s27 }
0x6294   :  { %14711 = vrot.lane.b32.xlu0 %v20684_v60, %s18604_s25 }
0x6295   :  { %15168 = vrot.lane.b32.xlu1 %v20727_v17, %s18608_s27 }
0x6298   :  { %15172 = vrot.lane.b32.xlu0 %v20715_v54, %s18608_s27 }
0x629c   :  { %15170 = vrot.lane.b32.xlu0 %v20729_v28, %s18608_s27 }
0x629f   :  { %v17988_v11 = vpop.f32.mrf.mxu1 }
0x62a0   :  { %v14309_v27 = vadd.f32 %v17988_v11, %v20913_v37 }
0x62a1   :  { %v14299_v22 = vpop.f32.mrf.mxu1 }
0x62a2   :  { %v14308_v39 = vadd.f32 %v14299_v22, %v20915_v56 }
0x62fa   :  { %v18033_v32 = vpop.f32.mrf.mxu0 }
0x62fb   :  { %v14970_v18 = vadd.f32 %v20738_v59, %v18033_v32 }
0x62fc   :  { %v14964_v29 = vpop.f32.mrf.mxu0 }
0x62fd   :  { %v14965_v50 = vadd.f32 %v20744_v48, %v14964_v29  ;;  %v18002_v49 = vpop.f32.mrf.mxu1  ;;  %v14976_v9 = vsel %vm238_vm2, %v14970_v18, -inf }
0x62fe   :  { %14977 = vmax.xlane.f32.xlu0 %v14976_v9 }
0x62ff   :  { %v14501_v17 = vpop.f32.mrf.mxu1  ;;  %v14973_v44 = vsel %vm238_vm2, %v14965_v50, -inf }
0x6300   :  { %18005 = vmatprep.mubr.msk.f32.mxu1 %vm5430_vm4, %v14501_v17  ;;  %14974 = vmax.xlane.f32.xlu1 %v14973_v44  ;;  %v13173_v17 = vld [vmem:[%s21141_s3 + $0x198] sm:$0xff] }
0x6301   :  { %18006 = vmatmul.mubr.msk.f32.vlgmr.msra.gmra.mxu1 %vm5430_vm4, %v18002_v49 }
0x6305   :  { %v14704_v28 = vpop.xlane.xlu1 %14703 }
0x6306   :  { %18538 = vrcp.f32 %v14704_v28 }
0x6307   :  { %v14701_v20 = vpop.xlane.xlu0 %14700 }
0x6308   :  { %18540 = vrcp.f32 %v14701_v20 }
0x6309   :  { %v14710_v43 = vpop.permute.xlu1 %14709 }
0x630b   :  { %v14712_v42 = vpop.permute.xlu0 %14711 }
0x630c   :  { %18015 = vmatprep.subr.mxu1 %v14712_v42 }
0x630d   :  { %18016 = vmatpush3.msra.mxu1 %v14712_v42  ;;  %v15175_v51 = vpop.permute.xlu1 %15174 }
0x630e   :  { %18017 = vmatprep.subr.mxu1 %v14710_v43  ;;  %18046 = vmatprep.subr.msk.mxu0 %vm5430_vm4, %v15175_v51 }
0x630f   :  { %v15173_v5 = vpop.permute.xlu0 %15172  ;;  %18018 = vmatpush3.msra.mxu1 %v14710_v43  ;;  %18047 = vmatpush3.xpose.msk.msra.mxu0 %vm5430_vm4, %v15175_v51 }
0x6310   :  { %18048 = vmatprep.subr.msk.mxu0 %vm5430_vm4, %v15173_v5  ;;  %18022 = vmatprep.subr.msk.mxu1 %vm5831_vm5, %v14796_v40 }
0x6311   :  { %v15169_v38 = vpop.permute.xlu1 %15168 }
0x6312   :  { %18050 = vmatprep.mubr.msk.f32.mxu0 %vm5430_vm4, %v15169_v38  ;;  %v15368_v38 = vrot.slane %v13173_v17, 4 }
0x6313   :  { %18049 = vmatpush3.xpose.msk.msra.mxu0 %vm5430_vm4, %v15173_v5  ;;  %v18539_v61 = vpop.eup %18538  ;;  %v15171_v31 = vpop.permute.xlu0 %15170 }
0x6314   :  { %v14708_v58 = vmul.f32 %v18539_v61, %v18535_v24 }
0x6315   :  { %v18541_v37 = vpop.eup %18540 }
0x6316   :  { %18051 = vmatmul.mubr.msk.f32.vlgmr.msra.gmra.mxu0 %vm5430_vm4, %v15171_v31  ;;  %v14707_v46 = vmul.f32 %v18541_v37, %v18537_v26 }
0x6318   :  { %18019 = vmatprep.mubr.msk.f32.mxu1 %vm238_vm2, %v14707_v46 }
0x6319   :  { %18020 = vmatmul.mubr.msk.f32.vlgmr.msra.gmra.mxu1 %vm238_vm2, %v14708_v58 }
0x631a   :  { %18023 = vmatpush3.msk.msra.mxu1 %vm5831_vm5, %v14796_v40 }
0x6387   :  { %v14978_v0 = vpop.xlane.xlu0 %14977 }
0x6388   :  { %v14980_v41 = vsub.f32 %v14970_v18, %v14978_v0 }
0x6389   :  { %v14975_v23 = vpop.xlane.xlu1 %14974 }
0x638a   :  { %v14983_v30 = vmul.f32 1.442695, %v14980_v41  ;;  %v14979_v10 = vsub.f32 %v14965_v50, %v14975_v23 }
0x638c   :  { %18542 = vpow2.f32 %v14983_v30  ;;  %v14981_v7 = vmul.f32 1.442695, %v14979_v10 }
0x638e   :  { %18544 = vpow2.f32 %v14981_v7 }
0x6399   :  { %v18543_v63 = vpop.eup %18542 }
0x639a   :  { %v14988_v1 = vsel %vm238_vm2, %v18543_v63, 0.0 }
0x639b   :  { %v18545_v2 = vpop.eup %18544  ;;  %14989 = vadd.xlane.f32.xlu1 %v14988_v1 }
0x639c   :  { %v14985_v4 = vsel %vm238_vm2, %v18545_v2, 0.0 }
0x639d   :  { %14986 = vadd.xlane.f32.xlu0 %v14985_v4 }
0x63ac   :  { %14995 = vrot.lane.b32.xlu1 %v20715_v54, %s18597_s10 }
0x63b3   :  { %14997 = vrot.lane.b32.xlu0 %v20684_v60, %s18597_s10 }
0x63c1   :  { %v18007_v57 = vpop.f32.mrf.mxu1 }
0x63c2   :  { %v14595_v62 = vadd.f32 %v18007_v57, %v14309_v27 }
0x63c3   :  { %v14585_v6 = vpop.f32.mrf.mxu1 }
0x63c4   :  { %v20974_v52 = vadd.f32 %v14585_v6, %v14308_v39 }
0x63d6   :  { %v18052_v47 = vpop.f32.mrf.mxu0 }
0x63d7   :  { %v15256_v45 = vadd.f32 %v20738_v59, %v18052_v47 }
0x63d8   :  { %v15250_v8 = vpop.f32.mrf.mxu0 }
0x63d9   :  { %v15251_v12 = vadd.f32 %v20744_v48, %v15250_v8  ;;  %v18021_v13 = vpop.f32.mrf.mxu1  ;;  %v15262_v14 = vsel %vm238_vm2, %v15256_v45, -inf }
0x63da   :  { %15263 = vmax.xlane.f32.xlu0 %v15262_v14 }
0x63db   :  { %v14787_v15 = vpop.f32.mrf.mxu1  ;;  %v15259_v33 = vsel %vm238_vm2, %v15251_v12, -inf }
0x63dc   :  { %18024 = vmatprep.mubr.msk.f32.mxu1 %vm5430_vm4, %v14787_v15  ;;  %15260 = vmax.xlane.f32.xlu1 %v15259_v33 }
0x63dd   :  { %18025 = vmatmul.mubr.msk.f32.vlgmr.msra.gmra.mxu1 %vm5430_vm4, %v18021_v13 }
0x6424   :  { %v14990_v56 = vpop.xlane.xlu1 %14989 }
0x6425   :  { %18546 = vrcp.f32 %v14990_v56 }
0x6426   :  { %v14987_v19 = vpop.xlane.xlu0 %14986 }
0x6427   :  { %18548 = vrcp.f32 %v14987_v19 }
0x6428   :  { %v14996_v24 = vpop.permute.xlu1 %14995 }
0x642a   :  { %v14998_v59 = vpop.permute.xlu0 %14997 }
0x642b   :  { %18034 = vmatprep.subr.mxu1 %v14998_v59 }
0x642c   :  { %18035 = vmatpush3.msra.mxu1 %v14998_v59 }
0x642d   :  { %18036 = vmatprep.subr.mxu1 %v14996_v24 }
0x642e   :  { %18037 = vmatpush3.msra.mxu1 %v14996_v24 }
0x642f   :  { %18041 = vmatprep.subr.msk.mxu1 %vm5831_vm5, %v13173_v17 }
0x6432   :  { %v18547_v48 = vpop.eup %18546 }
0x6433   :  { %v14994_v55 = vmul.f32 %v18547_v48, %v18543_v63  ;;  %v15454_v63 = vld [vmem:[%s21139_s4 + $0x41] ss:$0 sm:$0xff] }
0x6434   :  { %v18549_v25 = vpop.eup %18548 }
0x6435   :  { %v14993_v26 = vmul.f32 %v18549_v25, %v18545_v2 }
0x6437   :  { %18038 = vmatprep.mubr.msk.f32.mxu1 %vm238_vm2, %v14993_v26 }
0x6438   :  { %18039 = vmatmul.mubr.msk.f32.vlgmr.msra.gmra.mxu1 %vm238_vm2, %v14994_v55  ;;  %v15468_v55 = vld [vmem:[%s21139_s4 + $0x47] ss:$0 sm:$0xff] }
0x6439   :  { %18042 = vmatpush3.msk.msra.mxu1 %vm5831_vm5, %v13173_v17  ;;  %v15523_v17 = vld [vmem:[%s21141_s3 + $0x1a0] sm:$0xff] }
0x6463   :  { %v15264_v34 = vpop.xlane.xlu0 %15263 }
0x6464   :  { %v15266_v11 = vsub.f32 %v15256_v45, %v15264_v34  ;;  %v15467_v34 = vld [vmem:[%s21139_s4 + $0x46] ss:$0 sm:$0xff] }
0x6465   :  { %v15261_v27 = vpop.xlane.xlu1 %15260 }
0x6466   :  { %v15269_v32 = vmul.f32 1.442695, %v15266_v11  ;;  %v15265_v22 = vsub.f32 %v15251_v12, %v15261_v27  ;;  %v15526_v11 = vld [vmem:[%s21141_s3 + $0x1b8] sm:$0xff]  ;;  %v15525_v27 = vld [vmem:[%s21141_s3 + $0x1b0] sm:$0xff] }
0x6467   :  { %18065 = vmatprep.subr.mxu0 %v15526_v11 }
0x6468   :  { %18550 = vpow2.f32 %v15269_v32  ;;  %v15267_v18 = vmul.f32 1.442695, %v15265_v22  ;;  %18066 = vmatpush3.msra.mxu0 %v15526_v11  ;;  %v15524_v32 = vld [vmem:[%s21141_s3 + $0x1a8] sm:$0xff] }
0x6469   :  { %18067 = vmatprep.subr.mxu0 %v15525_v27 }
0x646a   :  { %18552 = vpow2.f32 %v15267_v18  ;;  %18068 = vmatpush3.msra.mxu0 %v15525_v27 }
0x646b   :  { %18069 = vmatprep.subr.mxu0 %v15524_v32 }
0x646c   :  { %18070 = vmatpush3.msra.mxu0 %v15524_v32  ;;  %v15716_v32 = vld [vmem:[%s21139_s4 + $0x51] ss:$0 sm:$0xff] }
0x646d   :  { %18071 = vmatprep.subr.mxu0 %v15523_v17 }
0x646e   :  { %18072 = vmatpush3.msra.mxu0 %v15523_v17 }
0x6475   :  { %v18551_v29 = vpop.eup %18550 }
0x6476   :  { %v15274_v50 = vsel %vm238_vm2, %v18551_v29, 0.0 }
0x6477   :  { %v18553_v49 = vpop.eup %18552  ;;  %15275 = vadd.xlane.f32.xlu1 %v15274_v50 }
0x6478   :  { %v15271_v9 = vsel %vm238_vm2, %v18553_v49, 0.0 }
0x6479   :  { %15272 = vadd.xlane.f32.xlu0 %v15271_v9 }
0x6488   :  { %15281 = vrot.lane.b32.xlu1 %v20715_v54, %s18607_s20 }
0x648f   :  { %15283 = vrot.lane.b32.xlu0 %v20684_v60, %s18607_s20 }
0x649d   :  { %v18026_v44 = vpop.f32.mrf.mxu1 }
0x649e   :  { %v14881_v28 = vadd.f32 %v18026_v44, %v14595_v62  ;;  %v15622_v44 = vld [vmem:[%s21141_s3 + $0x1f8] sm:$0xff] }
0x649f   :  { %v14871_v20 = vpop.f32.mrf.mxu1 }
0x64a0   :  { %v14880_v58 = vadd.f32 %v14871_v20, %v20974_v52  ;;  %v15620_v20 = vld [vmem:[%s21141_s3 + $0x1e8] sm:$0xff] }
0x64f8   :  { %v18040_v43 = vpop.f32.mrf.mxu1 }
0x64fa   :  { %v15073_v42 = vpop.f32.mrf.mxu1 }
0x64fb   :  { %18043 = vmatprep.mubr.msk.f32.mxu1 %vm5430_vm4, %v15073_v42 }
0x64fc   :  { %18044 = vmatmul.mubr.msk.f32.vlgmr.msra.gmra.mxu1 %vm5430_vm4, %v18040_v43 }
0x6500   :  { %v15276_v40 = vpop.xlane.xlu1 %15275 }
0x6501   :  { %18554 = vrcp.f32 %v15276_v40 }
0x6502   :  { %v15273_v51 = vpop.xlane.xlu0 %15272 }
0x6503   :  { %18556 = vrcp.f32 %v15273_v51  ;;  %v15619_v51 = vld [vmem:[%s21141_s3 + $0x1e0] sm:$0xff] }
0x6504   :  { %v15282_v54 = vpop.permute.xlu1 %15281 }
0x6506   :  { %v15284_v5 = vpop.permute.xlu0 %15283 }
0x6507   :  { %18053 = vmatprep.subr.mxu1 %v15284_v5 }
0x6508   :  { %18054 = vmatpush3.msra.mxu1 %v15284_v5 }
0x6509   :  { %18055 = vmatprep.subr.mxu1 %v15282_v54 }
0x650a   :  { %18056 = vmatpush3.msra.mxu1 %v15282_v54 }
0x650b   :  { %18060 = vmatprep.subr.msk.mxu1 %vm5831_vm5, %v15368_v38 }
0x650e   :  { %v18555_v60 = vpop.eup %18554 }
0x650f   :  { %v15280_v31 = vmul.f32 %v18555_v60, %v18551_v29 }
0x6510   :  { %v18557_v61 = vpop.eup %18556 }
0x6511   :  { %v15279_v37 = vmul.f32 %v18557_v61, %v18553_v49 }
0x6513   :  { %18057 = vmatprep.mubr.msk.f32.mxu1 %vm238_vm2, %v15279_v37 }
0x6514   :  { %18058 = vmatmul.mubr.msk.f32.vlgmr.msra.gmra.mxu1 %vm238_vm2, %v15280_v31 }
0x6515   :  { %18061 = vmatpush3.msk.msra.mxu1 %vm5831_vm5, %v15368_v38 }
0x6516   :  { %18076 = vmatprep.subr.mxu1 %v15622_v44 }
0x65bc   :  { %v18045_v46 = vpop.f32.mrf.mxu1 }
0x65bd   :  { %v15167_v0 = vadd.f32 %v18045_v46, %v14881_v28  ;;  %v15621_v28 = vld [vmem:[%s21141_s3 + $0x1f0] sm:$0xff] }
0x65be   :  { %v15157_v41 = vpop.f32.mrf.mxu1 }
0x65bf   :  { %v15166_v23 = vadd.f32 %v15157_v41, %v14880_v58  ;;  %v15617_v41 = vld [vmem:[%s21141_s3 + $0x1d0] sm:$0xff] }
0x65d4   :  { %v18059_v30 = vpop.f32.mrf.mxu1 }
0x65d6   :  { %v15359_v10 = vpop.f32.mrf.mxu1 }
0x65d7   :  { %18062 = vmatprep.mubr.msk.f32.mxu1 %vm5430_vm4, %v15359_v10  ;;  %v15527_v10 = vld [vmem:[%s21139_s4 + $0x42] ss:$0 sm:$0xff] }
0x65d8   :  { %18063 = vmatmul.mubr.msk.f32.vlgmr.msra.gmra.mxu1 %vm5430_vm4, %v18059_v30  ;;  %v15615_v30 = vld [vmem:[%s21141_s3 + $0x1c0] sm:$0xff] }
0x65d9   :  { %18077 = vmatpush3.msra.mxu1 %v15622_v44 }
0x65da   :  { %18078 = vmatprep.subr.mxu1 %v15621_v28 }
0x65db   :  { %18079 = vmatpush3.msra.mxu1 %v15621_v28 }
0x65dc   :  { %18080 = vmatprep.subr.mxu1 %v15620_v20 }
0x65dd   :  { %18081 = vmatpush3.msra.mxu1 %v15620_v20 }
0x65de   :  { %18082 = vmatprep.subr.mxu1 %v15619_v51 }
0x65df   :  { %18083 = vmatpush3.msra.mxu1 %v15619_v51 }
0x6698   :  { %v18064_v7 = vpop.f32.mrf.mxu1 }
0x6699   :  { %v15453_v1 = vadd.f32 %v18064_v7, %v15167_v0  ;;  %v15618_v0 = vld [vmem:[%s21141_s3 + $0x1d8] sm:$0xff] }
0x669a   :  { %v15443_v2 = vpop.f32.mrf.mxu1  ;;  %18084 = vmatprep.subr.mxu1 %v15618_v0 }
0x669b   :  { %v15456_v4 = vadd.f32 %v15454_v63, %v15453_v1  ;;  %v15452_v57 = vadd.f32 %v15443_v2, %v15166_v23  ;;  %18085 = vmatpush3.msra.mxu1 %v15618_v0  ;;  %v15616_v23 = vld [vmem:[%s21141_s3 + $0x1c8] sm:$0xff] }
0x669c   :  { %18086 = vmatprep.subr.mxu1 %v15617_v41 }
0x669d   :  { %v15455_v39 = vadd.f32 %v15454_v63, %v15452_v57  ;;  %15461 = vrot.lane.b32.xlu0 %v15456_v4, %s18583_s6  ;;  %18087 = vmatpush3.msra.mxu1 %v15617_v41 }
0x669e   :  { %18088 = vmatprep.subr.mxu1 %v15616_v23 }
0x669f   :  { %15459 = vrot.lane.b32.xlu1 %v15455_v39, %s18583_s6  ;;  %18089 = vmatpush3.msra.mxu1 %v15616_v23  ;;  %v15623_v39 = vld [vmem:[%s21139_s4 + $0x43] ss:$0 sm:$0xff] }
0x66a0   :  { %18090 = vmatprep.subr.mxu1 %v15615_v30 }
0x66a1   :  { %18091 = vmatpush3.msra.mxu1 %v15615_v30 }
0x670f   :  { %v15462_v62 = vpop.permute.xlu0 %15461 }
0x6710   :  { %v15466_v6 = vadd.f32 %v15462_v62, %v20706_v53 }
0x6711   :  { %v15460_v52 = vpop.permute.xlu1 %15459 }
0x6712   :  { %v15465_v47 = vadd.f32 %v15460_v52, %v20708_v36  ;;  %15473 = vrot.lane.b32.xlu0 %v15466_v6, %s18583_s6 }
0x6714   :  { %15471 = vrot.lane.b32.xlu1 %v15465_v47, %s18583_s6 }
0x6784   :  { %v15474_v45 = vpop.permute.xlu0 %15473 }
0x6785   :  { %v15480_v8 = vsel %vm5340_vm3, %v15474_v45, 0.0 }
0x6786   :  { %15481 = vadd.xlane.f32.xlu0 %v15480_v8  ;;  %v15472_v12 = vpop.permute.xlu1 %15471 }
0x6787   :  { %v15477_v13 = vsel %vm5340_vm3, %v15472_v12, 0.0 }
0x6788   :  { %15478 = vadd.xlane.f32.xlu1 %v15477_v13 }
0x680f   :  { %v15482_v14 = vpop.xlane.xlu0 %15481 }
0x6810   :  { %v15484_v15 = vmul.f32 0.03125, %v15482_v14 }
0x6811   :  { %v15479_v33 = vpop.xlane.xlu1 %15478 }
0x6812   :  { %v15486_v56 = vsub.f32 %v15466_v6, %v15484_v15  ;;  %v15483_v53 = vmul.f32 0.03125, %v15479_v33 }
0x6814   :  { %v15488_v19 = vmul.f32 %v15486_v56, %v15486_v56  ;;  %v15485_v59 = vsub.f32 %v15465_v47, %v15483_v53 }
0x6816   :  { %v15487_v36 = vmul.f32 %v15485_v59, %v15485_v59  ;;  %15493 = vrot.lane.b32.xlu1 %v15488_v19, %s18583_s6 }
0x6818   :  { %15491 = vrot.lane.b32.xlu0 %v15487_v36, %s18583_s6 }
0x6888   :  { %v15494_v24 = vpop.permute.xlu1 %15493 }
0x6889   :  { %v15500_v48 = vsel %vm5340_vm3, %v15494_v24, 0.0 }
0x688a   :  { %v15492_v25 = vpop.permute.xlu0 %15491  ;;  %15501 = vadd.xlane.f32.xlu0 %v15500_v48 }
0x688b   :  { %v15497_v26 = vsel %vm5340_vm3, %v15492_v25, 0.0 }
0x688c   :  { %15498 = vadd.xlane.f32.xlu1 %v15497_v26 }
0x689d   :  { %15518 = vrot.lane.b32.xlu1 %v15468_v55, %s18583_s6 }
0x68a0   :  { %15512 = vrot.lane.b32.xlu0 %v15467_v34, %s18583_s6 }
0x6913   :  { %v15502_v22 = vpop.xlane.xlu0 %15501 }
0x6914   :  { %v15504_v18 = vmul.f32 0.03125, %v15502_v22  ;;  %v15715_v22 = vld [vmem:[%s21139_s4 + $0x50] ss:$0 sm:$0xff] }
0x6915   :  { %v15499_v29 = vpop.xlane.xlu1 %15498 }
0x6916   :  { %v15506_v50 = vadd.f32 1e-05, %v15504_v18  ;;  %v15503_v49 = vmul.f32 0.03125, %v15499_v29  ;;  %v15774_v18 = vld [vmem:[%s21141_s3 + $0x218] sm:$0xff]  ;;  %v15773_v29 = vld [vmem:[%s21141_s3 + $0x210] sm:$0xff] }
0x6917   :  { %v15513_v42 = vpop.permute.xlu0 %15512  ;;  %18095 = vmatprep.subr.mxu0 %v15774_v18 }
0x6918   :  { %18558 = vrsqrt.f32 %v15506_v50  ;;  %v15505_v9 = vadd.f32 1e-05, %v15503_v49  ;;  %v15772_v50 = vld [vmem:[%s21141_s3 + $0x208] sm:$0xff] }
0x6919   :  { %v15519_v38 = vpop.permute.xlu1 %15518 }
0x691a   :  { %18560 = vrsqrt.f32 %v15505_v9 }
0x6925   :  { %v18559_v43 = vpop.eup %18558 }
0x6926   :  { %v15510_v40 = vmul.f32 %v18559_v43, %v15486_v56  ;;  %v15771_v43 = vld [vmem:[%s21141_s3 + $0x200] sm:$0xff] }
0x6927   :  { %v18561_v5 = vpop.eup %18560 }
0x6928   :  { %v15509_v54 = vmul.f32 %v18561_v5, %v15485_v59  ;;  %v15516_v60 = vmul.f32 %v15513_v42, %v15510_v40 }
0x692a   :  { %v15515_v61 = vmul.f32 %v15513_v42, %v15509_v54  ;;  %v15522_v37 = vadd.f32 %v15519_v38, %v15516_v60 }
0x692c   :  { %v15521_v31 = vadd.f32 %v15519_v38, %v15515_v61  ;;  %15532 = vrot.lane.b32.xlu0 %v15522_v37, %s18583_s6 }
0x692e   :  { %15530 = vrot.lane.b32.xlu1 %v15521_v31, %s18583_s6 }
0x699e   :  { %v15533_v58 = vpop.permute.xlu0 %15532 }
0x69a0   :  { %v15531_v46 = vpop.permute.xlu1 %15530 }
0x69a1   :  { %18073 = vmatprep.mubr.msk.f32.mxu0 %vm5340_vm3, %v15531_v46 }
0x69a2   :  { %18074 = vmatmul.mubr.msk.f32.vlgmr.msra.gmra.mxu0 %vm5340_vm3, %v15533_v58 }
0x69a3   :  { %18096 = vmatpush3.msra.mxu0 %v15774_v18 }
0x69a4   :  { %18097 = vmatprep.subr.mxu0 %v15773_v29 }
0x69a5   :  { %18098 = vmatpush3.msra.mxu0 %v15773_v29 }
0x69a6   :  { %18099 = vmatprep.subr.mxu0 %v15772_v50 }
0x69a7   :  { %18100 = vmatpush3.msra.mxu0 %v15772_v50 }
0x69a8   :  { %18101 = vmatprep.subr.mxu0 %v15771_v43 }
0x69a9   :  { %18102 = vmatpush3.msra.mxu0 %v15771_v43 }
0x6a62   :  { %v18075_v7 = vpop.f32.mrf.mxu0 }
0x6a63   :  { %v15610_v63 = vadd.f32 %v18075_v7, %v15527_v10 }
0x6a64   :  { %v15604_v1 = vpop.f32.mrf.mxu0 }
0x6a65   :  { %v15605_v2 = vadd.f32 %v15604_v1, %v15527_v10  ;;  %v15614_v57 = vmax.f32 %v15610_v63, 0.0 }
0x6a67   :  { %v15613_v4 = vmax.f32 %v15605_v2, 0.0 }
0x6a69   :  { %18092 = vmatprep.mubr.msk.f32.mxu1 %vm56_vm0, %v15613_v4 }
0x6a6a   :  { %18093 = vmatmul.mubr.msk.f32.vlgmr.msra.gmra.mxu1 %vm56_vm0, %v15614_v57 }
0x6b2a   :  { %v18094_v62 = vpop.f32.mrf.mxu1 }
0x6b2b   :  { %v15702_v6 = vadd.f32 %v18094_v62, %v15623_v39 }
0x6b2c   :  { %v15696_v52 = vpop.f32.mrf.mxu1 }
0x6b2d   :  { %v15697_v47 = vadd.f32 %v15696_v52, %v15623_v39  ;;  %15709 = vrot.lane.b32.xlu0 %v15702_v6, %s18583_s6 }
0x6b2f   :  { %15707 = vrot.lane.b32.xlu1 %v15697_v47, %s18583_s6 }
0x6b9f   :  { %v15710_v45 = vpop.permute.xlu0 %15709 }
0x6ba0   :  { %v15714_v8 = vadd.f32 %v15710_v45, %v15522_v37 }
0x6ba1   :  { %v15708_v12 = vpop.permute.xlu1 %15707 }
0x6ba2   :  { %v15713_v13 = vadd.f32 %v15708_v12, %v15521_v31  ;;  %15721 = vrot.lane.b32.xlu0 %v15714_v8, %s18583_s6 }
0x6ba4   :  { %15719 = vrot.lane.b32.xlu1 %v15713_v13, %s18583_s6 }
0x6c14   :  { %v15722_v14 = vpop.permute.xlu0 %15721 }
0x6c15   :  { %v15728_v15 = vsel %vm5340_vm3, %v15722_v14, 0.0 }
0x6c16   :  { %15729 = vadd.xlane.f32.xlu0 %v15728_v15  ;;  %v15720_v33 = vpop.permute.xlu1 %15719 }
0x6c17   :  { %v15725_v56 = vsel %vm5340_vm3, %v15720_v33, 0.0 }
0x6c18   :  { %15726 = vadd.xlane.f32.xlu1 %v15725_v56 }
0x6c9f   :  { %v15730_v53 = vpop.xlane.xlu0 %15729 }
0x6ca0   :  { %v15732_v19 = vmul.f32 0.03125, %v15730_v53 }
0x6ca1   :  { %v15727_v59 = vpop.xlane.xlu1 %15726 }
0x6ca2   :  { %v15734_v36 = vsub.f32 %v15714_v8, %v15732_v19  ;;  %v15731_v24 = vmul.f32 0.03125, %v15727_v59 }
0x6ca4   :  { %v15736_v48 = vmul.f32 %v15734_v36, %v15734_v36  ;;  %v15733_v25 = vsub.f32 %v15713_v13, %v15731_v24 }
0x6ca6   :  { %v15735_v26 = vmul.f32 %v15733_v25, %v15733_v25  ;;  %15741 = vrot.lane.b32.xlu1 %v15736_v48, %s18583_s6 }
0x6ca8   :  { %15739 = vrot.lane.b32.xlu0 %v15735_v26, %s18583_s6 }
0x6d18   :  { %v15742_v55 = vpop.permute.xlu1 %15741 }
0x6d19   :  { %v15748_v34 = vsel %vm5340_vm3, %v15742_v55, 0.0 }
0x6d1a   :  { %v15740_v11 = vpop.permute.xlu0 %15739  ;;  %15749 = vadd.xlane.f32.xlu0 %v15748_v34 }
0x6d1b   :  { %v15745_v27 = vsel %vm5340_vm3, %v15740_v11, 0.0 }
0x6d1c   :  { %15746 = vadd.xlane.f32.xlu1 %v15745_v27 }
0x6d2d   :  { %15766 = vrot.lane.b32.xlu1 %v15716_v32, %s18583_s6 }
0x6d30   :  { %15760 = vrot.lane.b32.xlu0 %v15715_v22, %s18583_s6 }
0x6da3   :  { %v15750_v49 = vpop.xlane.xlu0 %15749 }
0x6da4   :  { %v15752_v9 = vmul.f32 0.03125, %v15750_v49 }
0x6da5   :  { %v15747_v17 = vpop.xlane.xlu1 %15746 }
0x6da6   :  { %v15754_v44 = vadd.f32 1e-05, %v15752_v9  ;;  %v15751_v28 = vmul.f32 0.03125, %v15747_v17 }
0x6da7   :  { %v15761_v40 = vpop.permute.xlu0 %15760 }
0x6da8   :  { %18562 = vrsqrt.f32 %v15754_v44  ;;  %v15753_v20 = vadd.f32 1e-05, %v15751_v28 }
0x6da9   :  { %v15767_v38 = vpop.permute.xlu1 %15766 }
0x6daa   :  { %18564 = vrsqrt.f32 %v15753_v20 }
0x6dab   :  { %18566 = vlog2.f32 %v19886_v21 }
0x6dac   :  { %18568 = vlog2.f32 %v19891_v16 }
0x6db5   :  { %v18563_v42 = vpop.eup %18562 }
0x6db6   :  { %v15758_v51 = vmul.f32 %v18563_v42, %v15734_v36 }
0x6db7   :  { %v18565_v5 = vpop.eup %18564 }
0x6db8   :  { %v15757_v54 = vmul.f32 %v18565_v5, %v15733_v25  ;;  %v15764_v60 = vmul.f32 %v15761_v40, %v15758_v51  ;;  %v18567_v31 = vpop.eup %18566 }
0x6db9   :  { %v18569_v21 = vpop.eup %18568  ;;  %v5328_v58 = vmul.f32 0.6931472, %v18567_v31 }
0x6dba   :  { %v15763_v61 = vmul.f32 %v15761_v40, %v15757_v54  ;;  %v15770_v37 = vadd.f32 %v15767_v38, %v15764_v60  ;;  %v5326_v16 = vmul.f32 0.6931472, %v18569_v21 }
0x6dbb   :  { %v5330_v0 = vmul.f32 2.0, %v5328_v58 }
0x6dbc   :  { %v15769_v46 = vadd.f32 %v15767_v38, %v15763_v61  ;;  %15779 = vrot.lane.b32.xlu0 %v15770_v37, %s18583_s6  ;;  %v5329_v41 = vmul.f32 2.0, %v5326_v16 }
0x6dbe   :  { %15777 = vrot.lane.b32.xlu1 %v15769_v46, %s18583_s6 }
0x6dc0   :  { %15866 = vrot.lane.b32.xlu0 %v19878_v3, %s18583_s6 }
0x6dc2   :  { %15864 = vrot.lane.b32.xlu1 %v19881_v35, %s18583_s6 }
0x6dc4   :  { %15877 = vrot.lane.b32.xlu0 %v5330_v0, %s18583_s6 }
0x6dc6   :  { %15875 = vrot.lane.b32.xlu1 %v5329_v41, %s18583_s6 }
0x6e2e   :  { %v15780_v30 = vpop.permute.xlu0 %15779 }
0x6e30   :  { %v15778_v23 = vpop.permute.xlu1 %15777 }
0x6e31   :  { %18103 = vmatprep.mubr.msk.f32.mxu0 %vm5340_vm3, %v15778_v23 }
0x6e32   :  { %18104 = vmatmul.mubr.msk.f32.vlgmr.msra.gmra.mxu0 %vm5340_vm3, %v15780_v30  ;;  %v15867_v10 = vpop.permute.xlu0 %15866 }
0x6e34   :  { %v15865_v7 = vpop.permute.xlu1 %15864 }
0x6e36   :  { %v15878_v35 = vpop.permute.xlu0 %15877 }
0x6e38   :  { %v15876_v1 = vpop.permute.xlu1 %15875 }
0x6ef2   :  { %v18105_v3 = vpop.f32.mrf.mxu0 }
0x6ef3   :  { %15861 = vst.msk [vmem:[%s21142_s5 + $0x8] sm:$0xff] %vm56_vm0, %v18105_v3 }
0x6ef4   :  { %15872 = vst.msk [vmem:[%s21142_s5 + $0x8] sm:$0xff] %vm15870_vm6, %v15867_v10  ;;  %v15851_v63 = vpop.f32.mrf.mxu0 }
0x6ef5   :  { %15883 = vst.msk [vmem:[%s21142_s5 + $0x8] sm:$0xff] %vm15881_vm7, %v15878_v35 }
0x6ef6   :  { %15860 = vst.msk [vmem:[%s21142_s5] sm:$0xff] %vm56_vm0, %v15851_v63 }
0x6ef7   :  { %15871 = vst.msk [vmem:[%s21142_s5] sm:$0xff] %vm15870_vm6, %v15865_v7 }
0x6ef8   :  { %15882 = vst.msk [vmem:[%s21142_s5] sm:$0xff] %vm15881_vm7, %v15876_v1 }

</bundles_post_ra>
